<compile_context>
chip_gen: v7x
topology: tpu7x:2x2x1
jax: 0.10.0
libtpu: 0.0.40
codegen_flags: <defaults>
</compile_context>

<pallas_src>
import jax
import jax.numpy as jnp
from jax import lax
from jax.experimental import pallas as pl
from jax.experimental.pallas import tpu as pltpu


def _round_up(x, m):
    return ((x + m - 1) // m) * m


def precompute_freqs_cis(dim, end, theta=10000.0):
    """Mirrors f5_tts precompute_freqs_cis: concat(cos, sin) of t * theta^(-2i/dim)."""
    freqs = 1.0 / (theta ** (jnp.arange(0, dim, 2)[: dim // 2].astype(jnp.float32) / dim))
    t = jnp.arange(end, dtype=jnp.float32)
    ang = jnp.outer(t, freqs)
    return jnp.concatenate([jnp.cos(ang), jnp.sin(ang)], axis=-1)   # (end, dim)


def _make_kernel(vocab, needs_clamp, max_pos, use_onehot_matmul):
    def kernel(ids_ref, emb_ref, frq_ref, o_ref):
        # ids_ref : VMEM (1, TN, 1) int32  -- token ids (already "+1"/dropped), seq on sublanes
        # emb_ref : VMEM (Vp, D)   f32     -- embedding table, resident (constant block index)
        # frq_ref : VMEM (TN, D)   f32     -- positional tile (index_map-clamped when needed)
        # o_ref   : VMEM (1, TN, D) f32
        tn, d = o_ref.shape[1], o_ref.shape[2]
        ids_col = ids_ref[0]                                   # (TN, 1) int32

        # ---- positional embedding tile ----
        pos = frq_ref[...]                                     # (TN, D)
        if needs_clamp:
            # max_pos % TN == 0  =>  a tile is either fully in range or fully clamped.
            # Clamped tiles fetch the LAST frq tile (see index_map) and broadcast its
            # last row, i.e. position max_pos - 1 (torch: min(arange, max_pos - 1)).
            base = pl.program_id(1) * tn
            last_row = jnp.broadcast_to(pos[tn - 1:tn, :], (tn, d))
            pos = jnp.where(base < max_pos, pos, last_row)

        # ---- vectorized token-embedding lookup ----
        if use_onehot_matmul:
            # one-hot MXU matmul (for large vocabs); 0/1 one-hot in f32 with HIGHEST
            # precision keeps the lookup exact vs. the f32 reference.
            vp = emb_ref.shape[0]
            onehot = (ids_col == lax.broadcasted_iota(jnp.int32, (tn, vp), 1)
                      ).astype(jnp.float32)                    # (TN, Vp)
            emb = jnp.dot(onehot, emb_ref[...],
                          preferred_element_type=jnp.float32,
                          precision=jax.lax.Precision.HIGHEST)
        else:
            # small vocab: static sweep of vector selects on the VPU (exact f32).
            emb = jnp.zeros((tn, d), jnp.float32)
            for v in range(vocab):
                row = emb_ref[v:v + 1, :]                      # (1, D), static slice
                emb = jnp.where(ids_col == v, row, emb)

        # single fused store: lookup + positional add (one write per tile, no RMW)
        o_ref[0] = (emb + pos).astype(o_ref.dtype)

    return kernel


def text_embedding(text, text_embed_table, freqs_cis, drop_text=False,
                   tile_n=256, use_onehot_matmul=False):
    """Pallas forward of TextEmbedding.

    text:             (B, NT) int32 token ids in [-1, text_num_embeds - 1]
    text_embed_table: (text_num_embeds + 1, D) float
    freqs_cis:        (MAX_POS, D) float  (D should be a multiple of 128 for
                      lane-dense stores; any D is still correct)
    """
    B, NT = text.shape
    V, D = text_embed_table.shape
    MAX_POS = freqs_cis.shape[0]

    # --- sequence tile: multiple of 128 sublanes, not wastefully larger than NT ---
    TN = _round_up(max(1, min(int(tile_n), NT)), 128)
    NT_pad = _round_up(NT, TN)
    n_tiles = NT_pad // TN

    # --- position clamp handling ---
    frq = freqs_cis.astype(jnp.float32)
    max_pos = MAX_POS
    needs_clamp = NT_pad > max_pos
    if needs_clamp and max_pos % TN != 0:
        # Rare fallback (max_pos not tile-aligned, e.g. < 128): extend the table once
        # with the clamped last row so every fetched tile is uniform; no in-kernel clamp.
        frq = jnp.concatenate(
            [frq, jnp.broadcast_to(frq[-1:], (NT_pad - max_pos, D))], axis=0)
        max_pos = NT_pad
        needs_clamp = False

    # --- token ids: +1 / drop (static flag), pad to whole tiles, seq dim on sublanes ---
    ids = jnp.zeros_like(text) if drop_text else text + 1
    ids = ids.astype(jnp.int32)
    if NT_pad != NT:
        ids = jnp.pad(ids, ((0, 0), (0, NT_pad - NT)))          # pad id 0 (valid row)
    ids = ids.reshape(B, NT_pad, 1)

    # --- embedding table: pad rows (never selected) for friendly layout / MXU K-dim ---
    Vp = _round_up(V, 128 if use_onehot_matmul else 8)
    emb = text_embed_table.astype(jnp.float32)
    if Vp != V:
        emb = jnp.pad(emb, ((0, Vp - V), (0, 0)))

    if needs_clamp:
        last_blk = max_pos // TN - 1
        frq_map = lambda b, t: (jnp.minimum(t, last_blk), 0)
    else:
        frq_map = lambda b, t: (t, 0)

    grid_spec = pltpu.PrefetchScalarGridSpec(
        num_scalar_prefetch=0,
        grid=(B, n_tiles),
        in_specs=[
            pl.BlockSpec((1, TN, 1), lambda b, t: (b, t, 0)),    # token ids tile
            pl.BlockSpec((Vp, D), lambda b, t: (0, 0)),          # table (VMEM-resident)
            pl.BlockSpec((TN, D), frq_map),                      # positional tile
        ],
        out_specs=pl.BlockSpec((1, TN, D), lambda b, t: (b, t, 0)),
    )

    # Output is emitted as (B, NT, D) directly: Pallas masks the ragged last block's
    # writeback, so there is no post-pallas slice copy through HBM.
    return pl.pallas_call(
        _make_kernel(V, needs_clamp, max_pos, use_onehot_matmul),
        out_shape=jax.ShapeDtypeStruct((B, NT, D), jnp.float32),
        grid_spec=grid_spec,
        compiler_params=pltpu.CompilerParams(
            dimension_semantics=("parallel", "parallel")),
    )(ids, emb, frq)


def reference(text, text_embed_table, freqs_cis, drop_text=False):
    """Pure-JAX reference mirroring the PyTorch forward exactly."""
    ids = jnp.zeros_like(text) if drop_text else text + 1
    emb = text_embed_table[ids]                                  # (B, NT, D)
    NT = text.shape[1]
    pos = jnp.minimum(jnp.arange(NT), freqs_cis.shape[0] - 1)
    return emb + freqs_cis[pos][None]


if __name__ == "__main__":
    B, NT = 2, 40
    TEXT_NUM_EMBEDS = 32          # module allocates text_num_embeds + 1 rows
    D = 128                       # out_dim: multiple of 128 -> lane-dense stores
    MAX_POS = 1024

    key = jax.random.PRNGKey(0)
    k_tok, k_emb, k_tok2 = jax.random.split(key, 3)
    text = jax.random.randint(k_tok, (B, NT), -1, TEXT_NUM_EMBEDS, dtype=jnp.int32)
    table = jax.random.normal(k_emb, (TEXT_NUM_EMBEDS + 1, D), jnp.float32)
    freqs = precompute_freqs_cis(D, MAX_POS)

    # standard path (single ragged tile: NT=40 inside one TN=128 block)
    out = jax.block_until_ready(text_embedding(text, table, freqs, drop_text=False))
    ref = reference(text, table, freqs, drop_text=False)
    assert out.shape == (B, NT, D)
    assert jnp.allclose(out, ref, atol=1e-5, rtol=1e-5), float(jnp.max(jnp.abs(out - ref)))

    # drop_text path
    out_d = jax.block_until_ready(text_embedding(text, table, freqs, drop_text=True))
    ref_d = reference(text, table, freqs, drop_text=True)
    assert jnp.allclose(out_d, ref_d, atol=1e-5, rtol=1e-5)

    # long sequence, in-kernel position clamp (max_pos % TN == 0) + ragged last tile
    NT_long = 300
    text_long = jax.random.randint(k_tok2, (B, NT_long), -1, TEXT_NUM_EMBEDS,
                                   dtype=jnp.int32)
    freqs_small = precompute_freqs_cis(D, 128)
    out_c = jax.block_until_ready(text_embedding(text_long, table, freqs_small,
                                                 tile_n=128))
    ref_c = reference(text_long, table, freqs_small)
    assert out_c.shape == (B, NT_long, D)
    assert jnp.allclose(out_c, ref_c, atol=1e-5, rtol=1e-5)

    # clamp fallback path: max_pos not tile-aligned -> wrapper extends the table once
    freqs_odd = precompute_freqs_cis(D, 200)
    out_f = jax.block_until_ready(text_embedding(text_long, table, freqs_odd,
                                                 tile_n=128))
    ref_f = reference(text_long, table, freqs_odd)
    assert jnp.allclose(out_f, ref_f, atol=1e-5, rtol=1e-5)

    print("KERNEL_OK")
</pallas_src>

<mosaic_0001>
module attributes {stable_mosaic.version = 11 : i64} {
  func.func @kernel(%arg0: i32, %arg1: i32, %arg2: memref<1x128x1xi32, #tpu.memory_space<vmem>>, %arg3: memref<40x128xf32, #tpu.memory_space<vmem>>, %arg4: memref<128x128xf32, #tpu.memory_space<vmem>>, %arg5: memref<1x128x128xf32, #tpu.memory_space<vmem>>) attributes {dimension_semantics = [#tpu.dimension_semantics<parallel>, #tpu.dimension_semantics<parallel>], iteration_bounds = array<i64: 2, 1>, scalar_prefetch = 0 : i64, scratch_operands = 0 : i64, tpu.core_type = #tpu.core_type<tc>, window_params = [{transform_indices = @transform_0, window_bounds = array<i64: 1, 128, 1>}, {pipeline_mode = #tpu.pipeline_mode<synchronous>, transform_indices = @transform_1, window_bounds = array<i64: 40, 128>}, {transform_indices = @transform_2, window_bounds = array<i64: 128, 128>}, {transform_indices = @transform_3, window_bounds = array<i64: 1, 128, 128>}]} {
    %c0 = arith.constant 0 : index
    %c0_0 = arith.constant 0 : index
    %c0_1 = arith.constant 0 : index
    %0 = vector.load %arg2[%c0, %c0_0, %c0_1] : memref<1x128x1xi32, #tpu.memory_space<vmem>>, vector<1x128x1xi32>
    %1 = vector.shape_cast %0 : vector<1x128x1xi32> to vector<128x1xi32>
    %c0_2 = arith.constant 0 : index
    %c0_3 = arith.constant 0 : index
    %2 = vector.load %arg4[%c0_2, %c0_3] : memref<128x128xf32, #tpu.memory_space<vmem>>, vector<128x128xf32>
    %cst = arith.constant 0.000000e+00 : f32
    %3 = vector.broadcast %cst : f32 to vector<128x128xf32>
    %c0_4 = arith.constant 0 : index
    %c0_5 = arith.constant 0 : index
    %4 = vector.load %arg3[%c0_4, %c0_5] : memref<40x128xf32, #tpu.memory_space<vmem>>, vector<1x128xf32>
    %c0_i32 = arith.constant 0 : i32
    %5 = vector.broadcast %c0_i32 : i32 to vector<128x1xi32>
    %6 = arith.cmpi eq, %1, %5 : vector<128x1xi32>
    %7 = vector.shape_cast %6 : vector<128x1xi1> to vector<128x1xi1>
    %8 = vector.broadcast %7 : vector<128x1xi1> to vector<128x128xi1>
    %9 = vector.shape_cast %4 : vector<1x128xf32> to vector<1x128xf32>
    %10 = vector.broadcast %9 : vector<1x128xf32> to vector<128x128xf32>
    %11 = arith.select %8, %10, %3 : vector<128x128xi1>, vector<128x128xf32>
    %c1 = arith.constant 1 : index
    %c0_6 = arith.constant 0 : index
    %12 = vector.load %arg3[%c1, %c0_6] : memref<40x128xf32, #tpu.memory_space<vmem>>, vector<1x128xf32>
    %c1_i32 = arith.constant 1 : i32
    %13 = vector.broadcast %c1_i32 : i32 to vector<128x1xi32>
    %14 = arith.cmpi eq, %1, %13 : vector<128x1xi32>
    %15 = vector.shape_cast %14 : vector<128x1xi1> to vector<128x1xi1>
    %16 = vector.broadcast %15 : vector<128x1xi1> to vector<128x128xi1>
    %17 = vector.shape_cast %12 : vector<1x128xf32> to vector<1x128xf32>
    %18 = vector.broadcast %17 : vector<1x128xf32> to vector<128x128xf32>
    %19 = arith.select %16, %18, %11 : vector<128x128xi1>, vector<128x128xf32>
    %c2 = arith.constant 2 : index
    %c0_7 = arith.constant 0 : index
    %20 = vector.load %arg3[%c2, %c0_7] : memref<40x128xf32, #tpu.memory_space<vmem>>, vector<1x128xf32>
    %c2_i32 = arith.constant 2 : i32
    %21 = vector.broadcast %c2_i32 : i32 to vector<128x1xi32>
    %22 = arith.cmpi eq, %1, %21 : vector<128x1xi32>
    %23 = vector.shape_cast %22 : vector<128x1xi1> to vector<128x1xi1>
    %24 = vector.broadcast %23 : vector<128x1xi1> to vector<128x128xi1>
    %25 = vector.shape_cast %20 : vector<1x128xf32> to vector<1x128xf32>
    %26 = vector.broadcast %25 : vector<1x128xf32> to vector<128x128xf32>
    %27 = arith.select %24, %26, %19 : vector<128x128xi1>, vector<128x128xf32>
    %c3 = arith.constant 3 : index
    %c0_8 = arith.constant 0 : index
    %28 = vector.load %arg3[%c3, %c0_8] : memref<40x128xf32, #tpu.memory_space<vmem>>, vector<1x128xf32>
    %c3_i32 = arith.constant 3 : i32
    %29 = vector.broadcast %c3_i32 : i32 to vector<128x1xi32>
    %30 = arith.cmpi eq, %1, %29 : vector<128x1xi32>
    %31 = vector.shape_cast %30 : vector<128x1xi1> to vector<128x1xi1>
    %32 = vector.broadcast %31 : vector<128x1xi1> to vector<128x128xi1>
    %33 = vector.shape_cast %28 : vector<1x128xf32> to vector<1x128xf32>
    %34 = vector.broadcast %33 : vector<1x128xf32> to vector<128x128xf32>
    %35 = arith.select %32, %34, %27 : vector<128x128xi1>, vector<128x128xf32>
    %c4 = arith.constant 4 : index
    %c0_9 = arith.constant 0 : index
    %36 = vector.load %arg3[%c4, %c0_9] : memref<40x128xf32, #tpu.memory_space<vmem>>, vector<1x128xf32>
    %c4_i32 = arith.constant 4 : i32
    %37 = vector.broadcast %c4_i32 : i32 to vector<128x1xi32>
    %38 = arith.cmpi eq, %1, %37 : vector<128x1xi32>
    %39 = vector.shape_cast %38 : vector<128x1xi1> to vector<128x1xi1>
    %40 = vector.broadcast %39 : vector<128x1xi1> to vector<128x128xi1>
    %41 = vector.shape_cast %36 : vector<1x128xf32> to vector<1x128xf32>
    %42 = vector.broadcast %41 : vector<1x128xf32> to vector<128x128xf32>
    %43 = arith.select %40, %42, %35 : vector<128x128xi1>, vector<128x128xf32>
    %c5 = arith.constant 5 : index
    %c0_10 = arith.constant 0 : index
    %44 = vector.load %arg3[%c5, %c0_10] : memref<40x128xf32, #tpu.memory_space<vmem>>, vector<1x128xf32>
    %c5_i32 = arith.constant 5 : i32
    %45 = vector.broadcast %c5_i32 : i32 to vector<128x1xi32>
    %46 = arith.cmpi eq, %1, %45 : vector<128x1xi32>
    %47 = vector.shape_cast %46 : vector<128x1xi1> to vector<128x1xi1>
    %48 = vector.broadcast %47 : vector<128x1xi1> to vector<128x128xi1>
    %49 = vector.shape_cast %44 : vector<1x128xf32> to vector<1x128xf32>
    %50 = vector.broadcast %49 : vector<1x128xf32> to vector<128x128xf32>
    %51 = arith.select %48, %50, %43 : vector<128x128xi1>, vector<128x128xf32>
    %c6 = arith.constant 6 : index
    %c0_11 = arith.constant 0 : index
    %52 = vector.load %arg3[%c6, %c0_11] : memref<40x128xf32, #tpu.memory_space<vmem>>, vector<1x128xf32>
    %c6_i32 = arith.constant 6 : i32
    %53 = vector.broadcast %c6_i32 : i32 to vector<128x1xi32>
    %54 = arith.cmpi eq, %1, %53 : vector<128x1xi32>
    %55 = vector.shape_cast %54 : vector<128x1xi1> to vector<128x1xi1>
    %56 = vector.broadcast %55 : vector<128x1xi1> to vector<128x128xi1>
    %57 = vector.shape_cast %52 : vector<1x128xf32> to vector<1x128xf32>
    %58 = vector.broadcast %57 : vector<1x128xf32> to vector<128x128xf32>
    %59 = arith.select %56, %58, %51 : vector<128x128xi1>, vector<128x128xf32>
    %c7 = arith.constant 7 : index
    %c0_12 = arith.constant 0 : index
    %60 = vector.load %arg3[%c7, %c0_12] : memref<40x128xf32, #tpu.memory_space<vmem>>, vector<1x128xf32>
    %c7_i32 = arith.constant 7 : i32
    %61 = vector.broadcast %c7_i32 : i32 to vector<128x1xi32>
    %62 = arith.cmpi eq, %1, %61 : vector<128x1xi32>
    %63 = vector.shape_cast %62 : vector<128x1xi1> to vector<128x1xi1>
    %64 = vector.broadcast %63 : vector<128x1xi1> to vector<128x128xi1>
    %65 = vector.shape_cast %60 : vector<1x128xf32> to vector<1x128xf32>
    %66 = vector.broadcast %65 : vector<1x128xf32> to vector<128x128xf32>
    %67 = arith.select %64, %66, %59 : vector<128x128xi1>, vector<128x128xf32>
    %c8 = arith.constant 8 : index
    %c0_13 = arith.constant 0 : index
    %68 = vector.load %arg3[%c8, %c0_13] : memref<40x128xf32, #tpu.memory_space<vmem>>, vector<1x128xf32>
    %c8_i32 = arith.constant 8 : i32
    %69 = vector.broadcast %c8_i32 : i32 to vector<128x1xi32>
    %70 = arith.cmpi eq, %1, %69 : vector<128x1xi32>
    %71 = vector.shape_cast %70 : vector<128x1xi1> to vector<128x1xi1>
    %72 = vector.broadcast %71 : vector<128x1xi1> to vector<128x128xi1>
    %73 = vector.shape_cast %68 : vector<1x128xf32> to vector<1x128xf32>
    %74 = vector.broadcast %73 : vector<1x128xf32> to vector<128x128xf32>
    %75 = arith.select %72, %74, %67 : vector<128x128xi1>, vector<128x128xf32>
    %c9 = arith.constant 9 : index
    %c0_14 = arith.constant 0 : index
    %76 = vector.load %arg3[%c9, %c0_14] : memref<40x128xf32, #tpu.memory_space<vmem>>, vector<1x128xf32>
    %c9_i32 = arith.constant 9 : i32
    %77 = vector.broadcast %c9_i32 : i32 to vector<128x1xi32>
    %78 = arith.cmpi eq, %1, %77 : vector<128x1xi32>
    %79 = vector.shape_cast %78 : vector<128x1xi1> to vector<128x1xi1>
    %80 = vector.broadcast %79 : vector<128x1xi1> to vector<128x128xi1>
    %81 = vector.shape_cast %76 : vector<1x128xf32> to vector<1x128xf32>
    %82 = vector.broadcast %81 : vector<1x128xf32> to vector<128x128xf32>
    %83 = arith.select %80, %82, %75 : vector<128x128xi1>, vector<128x128xf32>
    %c10 = arith.constant 10 : index
    %c0_15 = arith.constant 0 : index
    %84 = vector.load %arg3[%c10, %c0_15] : memref<40x128xf32, #tpu.memory_space<vmem>>, vector<1x128xf32>
    %c10_i32 = arith.constant 10 : i32
    %85 = vector.broadcast %c10_i32 : i32 to vector<128x1xi32>
    %86 = arith.cmpi eq, %1, %85 : vector<128x1xi32>
    %87 = vector.shape_cast %86 : vector<128x1xi1> to vector<128x1xi1>
    %88 = vector.broadcast %87 : vector<128x1xi1> to vector<128x128xi1>
    %89 = vector.shape_cast %84 : vector<1x128xf32> to vector<1x128xf32>
    %90 = vector.broadcast %89 : vector<1x128xf32> to vector<128x128xf32>
    %91 = arith.select %88, %90, %83 : vector<128x128xi1>, vector<128x128xf32>
    %c11 = arith.constant 11 : index
    %c0_16 = arith.constant 0 : index
    %92 = vector.load %arg3[%c11, %c0_16] : memref<40x128xf32, #tpu.memory_space<vmem>>, vector<1x128xf32>
    %c11_i32 = arith.constant 11 : i32
    %93 = vector.broadcast %c11_i32 : i32 to vector<128x1xi32>
    %94 = arith.cmpi eq, %1, %93 : vector<128x1xi32>
    %95 = vector.shape_cast %94 : vector<128x1xi1> to vector<128x1xi1>
    %96 = vector.broadcast %95 : vector<128x1xi1> to vector<128x128xi1>
    %97 = vector.shape_cast %92 : vector<1x128xf32> to vector<1x128xf32>
    %98 = vector.broadcast %97 : vector<1x128xf32> to vector<128x128xf32>
    %99 = arith.select %96, %98, %91 : vector<128x128xi1>, vector<128x128xf32>
    %c12 = arith.constant 12 : index
    %c0_17 = arith.constant 0 : index
    %100 = vector.load %arg3[%c12, %c0_17] : memref<40x128xf32, #tpu.memory_space<vmem>>, vector<1x128xf32>
    %c12_i32 = arith.constant 12 : i32
    %101 = vector.broadcast %c12_i32 : i32 to vector<128x1xi32>
    %102 = arith.cmpi eq, %1, %101 : vector<128x1xi32>
    %103 = vector.shape_cast %102 : vector<128x1xi1> to vector<128x1xi1>
    %104 = vector.broadcast %103 : vector<128x1xi1> to vector<128x128xi1>
    %105 = vector.shape_cast %100 : vector<1x128xf32> to vector<1x128xf32>
    %106 = vector.broadcast %105 : vector<1x128xf32> to vector<128x128xf32>
    %107 = arith.select %104, %106, %99 : vector<128x128xi1>, vector<128x128xf32>
    %c13 = arith.constant 13 : index
    %c0_18 = arith.constant 0 : index
    %108 = vector.load %arg3[%c13, %c0_18] : memref<40x128xf32, #tpu.memory_space<vmem>>, vector<1x128xf32>
    %c13_i32 = arith.constant 13 : i32
    %109 = vector.broadcast %c13_i32 : i32 to vector<128x1xi32>
    %110 = arith.cmpi eq, %1, %109 : vector<128x1xi32>
    %111 = vector.shape_cast %110 : vector<128x1xi1> to vector<128x1xi1>
    %112 = vector.broadcast %111 : vector<128x1xi1> to vector<128x128xi1>
    %113 = vector.shape_cast %108 : vector<1x128xf32> to vector<1x128xf32>
    %114 = vector.broadcast %113 : vector<1x128xf32> to vector<128x128xf32>
    %115 = arith.select %112, %114, %107 : vector<128x128xi1>, vector<128x128xf32>
    %c14 = arith.constant 14 : index
    %c0_19 = arith.constant 0 : index
    %116 = vector.load %arg3[%c14, %c0_19] : memref<40x128xf32, #tpu.memory_space<vmem>>, vector<1x128xf32>
    %c14_i32 = arith.constant 14 : i32
    %117 = vector.broadcast %c14_i32 : i32 to vector<128x1xi32>
    %118 = arith.cmpi eq, %1, %117 : vector<128x1xi32>
    %119 = vector.shape_cast %118 : vector<128x1xi1> to vector<128x1xi1>
    %120 = vector.broadcast %119 : vector<128x1xi1> to vector<128x128xi1>
    %121 = vector.shape_cast %116 : vector<1x128xf32> to vector<1x128xf32>
    %122 = vector.broadcast %121 : vector<1x128xf32> to vector<128x128xf32>
    %123 = arith.select %120, %122, %115 : vector<128x128xi1>, vector<128x128xf32>
    %c15 = arith.constant 15 : index
    %c0_20 = arith.constant 0 : index
    %124 = vector.load %arg3[%c15, %c0_20] : memref<40x128xf32, #tpu.memory_space<vmem>>, vector<1x128xf32>
    %c15_i32 = arith.constant 15 : i32
    %125 = vector.broadcast %c15_i32 : i32 to vector<128x1xi32>
    %126 = arith.cmpi eq, %1, %125 : vector<128x1xi32>
    %127 = vector.shape_cast %126 : vector<128x1xi1> to vector<128x1xi1>
    %128 = vector.broadcast %127 : vector<128x1xi1> to vector<128x128xi1>
    %129 = vector.shape_cast %124 : vector<1x128xf32> to vector<1x128xf32>
    %130 = vector.broadcast %129 : vector<1x128xf32> to vector<128x128xf32>
    %131 = arith.select %128, %130, %123 : vector<128x128xi1>, vector<128x128xf32>
    %c16 = arith.constant 16 : index
    %c0_21 = arith.constant 0 : index
    %132 = vector.load %arg3[%c16, %c0_21] : memref<40x128xf32, #tpu.memory_space<vmem>>, vector<1x128xf32>
    %c16_i32 = arith.constant 16 : i32
    %133 = vector.broadcast %c16_i32 : i32 to vector<128x1xi32>
    %134 = arith.cmpi eq, %1, %133 : vector<128x1xi32>
    %135 = vector.shape_cast %134 : vector<128x1xi1> to vector<128x1xi1>
    %136 = vector.broadcast %135 : vector<128x1xi1> to vector<128x128xi1>
    %137 = vector.shape_cast %132 : vector<1x128xf32> to vector<1x128xf32>
    %138 = vector.broadcast %137 : vector<1x128xf32> to vector<128x128xf32>
    %139 = arith.select %136, %138, %131 : vector<128x128xi1>, vector<128x128xf32>
    %c17 = arith.constant 17 : index
    %c0_22 = arith.constant 0 : index
    %140 = vector.load %arg3[%c17, %c0_22] : memref<40x128xf32, #tpu.memory_space<vmem>>, vector<1x128xf32>
    %c17_i32 = arith.constant 17 : i32
    %141 = vector.broadcast %c17_i32 : i32 to vector<128x1xi32>
    %142 = arith.cmpi eq, %1, %141 : vector<128x1xi32>
    %143 = vector.shape_cast %142 : vector<128x1xi1> to vector<128x1xi1>
    %144 = vector.broadcast %143 : vector<128x1xi1> to vector<128x128xi1>
    %145 = vector.shape_cast %140 : vector<1x128xf32> to vector<1x128xf32>
    %146 = vector.broadcast %145 : vector<1x128xf32> to vector<128x128xf32>
    %147 = arith.select %144, %146, %139 : vector<128x128xi1>, vector<128x128xf32>
    %c18 = arith.constant 18 : index
    %c0_23 = arith.constant 0 : index
    %148 = vector.load %arg3[%c18, %c0_23] : memref<40x128xf32, #tpu.memory_space<vmem>>, vector<1x128xf32>
    %c18_i32 = arith.constant 18 : i32
    %149 = vector.broadcast %c18_i32 : i32 to vector<128x1xi32>
    %150 = arith.cmpi eq, %1, %149 : vector<128x1xi32>
    %151 = vector.shape_cast %150 : vector<128x1xi1> to vector<128x1xi1>
    %152 = vector.broadcast %151 : vector<128x1xi1> to vector<128x128xi1>
    %153 = vector.shape_cast %148 : vector<1x128xf32> to vector<1x128xf32>
    %154 = vector.broadcast %153 : vector<1x128xf32> to vector<128x128xf32>
    %155 = arith.select %152, %154, %147 : vector<128x128xi1>, vector<128x128xf32>
    %c19 = arith.constant 19 : index
    %c0_24 = arith.constant 0 : index
    %156 = vector.load %arg3[%c19, %c0_24] : memref<40x128xf32, #tpu.memory_space<vmem>>, vector<1x128xf32>
    %c19_i32 = arith.constant 19 : i32
    %157 = vector.broadcast %c19_i32 : i32 to vector<128x1xi32>
    %158 = arith.cmpi eq, %1, %157 : vector<128x1xi32>
    %159 = vector.shape_cast %158 : vector<128x1xi1> to vector<128x1xi1>
    %160 = vector.broadcast %159 : vector<128x1xi1> to vector<128x128xi1>
    %161 = vector.shape_cast %156 : vector<1x128xf32> to vector<1x128xf32>
    %162 = vector.broadcast %161 : vector<1x128xf32> to vector<128x128xf32>
    %163 = arith.select %160, %162, %155 : vector<128x128xi1>, vector<128x128xf32>
    %c20 = arith.constant 20 : index
    %c0_25 = arith.constant 0 : index
    %164 = vector.load %arg3[%c20, %c0_25] : memref<40x128xf32, #tpu.memory_space<vmem>>, vector<1x128xf32>
    %c20_i32 = arith.constant 20 : i32
    %165 = vector.broadcast %c20_i32 : i32 to vector<128x1xi32>
    %166 = arith.cmpi eq, %1, %165 : vector<128x1xi32>
    %167 = vector.shape_cast %166 : vector<128x1xi1> to vector<128x1xi1>
    %168 = vector.broadcast %167 : vector<128x1xi1> to vector<128x128xi1>
    %169 = vector.shape_cast %164 : vector<1x128xf32> to vector<1x128xf32>
    %170 = vector.broadcast %169 : vector<1x128xf32> to vector<128x128xf32>
    %171 = arith.select %168, %170, %163 : vector<128x128xi1>, vector<128x128xf32>
    %c21 = arith.constant 21 : index
    %c0_26 = arith.constant 0 : index
    %172 = vector.load %arg3[%c21, %c0_26] : memref<40x128xf32, #tpu.memory_space<vmem>>, vector<1x128xf32>
    %c21_i32 = arith.constant 21 : i32
    %173 = vector.broadcast %c21_i32 : i32 to vector<128x1xi32>
    %174 = arith.cmpi eq, %1, %173 : vector<128x1xi32>
    %175 = vector.shape_cast %174 : vector<128x1xi1> to vector<128x1xi1>
    %176 = vector.broadcast %175 : vector<128x1xi1> to vector<128x128xi1>
    %177 = vector.shape_cast %172 : vector<1x128xf32> to vector<1x128xf32>
    %178 = vector.broadcast %177 : vector<1x128xf32> to vector<128x128xf32>
    %179 = arith.select %176, %178, %171 : vector<128x128xi1>, vector<128x128xf32>
    %c22 = arith.constant 22 : index
    %c0_27 = arith.constant 0 : index
    %180 = vector.load %arg3[%c22, %c0_27] : memref<40x128xf32, #tpu.memory_space<vmem>>, vector<1x128xf32>
    %c22_i32 = arith.constant 22 : i32
    %181 = vector.broadcast %c22_i32 : i32 to vector<128x1xi32>
    %182 = arith.cmpi eq, %1, %181 : vector<128x1xi32>
    %183 = vector.shape_cast %182 : vector<128x1xi1> to vector<128x1xi1>
    %184 = vector.broadcast %183 : vector<128x1xi1> to vector<128x128xi1>
    %185 = vector.shape_cast %180 : vector<1x128xf32> to vector<1x128xf32>
    %186 = vector.broadcast %185 : vector<1x128xf32> to vector<128x128xf32>
    %187 = arith.select %184, %186, %179 : vector<128x128xi1>, vector<128x128xf32>
    %c23 = arith.constant 23 : index
    %c0_28 = arith.constant 0 : index
    %188 = vector.load %arg3[%c23, %c0_28] : memref<40x128xf32, #tpu.memory_space<vmem>>, vector<1x128xf32>
    %c23_i32 = arith.constant 23 : i32
    %189 = vector.broadcast %c23_i32 : i32 to vector<128x1xi32>
    %190 = arith.cmpi eq, %1, %189 : vector<128x1xi32>
    %191 = vector.shape_cast %190 : vector<128x1xi1> to vector<128x1xi1>
    %192 = vector.broadcast %191 : vector<128x1xi1> to vector<128x128xi1>
    %193 = vector.shape_cast %188 : vector<1x128xf32> to vector<1x128xf32>
    %194 = vector.broadcast %193 : vector<1x128xf32> to vector<128x128xf32>
    %195 = arith.select %192, %194, %187 : vector<128x128xi1>, vector<128x128xf32>
    %c24 = arith.constant 24 : index
    %c0_29 = arith.constant 0 : index
    %196 = vector.load %arg3[%c24, %c0_29] : memref<40x128xf32, #tpu.memory_space<vmem>>, vector<1x128xf32>
    %c24_i32 = arith.constant 24 : i32
    %197 = vector.broadcast %c24_i32 : i32 to vector<128x1xi32>
    %198 = arith.cmpi eq, %1, %197 : vector<128x1xi32>
    %199 = vector.shape_cast %198 : vector<128x1xi1> to vector<128x1xi1>
    %200 = vector.broadcast %199 : vector<128x1xi1> to vector<128x128xi1>
    %201 = vector.shape_cast %196 : vector<1x128xf32> to vector<1x128xf32>
    %202 = vector.broadcast %201 : vector<1x128xf32> to vector<128x128xf32>
    %203 = arith.select %200, %202, %195 : vector<128x128xi1>, vector<128x128xf32>
    %c25 = arith.constant 25 : index
    %c0_30 = arith.constant 0 : index
    %204 = vector.load %arg3[%c25, %c0_30] : memref<40x128xf32, #tpu.memory_space<vmem>>, vector<1x128xf32>
    %c25_i32 = arith.constant 25 : i32
    %205 = vector.broadcast %c25_i32 : i32 to vector<128x1xi32>
    %206 = arith.cmpi eq, %1, %205 : vector<128x1xi32>
    %207 = vector.shape_cast %206 : vector<128x1xi1> to vector<128x1xi1>
    %208 = vector.broadcast %207 : vector<128x1xi1> to vector<128x128xi1>
    %209 = vector.shape_cast %204 : vector<1x128xf32> to vector<1x128xf32>
    %210 = vector.broadcast %209 : vector<1x128xf32> to vector<128x128xf32>
    %211 = arith.select %208, %210, %203 : vector<128x128xi1>, vector<128x128xf32>
    %c26 = arith.constant 26 : index
    %c0_31 = arith.constant 0 : index
    %212 = vector.load %arg3[%c26, %c0_31] : memref<40x128xf32, #tpu.memory_space<vmem>>, vector<1x128xf32>
    %c26_i32 = arith.constant 26 : i32
    %213 = vector.broadcast %c26_i32 : i32 to vector<128x1xi32>
    %214 = arith.cmpi eq, %1, %213 : vector<128x1xi32>
    %215 = vector.shape_cast %214 : vector<128x1xi1> to vector<128x1xi1>
    %216 = vector.broadcast %215 : vector<128x1xi1> to vector<128x128xi1>
    %217 = vector.shape_cast %212 : vector<1x128xf32> to vector<1x128xf32>
    %218 = vector.broadcast %217 : vector<1x128xf32> to vector<128x128xf32>
    %219 = arith.select %216, %218, %211 : vector<128x128xi1>, vector<128x128xf32>
    %c27 = arith.constant 27 : index
    %c0_32 = arith.constant 0 : index
    %220 = vector.load %arg3[%c27, %c0_32] : memref<40x128xf32, #tpu.memory_space<vmem>>, vector<1x128xf32>
    %c27_i32 = arith.constant 27 : i32
    %221 = vector.broadcast %c27_i32 : i32 to vector<128x1xi32>
    %222 = arith.cmpi eq, %1, %221 : vector<128x1xi32>
    %223 = vector.shape_cast %222 : vector<128x1xi1> to vector<128x1xi1>
    %224 = vector.broadcast %223 : vector<128x1xi1> to vector<128x128xi1>
    %225 = vector.shape_cast %220 : vector<1x128xf32> to vector<1x128xf32>
    %226 = vector.broadcast %225 : vector<1x128xf32> to vector<128x128xf32>
    %227 = arith.select %224, %226, %219 : vector<128x128xi1>, vector<128x128xf32>
    %c28 = arith.constant 28 : index
    %c0_33 = arith.constant 0 : index
    %228 = vector.load %arg3[%c28, %c0_33] : memref<40x128xf32, #tpu.memory_space<vmem>>, vector<1x128xf32>
    %c28_i32 = arith.constant 28 : i32
    %229 = vector.broadcast %c28_i32 : i32 to vector<128x1xi32>
    %230 = arith.cmpi eq, %1, %229 : vector<128x1xi32>
    %231 = vector.shape_cast %230 : vector<128x1xi1> to vector<128x1xi1>
    %232 = vector.broadcast %231 : vector<128x1xi1> to vector<128x128xi1>
    %233 = vector.shape_cast %228 : vector<1x128xf32> to vector<1x128xf32>
    %234 = vector.broadcast %233 : vector<1x128xf32> to vector<128x128xf32>
    %235 = arith.select %232, %234, %227 : vector<128x128xi1>, vector<128x128xf32>
    %c29 = arith.constant 29 : index
    %c0_34 = arith.constant 0 : index
    %236 = vector.load %arg3[%c29, %c0_34] : memref<40x128xf32, #tpu.memory_space<vmem>>, vector<1x128xf32>
    %c29_i32 = arith.constant 29 : i32
    %237 = vector.broadcast %c29_i32 : i32 to vector<128x1xi32>
    %238 = arith.cmpi eq, %1, %237 : vector<128x1xi32>
    %239 = vector.shape_cast %238 : vector<128x1xi1> to vector<128x1xi1>
    %240 = vector.broadcast %239 : vector<128x1xi1> to vector<128x128xi1>
    %241 = vector.shape_cast %236 : vector<1x128xf32> to vector<1x128xf32>
    %242 = vector.broadcast %241 : vector<1x128xf32> to vector<128x128xf32>
    %243 = arith.select %240, %242, %235 : vector<128x128xi1>, vector<128x128xf32>
    %c30 = arith.constant 30 : index
    %c0_35 = arith.constant 0 : index
    %244 = vector.load %arg3[%c30, %c0_35] : memref<40x128xf32, #tpu.memory_space<vmem>>, vector<1x128xf32>
    %c30_i32 = arith.constant 30 : i32
    %245 = vector.broadcast %c30_i32 : i32 to vector<128x1xi32>
    %246 = arith.cmpi eq, %1, %245 : vector<128x1xi32>
    %247 = vector.shape_cast %246 : vector<128x1xi1> to vector<128x1xi1>
    %248 = vector.broadcast %247 : vector<128x1xi1> to vector<128x128xi1>
    %249 = vector.shape_cast %244 : vector<1x128xf32> to vector<1x128xf32>
    %250 = vector.broadcast %249 : vector<1x128xf32> to vector<128x128xf32>
    %251 = arith.select %248, %250, %243 : vector<128x128xi1>, vector<128x128xf32>
    %c31 = arith.constant 31 : index
    %c0_36 = arith.constant 0 : index
    %252 = vector.load %arg3[%c31, %c0_36] : memref<40x128xf32, #tpu.memory_space<vmem>>, vector<1x128xf32>
    %c31_i32 = arith.constant 31 : i32
    %253 = vector.broadcast %c31_i32 : i32 to vector<128x1xi32>
    %254 = arith.cmpi eq, %1, %253 : vector<128x1xi32>
    %255 = vector.shape_cast %254 : vector<128x1xi1> to vector<128x1xi1>
    %256 = vector.broadcast %255 : vector<128x1xi1> to vector<128x128xi1>
    %257 = vector.shape_cast %252 : vector<1x128xf32> to vector<1x128xf32>
    %258 = vector.broadcast %257 : vector<1x128xf32> to vector<128x128xf32>
    %259 = arith.select %256, %258, %251 : vector<128x128xi1>, vector<128x128xf32>
    %c32 = arith.constant 32 : index
    %c0_37 = arith.constant 0 : index
    %260 = vector.load %arg3[%c32, %c0_37] : memref<40x128xf32, #tpu.memory_space<vmem>>, vector<1x128xf32>
    %c32_i32 = arith.constant 32 : i32
    %261 = vector.broadcast %c32_i32 : i32 to vector<128x1xi32>
    %262 = arith.cmpi eq, %1, %261 : vector<128x1xi32>
    %263 = vector.shape_cast %262 : vector<128x1xi1> to vector<128x1xi1>
    %264 = vector.broadcast %263 : vector<128x1xi1> to vector<128x128xi1>
    %265 = vector.shape_cast %260 : vector<1x128xf32> to vector<1x128xf32>
    %266 = vector.broadcast %265 : vector<1x128xf32> to vector<128x128xf32>
    %267 = arith.select %264, %266, %259 : vector<128x128xi1>, vector<128x128xf32>
    %268 = arith.addf %267, %2 : vector<128x128xf32>
    %c0_38 = arith.constant 0 : index
    %c0_39 = arith.constant 0 : index
    %c0_40 = arith.constant 0 : index
    %269 = vector.load %arg5[%c0_38, %c0_39, %c0_40] : memref<1x128x128xf32, #tpu.memory_space<vmem>>, vector<1x128x128xf32>
    %270 = vector.shape_cast %269 : vector<1x128x128xf32> to vector<128x128xf32>
    %271 = vector.shape_cast %268 : vector<128x128xf32> to vector<1x128x128xf32>
    tpu.vector_store %arg5[%c0_38, %c0_39, %c0_40], %271 {strides = array<i32>} : memref<1x128x128xf32, #tpu.memory_space<vmem>>, vector<1x128x128xf32>,
    return
  }
  func.func @transform_0(%arg0: i32, %arg1: i32) -> (i32, i32, i32) {
    %c0_i32 = arith.constant 0 : i32
    %c0_i32_0 = arith.constant 0 : i32
    return %arg0, %arg1, %c0_i32 : i32, i32, i32
  }
  func.func @transform_1(%arg0: i32, %arg1: i32) -> (i32, i32) {
    %c0_i32 = arith.constant 0 : i32
    %c0_i32_0 = arith.constant 0 : i32
    %c0_i32_1 = arith.constant 0 : i32
    return %c0_i32, %c0_i32_0 : i32, i32
  }
  func.func @transform_2(%arg0: i32, %arg1: i32) -> (i32, i32) {
    %c0_i32 = arith.constant 0 : i32
    %c0_i32_0 = arith.constant 0 : i32
    return %arg1, %c0_i32 : i32, i32
  }
  func.func @transform_3(%arg0: i32, %arg1: i32) -> (i32, i32, i32) {
    %c0_i32 = arith.constant 0 : i32
    %c0_i32_0 = arith.constant 0 : i32
    return %arg0, %arg1, %c0_i32 : i32, i32, i32
  }
}

</mosaic_0001>

<bundles_post_ra>
// kernel: tpu_custom_call.1
= control target key start
LH: loop header
LB: loop body
LE: loop exit
PB: predicated region body
PF: predicated region fallthrough
CT: control target
= control target key end

     0   :  { %8 = vsyncpa [#allocation3], 0  ;;  %s8733_s0 = inlined_call_operand.vmem [shape: s32[2,128,1], index: 0, kind: input, shape index: {}]   ;;  %s8734_s1 = inlined_call_operand.vmem [shape: f32[40,128], index: 1, kind: input, shape index: {}]   ;;  %s8735_s2 = inlined_call_operand.hbm [shape: f32[1024,128], index: 2, kind: input, shape index: {}]   ;;  %s8736_s3 = inlined_call_operand.hbm [shape: f32[2,40,128], index: 3, kind: output, shape index: {}]  }
   0x1   :  { %9 = vsyncpa [#allocation4], 0 }
   0x2   :  { %11 = vsyncpa [#allocation4 + $0x1], 0  ;;  %s4598_s12 = smov 0   ;;  %s4600_s13 = smov 0  }
   0x3   :  { %s4602_s14 = smov 0   ;;  %s4604_s15 = smov 0  }
   0x4   :  { %s4606_s16 = smov 0   ;;  %s4608_s17 = smov 0  }
   0x5 LB: > { %s4264_s18 = sadd.s32 4294967295, %s4569_s17   ;;  %s4265_s19 = sadd.s32 4294967294, %s4569_s17   ;;  %s4569_s17 = sphi %s4608_s17, %s17_s17   ;;  %s4565_s16 = sphi %s4606_s16, %s9566_s16   ;;  %s4561_s15 = sphi %s4604_s15, %s9565_s15   ;;  %s4557_s14 = sphi %s4602_s14, %s9564_s14   ;;  %s4553_s13 = sphi %s4600_s13, %s9563_s13   ;;  %s4549_s12 = sphi %s4598_s12, %s9562_s12  }
   0x6   : > { %s29_s20 = sadd.s32 1, %s4565_s16  ;;  %s113_s21 = sadd.s32 1, %s4557_s14 }
   0x7   : > { %p31_p0 = scmp.ge.s32.totalorder %s29_s20, 2  ;;  %p123_p1 = scmp.ne.s32.totalorder %s4557_s14, %s4553_s13 }
   0x8   : > { %p124_p2 = scmp.eq.s32.totalorder %s4264_s18, 1  ;;  %p129_p3 = scmp.ne.s32.totalorder %s4553_s13, %s4549_s12 }
   0x9   : > { %s9568_s20 = smov (%p31_p0, %s29_s20), 0  ;;  %p130_p5 = scmp.eq.s32.totalorder %s4265_s19, 1 }
   0xa   : > { %p4638_p4 = por %p124_p2, %p123_p1  ;;  %s108_s23 = ssub.s32 %s4565_s16, %s9568_s20 }
   0xb   : > { %p4266_p6 = scmp.ge.s32.totalorder %s4569_s17, 1  ;;  %p111_p7 = scmp.eq.s32.totalorder %s108_s23, 0 }
   0xc   : > { %s8810_s22 = scalar_select %p4638_p4, 1, 0 }
   0xd   : > { %p4645_p8 = por %p130_p5, %p129_p3  ;;  %p137_p9 = scmp.lt.s32.totalorder %s4569_s17, 3 }
   0xe   : > { %s4651_s25 = scalar_select %p111_p7, %s4557_s14, %s113_s21  }
   0xf   : > { %s8811_s24 = scalar_select %p4645_p8, 1, 0 }
  0x10   : > { %p4653_p10 = pnand %p4266_p6, %p137_p9  ;;  %p4657_p11 = scmp.eq.s32.totalorder %s4264_s18, 0 }
  0x11   : > { %s4571_s28 = smov [#allocation2]   ;;  %s4463_s6 = scalar_lea.hbm %s8735_s2, 2048 }
  0x12   : > { %s8812_s26 = scalar_select %p4653_p10, 1, 0 }
  0x13   : > { %s8813_s27 = scalar_select %p4657_p11, 1, 0 }
  0x14   : > { %p4318_p12 = pneg %p4653_p10  ;;  %s155_s29 = sshll.u32 %s4571_s28, 4  ;;  %s156_s29 = int_to_ptr.vmem [resolvable:$true] %s155_s29 }
  0x15   : > { %p4464_p0 = scmp.ne.s32.totalorder %s8735_s2, %s4463_s6  ;;  %s4468_s11 = scalar_lea.hbm %s8735_s2, 16384 }
  0x16   : > { %p4665_p13 = pnand %p4657_p11, %p4318_p12  ;;  %p4469_p5 = scmp.lt.u32.totalorder %s4468_s11, %s4463_s6 }
  0x17   : > { %p4470_p6 = scmp.lt.u32.totalorder %s4463_s6, %s8735_s2 }
  0x18   : > { %p4465_p1 = pneg %p4665_p13 }
  0x19   : > { %p4471_p7 = por %p4470_p6, %p4469_p5 }
  0x1a   : > { %p4466_p2 = pnand %p4465_p1, %p4464_p0 }
  0x1c   : > { %p4467_p3 = pneg %p4466_p2 }
  0x1e   : > { %p4472_p9 = pnand %p4471_p7, %p4467_p3 }
  0x20   : > { %4475 = shalt.err (!%p4472_p9)
}
  0x21   : > { %s4476_s21 = scalar_lea.vmem %s156_s29, 2048  ;;  %p4484_p11 = scmp.lt.s32.totalorder %s156_s29, %s156_s29 }
  0x22   : > { %p4477_p12 = scmp.ne.s32.totalorder %s156_s29, %s4476_s21  ;;  %p4485_p10 = scmp.lt.s32.totalorder %s4476_s21, %s4476_s21 }
  0x24   : > { %p4479_p8 = pnand %p4477_p12, %p4465_p1  ;;  %p4486_p0 = por %p4485_p10, %p4484_p11 }
  0x26   : > { %p4480_p4 = pneg %p4479_p8 }
  0x28   : > { %p4487_p2 = pnand %p4486_p0, %p4480_p4 }
  0x2a   : > { %4490 = shalt.err (!%p4487_p2)
}
  0x2b   : > { %s4572_s23 = smov 128   ;;  %s4573_s28 = smov 8  }
  0x2c   : > { %4321 = dma.hbm_to_vmem [thread:$0]  (!%p4665_p13), %s8735_s2, 2048, %s156_s29, [#allocation3], %s4572_s23, %s4572_s23, %s4573_s28  }
  0x2d   : > { %p8815_p3 = scmp.ne.s32.totalorder %s8812_s26, 0 }
  0x2f   : > { %184 = sbr.rel (%p8815_p3) target bundleno = 1276 (0x4fc), region = 32 }
  0x36   : > { %p8816_p5 = scmp.ne.s32.totalorder %s8813_s27, 0 }
  0x38   : > { %4540 = dma.done.wait (%p8816_p5), [#allocation3], 2048  }
  0x39   : > { %4542 = vsyncadd (%p8816_p5), [#allocation3], 4294965248  ;;  %p213_p4 = scmp.lt.s32.totalorder %s4561_s15, 1  ;;  %v8769_v0 = vmov 0   ;;  %s209_s23 = sand.u32 1, %s4553_s13  }
  0x3a   : > { %4384 = vset.pattern.permute.xlu1 %v8769_v0  ;;  %4383 = vset.pattern.permute.xlu0 %v8769_v0  ;;  %s4271_s27 = sshll.u32 %s209_s23, 7  ;;  %s8688_s11 = scalar_lea.sflag [#allocation4], %s209_s23 }
  0x3b   : > { %s214_s30 = scalar_select %p213_p4, %s4561_s15, 1 }
  0x3c   : > { %s8572_s10 = scalar_lea.vmem [#allocation5], %s4271_s27  ;;  %p9560_p8 = scmp.ne.s32.totalorder %s8810_s22, 0 }
  0x3d   : > { %s4311_s6 = sshll.u32 %s214_s30, 7 }
  0x3e   : > { %s4701_s26 = scalar_lea.vmem %s8733_s0, %s4311_s6 }
  0x3f   : > { %v4704_v1 = vld [vmem:[%s4701_s26 + $0x10] sm:$0xff]  ;;  %v4707_v2 = vld [vmem:[%s4701_s26] sm:$0xff]  ;;  %v4710_v3 = vld [vmem:[%s4701_s26 + $0x18] sm:$0xff] }
  0x40   : > { %vm261_vm0 = vcmp.eq.s32.totalorder %v4704_v1, 0  ;;  %vm259_vm1 = vcmp.eq.s32.totalorder %v4707_v2, 0  ;;  %vm262_vm2 = vcmp.eq.s32.totalorder %v4710_v3, 0  ;;  %v4716_v4 = vld [vmem:[%s4701_s26 + $0x8] sm:$0xff]  ;;  %v4725_v8 = vld [vmem:[%s4701_s26 + $0x20] sm:$0xff]  ;;  %v4732_v11 = vld [vmem:[%s4701_s26 + $0x38] sm:$0xff] }
  0x41   : > { %v277_v5 = vsel %vm261_vm0, 1, %v8769_v0  ;;  %v275_v6 = vsel %vm259_vm1, 1, %v8769_v0  ;;  %vm260_vm3 = vcmp.eq.s32.totalorder %v4716_v4, 0  ;;  %v4722_v7 = vld [vmem:[%s4701_s26 + $0x28] sm:$0xff]  ;;  %v278_v9 = vsel %vm262_vm2, 1, %v8769_v0  ;;  %v4735_v12 = vld [vmem:[%s4701_s26 + $0x30] sm:$0xff] }
  0x42   : > { %298 = vperm.xlu1 %4384, %v277_v5   ;;  %292 = vperm.xlu0 %4383, %v275_v6   ;;  %v276_v10 = vsel %vm260_vm3, 1, %v8769_v0  ;;  %vm264_vm4 = vcmp.eq.s32.totalorder %v4722_v7, 0  ;;  %vm263_vm5 = vcmp.eq.s32.totalorder %v4725_v8, 0  ;;  %vm266_vm6 = vcmp.eq.s32.totalorder %v4732_v11, 0  ;;  %v4742_v15 = vld [vmem:[%s4701_s26 + $0x48] sm:$0xff]  ;;  %v4745_v16 = vld [vmem:[%s4701_s26 + $0x40] sm:$0xff] }
  0x43   : > { %v280_v13 = vsel %vm264_vm4, 1, %v8769_v0  ;;  %v279_v14 = vsel %vm263_vm5, 1, %v8769_v0  ;;  %vm265_vm7 = vcmp.eq.s32.totalorder %v4735_v12, 0  ;;  %v282_v17 = vsel %vm266_vm6, 1, %v8769_v0  ;;  %v4752_v19 = vld [vmem:[%s4701_s26 + $0x58] sm:$0xff]  ;;  %v4755_v20 = vld [vmem:[%s4701_s26 + $0x50] sm:$0xff] }
  0x44   : > { %v281_v18 = vsel %vm265_vm7, 1, %v8769_v0  ;;  %vm268_vm8 = vcmp.eq.s32.totalorder %v4742_v15, 0  ;;  %vm267_vm9 = vcmp.eq.s32.totalorder %v4745_v16, 0  ;;  %vm270_vm10 = vcmp.eq.s32.totalorder %v4752_v19, 0  ;;  %v4762_v23 = vld [vmem:[%s4701_s26 + $0x68] sm:$0xff]  ;;  %v4765_v24 = vld [vmem:[%s4701_s26 + $0x60] sm:$0xff] }
  0x45   : > { %v284_v21 = vsel %vm268_vm8, 1, %v8769_v0  ;;  %v283_v22 = vsel %vm267_vm9, 1, %v8769_v0  ;;  %vm269_vm11 = vcmp.eq.s32.totalorder %v4755_v20, 0  ;;  %v286_v25 = vsel %vm270_vm10, 1, %v8769_v0  ;;  %v4772_v27 = vld [vmem:[%s4701_s26 + $0x78] sm:$0xff]  ;;  %v4775_v28 = vld [vmem:[%s4701_s26 + $0x70] sm:$0xff] }
  0x46   : > { %301 = vperm.xlu1 %4384, %v278_v9   ;;  %295 = vperm.xlu0 %4383, %v276_v10   ;;  %v285_v26 = vsel %vm269_vm11, 1, %v8769_v0  ;;  %vm272_vm12 = vcmp.eq.s32.totalorder %v4762_v23, 0  ;;  %vm271_vm13 = vcmp.eq.s32.totalorder %v4765_v24, 0  ;;  %vm274_vm14 = vcmp.eq.s32.totalorder %v4772_v27, 0 }
  0x47   : > { %v288_v29 = vsel %vm272_vm12, 1, %v8769_v0  ;;  %v287_v30 = vsel %vm271_vm13, 1, %v8769_v0  ;;  %vm273_vm15 = vcmp.eq.s32.totalorder %v4775_v28, 0  ;;  %v290_v31 = vsel %vm274_vm14, 1, %v8769_v0 }
  0x48   : > { %v289_v32 = vsel %vm273_vm15, 1, %v8769_v0  ;;  %vm377_vm0 = vcmp.eq.s32.totalorder %v4716_v4, 1  ;;  %vm376_vm1 = vcmp.eq.s32.totalorder %v4707_v2, 1  ;;  %vm379_vm2 = vcmp.eq.s32.totalorder %v4710_v3, 1 }
  0x49   : > { %v393_v33 = vsel %vm377_vm0, 1, %v8769_v0  ;;  %v392_v34 = vsel %vm376_vm1, 1, %v8769_v0  ;;  %vm378_vm3 = vcmp.eq.s32.totalorder %v4704_v1, 1  ;;  %v395_v35 = vsel %vm379_vm2, 1, %v8769_v0 }
  0x4a   : > { %307 = vperm.xlu1 %4384, %v280_v13   ;;  %304 = vperm.xlu0 %4383, %v279_v14   ;;  %v394_v36 = vsel %vm378_vm3, 1, %v8769_v0  ;;  %vm381_vm4 = vcmp.eq.s32.totalorder %v4722_v7, 1  ;;  %vm380_vm5 = vcmp.eq.s32.totalorder %v4725_v8, 1  ;;  %vm383_vm6 = vcmp.eq.s32.totalorder %v4732_v11, 1 }
  0x4b   : > { %v397_v37 = vsel %vm381_vm4, 1, %v8769_v0  ;;  %v396_v38 = vsel %vm380_vm5, 1, %v8769_v0  ;;  %vm382_vm7 = vcmp.eq.s32.totalorder %v4735_v12, 1  ;;  %v399_v39 = vsel %vm383_vm6, 1, %v8769_v0 }
  0x4c   : > { %v398_v40 = vsel %vm382_vm7, 1, %v8769_v0  ;;  %vm385_vm8 = vcmp.eq.s32.totalorder %v4742_v15, 1  ;;  %vm384_vm9 = vcmp.eq.s32.totalorder %v4745_v16, 1  ;;  %vm387_vm10 = vcmp.eq.s32.totalorder %v4752_v19, 1 }
  0x4d   : > { %v401_v41 = vsel %vm385_vm8, 1, %v8769_v0  ;;  %v400_v42 = vsel %vm384_vm9, 1, %v8769_v0  ;;  %vm386_vm11 = vcmp.eq.s32.totalorder %v4755_v20, 1  ;;  %v403_v43 = vsel %vm387_vm10, 1, %v8769_v0 }
  0x4e   : > { %313 = vperm.xlu1 %4384, %v282_v17   ;;  %310 = vperm.xlu0 %4383, %v281_v18   ;;  %v402_v44 = vsel %vm386_vm11, 1, %v8769_v0  ;;  %vm389_vm12 = vcmp.eq.s32.totalorder %v4762_v23, 1  ;;  %vm388_vm13 = vcmp.eq.s32.totalorder %v4765_v24, 1  ;;  %vm391_vm14 = vcmp.eq.s32.totalorder %v4772_v27, 1 }
  0x4f   : > { %v405_v45 = vsel %vm389_vm12, 1, %v8769_v0  ;;  %v404_v46 = vsel %vm388_vm13, 1, %v8769_v0  ;;  %vm390_vm15 = vcmp.eq.s32.totalorder %v4775_v28, 1  ;;  %v407_v47 = vsel %vm391_vm14, 1, %v8769_v0 }
  0x50   : > { %v406_v48 = vsel %vm390_vm15, 1, %v8769_v0  ;;  %vm494_vm0 = vcmp.eq.s32.totalorder %v4716_v4, 2  ;;  %vm493_vm1 = vcmp.eq.s32.totalorder %v4707_v2, 2  ;;  %vm496_vm2 = vcmp.eq.s32.totalorder %v4710_v3, 2 }
  0x51   : > { %v510_v49 = vsel %vm494_vm0, 1, %v8769_v0  ;;  %v509_v50 = vsel %vm493_vm1, 1, %v8769_v0  ;;  %vm495_vm3 = vcmp.eq.s32.totalorder %v4704_v1, 2  ;;  %v512_v51 = vsel %vm496_vm2, 1, %v8769_v0 }
  0x52   : > { %319 = vperm.xlu1 %4384, %v284_v21   ;;  %316 = vperm.xlu0 %4383, %v283_v22   ;;  %v511_v52 = vsel %vm495_vm3, 1, %v8769_v0  ;;  %vm498_vm4 = vcmp.eq.s32.totalorder %v4722_v7, 2  ;;  %vm497_vm5 = vcmp.eq.s32.totalorder %v4725_v8, 2  ;;  %vm500_vm6 = vcmp.eq.s32.totalorder %v4732_v11, 2 }
  0x53   : > { %v514_v53 = vsel %vm498_vm4, 1, %v8769_v0  ;;  %v513_v54 = vsel %vm497_vm5, 1, %v8769_v0  ;;  %vm499_vm7 = vcmp.eq.s32.totalorder %v4735_v12, 2  ;;  %v516_v55 = vsel %vm500_vm6, 1, %v8769_v0 }
  0x54   : > { %v515_v56 = vsel %vm499_vm7, 1, %v8769_v0  ;;  %vm502_vm8 = vcmp.eq.s32.totalorder %v4742_v15, 2  ;;  %vm501_vm9 = vcmp.eq.s32.totalorder %v4745_v16, 2  ;;  %vm504_vm10 = vcmp.eq.s32.totalorder %v4752_v19, 2 }
  0x55   : > { %v518_v57 = vsel %vm502_vm8, 1, %v8769_v0  ;;  %v517_v58 = vsel %vm501_vm9, 1, %v8769_v0  ;;  %vm503_vm11 = vcmp.eq.s32.totalorder %v4755_v20, 2  ;;  %v520_v59 = vsel %vm504_vm10, 1, %v8769_v0 }
  0x56   : > { %325 = vperm.xlu1 %4384, %v286_v25   ;;  %322 = vperm.xlu0 %4383, %v285_v26   ;;  %v519_v60 = vsel %vm503_vm11, 1, %v8769_v0  ;;  %vm506_vm12 = vcmp.eq.s32.totalorder %v4762_v23, 2  ;;  %vm505_vm13 = vcmp.eq.s32.totalorder %v4765_v24, 2  ;;  %vm508_vm14 = vcmp.eq.s32.totalorder %v4772_v27, 2 }
  0x57   : > { %v522_v61 = vsel %vm506_vm12, 1, %v8769_v0  ;;  %v521_v62 = vsel %vm505_vm13, 1, %v8769_v0  ;;  %vm507_vm15 = vcmp.eq.s32.totalorder %v4775_v28, 2  ;;  %v524_v63 = vsel %vm508_vm14, 1, %v8769_v0 }
  0x58   : > { %v523_v5 = vsel %vm507_vm15, 1, %v8769_v0  ;;  %vm611_vm0 = vcmp.eq.s32.totalorder %v4716_v4, 3  ;;  %vm610_vm1 = vcmp.eq.s32.totalorder %v4707_v2, 3  ;;  %vm613_vm2 = vcmp.eq.s32.totalorder %v4710_v3, 3 }
  0x59   : > { %v627_v6 = vsel %vm611_vm0, 1, %v8769_v0  ;;  %v626_v9 = vsel %vm610_vm1, 1, %v8769_v0  ;;  %vm612_vm3 = vcmp.eq.s32.totalorder %v4704_v1, 3  ;;  %v629_v10 = vsel %vm613_vm2, 1, %v8769_v0 }
  0x5a   : > { %331 = vperm.xlu1 %4384, %v288_v29   ;;  %328 = vperm.xlu0 %4383, %v287_v30   ;;  %v628_v13 = vsel %vm612_vm3, 1, %v8769_v0  ;;  %vm615_vm4 = vcmp.eq.s32.totalorder %v4722_v7, 3  ;;  %vm614_vm5 = vcmp.eq.s32.totalorder %v4725_v8, 3  ;;  %vm617_vm6 = vcmp.eq.s32.totalorder %v4732_v11, 3 }
  0x5b   : > { %v631_v14 = vsel %vm615_vm4, 1, %v8769_v0  ;;  %v630_v17 = vsel %vm614_vm5, 1, %v8769_v0  ;;  %vm616_vm7 = vcmp.eq.s32.totalorder %v4735_v12, 3  ;;  %v633_v18 = vsel %vm617_vm6, 1, %v8769_v0 }
  0x5c   : > { %v632_v21 = vsel %vm616_vm7, 1, %v8769_v0  ;;  %vm619_vm8 = vcmp.eq.s32.totalorder %v4742_v15, 3  ;;  %vm618_vm9 = vcmp.eq.s32.totalorder %v4745_v16, 3  ;;  %vm621_vm10 = vcmp.eq.s32.totalorder %v4752_v19, 3 }
  0x5d   : > { %v635_v22 = vsel %vm619_vm8, 1, %v8769_v0  ;;  %v634_v25 = vsel %vm618_vm9, 1, %v8769_v0  ;;  %vm620_vm11 = vcmp.eq.s32.totalorder %v4755_v20, 3  ;;  %v637_v26 = vsel %vm621_vm10, 1, %v8769_v0 }
  0x5e   : > { %337 = vperm.xlu1 %4384, %v290_v31   ;;  %334 = vperm.xlu0 %4383, %v289_v32   ;;  %v636_v29 = vsel %vm620_vm11, 1, %v8769_v0  ;;  %vm623_vm12 = vcmp.eq.s32.totalorder %v4762_v23, 3  ;;  %vm622_vm13 = vcmp.eq.s32.totalorder %v4765_v24, 3  ;;  %vm625_vm14 = vcmp.eq.s32.totalorder %v4772_v27, 3 }
  0x5f   : > { %v639_v30 = vsel %vm623_vm12, 1, %v8769_v0  ;;  %v638_v31 = vsel %vm622_vm13, 1, %v8769_v0  ;;  %vm624_vm15 = vcmp.eq.s32.totalorder %v4775_v28, 3  ;;  %v641_v32 = vsel %vm625_vm14, 1, %v8769_v0 }
  0x60   : > { %vm728_vm0 = vcmp.eq.s32.totalorder %v4716_v4, 4  ;;  %vm727_vm1 = vcmp.eq.s32.totalorder %v4707_v2, 4  ;;  %vm730_vm2 = vcmp.eq.s32.totalorder %v4710_v3, 4  ;;  %vm729_vm3 = vcmp.eq.s32.totalorder %v4704_v1, 4 }
  0x61   : > { %vm732_vm4 = vcmp.eq.s32.totalorder %v4722_v7, 4  ;;  %vm731_vm5 = vcmp.eq.s32.totalorder %v4725_v8, 4  ;;  %vm734_vm6 = vcmp.eq.s32.totalorder %v4732_v11, 4  ;;  %vm733_vm7 = vcmp.eq.s32.totalorder %v4735_v12, 4 }
  0x62   : > { %412 = vperm.xlu1 %4384, %v393_v33   ;;  %409 = vperm.xlu0 %4383, %v392_v34   ;;  %v640_v33 = vsel %vm624_vm15, 1, %v8769_v0  ;;  %v744_v34 = vsel %vm728_vm0, 1, %v8769_v0  ;;  %vm736_vm8 = vcmp.eq.s32.totalorder %v4742_v15, 4  ;;  %vm735_vm9 = vcmp.eq.s32.totalorder %v4745_v16, 4 }
  0x63   : > { %vm738_vm10 = vcmp.eq.s32.totalorder %v4752_v19, 4  ;;  %vm737_vm11 = vcmp.eq.s32.totalorder %v4755_v20, 4  ;;  %vm740_vm12 = vcmp.eq.s32.totalorder %v4762_v23, 4  ;;  %vm739_vm13 = vcmp.eq.s32.totalorder %v4765_v24, 4 }
  0x64   : > { %vm742_vm14 = vcmp.eq.s32.totalorder %v4772_v27, 4  ;;  %vm741_vm15 = vcmp.eq.s32.totalorder %v4775_v28, 4  ;;  %vm845_vm0 = vcmp.eq.s32.totalorder %v4716_v4, 5 }
  0x66   : > { %418 = vperm.xlu1 %4384, %v395_v35   ;;  %415 = vperm.xlu0 %4383, %v394_v36   ;;  %v743_v35 = vsel %vm727_vm1, 1, %v8769_v0  ;;  %vm844_vm1 = vcmp.eq.s32.totalorder %v4707_v2, 5 }
  0x6a   : > { %424 = vperm.xlu1 %4384, %v397_v37   ;;  %421 = vperm.xlu0 %4383, %v396_v38   ;;  %v746_v38 = vsel %vm730_vm2, 1, %v8769_v0  ;;  %vm847_vm2 = vcmp.eq.s32.totalorder %v4710_v3, 5 }
  0x6e   : > { %430 = vperm.xlu1 %4384, %v399_v39   ;;  %427 = vperm.xlu0 %4383, %v398_v40   ;;  %v745_v39 = vsel %vm729_vm3, 1, %v8769_v0  ;;  %vm846_vm3 = vcmp.eq.s32.totalorder %v4704_v1, 5 }
  0x72   : > { %436 = vperm.xlu1 %4384, %v401_v41   ;;  %433 = vperm.xlu0 %4383, %v400_v42   ;;  %v748_v42 = vsel %vm732_vm4, 1, %v8769_v0  ;;  %vm849_vm4 = vcmp.eq.s32.totalorder %v4722_v7, 5 }
  0x76   : > { %442 = vperm.xlu1 %4384, %v403_v43   ;;  %439 = vperm.xlu0 %4383, %v402_v44   ;;  %v747_v43 = vsel %vm731_vm5, 1, %v8769_v0  ;;  %vm848_vm5 = vcmp.eq.s32.totalorder %v4725_v8, 5 }
  0x7a   : > { %448 = vperm.xlu1 %4384, %v405_v45   ;;  %445 = vperm.xlu0 %4383, %v404_v46   ;;  %v750_v46 = vsel %vm734_vm6, 1, %v8769_v0  ;;  %vm851_vm6 = vcmp.eq.s32.totalorder %v4732_v11, 5 }
  0x7e   : > { %454 = vperm.xlu1 %4384, %v407_v47   ;;  %451 = vperm.xlu0 %4383, %v406_v48   ;;  %v749_v47 = vsel %vm733_vm7, 1, %v8769_v0  ;;  %vm850_vm7 = vcmp.eq.s32.totalorder %v4735_v12, 5 }
  0x82   : > { %529 = vperm.xlu1 %4384, %v510_v49   ;;  %526 = vperm.xlu0 %4383, %v509_v50   ;;  %v752_v50 = vsel %vm736_vm8, 1, %v8769_v0  ;;  %vm853_vm8 = vcmp.eq.s32.totalorder %v4742_v15, 5 }
  0x86   : > { %535 = vperm.xlu1 %4384, %v512_v51   ;;  %532 = vperm.xlu0 %4383, %v511_v52   ;;  %v751_v51 = vsel %vm735_vm9, 1, %v8769_v0  ;;  %vm852_vm9 = vcmp.eq.s32.totalorder %v4745_v16, 5 }
  0x8a   : > { %541 = vperm.xlu1 %4384, %v514_v53   ;;  %538 = vperm.xlu0 %4383, %v513_v54   ;;  %v754_v54 = vsel %vm738_vm10, 1, %v8769_v0  ;;  %vm855_vm10 = vcmp.eq.s32.totalorder %v4752_v19, 5 }
  0x8e   : > { %547 = vperm.xlu1 %4384, %v516_v55   ;;  %544 = vperm.xlu0 %4383, %v515_v56   ;;  %v753_v55 = vsel %vm737_vm11, 1, %v8769_v0  ;;  %vm854_vm11 = vcmp.eq.s32.totalorder %v4755_v20, 5 }
  0x92   : > { %553 = vperm.xlu1 %4384, %v518_v57   ;;  %550 = vperm.xlu0 %4383, %v517_v58   ;;  %v756_v58 = vsel %vm740_vm12, 1, %v8769_v0  ;;  %vm857_vm12 = vcmp.eq.s32.totalorder %v4762_v23, 5 }
  0x96   : > { %559 = vperm.xlu1 %4384, %v520_v59   ;;  %556 = vperm.xlu0 %4383, %v519_v60   ;;  %v755_v59 = vsel %vm739_vm13, 1, %v8769_v0  ;;  %vm856_vm13 = vcmp.eq.s32.totalorder %v4765_v24, 5 }
  0x9a   : > { %565 = vperm.xlu1 %4384, %v522_v61   ;;  %562 = vperm.xlu0 %4383, %v521_v62   ;;  %v758_v62 = vsel %vm742_vm14, 1, %v8769_v0  ;;  %vm859_vm14 = vcmp.eq.s32.totalorder %v4772_v27, 5 }
  0x9e   : > { %571 = vperm.xlu1 %4384, %v524_v63   ;;  %568 = vperm.xlu0 %4383, %v523_v5   ;;  %v757_v63 = vsel %vm741_vm15, 1, %v8769_v0  ;;  %vm858_vm15 = vcmp.eq.s32.totalorder %v4775_v28, 5 }
  0xa2   : > { %646 = vperm.xlu1 %4384, %v627_v6   ;;  %643 = vperm.xlu0 %4383, %v626_v9   ;;  %v861_v9 = vsel %vm845_vm0, 1, %v8769_v0  ;;  %vm962_vm0 = vcmp.eq.s32.totalorder %v4716_v4, 6 }
  0xa6   : > { %652 = vperm.xlu1 %4384, %v629_v10   ;;  %649 = vperm.xlu0 %4383, %v628_v13   ;;  %v860_v10 = vsel %vm844_vm1, 1, %v8769_v0  ;;  %vm961_vm1 = vcmp.eq.s32.totalorder %v4707_v2, 6 }
  0xaa   : > { %658 = vperm.xlu1 %4384, %v631_v14   ;;  %655 = vperm.xlu0 %4383, %v630_v17   ;;  %v863_v17 = vsel %vm847_vm2, 1, %v8769_v0  ;;  %vm964_vm2 = vcmp.eq.s32.totalorder %v4710_v3, 6 }
  0xae   : > { %664 = vperm.xlu1 %4384, %v633_v18   ;;  %661 = vperm.xlu0 %4383, %v632_v21   ;;  %v862_v18 = vsel %vm846_vm3, 1, %v8769_v0  ;;  %vm963_vm3 = vcmp.eq.s32.totalorder %v4704_v1, 6 }
  0xb2   : > { %670 = vperm.xlu1 %4384, %v635_v22   ;;  %667 = vperm.xlu0 %4383, %v634_v25   ;;  %v865_v25 = vsel %vm849_vm4, 1, %v8769_v0  ;;  %vm966_vm4 = vcmp.eq.s32.totalorder %v4722_v7, 6 }
  0xb6   : > { %676 = vperm.xlu1 %4384, %v637_v26   ;;  %673 = vperm.xlu0 %4383, %v636_v29   ;;  %v864_v26 = vsel %vm848_vm5, 1, %v8769_v0  ;;  %vm965_vm5 = vcmp.eq.s32.totalorder %v4725_v8, 6 }
  0xba   : > { %682 = vperm.xlu1 %4384, %v639_v30   ;;  %679 = vperm.xlu0 %4383, %v638_v31   ;;  %v867_v31 = vsel %vm851_vm6, 1, %v8769_v0  ;;  %vm968_vm6 = vcmp.eq.s32.totalorder %v4732_v11, 6 }
  0xbe   : > { %688 = vperm.xlu1 %4384, %v641_v32   ;;  %685 = vperm.xlu0 %4383, %v640_v33   ;;  %v866_v32 = vsel %vm850_vm7, 1, %v8769_v0  ;;  %vm967_vm7 = vcmp.eq.s32.totalorder %v4735_v12, 6 }
  0xc1   : > { %v4885_v36 = vpop.permute.xlu1 %298  ;;  %v4887_v37 = vpop.permute.xlu0 %292 }
  0xc2   : > { %763 = vperm.xlu1 %4384, %v744_v34   ;;  %760 = vperm.xlu0 %4383, %v743_v35   ;;  %v869_v35 = vsel %vm853_vm8, 1, %v8769_v0  ;;  %vm970_vm8 = vcmp.eq.s32.totalorder %v4742_v15, 6 }
  0xc5   : > { %v4893_v40 = vpop.permute.xlu1 %301  ;;  %v4895_v41 = vpop.permute.xlu0 %295 }
  0xc6   : > { %769 = vperm.xlu1 %4384, %v746_v38   ;;  %766 = vperm.xlu0 %4383, %v745_v39   ;;  %v868_v38 = vsel %vm852_vm9, 1, %v8769_v0  ;;  %vm969_vm9 = vcmp.eq.s32.totalorder %v4745_v16, 6 }
  0xc9   : > { %v4901_v44 = vpop.permute.xlu1 %307  ;;  %v4903_v45 = vpop.permute.xlu0 %304 }
  0xca   : > { %775 = vperm.xlu1 %4384, %v748_v42   ;;  %772 = vperm.xlu0 %4383, %v747_v43   ;;  %v871_v43 = vsel %vm855_vm10, 1, %v8769_v0  ;;  %vm972_vm10 = vcmp.eq.s32.totalorder %v4752_v19, 6 }
  0xcd   : > { %v4909_v48 = vpop.permute.xlu1 %313  ;;  %v4911_v49 = vpop.permute.xlu0 %310 }
  0xce   : > { %781 = vperm.xlu1 %4384, %v750_v46   ;;  %778 = vperm.xlu0 %4383, %v749_v47   ;;  %v870_v46 = vsel %vm854_vm11, 1, %v8769_v0  ;;  %vm971_vm11 = vcmp.eq.s32.totalorder %v4755_v20, 6 }
  0xd1   : > { %v4917_v52 = vpop.permute.xlu1 %319  ;;  %v4919_v53 = vpop.permute.xlu0 %316 }
  0xd2   : > { %787 = vperm.xlu1 %4384, %v752_v50   ;;  %784 = vperm.xlu0 %4383, %v751_v51   ;;  %v873_v51 = vsel %vm857_vm12, 1, %v8769_v0  ;;  %vm974_vm12 = vcmp.eq.s32.totalorder %v4762_v23, 6 }
  0xd5   : > { %v4925_v56 = vpop.permute.xlu1 %325  ;;  %v4927_v57 = vpop.permute.xlu0 %322 }
  0xd6   : > { %793 = vperm.xlu1 %4384, %v754_v54   ;;  %790 = vperm.xlu0 %4383, %v753_v55   ;;  %v872_v54 = vsel %vm856_vm13, 1, %v8769_v0  ;;  %vm973_vm13 = vcmp.eq.s32.totalorder %v4765_v24, 6 }
  0xd9   : > { %v4933_v60 = vpop.permute.xlu1 %331  ;;  %v4935_v61 = vpop.permute.xlu0 %328 }
  0xda   : > { %799 = vperm.xlu1 %4384, %v756_v58   ;;  %796 = vperm.xlu0 %4383, %v755_v59   ;;  %v875_v59 = vsel %vm859_vm14, 1, %v8769_v0  ;;  %vm976_vm14 = vcmp.eq.s32.totalorder %v4772_v27, 6 }
  0xdd   : > { %v4941_v5 = vpop.permute.xlu1 %337  ;;  %v4943_v6 = vpop.permute.xlu0 %334 }
  0xde   : > { %805 = vperm.xlu1 %4384, %v758_v62   ;;  %802 = vperm.xlu0 %4383, %v757_v63   ;;  %v874_v62 = vsel %vm858_vm15, 1, %v8769_v0  ;;  %vm975_vm15 = vcmp.eq.s32.totalorder %v4775_v28, 6 }
  0xe1   : > { %v4949_v13 = vpop.permute.xlu1 %412  ;;  %v4951_v14 = vpop.permute.xlu0 %409 }
  0xe2   : > { %880 = vperm.xlu1 %4384, %v861_v9   ;;  %877 = vperm.xlu0 %4383, %v860_v10   ;;  %v978_v10 = vsel %vm962_vm0, 1, %v8769_v0  ;;  %vm1079_vm0 = vcmp.eq.s32.totalorder %v4716_v4, 7 }
  0xe5   : > { %v4957_v21 = vpop.permute.xlu1 %418  ;;  %v4959_v22 = vpop.permute.xlu0 %415 }
  0xe6   : > { %886 = vperm.xlu1 %4384, %v863_v17   ;;  %883 = vperm.xlu0 %4383, %v862_v18   ;;  %v977_v17 = vsel %vm961_vm1, 1, %v8769_v0  ;;  %vm1078_vm1 = vcmp.eq.s32.totalorder %v4707_v2, 7 }
  0xe9   : > { %v4965_v29 = vpop.permute.xlu1 %424  ;;  %v4967_v30 = vpop.permute.xlu0 %421 }
  0xea   : > { %892 = vperm.xlu1 %4384, %v865_v25   ;;  %889 = vperm.xlu0 %4383, %v864_v26   ;;  %v980_v26 = vsel %vm964_vm2, 1, %v8769_v0  ;;  %vm1081_vm2 = vcmp.eq.s32.totalorder %v4710_v3, 7 }
  0xed   : > { %v4973_v33 = vpop.permute.xlu1 %430  ;;  %v4975_v34 = vpop.permute.xlu0 %427 }
  0xee   : > { %898 = vperm.xlu1 %4384, %v867_v31   ;;  %895 = vperm.xlu0 %4383, %v866_v32   ;;  %v979_v31 = vsel %vm963_vm3, 1, %v8769_v0  ;;  %vm1080_vm3 = vcmp.eq.s32.totalorder %v4704_v1, 7 }
  0xf1   : > { %v4981_v39 = vpop.permute.xlu1 %436  ;;  %v4983_v42 = vpop.permute.xlu0 %433 }
  0xf2   : > { %904 = vperm.xlu1 %4384, %v869_v35   ;;  %901 = vperm.xlu0 %4383, %v868_v38   ;;  %v982_v38 = vsel %vm966_vm4, 1, %v8769_v0  ;;  %vm1083_vm4 = vcmp.eq.s32.totalorder %v4722_v7, 7 }
  0xf5   : > { %v4989_v47 = vpop.permute.xlu1 %442  ;;  %v4991_v50 = vpop.permute.xlu0 %439 }
  0xf6   : > { %910 = vperm.xlu1 %4384, %v871_v43   ;;  %907 = vperm.xlu0 %4383, %v870_v46   ;;  %v981_v43 = vsel %vm965_vm5, 1, %v8769_v0  ;;  %vm1082_vm5 = vcmp.eq.s32.totalorder %v4725_v8, 7 }
  0xf9   : > { %v4997_v55 = vpop.permute.xlu1 %448  ;;  %v4999_v58 = vpop.permute.xlu0 %445 }
  0xfa   : > { %916 = vperm.xlu1 %4384, %v873_v51   ;;  %913 = vperm.xlu0 %4383, %v872_v54   ;;  %v984_v54 = vsel %vm968_vm6, 1, %v8769_v0  ;;  %vm1085_vm6 = vcmp.eq.s32.totalorder %v4732_v11, 7 }
  0xfd   : > { %v5005_v63 = vpop.permute.xlu1 %454  ;;  %v5007_v9 = vpop.permute.xlu0 %451 }
  0xfe   : > { %922 = vperm.xlu1 %4384, %v875_v59   ;;  %919 = vperm.xlu0 %4383, %v874_v62   ;;  %v983_v59 = vsel %vm967_vm7, 1, %v8769_v0  ;;  %vm1084_vm7 = vcmp.eq.s32.totalorder %v4735_v12, 7 }
 0x101   : > { %v5013_v18 = vpop.permute.xlu1 %529  ;;  %v5015_v25 = vpop.permute.xlu0 %526 }
 0x102   : > { %997 = vperm.xlu1 %4384, %v978_v10   ;;  %994 = vperm.xlu0 %4383, %v977_v17   ;;  %v986_v17 = vsel %vm970_vm8, 1, %v8769_v0  ;;  %vm1087_vm8 = vcmp.eq.s32.totalorder %v4742_v15, 7 }
 0x105   : > { %v5021_v32 = vpop.permute.xlu1 %535  ;;  %v5023_v35 = vpop.permute.xlu0 %532 }
 0x106   : > { %1003 = vperm.xlu1 %4384, %v980_v26   ;;  %1000 = vperm.xlu0 %4383, %v979_v31   ;;  %v985_v26 = vsel %vm969_vm9, 1, %v8769_v0  ;;  %vm1086_vm9 = vcmp.eq.s32.totalorder %v4745_v16, 7 }
 0x109   : > { %v5029_v46 = vpop.permute.xlu1 %541  ;;  %v5031_v51 = vpop.permute.xlu0 %538 }
 0x10a   : > { %1009 = vperm.xlu1 %4384, %v982_v38   ;;  %1006 = vperm.xlu0 %4383, %v981_v43   ;;  %v988_v43 = vsel %vm972_vm10, 1, %v8769_v0  ;;  %vm1089_vm10 = vcmp.eq.s32.totalorder %v4752_v19, 7 }
 0x10d   : > { %v5037_v62 = vpop.permute.xlu1 %547  ;;  %v5039_v10 = vpop.permute.xlu0 %544 }
 0x10e   : > { %8817 = vst [vmem:[#allocation8_spill] sm:$0xff] %v5039_v10  ;;  %1015 = vperm.xlu1 %4384, %v984_v54   ;;  %1012 = vperm.xlu0 %4383, %v983_v59   ;;  %v987_v10 = vsel %vm971_vm11, 1, %v8769_v0  ;;  %vm1088_vm11 = vcmp.eq.s32.totalorder %v4755_v20, 7 }
 0x111   : > { %v5045_v31 = vpop.permute.xlu1 %553  ;;  %v5047_v38 = vpop.permute.xlu0 %550 }
 0x112   : > { %8818 = vst [vmem:[#allocation9_spill] sm:$0xff] %v5045_v31  ;;  %8819 = vst [vmem:[#allocation10_spill] sm:$0xff] %v5047_v38  ;;  %1021 = vperm.xlu1 %4384, %v986_v17   ;;  %1018 = vperm.xlu0 %4383, %v985_v26   ;;  %v990_v31 = vsel %vm974_vm12, 1, %v8769_v0  ;;  %v989_v38 = vsel %vm973_vm13, 1, %v8769_v0  ;;  %vm1091_vm12 = vcmp.eq.s32.totalorder %v4762_v23, 7  ;;  %vm1090_vm13 = vcmp.eq.s32.totalorder %v4765_v24, 7 }
 0x115   : > { %v5053_v54 = vpop.permute.xlu1 %559  ;;  %v5055_v59 = vpop.permute.xlu0 %556 }
 0x116   : > { %8820 = vst [vmem:[#allocation11_spill] sm:$0xff] %v5053_v54  ;;  %8821 = vst [vmem:[#allocation12_spill] sm:$0xff] %v5055_v59  ;;  %1027 = vperm.xlu1 %4384, %v988_v43   ;;  %1024 = vperm.xlu0 %4383, %v987_v10   ;;  %v992_v54 = vsel %vm976_vm14, 1, %v8769_v0  ;;  %v991_v59 = vsel %vm975_vm15, 1, %v8769_v0  ;;  %vm1093_vm14 = vcmp.eq.s32.totalorder %v4772_v27, 7  ;;  %vm1092_vm15 = vcmp.eq.s32.totalorder %v4775_v28, 7 }
 0x119   : > { %v5061_v17 = vpop.permute.xlu1 %565  ;;  %v5063_v26 = vpop.permute.xlu0 %562 }
 0x11a   : > { %8822 = vst [vmem:[#allocation13_spill] sm:$0xff] %v5061_v17  ;;  %8823 = vst [vmem:[#allocation14_spill] sm:$0xff] %v5063_v26  ;;  %1033 = vperm.xlu1 %4384, %v990_v31   ;;  %1030 = vperm.xlu0 %4383, %v989_v38   ;;  %v1095_v17 = vsel %vm1079_vm0, 1, %v8769_v0  ;;  %v1094_v26 = vsel %vm1078_vm1, 1, %v8769_v0  ;;  %vm1196_vm0 = vcmp.eq.s32.totalorder %v4716_v4, 8  ;;  %vm1195_vm1 = vcmp.eq.s32.totalorder %v4707_v2, 8 }
 0x11d   : > { %v5069_v10 = vpop.permute.xlu1 %571  ;;  %v5071_v43 = vpop.permute.xlu0 %568 }
 0x11e   : > { %8824 = vst [vmem:[#allocation15_spill] sm:$0xff] %v5069_v10  ;;  %8825 = vst [vmem:[#allocation16_spill] sm:$0xff] %v5071_v43  ;;  %1039 = vperm.xlu1 %4384, %v992_v54   ;;  %1036 = vperm.xlu0 %4383, %v991_v59   ;;  %v1097_v10 = vsel %vm1081_vm2, 1, %v8769_v0  ;;  %v1096_v43 = vsel %vm1080_vm3, 1, %v8769_v0  ;;  %vm1198_vm2 = vcmp.eq.s32.totalorder %v4710_v3, 8  ;;  %vm1197_vm3 = vcmp.eq.s32.totalorder %v4704_v1, 8 }
 0x11f   : > { %v1214_v2 = vsel %vm1198_vm2, 1, %v8769_v0  ;;  %v1213_v4 = vsel %vm1197_vm3, 1, %v8769_v0 }
 0x121   : > { %v5077_v31 = vpop.permute.xlu1 %646  ;;  %v5079_v38 = vpop.permute.xlu0 %643 }
 0x122   : > { %8826 = vst [vmem:[#allocation17_spill] sm:$0xff] %v5077_v31  ;;  %8827 = vst [vmem:[#allocation18_spill] sm:$0xff] %v5079_v38  ;;  %1114 = vperm.xlu1 %4384, %v1095_v17   ;;  %1111 = vperm.xlu0 %4383, %v1094_v26   ;;  %v1099_v31 = vsel %vm1083_vm4, 1, %v8769_v0  ;;  %v1098_v38 = vsel %vm1082_vm5, 1, %v8769_v0  ;;  %vm1200_vm4 = vcmp.eq.s32.totalorder %v4722_v7, 8  ;;  %vm1199_vm5 = vcmp.eq.s32.totalorder %v4725_v8, 8 }
 0x123   : > { %v1216_v1 = vsel %vm1200_vm4, 1, %v8769_v0  ;;  %v1215_v3 = vsel %vm1199_vm5, 1, %v8769_v0 }
 0x125   : > { %v5085_v54 = vpop.permute.xlu1 %652  ;;  %v5087_v59 = vpop.permute.xlu0 %649 }
 0x126   : > { %8828 = vst [vmem:[#allocation19_spill] sm:$0xff] %v5085_v54  ;;  %8829 = vst [vmem:[#allocation20_spill] sm:$0xff] %v5087_v59  ;;  %1120 = vperm.xlu1 %4384, %v1097_v10   ;;  %1117 = vperm.xlu0 %4383, %v1096_v43   ;;  %v1101_v54 = vsel %vm1085_vm6, 1, %v8769_v0  ;;  %v1100_v59 = vsel %vm1084_vm7, 1, %v8769_v0  ;;  %vm1202_vm6 = vcmp.eq.s32.totalorder %v4732_v11, 8  ;;  %vm1201_vm7 = vcmp.eq.s32.totalorder %v4735_v12, 8 }
 0x127   : > { %v1218_v7 = vsel %vm1202_vm6, 1, %v8769_v0  ;;  %v1217_v8 = vsel %vm1201_vm7, 1, %v8769_v0 }
 0x129   : > { %v5093_v17 = vpop.permute.xlu1 %658  ;;  %v5095_v26 = vpop.permute.xlu0 %655 }
 0x12a   : > { %8830 = vst [vmem:[#allocation21_spill] sm:$0xff] %v5093_v17  ;;  %8831 = vst [vmem:[#allocation22_spill] sm:$0xff] %v5095_v26  ;;  %1126 = vperm.xlu1 %4384, %v1099_v31   ;;  %1123 = vperm.xlu0 %4383, %v1098_v38   ;;  %v1103_v17 = vsel %vm1087_vm8, 1, %v8769_v0  ;;  %v1102_v26 = vsel %vm1086_vm9, 1, %v8769_v0  ;;  %vm1204_vm8 = vcmp.eq.s32.totalorder %v4742_v15, 8  ;;  %vm1203_vm9 = vcmp.eq.s32.totalorder %v4745_v16, 8 }
 0x12b   : > { %v1220_v11 = vsel %vm1204_vm8, 1, %v8769_v0  ;;  %v1219_v12 = vsel %vm1203_vm9, 1, %v8769_v0 }
 0x12d   : > { %v5101_v10 = vpop.permute.xlu1 %664  ;;  %v5103_v43 = vpop.permute.xlu0 %661 }
 0x12e   : > { %8832 = vst [vmem:[#allocation23_spill] sm:$0xff] %v5101_v10  ;;  %8833 = vst [vmem:[#allocation24_spill] sm:$0xff] %v5103_v43  ;;  %1132 = vperm.xlu1 %4384, %v1101_v54   ;;  %1129 = vperm.xlu0 %4383, %v1100_v59   ;;  %v1105_v10 = vsel %vm1089_vm10, 1, %v8769_v0  ;;  %v1104_v43 = vsel %vm1088_vm11, 1, %v8769_v0  ;;  %vm1206_vm10 = vcmp.eq.s32.totalorder %v4752_v19, 8  ;;  %vm1205_vm11 = vcmp.eq.s32.totalorder %v4755_v20, 8 }
 0x12f   : > { %v1222_v15 = vsel %vm1206_vm10, 1, %v8769_v0  ;;  %v1221_v16 = vsel %vm1205_vm11, 1, %v8769_v0 }
 0x131   : > { %v5109_v31 = vpop.permute.xlu1 %670  ;;  %v5111_v38 = vpop.permute.xlu0 %667 }
 0x132   : > { %8834 = vst [vmem:[#allocation25_spill] sm:$0xff] %v5109_v31  ;;  %8835 = vst [vmem:[#allocation26_spill] sm:$0xff] %v5111_v38  ;;  %1138 = vperm.xlu1 %4384, %v1103_v17   ;;  %1135 = vperm.xlu0 %4383, %v1102_v26   ;;  %v1107_v31 = vsel %vm1091_vm12, 1, %v8769_v0  ;;  %v1106_v38 = vsel %vm1090_vm13, 1, %v8769_v0  ;;  %vm1208_vm12 = vcmp.eq.s32.totalorder %v4762_v23, 8  ;;  %vm1207_vm13 = vcmp.eq.s32.totalorder %v4765_v24, 8 }
 0x133   : > { %v1224_v20 = vsel %vm1208_vm12, 1, %v8769_v0 }
 0x135   : > { %v5117_v54 = vpop.permute.xlu1 %676  ;;  %v5119_v59 = vpop.permute.xlu0 %673 }
 0x136   : > { %8836 = vst [vmem:[#allocation27_spill] sm:$0xff] %v5117_v54  ;;  %8837 = vst [vmem:[#allocation28_spill] sm:$0xff] %v5119_v59  ;;  %1144 = vperm.xlu1 %4384, %v1105_v10   ;;  %1141 = vperm.xlu0 %4383, %v1104_v43   ;;  %v1109_v54 = vsel %vm1093_vm14, 1, %v8769_v0  ;;  %v1108_v59 = vsel %vm1092_vm15, 1, %v8769_v0  ;;  %vm1210_vm14 = vcmp.eq.s32.totalorder %v4772_v27, 8  ;;  %vm1209_vm15 = vcmp.eq.s32.totalorder %v4775_v28, 8 }
 0x137   : > { %v1226_v24 = vsel %vm1210_vm14, 1, %v8769_v0 }
 0x139   : > { %v5125_v17 = vpop.permute.xlu1 %682  ;;  %v5127_v26 = vpop.permute.xlu0 %679 }
 0x13a   : > { %8838 = vst [vmem:[#allocation29_spill] sm:$0xff] %v5125_v17  ;;  %8839 = vst [vmem:[#allocation30_spill] sm:$0xff] %v5127_v26  ;;  %1150 = vperm.xlu1 %4384, %v1107_v31   ;;  %1147 = vperm.xlu0 %4383, %v1106_v38   ;;  %v1212_v17 = vsel %vm1196_vm0, 1, %v8769_v0  ;;  %v1211_v26 = vsel %vm1195_vm1, 1, %v8769_v0 }
 0x13d   : > { %v5133_v10 = vpop.permute.xlu1 %688  ;;  %v5135_v43 = vpop.permute.xlu0 %685 }
 0x13e   : > { %8840 = vst [vmem:[#allocation31_spill] sm:$0xff] %v5133_v10  ;;  %8841 = vst [vmem:[#allocation32_spill] sm:$0xff] %v5135_v43  ;;  %1156 = vperm.xlu1 %4384, %v1109_v54   ;;  %1153 = vperm.xlu0 %4383, %v1108_v59  }
 0x141   : > { %v5141_v31 = vpop.permute.xlu1 %763  ;;  %v5143_v38 = vpop.permute.xlu0 %760 }
 0x142   : > { %8842 = vst [vmem:[#allocation33_spill] sm:$0xff] %v5141_v31  ;;  %8843 = vst [vmem:[#allocation34_spill] sm:$0xff] %v5143_v38  ;;  %1231 = vperm.xlu1 %4384, %v1212_v17   ;;  %1228 = vperm.xlu0 %4383, %v1211_v26   ;;  %v5298_v31 = vld [vmem:[%s4701_s26 + $0x70] sm:$0xff] }
 0x145   : > { %v5149_v54 = vpop.permute.xlu1 %769  ;;  %v5151_v59 = vpop.permute.xlu0 %766 }
 0x146   : > { %8844 = vst [vmem:[#allocation35_spill] sm:$0xff] %v5149_v54  ;;  %8845 = vst [vmem:[#allocation36_spill] sm:$0xff] %v5151_v59  ;;  %1237 = vperm.xlu1 %4384, %v1214_v2   ;;  %1234 = vperm.xlu0 %4383, %v1213_v4   ;;  %v5284_v54 = vld [vmem:[%s4701_s26 + $0x60] sm:$0xff] }
 0x149   : > { %v5157_v17 = vpop.permute.xlu1 %775  ;;  %v5159_v26 = vpop.permute.xlu0 %772 }
 0x14a   : > { %8846 = vst [vmem:[#allocation37_spill] sm:$0xff] %v5157_v17  ;;  %8847 = vst [vmem:[#allocation38_spill] sm:$0xff] %v5159_v26  ;;  %1243 = vperm.xlu1 %4384, %v1216_v1   ;;  %1240 = vperm.xlu0 %4383, %v1215_v3   ;;  %v5270_v17 = vld [vmem:[%s4701_s26 + $0x50] sm:$0xff] }
 0x14b   : > { %vm1322_vm11 = vcmp.eq.s32.totalorder %v5270_v17, 9 }
 0x14d   : > { %v5165_v2 = vpop.permute.xlu1 %781  ;;  %v5167_v4 = vpop.permute.xlu0 %778 }
 0x14e   : > { %8848 = vst [vmem:[#allocation39_spill] sm:$0xff] %v5165_v2  ;;  %8849 = vst [vmem:[#allocation40_spill] sm:$0xff] %v5167_v4  ;;  %1249 = vperm.xlu1 %4384, %v1218_v7   ;;  %1246 = vperm.xlu0 %4383, %v1217_v8   ;;  %v1223_v8 = vsel %vm1207_vm13, 1, %v8769_v0  ;;  %v5256_v2 = vld [vmem:[%s4701_s26 + $0x40] sm:$0xff]  ;;  %vm1324_vm13 = vcmp.eq.s32.totalorder %v5284_v54, 9 }
 0x14f   : > { %vm1320_vm9 = vcmp.eq.s32.totalorder %v5256_v2, 9 }
 0x151   : > { %v5173_v1 = vpop.permute.xlu1 %787  ;;  %v5175_v3 = vpop.permute.xlu0 %784 }
 0x152   : > { %8850 = vst [vmem:[#allocation41_spill] sm:$0xff] %v5173_v1  ;;  %8851 = vst [vmem:[#allocation42_spill] sm:$0xff] %v5175_v3  ;;  %1255 = vperm.xlu1 %4384, %v1220_v11   ;;  %1252 = vperm.xlu0 %4383, %v1219_v12   ;;  %v1225_v12 = vsel %vm1209_vm15, 1, %v8769_v0  ;;  %v5242_v1 = vld [vmem:[%s4701_s26 + $0x30] sm:$0xff]  ;;  %vm1326_vm15 = vcmp.eq.s32.totalorder %v5298_v31, 9 }
 0x153   : > { %vm1318_vm7 = vcmp.eq.s32.totalorder %v5242_v1, 9 }
 0x155   : > { %v5181_v7 = vpop.permute.xlu1 %793  ;;  %v5183_v19 = vpop.permute.xlu0 %790 }
 0x156   : > { %8852 = vst [vmem:[#allocation43_spill] sm:$0xff] %v5181_v7  ;;  %8853 = vst [vmem:[#allocation44_spill] sm:$0xff] %v5183_v19  ;;  %1261 = vperm.xlu1 %4384, %v1222_v15   ;;  %1258 = vperm.xlu0 %4383, %v1221_v16   ;;  %v5196_v15 = vld [vmem:[%s4701_s26 + $0x8] sm:$0xff]  ;;  %v5200_v16 = vld [vmem:[%s4701_s26] sm:$0xff] }
 0x157   : > { %vm1313_vm0 = vcmp.eq.s32.totalorder %v5196_v15, 9  ;;  %vm1312_vm1 = vcmp.eq.s32.totalorder %v5200_v16, 9  ;;  %v5228_v7 = vld [vmem:[%s4701_s26 + $0x20] sm:$0xff] }
 0x158   : > { %vm1316_vm5 = vcmp.eq.s32.totalorder %v5228_v7, 9 }
 0x159   : > { %v5189_v11 = vpop.permute.xlu1 %799  ;;  %v5191_v23 = vpop.permute.xlu0 %796 }
 0x15a   : > { %8854 = vst [vmem:[#allocation45_spill] sm:$0xff] %v5189_v11  ;;  %8855 = vst [vmem:[#allocation46_spill] sm:$0xff] %v5191_v23  ;;  %1267 = vperm.xlu1 %4384, %v1224_v20   ;;  %1264 = vperm.xlu0 %4383, %v1223_v8   ;;  %v1329_v20 = vsel %vm1313_vm0, 1, %v8769_v0  ;;  %v1328_v8 = vsel %vm1312_vm1, 1, %v8769_v0  ;;  %v5210_v23 = vld [vmem:[%s4701_s26 + $0x18] sm:$0xff]  ;;  %v5214_v11 = vld [vmem:[%s4701_s26 + $0x10] sm:$0xff] }
 0x15b   : > { %vm1315_vm2 = vcmp.eq.s32.totalorder %v5210_v23, 9  ;;  %vm1314_vm3 = vcmp.eq.s32.totalorder %v5214_v11, 9  ;;  %vm1430_vm0 = vcmp.eq.s32.totalorder %v5196_v15, 10  ;;  %vm1429_vm1 = vcmp.eq.s32.totalorder %v5200_v16, 10 }
 0x15d   : > { %v5203_v27 = vpop.permute.xlu1 %805  ;;  %v5205_v28 = vpop.permute.xlu0 %802 }
 0x15e   : > { %8856 = vst [vmem:[#allocation47_spill] sm:$0xff] %v5203_v27  ;;  %8857 = vst [vmem:[#allocation48_spill] sm:$0xff] %v5205_v28  ;;  %1273 = vperm.xlu1 %4384, %v1226_v24   ;;  %1270 = vperm.xlu0 %4383, %v1225_v12   ;;  %v1331_v24 = vsel %vm1315_vm2, 1, %v8769_v0  ;;  %v1330_v12 = vsel %vm1314_vm3, 1, %v8769_v0  ;;  %v5224_v28 = vld [vmem:[%s4701_s26 + $0x28] sm:$0xff]  ;;  %vm1432_vm2 = vcmp.eq.s32.totalorder %v5210_v23, 10 }
 0x15f   : > { %vm1317_vm4 = vcmp.eq.s32.totalorder %v5224_v28, 9  ;;  %vm1431_vm3 = vcmp.eq.s32.totalorder %v5214_v11, 10 }
 0x161   : > { %v5217_v19 = vpop.permute.xlu1 %880  ;;  %v5219_v27 = vpop.permute.xlu0 %877 }
 0x162   : > { %8858 = vst [vmem:[#allocation49_spill] sm:$0xff] %v5217_v19  ;;  %8859 = vst [vmem:[#allocation50_spill] sm:$0xff] %v5219_v27  ;;  %1348 = vperm.xlu1 %4384, %v1329_v20   ;;  %1345 = vperm.xlu0 %4383, %v1328_v8   ;;  %v1333_v20 = vsel %vm1317_vm4, 1, %v8769_v0  ;;  %v1332_v8 = vsel %vm1316_vm5, 1, %v8769_v0  ;;  %v5238_v27 = vld [vmem:[%s4701_s26 + $0x38] sm:$0xff]  ;;  %vm1434_vm4 = vcmp.eq.s32.totalorder %v5224_v28, 10 }
 0x163   : > { %vm1319_vm6 = vcmp.eq.s32.totalorder %v5238_v27, 9  ;;  %vm1433_vm5 = vcmp.eq.s32.totalorder %v5228_v7, 10 }
 0x165   : > { %v5231_v3 = vpop.permute.xlu1 %886  ;;  %v5233_v19 = vpop.permute.xlu0 %883 }
 0x166   : > { %8860 = vst [vmem:[#allocation51_spill] sm:$0xff] %v5231_v3  ;;  %8861 = vst [vmem:[#allocation52_spill] sm:$0xff] %v5233_v19  ;;  %1354 = vperm.xlu1 %4384, %v1331_v24   ;;  %1351 = vperm.xlu0 %4383, %v1330_v12   ;;  %v1335_v24 = vsel %vm1319_vm6, 1, %v8769_v0  ;;  %v1334_v12 = vsel %vm1318_vm7, 1, %v8769_v0  ;;  %v5252_v19 = vld [vmem:[%s4701_s26 + $0x48] sm:$0xff]  ;;  %vm1436_vm6 = vcmp.eq.s32.totalorder %v5238_v27, 10 }
 0x167   : > { %vm1321_vm8 = vcmp.eq.s32.totalorder %v5252_v19, 9  ;;  %vm1435_vm7 = vcmp.eq.s32.totalorder %v5242_v1, 10 }
 0x169   : > { %v5245_v4 = vpop.permute.xlu1 %892  ;;  %v5247_v3 = vpop.permute.xlu0 %889 }
 0x16a   : > { %8862 = vst [vmem:[#allocation53_spill] sm:$0xff] %v5245_v4  ;;  %8863 = vst [vmem:[#allocation54_spill] sm:$0xff] %v5247_v3  ;;  %1360 = vperm.xlu1 %4384, %v1333_v20   ;;  %1357 = vperm.xlu0 %4383, %v1332_v8   ;;  %v1337_v20 = vsel %vm1321_vm8, 1, %v8769_v0  ;;  %v1336_v8 = vsel %vm1320_vm9, 1, %v8769_v0  ;;  %v5266_v3 = vld [vmem:[%s4701_s26 + $0x58] sm:$0xff]  ;;  %vm1438_vm8 = vcmp.eq.s32.totalorder %v5252_v19, 10 }
 0x16b   : > { %vm1323_vm10 = vcmp.eq.s32.totalorder %v5266_v3, 9  ;;  %vm1437_vm9 = vcmp.eq.s32.totalorder %v5256_v2, 10 }
 0x16d   : > { %v5259_v26 = vpop.permute.xlu1 %898  ;;  %v5261_v4 = vpop.permute.xlu0 %895 }
 0x16e   : > { %8864 = vst [vmem:[#allocation55_spill] sm:$0xff] %v5259_v26  ;;  %8865 = vst [vmem:[#allocation56_spill] sm:$0xff] %v5261_v4  ;;  %1366 = vperm.xlu1 %4384, %v1335_v24   ;;  %1363 = vperm.xlu0 %4383, %v1334_v12   ;;  %v1339_v24 = vsel %vm1323_vm10, 1, %v8769_v0  ;;  %v1338_v12 = vsel %vm1322_vm11, 1, %v8769_v0  ;;  %v5280_v4 = vld [vmem:[%s4701_s26 + $0x68] sm:$0xff]  ;;  %vm1440_vm10 = vcmp.eq.s32.totalorder %v5266_v3, 10 }
 0x16f   : > { %vm1325_vm12 = vcmp.eq.s32.totalorder %v5280_v4, 9  ;;  %vm1439_vm11 = vcmp.eq.s32.totalorder %v5270_v17, 10 }
 0x171   : > { %v5273_v59 = vpop.permute.xlu1 %904  ;;  %v5275_v26 = vpop.permute.xlu0 %901 }
 0x172   : > { %8866 = vst [vmem:[#allocation57_spill] sm:$0xff] %v5273_v59  ;;  %8867 = vst [vmem:[#allocation58_spill] sm:$0xff] %v5275_v26  ;;  %1372 = vperm.xlu1 %4384, %v1337_v20   ;;  %1369 = vperm.xlu0 %4383, %v1336_v8   ;;  %v1341_v20 = vsel %vm1325_vm12, 1, %v8769_v0  ;;  %v1340_v8 = vsel %vm1324_vm13, 1, %v8769_v0  ;;  %v5294_v26 = vld [vmem:[%s4701_s26 + $0x78] sm:$0xff]  ;;  %vm1442_vm12 = vcmp.eq.s32.totalorder %v5280_v4, 10 }
 0x173   : > { %vm1327_vm14 = vcmp.eq.s32.totalorder %v5294_v26, 9  ;;  %vm1441_vm13 = vcmp.eq.s32.totalorder %v5284_v54, 10 }
 0x175   : > { %v5287_v38 = vpop.permute.xlu1 %910  ;;  %v5289_v59 = vpop.permute.xlu0 %907 }
 0x176   : > { %8868 = vst [vmem:[#allocation59_spill] sm:$0xff] %v5287_v38  ;;  %8869 = vst [vmem:[#allocation60_spill] sm:$0xff] %v5289_v59  ;;  %1378 = vperm.xlu1 %4384, %v1339_v24   ;;  %1375 = vperm.xlu0 %4383, %v1338_v12   ;;  %v1343_v24 = vsel %vm1327_vm14, 1, %v8769_v0  ;;  %v1342_v12 = vsel %vm1326_vm15, 1, %v8769_v0  ;;  %vm1444_vm14 = vcmp.eq.s32.totalorder %v5294_v26, 10  ;;  %vm1443_vm15 = vcmp.eq.s32.totalorder %v5298_v31, 10 }
 0x179   : > { %v5301_v43 = vpop.permute.xlu1 %916  ;;  %v5303_v10 = vpop.permute.xlu0 %913 }
 0x17a   : > { %8870 = vst [vmem:[#allocation61_spill] sm:$0xff] %v5301_v43  ;;  %8871 = vst [vmem:[#allocation62_spill] sm:$0xff] %v5303_v10  ;;  %1384 = vperm.xlu1 %4384, %v1341_v20   ;;  %1381 = vperm.xlu0 %4383, %v1340_v8   ;;  %v1446_v43 = vsel %vm1430_vm0, 1, %v8769_v0  ;;  %v1445_v10 = vsel %vm1429_vm1, 1, %v8769_v0  ;;  %vm1547_vm0 = vcmp.eq.s32.totalorder %v5196_v15, 11  ;;  %vm1546_vm1 = vcmp.eq.s32.totalorder %v5200_v16, 11 }
 0x17d   : > { %v5309_v59 = vpop.permute.xlu1 %922  ;;  %v5311_v38 = vpop.permute.xlu0 %919 }
 0x17e   : > { %8872 = vst [vmem:[#allocation63_spill] sm:$0xff] %v5309_v59  ;;  %8873 = vst [vmem:[#allocation64_spill] sm:$0xff] %v5311_v38  ;;  %1390 = vperm.xlu1 %4384, %v1343_v24   ;;  %1387 = vperm.xlu0 %4383, %v1342_v12   ;;  %v1448_v59 = vsel %vm1432_vm2, 1, %v8769_v0  ;;  %v1447_v38 = vsel %vm1431_vm3, 1, %v8769_v0  ;;  %vm1549_vm2 = vcmp.eq.s32.totalorder %v5210_v23, 11  ;;  %vm1548_vm3 = vcmp.eq.s32.totalorder %v5214_v11, 11 }
 0x181   : > { %v5317_v20 = vpop.permute.xlu1 %997  ;;  %v5319_v8 = vpop.permute.xlu0 %994 }
 0x182   : > { %8874 = vst [vmem:[#allocation65_spill] sm:$0xff] %v5317_v20  ;;  %8875 = vst [vmem:[#allocation66_spill] sm:$0xff] %v5319_v8  ;;  %1465 = vperm.xlu1 %4384, %v1446_v43   ;;  %1462 = vperm.xlu0 %4383, %v1445_v10   ;;  %v1450_v20 = vsel %vm1434_vm4, 1, %v8769_v0  ;;  %v1449_v8 = vsel %vm1433_vm5, 1, %v8769_v0  ;;  %vm1551_vm4 = vcmp.eq.s32.totalorder %v5224_v28, 11  ;;  %vm1550_vm5 = vcmp.eq.s32.totalorder %v5228_v7, 11 }
 0x185   : > { %v5325_v24 = vpop.permute.xlu1 %1003  ;;  %v5327_v12 = vpop.permute.xlu0 %1000 }
 0x186   : > { %8876 = vst [vmem:[#allocation67_spill] sm:$0xff] %v5325_v24  ;;  %8877 = vst [vmem:[#allocation68_spill] sm:$0xff] %v5327_v12  ;;  %1471 = vperm.xlu1 %4384, %v1448_v59   ;;  %1468 = vperm.xlu0 %4383, %v1447_v38   ;;  %v1452_v24 = vsel %vm1436_vm6, 1, %v8769_v0  ;;  %v1451_v12 = vsel %vm1435_vm7, 1, %v8769_v0  ;;  %vm1553_vm6 = vcmp.eq.s32.totalorder %v5238_v27, 11  ;;  %vm1552_vm7 = vcmp.eq.s32.totalorder %v5242_v1, 11 }
 0x189   : > { %v5333_v10 = vpop.permute.xlu1 %1009  ;;  %v5335_v43 = vpop.permute.xlu0 %1006 }
 0x18a   : > { %8878 = vst [vmem:[#allocation69_spill] sm:$0xff] %v5333_v10  ;;  %8879 = vst [vmem:[#allocation70_spill] sm:$0xff] %v5335_v43  ;;  %1477 = vperm.xlu1 %4384, %v1450_v20   ;;  %1474 = vperm.xlu0 %4383, %v1449_v8   ;;  %v1454_v10 = vsel %vm1438_vm8, 1, %v8769_v0  ;;  %v1453_v43 = vsel %vm1437_vm9, 1, %v8769_v0  ;;  %vm1555_vm8 = vcmp.eq.s32.totalorder %v5252_v19, 11  ;;  %vm1554_vm9 = vcmp.eq.s32.totalorder %v5256_v2, 11 }
 0x18d   : > { %v5341_v38 = vpop.permute.xlu1 %1015  ;;  %v5343_v59 = vpop.permute.xlu0 %1012 }
 0x18e   : > { %8880 = vst [vmem:[#allocation71_spill] sm:$0xff] %v5341_v38  ;;  %8881 = vst [vmem:[#allocation72_spill] sm:$0xff] %v5343_v59  ;;  %1483 = vperm.xlu1 %4384, %v1452_v24   ;;  %1480 = vperm.xlu0 %4383, %v1451_v12   ;;  %v1456_v38 = vsel %vm1440_vm10, 1, %v8769_v0  ;;  %v1455_v59 = vsel %vm1439_vm11, 1, %v8769_v0  ;;  %vm1557_vm10 = vcmp.eq.s32.totalorder %v5266_v3, 11  ;;  %vm1556_vm11 = vcmp.eq.s32.totalorder %v5270_v17, 11 }
 0x191   : > { %v5349_v20 = vpop.permute.xlu1 %1021  ;;  %v5351_v8 = vpop.permute.xlu0 %1018 }
 0x192   : > { %8882 = vst [vmem:[#allocation73_spill] sm:$0xff] %v5349_v20  ;;  %8883 = vst [vmem:[#allocation74_spill] sm:$0xff] %v5351_v8  ;;  %1489 = vperm.xlu1 %4384, %v1454_v10   ;;  %1486 = vperm.xlu0 %4383, %v1453_v43   ;;  %v1458_v20 = vsel %vm1442_vm12, 1, %v8769_v0  ;;  %v1457_v8 = vsel %vm1441_vm13, 1, %v8769_v0  ;;  %vm1559_vm12 = vcmp.eq.s32.totalorder %v5280_v4, 11  ;;  %vm1558_vm13 = vcmp.eq.s32.totalorder %v5284_v54, 11 }
 0x195   : > { %v5357_v24 = vpop.permute.xlu1 %1027  ;;  %v5359_v12 = vpop.permute.xlu0 %1024 }
 0x196   : > { %8884 = vst [vmem:[#allocation75_spill] sm:$0xff] %v5357_v24  ;;  %8885 = vst [vmem:[#allocation76_spill] sm:$0xff] %v5359_v12  ;;  %1495 = vperm.xlu1 %4384, %v1456_v38   ;;  %1492 = vperm.xlu0 %4383, %v1455_v59   ;;  %v1460_v24 = vsel %vm1444_vm14, 1, %v8769_v0  ;;  %v1459_v12 = vsel %vm1443_vm15, 1, %v8769_v0  ;;  %vm1561_vm14 = vcmp.eq.s32.totalorder %v5294_v26, 11  ;;  %vm1560_vm15 = vcmp.eq.s32.totalorder %v5298_v31, 11 }
 0x199   : > { %v5365_v10 = vpop.permute.xlu1 %1033  ;;  %v5367_v43 = vpop.permute.xlu0 %1030 }
 0x19a   : > { %8886 = vst [vmem:[#allocation77_spill] sm:$0xff] %v5365_v10  ;;  %8887 = vst [vmem:[#allocation78_spill] sm:$0xff] %v5367_v43  ;;  %1501 = vperm.xlu1 %4384, %v1458_v20   ;;  %1498 = vperm.xlu0 %4383, %v1457_v8   ;;  %v1563_v10 = vsel %vm1547_vm0, 1, %v8769_v0  ;;  %v1562_v43 = vsel %vm1546_vm1, 1, %v8769_v0  ;;  %vm1664_vm0 = vcmp.eq.s32.totalorder %v5196_v15, 12  ;;  %vm1663_vm1 = vcmp.eq.s32.totalorder %v5200_v16, 12 }
 0x19d   : > { %v5373_v38 = vpop.permute.xlu1 %1039  ;;  %v5375_v59 = vpop.permute.xlu0 %1036 }
 0x19e   : > { %8888 = vst [vmem:[#allocation79_spill] sm:$0xff] %v5373_v38  ;;  %8889 = vst [vmem:[#allocation80_spill] sm:$0xff] %v5375_v59  ;;  %1507 = vperm.xlu1 %4384, %v1460_v24   ;;  %1504 = vperm.xlu0 %4383, %v1459_v12   ;;  %v1565_v38 = vsel %vm1549_vm2, 1, %v8769_v0  ;;  %v1564_v59 = vsel %vm1548_vm3, 1, %v8769_v0  ;;  %vm1666_vm2 = vcmp.eq.s32.totalorder %v5210_v23, 12  ;;  %vm1665_vm3 = vcmp.eq.s32.totalorder %v5214_v11, 12 }
 0x1a1   : > { %v5381_v20 = vpop.permute.xlu1 %1114  ;;  %v5383_v8 = vpop.permute.xlu0 %1111 }
 0x1a2   : > { %8890 = vst [vmem:[#allocation81_spill] sm:$0xff] %v5381_v20  ;;  %8891 = vst [vmem:[#allocation82_spill] sm:$0xff] %v5383_v8  ;;  %1582 = vperm.xlu1 %4384, %v1563_v10   ;;  %1579 = vperm.xlu0 %4383, %v1562_v43   ;;  %v1567_v20 = vsel %vm1551_vm4, 1, %v8769_v0  ;;  %v1566_v8 = vsel %vm1550_vm5, 1, %v8769_v0  ;;  %vm1668_vm4 = vcmp.eq.s32.totalorder %v5224_v28, 12  ;;  %vm1667_vm5 = vcmp.eq.s32.totalorder %v5228_v7, 12 }
 0x1a5   : > { %v5389_v24 = vpop.permute.xlu1 %1120  ;;  %v5391_v12 = vpop.permute.xlu0 %1117 }
 0x1a6   : > { %8892 = vst [vmem:[#allocation83_spill] sm:$0xff] %v5389_v24  ;;  %8893 = vst [vmem:[#allocation84_spill] sm:$0xff] %v5391_v12  ;;  %1588 = vperm.xlu1 %4384, %v1565_v38   ;;  %1585 = vperm.xlu0 %4383, %v1564_v59   ;;  %v1569_v24 = vsel %vm1553_vm6, 1, %v8769_v0  ;;  %v1568_v12 = vsel %vm1552_vm7, 1, %v8769_v0  ;;  %vm1670_vm6 = vcmp.eq.s32.totalorder %v5238_v27, 12  ;;  %vm1669_vm7 = vcmp.eq.s32.totalorder %v5242_v1, 12 }
 0x1a9   : > { %v5397_v10 = vpop.permute.xlu1 %1126  ;;  %v5399_v43 = vpop.permute.xlu0 %1123 }
 0x1aa   : > { %8894 = vst [vmem:[#allocation85_spill] sm:$0xff] %v5397_v10  ;;  %8895 = vst [vmem:[#allocation86_spill] sm:$0xff] %v5399_v43  ;;  %1594 = vperm.xlu1 %4384, %v1567_v20   ;;  %1591 = vperm.xlu0 %4383, %v1566_v8   ;;  %v1571_v10 = vsel %vm1555_vm8, 1, %v8769_v0  ;;  %v1570_v43 = vsel %vm1554_vm9, 1, %v8769_v0  ;;  %vm1672_vm8 = vcmp.eq.s32.totalorder %v5252_v19, 12  ;;  %vm1671_vm9 = vcmp.eq.s32.totalorder %v5256_v2, 12 }
 0x1ad   : > { %v5405_v38 = vpop.permute.xlu1 %1132  ;;  %v5407_v59 = vpop.permute.xlu0 %1129 }
 0x1ae   : > { %8896 = vst [vmem:[#allocation87_spill] sm:$0xff] %v5405_v38  ;;  %8897 = vst [vmem:[#allocation88_spill] sm:$0xff] %v5407_v59  ;;  %1600 = vperm.xlu1 %4384, %v1569_v24   ;;  %1597 = vperm.xlu0 %4383, %v1568_v12   ;;  %v1573_v38 = vsel %vm1557_vm10, 1, %v8769_v0  ;;  %v1572_v59 = vsel %vm1556_vm11, 1, %v8769_v0  ;;  %vm1674_vm10 = vcmp.eq.s32.totalorder %v5266_v3, 12  ;;  %vm1673_vm11 = vcmp.eq.s32.totalorder %v5270_v17, 12 }
 0x1b1   : > { %v5413_v20 = vpop.permute.xlu1 %1138  ;;  %v5415_v8 = vpop.permute.xlu0 %1135 }
 0x1b2   : > { %8898 = vst [vmem:[#allocation89_spill] sm:$0xff] %v5413_v20  ;;  %8899 = vst [vmem:[#allocation90_spill] sm:$0xff] %v5415_v8  ;;  %1606 = vperm.xlu1 %4384, %v1571_v10   ;;  %1603 = vperm.xlu0 %4383, %v1570_v43   ;;  %v1575_v20 = vsel %vm1559_vm12, 1, %v8769_v0  ;;  %v1574_v8 = vsel %vm1558_vm13, 1, %v8769_v0  ;;  %vm1676_vm12 = vcmp.eq.s32.totalorder %v5280_v4, 12  ;;  %vm1675_vm13 = vcmp.eq.s32.totalorder %v5284_v54, 12 }
 0x1b5   : > { %v5421_v24 = vpop.permute.xlu1 %1144  ;;  %v5423_v12 = vpop.permute.xlu0 %1141 }
 0x1b6   : > { %8900 = vst [vmem:[#allocation91_spill] sm:$0xff] %v5421_v24  ;;  %8901 = vst [vmem:[#allocation92_spill] sm:$0xff] %v5423_v12  ;;  %1612 = vperm.xlu1 %4384, %v1573_v38   ;;  %1609 = vperm.xlu0 %4383, %v1572_v59   ;;  %v1577_v24 = vsel %vm1561_vm14, 1, %v8769_v0  ;;  %v1576_v12 = vsel %vm1560_vm15, 1, %v8769_v0  ;;  %vm1678_vm14 = vcmp.eq.s32.totalorder %v5294_v26, 12  ;;  %vm1677_vm15 = vcmp.eq.s32.totalorder %v5298_v31, 12 }
 0x1b9   : > { %v5429_v10 = vpop.permute.xlu1 %1150  ;;  %v5431_v43 = vpop.permute.xlu0 %1147 }
 0x1ba   : > { %8902 = vst [vmem:[#allocation93_spill] sm:$0xff] %v5429_v10  ;;  %8903 = vst [vmem:[#allocation94_spill] sm:$0xff] %v5431_v43  ;;  %1618 = vperm.xlu1 %4384, %v1575_v20   ;;  %1615 = vperm.xlu0 %4383, %v1574_v8   ;;  %v1680_v10 = vsel %vm1664_vm0, 1, %v8769_v0  ;;  %v1679_v43 = vsel %vm1663_vm1, 1, %v8769_v0  ;;  %vm1781_vm0 = vcmp.eq.s32.totalorder %v5196_v15, 13  ;;  %vm1780_vm1 = vcmp.eq.s32.totalorder %v5200_v16, 13 }
 0x1bd   : > { %v5437_v38 = vpop.permute.xlu1 %1156  ;;  %v5439_v59 = vpop.permute.xlu0 %1153 }
 0x1be   : > { %8904 = vst [vmem:[#allocation95_spill] sm:$0xff] %v5437_v38  ;;  %8905 = vst [vmem:[#allocation96_spill] sm:$0xff] %v5439_v59  ;;  %1624 = vperm.xlu1 %4384, %v1577_v24   ;;  %1621 = vperm.xlu0 %4383, %v1576_v12   ;;  %v1682_v38 = vsel %vm1666_vm2, 1, %v8769_v0  ;;  %v1681_v59 = vsel %vm1665_vm3, 1, %v8769_v0  ;;  %vm1783_vm2 = vcmp.eq.s32.totalorder %v5210_v23, 13  ;;  %vm1782_vm3 = vcmp.eq.s32.totalorder %v5214_v11, 13 }
 0x1c1   : > { %v5445_v20 = vpop.permute.xlu1 %1231  ;;  %v5447_v8 = vpop.permute.xlu0 %1228 }
 0x1c2   : > { %8906 = vst [vmem:[#allocation97_spill] sm:$0xff] %v5445_v20  ;;  %8907 = vst [vmem:[#allocation98_spill] sm:$0xff] %v5447_v8  ;;  %1699 = vperm.xlu1 %4384, %v1680_v10   ;;  %1696 = vperm.xlu0 %4383, %v1679_v43   ;;  %v1684_v20 = vsel %vm1668_vm4, 1, %v8769_v0  ;;  %v1683_v8 = vsel %vm1667_vm5, 1, %v8769_v0  ;;  %vm1785_vm4 = vcmp.eq.s32.totalorder %v5224_v28, 13  ;;  %vm1784_vm5 = vcmp.eq.s32.totalorder %v5228_v7, 13 }
 0x1c5   : > { %v5453_v24 = vpop.permute.xlu1 %1237  ;;  %v5455_v12 = vpop.permute.xlu0 %1234 }
 0x1c6   : > { %8908 = vst [vmem:[#allocation99_spill] sm:$0xff] %v5453_v24  ;;  %8909 = vst [vmem:[#allocation100_spill] sm:$0xff] %v5455_v12  ;;  %1705 = vperm.xlu1 %4384, %v1682_v38   ;;  %1702 = vperm.xlu0 %4383, %v1681_v59   ;;  %v1686_v24 = vsel %vm1670_vm6, 1, %v8769_v0  ;;  %v1685_v12 = vsel %vm1669_vm7, 1, %v8769_v0  ;;  %vm1787_vm6 = vcmp.eq.s32.totalorder %v5238_v27, 13  ;;  %vm1786_vm7 = vcmp.eq.s32.totalorder %v5242_v1, 13 }
 0x1c9   : > { %v5461_v10 = vpop.permute.xlu1 %1243  ;;  %v5463_v43 = vpop.permute.xlu0 %1240 }
 0x1ca   : > { %8910 = vst [vmem:[#allocation101_spill] sm:$0xff] %v5461_v10  ;;  %8911 = vst [vmem:[#allocation102_spill] sm:$0xff] %v5463_v43  ;;  %1711 = vperm.xlu1 %4384, %v1684_v20   ;;  %1708 = vperm.xlu0 %4383, %v1683_v8   ;;  %v1688_v10 = vsel %vm1672_vm8, 1, %v8769_v0  ;;  %v1687_v43 = vsel %vm1671_vm9, 1, %v8769_v0  ;;  %vm1789_vm8 = vcmp.eq.s32.totalorder %v5252_v19, 13  ;;  %vm1788_vm9 = vcmp.eq.s32.totalorder %v5256_v2, 13 }
 0x1cd   : > { %v5469_v38 = vpop.permute.xlu1 %1249  ;;  %v5471_v59 = vpop.permute.xlu0 %1246 }
 0x1ce   : > { %8912 = vst [vmem:[#allocation103_spill] sm:$0xff] %v5469_v38  ;;  %8913 = vst [vmem:[#allocation104_spill] sm:$0xff] %v5471_v59  ;;  %1717 = vperm.xlu1 %4384, %v1686_v24   ;;  %1714 = vperm.xlu0 %4383, %v1685_v12   ;;  %v1690_v38 = vsel %vm1674_vm10, 1, %v8769_v0  ;;  %v1689_v59 = vsel %vm1673_vm11, 1, %v8769_v0  ;;  %vm1791_vm10 = vcmp.eq.s32.totalorder %v5266_v3, 13  ;;  %vm1790_vm11 = vcmp.eq.s32.totalorder %v5270_v17, 13 }
 0x1d1   : > { %v5477_v20 = vpop.permute.xlu1 %1255  ;;  %v5479_v8 = vpop.permute.xlu0 %1252 }
 0x1d2   : > { %8914 = vst [vmem:[#allocation105_spill] sm:$0xff] %v5477_v20  ;;  %8915 = vst [vmem:[#allocation106_spill] sm:$0xff] %v5479_v8  ;;  %1723 = vperm.xlu1 %4384, %v1688_v10   ;;  %1720 = vperm.xlu0 %4383, %v1687_v43   ;;  %v1692_v20 = vsel %vm1676_vm12, 1, %v8769_v0  ;;  %v1691_v8 = vsel %vm1675_vm13, 1, %v8769_v0  ;;  %vm1793_vm12 = vcmp.eq.s32.totalorder %v5280_v4, 13  ;;  %vm1792_vm13 = vcmp.eq.s32.totalorder %v5284_v54, 13 }
 0x1d5   : > { %v5485_v24 = vpop.permute.xlu1 %1261  ;;  %v5487_v12 = vpop.permute.xlu0 %1258 }
 0x1d6   : > { %8916 = vst [vmem:[#allocation107_spill] sm:$0xff] %v5485_v24  ;;  %8917 = vst [vmem:[#allocation108_spill] sm:$0xff] %v5487_v12  ;;  %1729 = vperm.xlu1 %4384, %v1690_v38   ;;  %1726 = vperm.xlu0 %4383, %v1689_v59   ;;  %v1694_v24 = vsel %vm1678_vm14, 1, %v8769_v0  ;;  %v1693_v12 = vsel %vm1677_vm15, 1, %v8769_v0  ;;  %vm1795_vm14 = vcmp.eq.s32.totalorder %v5294_v26, 13  ;;  %vm1794_vm15 = vcmp.eq.s32.totalorder %v5298_v31, 13 }
 0x1d9   : > { %v5493_v10 = vpop.permute.xlu1 %1267  ;;  %v5495_v43 = vpop.permute.xlu0 %1264 }
 0x1da   : > { %8918 = vst [vmem:[#allocation109_spill] sm:$0xff] %v5493_v10  ;;  %8919 = vst [vmem:[#allocation110_spill] sm:$0xff] %v5495_v43  ;;  %1735 = vperm.xlu1 %4384, %v1692_v20   ;;  %1732 = vperm.xlu0 %4383, %v1691_v8   ;;  %v1797_v10 = vsel %vm1781_vm0, 1, %v8769_v0  ;;  %v1796_v43 = vsel %vm1780_vm1, 1, %v8769_v0  ;;  %vm1898_vm0 = vcmp.eq.s32.totalorder %v5196_v15, 14  ;;  %vm1897_vm1 = vcmp.eq.s32.totalorder %v5200_v16, 14 }
 0x1dd   : > { %v5501_v38 = vpop.permute.xlu1 %1273  ;;  %v5503_v59 = vpop.permute.xlu0 %1270 }
 0x1de   : > { %8920 = vst [vmem:[#allocation111_spill] sm:$0xff] %v5501_v38  ;;  %8921 = vst [vmem:[#allocation112_spill] sm:$0xff] %v5503_v59  ;;  %1741 = vperm.xlu1 %4384, %v1694_v24   ;;  %1738 = vperm.xlu0 %4383, %v1693_v12   ;;  %v1799_v38 = vsel %vm1783_vm2, 1, %v8769_v0  ;;  %v1798_v59 = vsel %vm1782_vm3, 1, %v8769_v0  ;;  %vm1900_vm2 = vcmp.eq.s32.totalorder %v5210_v23, 14  ;;  %vm1899_vm3 = vcmp.eq.s32.totalorder %v5214_v11, 14 }
 0x1e1   : > { %v5509_v20 = vpop.permute.xlu1 %1348  ;;  %v5511_v8 = vpop.permute.xlu0 %1345 }
 0x1e2   : > { %8922 = vst [vmem:[#allocation113_spill] sm:$0xff] %v5509_v20  ;;  %8923 = vst [vmem:[#allocation114_spill] sm:$0xff] %v5511_v8  ;;  %1816 = vperm.xlu1 %4384, %v1797_v10   ;;  %1813 = vperm.xlu0 %4383, %v1796_v43   ;;  %v1801_v20 = vsel %vm1785_vm4, 1, %v8769_v0  ;;  %v1800_v8 = vsel %vm1784_vm5, 1, %v8769_v0  ;;  %vm1902_vm4 = vcmp.eq.s32.totalorder %v5224_v28, 14  ;;  %vm1901_vm5 = vcmp.eq.s32.totalorder %v5228_v7, 14 }
 0x1e5   : > { %v5517_v24 = vpop.permute.xlu1 %1354  ;;  %v5519_v12 = vpop.permute.xlu0 %1351 }
 0x1e6   : > { %8924 = vst [vmem:[#allocation115_spill] sm:$0xff] %v5517_v24  ;;  %8925 = vst [vmem:[#allocation116_spill] sm:$0xff] %v5519_v12  ;;  %1822 = vperm.xlu1 %4384, %v1799_v38   ;;  %1819 = vperm.xlu0 %4383, %v1798_v59   ;;  %v1803_v24 = vsel %vm1787_vm6, 1, %v8769_v0  ;;  %v1802_v12 = vsel %vm1786_vm7, 1, %v8769_v0  ;;  %vm1904_vm6 = vcmp.eq.s32.totalorder %v5238_v27, 14  ;;  %vm1903_vm7 = vcmp.eq.s32.totalorder %v5242_v1, 14 }
 0x1e9   : > { %v5525_v10 = vpop.permute.xlu1 %1360  ;;  %v5527_v43 = vpop.permute.xlu0 %1357 }
 0x1ea   : > { %8926 = vst [vmem:[#allocation117_spill] sm:$0xff] %v5525_v10  ;;  %8927 = vst [vmem:[#allocation118_spill] sm:$0xff] %v5527_v43  ;;  %1828 = vperm.xlu1 %4384, %v1801_v20   ;;  %1825 = vperm.xlu0 %4383, %v1800_v8   ;;  %v1805_v10 = vsel %vm1789_vm8, 1, %v8769_v0  ;;  %v1804_v43 = vsel %vm1788_vm9, 1, %v8769_v0  ;;  %vm1906_vm8 = vcmp.eq.s32.totalorder %v5252_v19, 14  ;;  %vm1905_vm9 = vcmp.eq.s32.totalorder %v5256_v2, 14 }
 0x1ed   : > { %v5533_v38 = vpop.permute.xlu1 %1366  ;;  %v5535_v59 = vpop.permute.xlu0 %1363 }
 0x1ee   : > { %8928 = vst [vmem:[#allocation119_spill] sm:$0xff] %v5533_v38  ;;  %8929 = vst [vmem:[#allocation120_spill] sm:$0xff] %v5535_v59  ;;  %1834 = vperm.xlu1 %4384, %v1803_v24   ;;  %1831 = vperm.xlu0 %4383, %v1802_v12   ;;  %v1807_v38 = vsel %vm1791_vm10, 1, %v8769_v0  ;;  %v1806_v59 = vsel %vm1790_vm11, 1, %v8769_v0  ;;  %vm1908_vm10 = vcmp.eq.s32.totalorder %v5266_v3, 14  ;;  %vm1907_vm11 = vcmp.eq.s32.totalorder %v5270_v17, 14 }
 0x1f1   : > { %v5541_v20 = vpop.permute.xlu1 %1372  ;;  %v5543_v8 = vpop.permute.xlu0 %1369 }
 0x1f2   : > { %8930 = vst [vmem:[#allocation121_spill] sm:$0xff] %v5541_v20  ;;  %8931 = vst [vmem:[#allocation122_spill] sm:$0xff] %v5543_v8  ;;  %1840 = vperm.xlu1 %4384, %v1805_v10   ;;  %1837 = vperm.xlu0 %4383, %v1804_v43   ;;  %v1809_v20 = vsel %vm1793_vm12, 1, %v8769_v0  ;;  %v1808_v8 = vsel %vm1792_vm13, 1, %v8769_v0  ;;  %vm1910_vm12 = vcmp.eq.s32.totalorder %v5280_v4, 14  ;;  %vm1909_vm13 = vcmp.eq.s32.totalorder %v5284_v54, 14 }
 0x1f5   : > { %v5549_v24 = vpop.permute.xlu1 %1378  ;;  %v5551_v12 = vpop.permute.xlu0 %1375 }
 0x1f6   : > { %8932 = vst [vmem:[#allocation123_spill] sm:$0xff] %v5549_v24  ;;  %8933 = vst [vmem:[#allocation124_spill] sm:$0xff] %v5551_v12  ;;  %1846 = vperm.xlu1 %4384, %v1807_v38   ;;  %1843 = vperm.xlu0 %4383, %v1806_v59   ;;  %v1811_v24 = vsel %vm1795_vm14, 1, %v8769_v0  ;;  %v1810_v12 = vsel %vm1794_vm15, 1, %v8769_v0  ;;  %vm1912_vm14 = vcmp.eq.s32.totalorder %v5294_v26, 14  ;;  %vm1911_vm15 = vcmp.eq.s32.totalorder %v5298_v31, 14 }
 0x1f9   : > { %v5557_v10 = vpop.permute.xlu1 %1384  ;;  %v5559_v43 = vpop.permute.xlu0 %1381 }
 0x1fa   : > { %8934 = vst [vmem:[#allocation125_spill] sm:$0xff] %v5557_v10  ;;  %8935 = vst [vmem:[#allocation126_spill] sm:$0xff] %v5559_v43  ;;  %1852 = vperm.xlu1 %4384, %v1809_v20   ;;  %1849 = vperm.xlu0 %4383, %v1808_v8   ;;  %v1914_v10 = vsel %vm1898_vm0, 1, %v8769_v0  ;;  %v1913_v43 = vsel %vm1897_vm1, 1, %v8769_v0  ;;  %vm2015_vm0 = vcmp.eq.s32.totalorder %v5196_v15, 15  ;;  %vm2014_vm1 = vcmp.eq.s32.totalorder %v5200_v16, 15 }
 0x1fd   : > { %v5565_v38 = vpop.permute.xlu1 %1390  ;;  %v5567_v59 = vpop.permute.xlu0 %1387 }
 0x1fe   : > { %8936 = vst [vmem:[#allocation127_spill] sm:$0xff] %v5565_v38  ;;  %8937 = vst [vmem:[#allocation128_spill] sm:$0xff] %v5567_v59  ;;  %1858 = vperm.xlu1 %4384, %v1811_v24   ;;  %1855 = vperm.xlu0 %4383, %v1810_v12   ;;  %v1916_v38 = vsel %vm1900_vm2, 1, %v8769_v0  ;;  %v1915_v59 = vsel %vm1899_vm3, 1, %v8769_v0  ;;  %vm2017_vm2 = vcmp.eq.s32.totalorder %v5210_v23, 15  ;;  %vm2016_vm3 = vcmp.eq.s32.totalorder %v5214_v11, 15 }
 0x201   : > { %v5573_v20 = vpop.permute.xlu1 %1465  ;;  %v5575_v8 = vpop.permute.xlu0 %1462 }
 0x202   : > { %8938 = vst [vmem:[#allocation129_spill] sm:$0xff] %v5573_v20  ;;  %8939 = vst [vmem:[#allocation130_spill] sm:$0xff] %v5575_v8  ;;  %1933 = vperm.xlu1 %4384, %v1914_v10   ;;  %1930 = vperm.xlu0 %4383, %v1913_v43   ;;  %v1918_v20 = vsel %vm1902_vm4, 1, %v8769_v0  ;;  %v1917_v8 = vsel %vm1901_vm5, 1, %v8769_v0  ;;  %vm2019_vm4 = vcmp.eq.s32.totalorder %v5224_v28, 15  ;;  %vm2018_vm5 = vcmp.eq.s32.totalorder %v5228_v7, 15 }
 0x205   : > { %v5581_v24 = vpop.permute.xlu1 %1471  ;;  %v5583_v12 = vpop.permute.xlu0 %1468 }
 0x206   : > { %8940 = vst [vmem:[#allocation131_spill] sm:$0xff] %v5581_v24  ;;  %8941 = vst [vmem:[#allocation132_spill] sm:$0xff] %v5583_v12  ;;  %1939 = vperm.xlu1 %4384, %v1916_v38   ;;  %1936 = vperm.xlu0 %4383, %v1915_v59   ;;  %v1920_v24 = vsel %vm1904_vm6, 1, %v8769_v0  ;;  %v1919_v12 = vsel %vm1903_vm7, 1, %v8769_v0  ;;  %vm2021_vm6 = vcmp.eq.s32.totalorder %v5238_v27, 15  ;;  %vm2020_vm7 = vcmp.eq.s32.totalorder %v5242_v1, 15 }
 0x209   : > { %v5589_v10 = vpop.permute.xlu1 %1477  ;;  %v5591_v43 = vpop.permute.xlu0 %1474 }
 0x20a   : > { %8942 = vst [vmem:[#allocation133_spill] sm:$0xff] %v5589_v10  ;;  %8943 = vst [vmem:[#allocation134_spill] sm:$0xff] %v5591_v43  ;;  %1945 = vperm.xlu1 %4384, %v1918_v20   ;;  %1942 = vperm.xlu0 %4383, %v1917_v8   ;;  %v1922_v10 = vsel %vm1906_vm8, 1, %v8769_v0  ;;  %v1921_v43 = vsel %vm1905_vm9, 1, %v8769_v0  ;;  %vm2023_vm8 = vcmp.eq.s32.totalorder %v5252_v19, 15  ;;  %vm2022_vm9 = vcmp.eq.s32.totalorder %v5256_v2, 15 }
 0x20d   : > { %v5597_v38 = vpop.permute.xlu1 %1483  ;;  %v5599_v59 = vpop.permute.xlu0 %1480 }
 0x20e   : > { %8944 = vst [vmem:[#allocation135_spill] sm:$0xff] %v5597_v38  ;;  %8945 = vst [vmem:[#allocation136_spill] sm:$0xff] %v5599_v59  ;;  %1951 = vperm.xlu1 %4384, %v1920_v24   ;;  %1948 = vperm.xlu0 %4383, %v1919_v12   ;;  %v1924_v38 = vsel %vm1908_vm10, 1, %v8769_v0  ;;  %v1923_v59 = vsel %vm1907_vm11, 1, %v8769_v0  ;;  %vm2025_vm10 = vcmp.eq.s32.totalorder %v5266_v3, 15  ;;  %vm2024_vm11 = vcmp.eq.s32.totalorder %v5270_v17, 15 }
 0x211   : > { %v5605_v20 = vpop.permute.xlu1 %1489  ;;  %v5607_v8 = vpop.permute.xlu0 %1486 }
 0x212   : > { %8946 = vst [vmem:[#allocation137_spill] sm:$0xff] %v5605_v20  ;;  %8947 = vst [vmem:[#allocation138_spill] sm:$0xff] %v5607_v8  ;;  %1957 = vperm.xlu1 %4384, %v1922_v10   ;;  %1954 = vperm.xlu0 %4383, %v1921_v43   ;;  %v1926_v20 = vsel %vm1910_vm12, 1, %v8769_v0  ;;  %v1925_v8 = vsel %vm1909_vm13, 1, %v8769_v0  ;;  %vm2027_vm12 = vcmp.eq.s32.totalorder %v5280_v4, 15  ;;  %vm2026_vm13 = vcmp.eq.s32.totalorder %v5284_v54, 15 }
 0x215   : > { %v5613_v24 = vpop.permute.xlu1 %1495  ;;  %v5615_v12 = vpop.permute.xlu0 %1492 }
 0x216   : > { %8948 = vst [vmem:[#allocation139_spill] sm:$0xff] %v5613_v24  ;;  %8949 = vst [vmem:[#allocation140_spill] sm:$0xff] %v5615_v12  ;;  %1963 = vperm.xlu1 %4384, %v1924_v38   ;;  %1960 = vperm.xlu0 %4383, %v1923_v59   ;;  %v1928_v24 = vsel %vm1912_vm14, 1, %v8769_v0  ;;  %v1927_v12 = vsel %vm1911_vm15, 1, %v8769_v0  ;;  %vm2029_vm14 = vcmp.eq.s32.totalorder %v5294_v26, 15  ;;  %vm2028_vm15 = vcmp.eq.s32.totalorder %v5298_v31, 15 }
 0x219   : > { %v5621_v10 = vpop.permute.xlu1 %1501  ;;  %v5623_v43 = vpop.permute.xlu0 %1498 }
 0x21a   : > { %8950 = vst [vmem:[#allocation141_spill] sm:$0xff] %v5621_v10  ;;  %8951 = vst [vmem:[#allocation142_spill] sm:$0xff] %v5623_v43  ;;  %1969 = vperm.xlu1 %4384, %v1926_v20   ;;  %1966 = vperm.xlu0 %4383, %v1925_v8   ;;  %v2031_v10 = vsel %vm2015_vm0, 1, %v8769_v0  ;;  %v2030_v43 = vsel %vm2014_vm1, 1, %v8769_v0  ;;  %vm2132_vm0 = vcmp.eq.s32.totalorder %v5196_v15, 16  ;;  %vm2131_vm1 = vcmp.eq.s32.totalorder %v5200_v16, 16 }
 0x21d   : > { %v5629_v38 = vpop.permute.xlu1 %1507  ;;  %v5631_v59 = vpop.permute.xlu0 %1504 }
 0x21e   : > { %8952 = vst [vmem:[#allocation143_spill] sm:$0xff] %v5629_v38  ;;  %8953 = vst [vmem:[#allocation144_spill] sm:$0xff] %v5631_v59  ;;  %1975 = vperm.xlu1 %4384, %v1928_v24   ;;  %1972 = vperm.xlu0 %4383, %v1927_v12   ;;  %v2033_v38 = vsel %vm2017_vm2, 1, %v8769_v0  ;;  %v2032_v59 = vsel %vm2016_vm3, 1, %v8769_v0  ;;  %vm2134_vm2 = vcmp.eq.s32.totalorder %v5210_v23, 16  ;;  %vm2133_vm3 = vcmp.eq.s32.totalorder %v5214_v11, 16 }
 0x21f   : > { %v2150_v15 = vsel %vm2134_vm2, 1, %v8769_v0  ;;  %v2149_v16 = vsel %vm2133_vm3, 1, %v8769_v0 }
 0x221   : > { %v5637_v20 = vpop.permute.xlu1 %1582  ;;  %v5639_v8 = vpop.permute.xlu0 %1579 }
 0x222   : > { %8954 = vst [vmem:[#allocation145_spill] sm:$0xff] %v5637_v20  ;;  %8955 = vst [vmem:[#allocation146_spill] sm:$0xff] %v5639_v8  ;;  %2050 = vperm.xlu1 %4384, %v2031_v10   ;;  %2047 = vperm.xlu0 %4383, %v2030_v43   ;;  %v2035_v20 = vsel %vm2019_vm4, 1, %v8769_v0  ;;  %v2034_v8 = vsel %vm2018_vm5, 1, %v8769_v0  ;;  %vm2136_vm4 = vcmp.eq.s32.totalorder %v5224_v28, 16  ;;  %vm2135_vm5 = vcmp.eq.s32.totalorder %v5228_v7, 16 }
 0x223   : > { %v2152_v11 = vsel %vm2136_vm4, 1, %v8769_v0  ;;  %v2151_v23 = vsel %vm2135_vm5, 1, %v8769_v0 }
 0x225   : > { %v5645_v24 = vpop.permute.xlu1 %1588  ;;  %v5647_v12 = vpop.permute.xlu0 %1585 }
 0x226   : > { %8956 = vst [vmem:[#allocation147_spill] sm:$0xff] %v5645_v24  ;;  %8957 = vst [vmem:[#allocation148_spill] sm:$0xff] %v5647_v12  ;;  %2056 = vperm.xlu1 %4384, %v2033_v38   ;;  %2053 = vperm.xlu0 %4383, %v2032_v59   ;;  %v2037_v24 = vsel %vm2021_vm6, 1, %v8769_v0  ;;  %v2036_v12 = vsel %vm2020_vm7, 1, %v8769_v0  ;;  %vm2138_vm6 = vcmp.eq.s32.totalorder %v5238_v27, 16  ;;  %vm2137_vm7 = vcmp.eq.s32.totalorder %v5242_v1, 16 }
 0x227   : > { %v2154_v7 = vsel %vm2138_vm6, 1, %v8769_v0  ;;  %v2153_v28 = vsel %vm2137_vm7, 1, %v8769_v0 }
 0x229   : > { %v5653_v10 = vpop.permute.xlu1 %1594  ;;  %v5655_v43 = vpop.permute.xlu0 %1591 }
 0x22a   : > { %8958 = vst [vmem:[#allocation149_spill] sm:$0xff] %v5653_v10  ;;  %8959 = vst [vmem:[#allocation150_spill] sm:$0xff] %v5655_v43  ;;  %2062 = vperm.xlu1 %4384, %v2035_v20   ;;  %2059 = vperm.xlu0 %4383, %v2034_v8   ;;  %v2039_v10 = vsel %vm2023_vm8, 1, %v8769_v0  ;;  %v2038_v43 = vsel %vm2022_vm9, 1, %v8769_v0  ;;  %vm2140_vm8 = vcmp.eq.s32.totalorder %v5252_v19, 16  ;;  %vm2139_vm9 = vcmp.eq.s32.totalorder %v5256_v2, 16 }
 0x22b   : > { %v2156_v1 = vsel %vm2140_vm8, 1, %v8769_v0  ;;  %v2155_v27 = vsel %vm2139_vm9, 1, %v8769_v0 }
 0x22d   : > { %v5661_v38 = vpop.permute.xlu1 %1600  ;;  %v5663_v59 = vpop.permute.xlu0 %1597 }
 0x22e   : > { %8960 = vst [vmem:[#allocation151_spill] sm:$0xff] %v5661_v38  ;;  %8961 = vst [vmem:[#allocation152_spill] sm:$0xff] %v5663_v59  ;;  %2068 = vperm.xlu1 %4384, %v2037_v24   ;;  %2065 = vperm.xlu0 %4383, %v2036_v12   ;;  %v2041_v38 = vsel %vm2025_vm10, 1, %v8769_v0  ;;  %v2040_v59 = vsel %vm2024_vm11, 1, %v8769_v0  ;;  %vm2142_vm10 = vcmp.eq.s32.totalorder %v5266_v3, 16  ;;  %vm2141_vm11 = vcmp.eq.s32.totalorder %v5270_v17, 16 }
 0x22f   : > { %v2158_v2 = vsel %vm2142_vm10, 1, %v8769_v0  ;;  %v2157_v19 = vsel %vm2141_vm11, 1, %v8769_v0 }
 0x231   : > { %v5669_v20 = vpop.permute.xlu1 %1606  ;;  %v5671_v8 = vpop.permute.xlu0 %1603 }
 0x232   : > { %8962 = vst [vmem:[#allocation153_spill] sm:$0xff] %v5669_v20  ;;  %8963 = vst [vmem:[#allocation154_spill] sm:$0xff] %v5671_v8  ;;  %2074 = vperm.xlu1 %4384, %v2039_v10   ;;  %2071 = vperm.xlu0 %4383, %v2038_v43   ;;  %v2043_v20 = vsel %vm2027_vm12, 1, %v8769_v0  ;;  %v2042_v8 = vsel %vm2026_vm13, 1, %v8769_v0  ;;  %vm2144_vm12 = vcmp.eq.s32.totalorder %v5280_v4, 16  ;;  %vm2143_vm13 = vcmp.eq.s32.totalorder %v5284_v54, 16 }
 0x233   : > { %v2160_v17 = vsel %vm2144_vm12, 1, %v8769_v0 }
 0x235   : > { %v5677_v24 = vpop.permute.xlu1 %1612  ;;  %v5679_v12 = vpop.permute.xlu0 %1609 }
 0x236   : > { %8964 = vst [vmem:[#allocation155_spill] sm:$0xff] %v5677_v24  ;;  %8965 = vst [vmem:[#allocation156_spill] sm:$0xff] %v5679_v12  ;;  %2080 = vperm.xlu1 %4384, %v2041_v38   ;;  %2077 = vperm.xlu0 %4383, %v2040_v59   ;;  %v2045_v24 = vsel %vm2029_vm14, 1, %v8769_v0  ;;  %v2044_v12 = vsel %vm2028_vm15, 1, %v8769_v0  ;;  %vm2146_vm14 = vcmp.eq.s32.totalorder %v5294_v26, 16  ;;  %vm2145_vm15 = vcmp.eq.s32.totalorder %v5298_v31, 16 }
 0x237   : > { %v2162_v54 = vsel %vm2146_vm14, 1, %v8769_v0 }
 0x239   : > { %v5685_v10 = vpop.permute.xlu1 %1618  ;;  %v5687_v43 = vpop.permute.xlu0 %1615 }
 0x23a   : > { %8966 = vst [vmem:[#allocation157_spill] sm:$0xff] %v5685_v10  ;;  %8967 = vst [vmem:[#allocation158_spill] sm:$0xff] %v5687_v43  ;;  %2086 = vperm.xlu1 %4384, %v2043_v20   ;;  %2083 = vperm.xlu0 %4383, %v2042_v8   ;;  %v2148_v10 = vsel %vm2132_vm0, 1, %v8769_v0  ;;  %v2147_v43 = vsel %vm2131_vm1, 1, %v8769_v0 }
 0x23d   : > { %v5693_v38 = vpop.permute.xlu1 %1624  ;;  %v5695_v59 = vpop.permute.xlu0 %1621 }
 0x23e   : > { %8968 = vst [vmem:[#allocation159_spill] sm:$0xff] %v5693_v38  ;;  %8969 = vst [vmem:[#allocation160_spill] sm:$0xff] %v5695_v59  ;;  %2092 = vperm.xlu1 %4384, %v2045_v24   ;;  %2089 = vperm.xlu0 %4383, %v2044_v12  }
 0x241   : > { %v5701_v20 = vpop.permute.xlu1 %1699  ;;  %v5703_v8 = vpop.permute.xlu0 %1696 }
 0x242   : > { %8970 = vst [vmem:[#allocation161_spill] sm:$0xff] %v5701_v20  ;;  %8971 = vst [vmem:[#allocation162_spill] sm:$0xff] %v5703_v8  ;;  %2167 = vperm.xlu1 %4384, %v2148_v10   ;;  %2164 = vperm.xlu0 %4383, %v2147_v43   ;;  %v5858_v20 = vld [vmem:[%s4701_s26 + $0x70] sm:$0xff] }
 0x245   : > { %v5709_v24 = vpop.permute.xlu1 %1705  ;;  %v5711_v12 = vpop.permute.xlu0 %1702 }
 0x246   : > { %8972 = vst [vmem:[#allocation163_spill] sm:$0xff] %v5709_v24  ;;  %8973 = vst [vmem:[#allocation164_spill] sm:$0xff] %v5711_v12  ;;  %2173 = vperm.xlu1 %4384, %v2150_v15   ;;  %2170 = vperm.xlu0 %4383, %v2149_v16   ;;  %v5844_v24 = vld [vmem:[%s4701_s26 + $0x60] sm:$0xff] }
 0x249   : > { %v5717_v10 = vpop.permute.xlu1 %1711  ;;  %v5719_v43 = vpop.permute.xlu0 %1708 }
 0x24a   : > { %8974 = vst [vmem:[#allocation165_spill] sm:$0xff] %v5717_v10  ;;  %8975 = vst [vmem:[#allocation166_spill] sm:$0xff] %v5719_v43  ;;  %2179 = vperm.xlu1 %4384, %v2152_v11   ;;  %2176 = vperm.xlu0 %4383, %v2151_v23   ;;  %v5830_v10 = vld [vmem:[%s4701_s26 + $0x50] sm:$0xff] }
 0x24b   : > { %vm2258_vm11 = vcmp.eq.s32.totalorder %v5830_v10, 17 }
 0x24d   : > { %v5725_v15 = vpop.permute.xlu1 %1717  ;;  %v5727_v16 = vpop.permute.xlu0 %1714 }
 0x24e   : > { %8976 = vst [vmem:[#allocation167_spill] sm:$0xff] %v5725_v15  ;;  %8977 = vst [vmem:[#allocation168_spill] sm:$0xff] %v5727_v16  ;;  %2185 = vperm.xlu1 %4384, %v2154_v7   ;;  %2182 = vperm.xlu0 %4383, %v2153_v28   ;;  %v2159_v28 = vsel %vm2143_vm13, 1, %v8769_v0  ;;  %v5816_v15 = vld [vmem:[%s4701_s26 + $0x40] sm:$0xff]  ;;  %vm2260_vm13 = vcmp.eq.s32.totalorder %v5844_v24, 17 }
 0x24f   : > { %vm2256_vm9 = vcmp.eq.s32.totalorder %v5816_v15, 17 }
 0x251   : > { %v5733_v11 = vpop.permute.xlu1 %1723  ;;  %v5735_v23 = vpop.permute.xlu0 %1720 }
 0x252   : > { %8978 = vst [vmem:[#allocation169_spill] sm:$0xff] %v5733_v11  ;;  %8979 = vst [vmem:[#allocation170_spill] sm:$0xff] %v5735_v23  ;;  %2191 = vperm.xlu1 %4384, %v2156_v1   ;;  %2188 = vperm.xlu0 %4383, %v2155_v27   ;;  %v2161_v27 = vsel %vm2145_vm15, 1, %v8769_v0  ;;  %v5802_v11 = vld [vmem:[%s4701_s26 + $0x30] sm:$0xff]  ;;  %vm2262_vm15 = vcmp.eq.s32.totalorder %v5858_v20, 17 }
 0x253   : > { %vm2254_vm7 = vcmp.eq.s32.totalorder %v5802_v11, 17 }
 0x255   : > { %v5741_v7 = vpop.permute.xlu1 %1729  ;;  %v5743_v3 = vpop.permute.xlu0 %1726 }
 0x256   : > { %8980 = vst [vmem:[#allocation171_spill] sm:$0xff] %v5741_v7  ;;  %8981 = vst [vmem:[#allocation172_spill] sm:$0xff] %v5743_v3  ;;  %2197 = vperm.xlu1 %4384, %v2158_v2   ;;  %2194 = vperm.xlu0 %4383, %v2157_v19   ;;  %v5756_v2 = vld [vmem:[%s4701_s26 + $0x8] sm:$0xff]  ;;  %v5760_v19 = vld [vmem:[%s4701_s26] sm:$0xff] }
 0x257   : > { %vm2249_vm0 = vcmp.eq.s32.totalorder %v5756_v2, 17  ;;  %vm2248_vm1 = vcmp.eq.s32.totalorder %v5760_v19, 17  ;;  %v5788_v7 = vld [vmem:[%s4701_s26 + $0x20] sm:$0xff] }
 0x258   : > { %vm2252_vm5 = vcmp.eq.s32.totalorder %v5788_v7, 17 }
 0x259   : > { %v5749_v1 = vpop.permute.xlu1 %1735  ;;  %v5751_v4 = vpop.permute.xlu0 %1732 }
 0x25a   : > { %8982 = vst [vmem:[#allocation173_spill] sm:$0xff] %v5749_v1  ;;  %8983 = vst [vmem:[#allocation174_spill] sm:$0xff] %v5751_v4  ;;  %2203 = vperm.xlu1 %4384, %v2160_v17   ;;  %2200 = vperm.xlu0 %4383, %v2159_v28   ;;  %v2265_v17 = vsel %vm2249_vm0, 1, %v8769_v0  ;;  %v2264_v28 = vsel %vm2248_vm1, 1, %v8769_v0  ;;  %v5770_v4 = vld [vmem:[%s4701_s26 + $0x18] sm:$0xff]  ;;  %v5774_v1 = vld [vmem:[%s4701_s26 + $0x10] sm:$0xff] }
 0x25b   : > { %vm2251_vm2 = vcmp.eq.s32.totalorder %v5770_v4, 17  ;;  %vm2250_vm3 = vcmp.eq.s32.totalorder %v5774_v1, 17  ;;  %vm2366_vm0 = vcmp.eq.s32.totalorder %v5756_v2, 18  ;;  %vm2365_vm1 = vcmp.eq.s32.totalorder %v5760_v19, 18 }
 0x25d   : > { %v5763_v31 = vpop.permute.xlu1 %1741  ;;  %v5765_v26 = vpop.permute.xlu0 %1738 }
 0x25e   : > { %8984 = vst [vmem:[#allocation175_spill] sm:$0xff] %v5763_v31  ;;  %8985 = vst [vmem:[#allocation176_spill] sm:$0xff] %v5765_v26  ;;  %2209 = vperm.xlu1 %4384, %v2162_v54   ;;  %2206 = vperm.xlu0 %4383, %v2161_v27   ;;  %v2267_v54 = vsel %vm2251_vm2, 1, %v8769_v0  ;;  %v2266_v27 = vsel %vm2250_vm3, 1, %v8769_v0  ;;  %v5784_v26 = vld [vmem:[%s4701_s26 + $0x28] sm:$0xff]  ;;  %vm2368_vm2 = vcmp.eq.s32.totalorder %v5770_v4, 18 }
 0x25f   : > { %vm2253_vm4 = vcmp.eq.s32.totalorder %v5784_v26, 17  ;;  %vm2367_vm3 = vcmp.eq.s32.totalorder %v5774_v1, 18 }
 0x261   : > { %v5777_v3 = vpop.permute.xlu1 %1816  ;;  %v5779_v31 = vpop.permute.xlu0 %1813 }
 0x262   : > { %8986 = vst [vmem:[#allocation177_spill] sm:$0xff] %v5777_v3  ;;  %8987 = vst [vmem:[#allocation178_spill] sm:$0xff] %v5779_v31  ;;  %2284 = vperm.xlu1 %4384, %v2265_v17   ;;  %2281 = vperm.xlu0 %4383, %v2264_v28   ;;  %v2269_v17 = vsel %vm2253_vm4, 1, %v8769_v0  ;;  %v2268_v28 = vsel %vm2252_vm5, 1, %v8769_v0  ;;  %v5798_v31 = vld [vmem:[%s4701_s26 + $0x38] sm:$0xff]  ;;  %vm2370_vm4 = vcmp.eq.s32.totalorder %v5784_v26, 18 }
 0x263   : > { %vm2255_vm6 = vcmp.eq.s32.totalorder %v5798_v31, 17  ;;  %vm2369_vm5 = vcmp.eq.s32.totalorder %v5788_v7, 18 }
 0x265   : > { %v5791_v23 = vpop.permute.xlu1 %1822  ;;  %v5793_v3 = vpop.permute.xlu0 %1819 }
 0x266   : > { %8988 = vst [vmem:[#allocation179_spill] sm:$0xff] %v5791_v23  ;;  %8989 = vst [vmem:[#allocation180_spill] sm:$0xff] %v5793_v3  ;;  %2290 = vperm.xlu1 %4384, %v2267_v54   ;;  %2287 = vperm.xlu0 %4383, %v2266_v27   ;;  %v2271_v54 = vsel %vm2255_vm6, 1, %v8769_v0  ;;  %v2270_v27 = vsel %vm2254_vm7, 1, %v8769_v0  ;;  %v5812_v3 = vld [vmem:[%s4701_s26 + $0x48] sm:$0xff]  ;;  %vm2372_vm6 = vcmp.eq.s32.totalorder %v5798_v31, 18 }
 0x267   : > { %vm2257_vm8 = vcmp.eq.s32.totalorder %v5812_v3, 17  ;;  %vm2371_vm7 = vcmp.eq.s32.totalorder %v5802_v11, 18 }
 0x269   : > { %v5805_v16 = vpop.permute.xlu1 %1828  ;;  %v5807_v23 = vpop.permute.xlu0 %1825 }
 0x26a   : > { %8990 = vst [vmem:[#allocation181_spill] sm:$0xff] %v5805_v16  ;;  %8991 = vst [vmem:[#allocation182_spill] sm:$0xff] %v5807_v23  ;;  %2296 = vperm.xlu1 %4384, %v2269_v17   ;;  %2293 = vperm.xlu0 %4383, %v2268_v28   ;;  %v2273_v17 = vsel %vm2257_vm8, 1, %v8769_v0  ;;  %v2272_v28 = vsel %vm2256_vm9, 1, %v8769_v0  ;;  %v5826_v23 = vld [vmem:[%s4701_s26 + $0x58] sm:$0xff]  ;;  %vm2374_vm8 = vcmp.eq.s32.totalorder %v5812_v3, 18 }
 0x26b   : > { %vm2259_vm10 = vcmp.eq.s32.totalorder %v5826_v23, 17  ;;  %vm2373_vm9 = vcmp.eq.s32.totalorder %v5816_v15, 18 }
 0x26d   : > { %v5819_v43 = vpop.permute.xlu1 %1834  ;;  %v5821_v16 = vpop.permute.xlu0 %1831 }
 0x26e   : > { %8992 = vst [vmem:[#allocation183_spill] sm:$0xff] %v5819_v43  ;;  %8993 = vst [vmem:[#allocation184_spill] sm:$0xff] %v5821_v16  ;;  %2302 = vperm.xlu1 %4384, %v2271_v54   ;;  %2299 = vperm.xlu0 %4383, %v2270_v27   ;;  %v2275_v54 = vsel %vm2259_vm10, 1, %v8769_v0  ;;  %v2274_v27 = vsel %vm2258_vm11, 1, %v8769_v0  ;;  %v5840_v16 = vld [vmem:[%s4701_s26 + $0x68] sm:$0xff]  ;;  %vm2376_vm10 = vcmp.eq.s32.totalorder %v5826_v23, 18 }
 0x26f   : > { %vm2261_vm12 = vcmp.eq.s32.totalorder %v5840_v16, 17  ;;  %vm2375_vm11 = vcmp.eq.s32.totalorder %v5830_v10, 18 }
 0x271   : > { %v5833_v12 = vpop.permute.xlu1 %1840  ;;  %v5835_v43 = vpop.permute.xlu0 %1837 }
 0x272   : > { %8994 = vst [vmem:[#allocation185_spill] sm:$0xff] %v5833_v12  ;;  %8995 = vst [vmem:[#allocation186_spill] sm:$0xff] %v5835_v43  ;;  %2308 = vperm.xlu1 %4384, %v2273_v17   ;;  %2305 = vperm.xlu0 %4383, %v2272_v28   ;;  %v2277_v17 = vsel %vm2261_vm12, 1, %v8769_v0  ;;  %v2276_v28 = vsel %vm2260_vm13, 1, %v8769_v0  ;;  %v5854_v43 = vld [vmem:[%s4701_s26 + $0x78] sm:$0xff]  ;;  %vm2378_vm12 = vcmp.eq.s32.totalorder %v5840_v16, 18 }
 0x273   : > { %vm2263_vm14 = vcmp.eq.s32.totalorder %v5854_v43, 17  ;;  %vm2377_vm13 = vcmp.eq.s32.totalorder %v5844_v24, 18 }
 0x275   : > { %v5847_v8 = vpop.permute.xlu1 %1846  ;;  %v5849_v12 = vpop.permute.xlu0 %1843 }
 0x276   : > { %8996 = vst [vmem:[#allocation187_spill] sm:$0xff] %v5847_v8  ;;  %8997 = vst [vmem:[#allocation188_spill] sm:$0xff] %v5849_v12  ;;  %2314 = vperm.xlu1 %4384, %v2275_v54   ;;  %2311 = vperm.xlu0 %4383, %v2274_v27   ;;  %v2279_v54 = vsel %vm2263_vm14, 1, %v8769_v0  ;;  %v2278_v27 = vsel %vm2262_vm15, 1, %v8769_v0  ;;  %vm2380_vm14 = vcmp.eq.s32.totalorder %v5854_v43, 18  ;;  %vm2379_vm15 = vcmp.eq.s32.totalorder %v5858_v20, 18 }
 0x279   : > { %v5861_v59 = vpop.permute.xlu1 %1852  ;;  %v5863_v38 = vpop.permute.xlu0 %1849 }
 0x27a   : > { %8998 = vst [vmem:[#allocation189_spill] sm:$0xff] %v5861_v59  ;;  %8999 = vst [vmem:[#allocation190_spill] sm:$0xff] %v5863_v38  ;;  %2320 = vperm.xlu1 %4384, %v2277_v17   ;;  %2317 = vperm.xlu0 %4383, %v2276_v28   ;;  %v2382_v59 = vsel %vm2366_vm0, 1, %v8769_v0  ;;  %v2381_v38 = vsel %vm2365_vm1, 1, %v8769_v0  ;;  %vm2483_vm0 = vcmp.eq.s32.totalorder %v5756_v2, 19  ;;  %vm2482_vm1 = vcmp.eq.s32.totalorder %v5760_v19, 19 }
 0x27d   : > { %v5869_v12 = vpop.permute.xlu1 %1858  ;;  %v5871_v8 = vpop.permute.xlu0 %1855 }
 0x27e   : > { %9000 = vst [vmem:[#allocation191_spill] sm:$0xff] %v5869_v12  ;;  %9001 = vst [vmem:[#allocation192_spill] sm:$0xff] %v5871_v8  ;;  %2326 = vperm.xlu1 %4384, %v2279_v54   ;;  %2323 = vperm.xlu0 %4383, %v2278_v27   ;;  %v2384_v12 = vsel %vm2368_vm2, 1, %v8769_v0  ;;  %v2383_v8 = vsel %vm2367_vm3, 1, %v8769_v0  ;;  %vm2485_vm2 = vcmp.eq.s32.totalorder %v5770_v4, 19  ;;  %vm2484_vm3 = vcmp.eq.s32.totalorder %v5774_v1, 19 }
 0x281   : > { %v5877_v17 = vpop.permute.xlu1 %1933  ;;  %v5879_v28 = vpop.permute.xlu0 %1930 }
 0x282   : > { %9002 = vst [vmem:[#allocation193_spill] sm:$0xff] %v5877_v17  ;;  %9003 = vst [vmem:[#allocation194_spill] sm:$0xff] %v5879_v28  ;;  %2401 = vperm.xlu1 %4384, %v2382_v59   ;;  %2398 = vperm.xlu0 %4383, %v2381_v38   ;;  %v2386_v17 = vsel %vm2370_vm4, 1, %v8769_v0  ;;  %v2385_v28 = vsel %vm2369_vm5, 1, %v8769_v0  ;;  %vm2487_vm4 = vcmp.eq.s32.totalorder %v5784_v26, 19  ;;  %vm2486_vm5 = vcmp.eq.s32.totalorder %v5788_v7, 19 }
 0x285   : > { %v5885_v54 = vpop.permute.xlu1 %1939  ;;  %v5887_v27 = vpop.permute.xlu0 %1936 }
 0x286   : > { %9004 = vst [vmem:[#allocation195_spill] sm:$0xff] %v5885_v54  ;;  %9005 = vst [vmem:[#allocation196_spill] sm:$0xff] %v5887_v27  ;;  %2407 = vperm.xlu1 %4384, %v2384_v12   ;;  %2404 = vperm.xlu0 %4383, %v2383_v8   ;;  %v2388_v54 = vsel %vm2372_vm6, 1, %v8769_v0  ;;  %v2387_v27 = vsel %vm2371_vm7, 1, %v8769_v0  ;;  %vm2489_vm6 = vcmp.eq.s32.totalorder %v5798_v31, 19  ;;  %vm2488_vm7 = vcmp.eq.s32.totalorder %v5802_v11, 19 }
 0x289   : > { %v5893_v38 = vpop.permute.xlu1 %1945  ;;  %v5895_v59 = vpop.permute.xlu0 %1942 }
 0x28a   : > { %9006 = vst [vmem:[#allocation197_spill] sm:$0xff] %v5893_v38  ;;  %9007 = vst [vmem:[#allocation198_spill] sm:$0xff] %v5895_v59  ;;  %2413 = vperm.xlu1 %4384, %v2386_v17   ;;  %2410 = vperm.xlu0 %4383, %v2385_v28   ;;  %v2390_v38 = vsel %vm2374_vm8, 1, %v8769_v0  ;;  %v2389_v59 = vsel %vm2373_vm9, 1, %v8769_v0  ;;  %vm2491_vm8 = vcmp.eq.s32.totalorder %v5812_v3, 19  ;;  %vm2490_vm9 = vcmp.eq.s32.totalorder %v5816_v15, 19 }
 0x28d   : > { %v5901_v8 = vpop.permute.xlu1 %1951  ;;  %v5903_v12 = vpop.permute.xlu0 %1948 }
 0x28e   : > { %9008 = vst [vmem:[#allocation199_spill] sm:$0xff] %v5901_v8  ;;  %9009 = vst [vmem:[#allocation200_spill] sm:$0xff] %v5903_v12  ;;  %2419 = vperm.xlu1 %4384, %v2388_v54   ;;  %2416 = vperm.xlu0 %4383, %v2387_v27   ;;  %v2392_v8 = vsel %vm2376_vm10, 1, %v8769_v0  ;;  %v2391_v12 = vsel %vm2375_vm11, 1, %v8769_v0  ;;  %vm2493_vm10 = vcmp.eq.s32.totalorder %v5826_v23, 19  ;;  %vm2492_vm11 = vcmp.eq.s32.totalorder %v5830_v10, 19 }
 0x291   : > { %v5909_v17 = vpop.permute.xlu1 %1957  ;;  %v5911_v28 = vpop.permute.xlu0 %1954 }
 0x292   : > { %9010 = vst [vmem:[#allocation201_spill] sm:$0xff] %v5909_v17  ;;  %9011 = vst [vmem:[#allocation202_spill] sm:$0xff] %v5911_v28  ;;  %2425 = vperm.xlu1 %4384, %v2390_v38   ;;  %2422 = vperm.xlu0 %4383, %v2389_v59   ;;  %v2394_v17 = vsel %vm2378_vm12, 1, %v8769_v0  ;;  %v2393_v28 = vsel %vm2377_vm13, 1, %v8769_v0  ;;  %vm2495_vm12 = vcmp.eq.s32.totalorder %v5840_v16, 19  ;;  %vm2494_vm13 = vcmp.eq.s32.totalorder %v5844_v24, 19 }
 0x295   : > { %v5917_v54 = vpop.permute.xlu1 %1963  ;;  %v5919_v27 = vpop.permute.xlu0 %1960 }
 0x296   : > { %9012 = vst [vmem:[#allocation203_spill] sm:$0xff] %v5917_v54  ;;  %9013 = vst [vmem:[#allocation204_spill] sm:$0xff] %v5919_v27  ;;  %2431 = vperm.xlu1 %4384, %v2392_v8   ;;  %2428 = vperm.xlu0 %4383, %v2391_v12   ;;  %v2396_v54 = vsel %vm2380_vm14, 1, %v8769_v0  ;;  %v2395_v27 = vsel %vm2379_vm15, 1, %v8769_v0  ;;  %vm2497_vm14 = vcmp.eq.s32.totalorder %v5854_v43, 19  ;;  %vm2496_vm15 = vcmp.eq.s32.totalorder %v5858_v20, 19 }
 0x299   : > { %v5925_v38 = vpop.permute.xlu1 %1969  ;;  %v5927_v59 = vpop.permute.xlu0 %1966 }
 0x29a   : > { %9014 = vst [vmem:[#allocation205_spill] sm:$0xff] %v5925_v38  ;;  %9015 = vst [vmem:[#allocation206_spill] sm:$0xff] %v5927_v59  ;;  %2437 = vperm.xlu1 %4384, %v2394_v17   ;;  %2434 = vperm.xlu0 %4383, %v2393_v28   ;;  %v2499_v38 = vsel %vm2483_vm0, 1, %v8769_v0  ;;  %v2498_v59 = vsel %vm2482_vm1, 1, %v8769_v0  ;;  %vm2600_vm0 = vcmp.eq.s32.totalorder %v5756_v2, 20  ;;  %vm2599_vm1 = vcmp.eq.s32.totalorder %v5760_v19, 20 }
 0x29d   : > { %v5933_v8 = vpop.permute.xlu1 %1975  ;;  %v5935_v12 = vpop.permute.xlu0 %1972 }
 0x29e   : > { %9016 = vst [vmem:[#allocation207_spill] sm:$0xff] %v5933_v8  ;;  %9017 = vst [vmem:[#allocation208_spill] sm:$0xff] %v5935_v12  ;;  %2443 = vperm.xlu1 %4384, %v2396_v54   ;;  %2440 = vperm.xlu0 %4383, %v2395_v27   ;;  %v2501_v8 = vsel %vm2485_vm2, 1, %v8769_v0  ;;  %v2500_v12 = vsel %vm2484_vm3, 1, %v8769_v0  ;;  %vm2602_vm2 = vcmp.eq.s32.totalorder %v5770_v4, 20  ;;  %vm2601_vm3 = vcmp.eq.s32.totalorder %v5774_v1, 20 }
 0x2a1   : > { %v5941_v17 = vpop.permute.xlu1 %2050  ;;  %v5943_v28 = vpop.permute.xlu0 %2047 }
 0x2a2   : > { %9018 = vst [vmem:[#allocation209_spill] sm:$0xff] %v5941_v17  ;;  %9019 = vst [vmem:[#allocation210_spill] sm:$0xff] %v5943_v28  ;;  %2518 = vperm.xlu1 %4384, %v2499_v38   ;;  %2515 = vperm.xlu0 %4383, %v2498_v59   ;;  %v2503_v17 = vsel %vm2487_vm4, 1, %v8769_v0  ;;  %v2502_v28 = vsel %vm2486_vm5, 1, %v8769_v0  ;;  %vm2604_vm4 = vcmp.eq.s32.totalorder %v5784_v26, 20  ;;  %vm2603_vm5 = vcmp.eq.s32.totalorder %v5788_v7, 20 }
 0x2a5   : > { %v5949_v54 = vpop.permute.xlu1 %2056  ;;  %v5951_v27 = vpop.permute.xlu0 %2053 }
 0x2a6   : > { %9020 = vst [vmem:[#allocation211_spill] sm:$0xff] %v5949_v54  ;;  %9021 = vst [vmem:[#allocation212_spill] sm:$0xff] %v5951_v27  ;;  %2524 = vperm.xlu1 %4384, %v2501_v8   ;;  %2521 = vperm.xlu0 %4383, %v2500_v12   ;;  %v2505_v54 = vsel %vm2489_vm6, 1, %v8769_v0  ;;  %v2504_v27 = vsel %vm2488_vm7, 1, %v8769_v0  ;;  %vm2606_vm6 = vcmp.eq.s32.totalorder %v5798_v31, 20  ;;  %vm2605_vm7 = vcmp.eq.s32.totalorder %v5802_v11, 20 }
 0x2a9   : > { %v5957_v38 = vpop.permute.xlu1 %2062  ;;  %v5959_v59 = vpop.permute.xlu0 %2059 }
 0x2aa   : > { %9022 = vst [vmem:[#allocation213_spill] sm:$0xff] %v5957_v38  ;;  %9023 = vst [vmem:[#allocation214_spill] sm:$0xff] %v5959_v59  ;;  %2530 = vperm.xlu1 %4384, %v2503_v17   ;;  %2527 = vperm.xlu0 %4383, %v2502_v28   ;;  %v2507_v38 = vsel %vm2491_vm8, 1, %v8769_v0  ;;  %v2506_v59 = vsel %vm2490_vm9, 1, %v8769_v0  ;;  %vm2608_vm8 = vcmp.eq.s32.totalorder %v5812_v3, 20  ;;  %vm2607_vm9 = vcmp.eq.s32.totalorder %v5816_v15, 20 }
 0x2ad   : > { %v5965_v8 = vpop.permute.xlu1 %2068  ;;  %v5967_v12 = vpop.permute.xlu0 %2065 }
 0x2ae   : > { %9024 = vst [vmem:[#allocation215_spill] sm:$0xff] %v5965_v8  ;;  %9025 = vst [vmem:[#allocation216_spill] sm:$0xff] %v5967_v12  ;;  %2536 = vperm.xlu1 %4384, %v2505_v54   ;;  %2533 = vperm.xlu0 %4383, %v2504_v27   ;;  %v2509_v8 = vsel %vm2493_vm10, 1, %v8769_v0  ;;  %v2508_v12 = vsel %vm2492_vm11, 1, %v8769_v0  ;;  %vm2610_vm10 = vcmp.eq.s32.totalorder %v5826_v23, 20  ;;  %vm2609_vm11 = vcmp.eq.s32.totalorder %v5830_v10, 20 }
 0x2b1   : > { %v5973_v17 = vpop.permute.xlu1 %2074  ;;  %v5975_v28 = vpop.permute.xlu0 %2071 }
 0x2b2   : > { %9026 = vst [vmem:[#allocation217_spill] sm:$0xff] %v5973_v17  ;;  %9027 = vst [vmem:[#allocation218_spill] sm:$0xff] %v5975_v28  ;;  %2542 = vperm.xlu1 %4384, %v2507_v38   ;;  %2539 = vperm.xlu0 %4383, %v2506_v59   ;;  %v2511_v17 = vsel %vm2495_vm12, 1, %v8769_v0  ;;  %v2510_v28 = vsel %vm2494_vm13, 1, %v8769_v0  ;;  %vm2612_vm12 = vcmp.eq.s32.totalorder %v5840_v16, 20  ;;  %vm2611_vm13 = vcmp.eq.s32.totalorder %v5844_v24, 20 }
 0x2b5   : > { %v5981_v54 = vpop.permute.xlu1 %2080  ;;  %v5983_v27 = vpop.permute.xlu0 %2077 }
 0x2b6   : > { %9028 = vst [vmem:[#allocation219_spill] sm:$0xff] %v5981_v54  ;;  %9029 = vst [vmem:[#allocation220_spill] sm:$0xff] %v5983_v27  ;;  %2548 = vperm.xlu1 %4384, %v2509_v8   ;;  %2545 = vperm.xlu0 %4383, %v2508_v12   ;;  %v2513_v54 = vsel %vm2497_vm14, 1, %v8769_v0  ;;  %v2512_v27 = vsel %vm2496_vm15, 1, %v8769_v0  ;;  %vm2614_vm14 = vcmp.eq.s32.totalorder %v5854_v43, 20  ;;  %vm2613_vm15 = vcmp.eq.s32.totalorder %v5858_v20, 20 }
 0x2b9   : > { %v5989_v38 = vpop.permute.xlu1 %2086  ;;  %v5991_v59 = vpop.permute.xlu0 %2083 }
 0x2ba   : > { %9030 = vst [vmem:[#allocation221_spill] sm:$0xff] %v5989_v38  ;;  %9031 = vst [vmem:[#allocation222_spill] sm:$0xff] %v5991_v59  ;;  %2554 = vperm.xlu1 %4384, %v2511_v17   ;;  %2551 = vperm.xlu0 %4383, %v2510_v28   ;;  %v2616_v38 = vsel %vm2600_vm0, 1, %v8769_v0  ;;  %v2615_v59 = vsel %vm2599_vm1, 1, %v8769_v0  ;;  %vm2717_vm0 = vcmp.eq.s32.totalorder %v5756_v2, 21  ;;  %vm2716_vm1 = vcmp.eq.s32.totalorder %v5760_v19, 21 }
 0x2bd   : > { %v5997_v8 = vpop.permute.xlu1 %2092  ;;  %v5999_v12 = vpop.permute.xlu0 %2089 }
 0x2be   : > { %9032 = vst [vmem:[#allocation223_spill] sm:$0xff] %v5997_v8  ;;  %9033 = vst [vmem:[#allocation224_spill] sm:$0xff] %v5999_v12  ;;  %2560 = vperm.xlu1 %4384, %v2513_v54   ;;  %2557 = vperm.xlu0 %4383, %v2512_v27   ;;  %v2618_v8 = vsel %vm2602_vm2, 1, %v8769_v0  ;;  %v2617_v12 = vsel %vm2601_vm3, 1, %v8769_v0  ;;  %vm2719_vm2 = vcmp.eq.s32.totalorder %v5770_v4, 21  ;;  %vm2718_vm3 = vcmp.eq.s32.totalorder %v5774_v1, 21 }
 0x2c1   : > { %v6005_v17 = vpop.permute.xlu1 %2167  ;;  %v6007_v28 = vpop.permute.xlu0 %2164 }
 0x2c2   : > { %9034 = vst [vmem:[#allocation225_spill] sm:$0xff] %v6005_v17  ;;  %9035 = vst [vmem:[#allocation226_spill] sm:$0xff] %v6007_v28  ;;  %2635 = vperm.xlu1 %4384, %v2616_v38   ;;  %2632 = vperm.xlu0 %4383, %v2615_v59   ;;  %v2620_v17 = vsel %vm2604_vm4, 1, %v8769_v0  ;;  %v2619_v28 = vsel %vm2603_vm5, 1, %v8769_v0  ;;  %vm2721_vm4 = vcmp.eq.s32.totalorder %v5784_v26, 21  ;;  %vm2720_vm5 = vcmp.eq.s32.totalorder %v5788_v7, 21 }
 0x2c5   : > { %v6013_v54 = vpop.permute.xlu1 %2173  ;;  %v6015_v27 = vpop.permute.xlu0 %2170 }
 0x2c6   : > { %9036 = vst [vmem:[#allocation227_spill] sm:$0xff] %v6013_v54  ;;  %9037 = vst [vmem:[#allocation228_spill] sm:$0xff] %v6015_v27  ;;  %2641 = vperm.xlu1 %4384, %v2618_v8   ;;  %2638 = vperm.xlu0 %4383, %v2617_v12   ;;  %v2622_v54 = vsel %vm2606_vm6, 1, %v8769_v0  ;;  %v2621_v27 = vsel %vm2605_vm7, 1, %v8769_v0  ;;  %vm2723_vm6 = vcmp.eq.s32.totalorder %v5798_v31, 21  ;;  %vm2722_vm7 = vcmp.eq.s32.totalorder %v5802_v11, 21 }
 0x2c9   : > { %v6021_v38 = vpop.permute.xlu1 %2179  ;;  %v6023_v59 = vpop.permute.xlu0 %2176 }
 0x2ca   : > { %9038 = vst [vmem:[#allocation229_spill] sm:$0xff] %v6021_v38  ;;  %9039 = vst [vmem:[#allocation230_spill] sm:$0xff] %v6023_v59  ;;  %2647 = vperm.xlu1 %4384, %v2620_v17   ;;  %2644 = vperm.xlu0 %4383, %v2619_v28   ;;  %v2624_v38 = vsel %vm2608_vm8, 1, %v8769_v0  ;;  %v2623_v59 = vsel %vm2607_vm9, 1, %v8769_v0  ;;  %vm2725_vm8 = vcmp.eq.s32.totalorder %v5812_v3, 21  ;;  %vm2724_vm9 = vcmp.eq.s32.totalorder %v5816_v15, 21 }
 0x2cd   : > { %v6029_v8 = vpop.permute.xlu1 %2185  ;;  %v6031_v12 = vpop.permute.xlu0 %2182 }
 0x2ce   : > { %9040 = vst [vmem:[#allocation231_spill] sm:$0xff] %v6029_v8  ;;  %9041 = vst [vmem:[#allocation232_spill] sm:$0xff] %v6031_v12  ;;  %2653 = vperm.xlu1 %4384, %v2622_v54   ;;  %2650 = vperm.xlu0 %4383, %v2621_v27   ;;  %v2626_v8 = vsel %vm2610_vm10, 1, %v8769_v0  ;;  %v2625_v12 = vsel %vm2609_vm11, 1, %v8769_v0  ;;  %vm2727_vm10 = vcmp.eq.s32.totalorder %v5826_v23, 21  ;;  %vm2726_vm11 = vcmp.eq.s32.totalorder %v5830_v10, 21 }
 0x2d1   : > { %v6037_v17 = vpop.permute.xlu1 %2191  ;;  %v6039_v28 = vpop.permute.xlu0 %2188 }
 0x2d2   : > { %9042 = vst [vmem:[#allocation233_spill] sm:$0xff] %v6037_v17  ;;  %9043 = vst [vmem:[#allocation234_spill] sm:$0xff] %v6039_v28  ;;  %2659 = vperm.xlu1 %4384, %v2624_v38   ;;  %2656 = vperm.xlu0 %4383, %v2623_v59   ;;  %v2628_v17 = vsel %vm2612_vm12, 1, %v8769_v0  ;;  %v2627_v28 = vsel %vm2611_vm13, 1, %v8769_v0  ;;  %vm2729_vm12 = vcmp.eq.s32.totalorder %v5840_v16, 21  ;;  %vm2728_vm13 = vcmp.eq.s32.totalorder %v5844_v24, 21 }
 0x2d5   : > { %v6045_v54 = vpop.permute.xlu1 %2197  ;;  %v6047_v27 = vpop.permute.xlu0 %2194 }
 0x2d6   : > { %9044 = vst [vmem:[#allocation235_spill] sm:$0xff] %v6045_v54  ;;  %9045 = vst [vmem:[#allocation236_spill] sm:$0xff] %v6047_v27  ;;  %2665 = vperm.xlu1 %4384, %v2626_v8   ;;  %2662 = vperm.xlu0 %4383, %v2625_v12   ;;  %v2630_v54 = vsel %vm2614_vm14, 1, %v8769_v0  ;;  %v2629_v27 = vsel %vm2613_vm15, 1, %v8769_v0  ;;  %vm2731_vm14 = vcmp.eq.s32.totalorder %v5854_v43, 21  ;;  %vm2730_vm15 = vcmp.eq.s32.totalorder %v5858_v20, 21 }
 0x2d9   : > { %v6053_v38 = vpop.permute.xlu1 %2203  ;;  %v6055_v59 = vpop.permute.xlu0 %2200 }
 0x2da   : > { %9046 = vst [vmem:[#allocation237_spill] sm:$0xff] %v6053_v38  ;;  %9047 = vst [vmem:[#allocation238_spill] sm:$0xff] %v6055_v59  ;;  %2671 = vperm.xlu1 %4384, %v2628_v17   ;;  %2668 = vperm.xlu0 %4383, %v2627_v28   ;;  %v2733_v38 = vsel %vm2717_vm0, 1, %v8769_v0  ;;  %v2732_v59 = vsel %vm2716_vm1, 1, %v8769_v0  ;;  %vm2834_vm0 = vcmp.eq.s32.totalorder %v5756_v2, 22  ;;  %vm2833_vm1 = vcmp.eq.s32.totalorder %v5760_v19, 22 }
 0x2dd   : > { %v6061_v8 = vpop.permute.xlu1 %2209  ;;  %v6063_v12 = vpop.permute.xlu0 %2206 }
 0x2de   : > { %9048 = vst [vmem:[#allocation239_spill] sm:$0xff] %v6061_v8  ;;  %9049 = vst [vmem:[#allocation240_spill] sm:$0xff] %v6063_v12  ;;  %2677 = vperm.xlu1 %4384, %v2630_v54   ;;  %2674 = vperm.xlu0 %4383, %v2629_v27   ;;  %v2735_v8 = vsel %vm2719_vm2, 1, %v8769_v0  ;;  %v2734_v12 = vsel %vm2718_vm3, 1, %v8769_v0  ;;  %vm2836_vm2 = vcmp.eq.s32.totalorder %v5770_v4, 22  ;;  %vm2835_vm3 = vcmp.eq.s32.totalorder %v5774_v1, 22 }
 0x2e1   : > { %v6069_v17 = vpop.permute.xlu1 %2284  ;;  %v6071_v28 = vpop.permute.xlu0 %2281 }
 0x2e2   : > { %9050 = vst [vmem:[#allocation241_spill] sm:$0xff] %v6069_v17  ;;  %9051 = vst [vmem:[#allocation242_spill] sm:$0xff] %v6071_v28  ;;  %2752 = vperm.xlu1 %4384, %v2733_v38   ;;  %2749 = vperm.xlu0 %4383, %v2732_v59   ;;  %v2737_v17 = vsel %vm2721_vm4, 1, %v8769_v0  ;;  %v2736_v28 = vsel %vm2720_vm5, 1, %v8769_v0  ;;  %vm2838_vm4 = vcmp.eq.s32.totalorder %v5784_v26, 22  ;;  %vm2837_vm5 = vcmp.eq.s32.totalorder %v5788_v7, 22 }
 0x2e5   : > { %v6077_v54 = vpop.permute.xlu1 %2290  ;;  %v6079_v27 = vpop.permute.xlu0 %2287 }
 0x2e6   : > { %9052 = vst [vmem:[#allocation243_spill] sm:$0xff] %v6077_v54  ;;  %9053 = vst [vmem:[#allocation244_spill] sm:$0xff] %v6079_v27  ;;  %2758 = vperm.xlu1 %4384, %v2735_v8   ;;  %2755 = vperm.xlu0 %4383, %v2734_v12   ;;  %v2739_v54 = vsel %vm2723_vm6, 1, %v8769_v0  ;;  %v2738_v27 = vsel %vm2722_vm7, 1, %v8769_v0  ;;  %vm2840_vm6 = vcmp.eq.s32.totalorder %v5798_v31, 22  ;;  %vm2839_vm7 = vcmp.eq.s32.totalorder %v5802_v11, 22 }
 0x2e9   : > { %v6085_v38 = vpop.permute.xlu1 %2296  ;;  %v6087_v59 = vpop.permute.xlu0 %2293 }
 0x2ea   : > { %9054 = vst [vmem:[#allocation245_spill] sm:$0xff] %v6085_v38  ;;  %9055 = vst [vmem:[#allocation246_spill] sm:$0xff] %v6087_v59  ;;  %2764 = vperm.xlu1 %4384, %v2737_v17   ;;  %2761 = vperm.xlu0 %4383, %v2736_v28   ;;  %v2741_v38 = vsel %vm2725_vm8, 1, %v8769_v0  ;;  %v2740_v59 = vsel %vm2724_vm9, 1, %v8769_v0  ;;  %vm2842_vm8 = vcmp.eq.s32.totalorder %v5812_v3, 22  ;;  %vm2841_vm9 = vcmp.eq.s32.totalorder %v5816_v15, 22 }
 0x2ed   : > { %v6093_v8 = vpop.permute.xlu1 %2302  ;;  %v6095_v12 = vpop.permute.xlu0 %2299 }
 0x2ee   : > { %9056 = vst [vmem:[#allocation247_spill] sm:$0xff] %v6093_v8  ;;  %9057 = vst [vmem:[#allocation248_spill] sm:$0xff] %v6095_v12  ;;  %2770 = vperm.xlu1 %4384, %v2739_v54   ;;  %2767 = vperm.xlu0 %4383, %v2738_v27   ;;  %v2743_v8 = vsel %vm2727_vm10, 1, %v8769_v0  ;;  %v2742_v12 = vsel %vm2726_vm11, 1, %v8769_v0  ;;  %vm2844_vm10 = vcmp.eq.s32.totalorder %v5826_v23, 22  ;;  %vm2843_vm11 = vcmp.eq.s32.totalorder %v5830_v10, 22 }
 0x2f1   : > { %v6101_v17 = vpop.permute.xlu1 %2308  ;;  %v6103_v28 = vpop.permute.xlu0 %2305 }
 0x2f2   : > { %9058 = vst [vmem:[#allocation249_spill] sm:$0xff] %v6101_v17  ;;  %9059 = vst [vmem:[#allocation250_spill] sm:$0xff] %v6103_v28  ;;  %2776 = vperm.xlu1 %4384, %v2741_v38   ;;  %2773 = vperm.xlu0 %4383, %v2740_v59   ;;  %v2745_v17 = vsel %vm2729_vm12, 1, %v8769_v0  ;;  %v2744_v28 = vsel %vm2728_vm13, 1, %v8769_v0  ;;  %vm2846_vm12 = vcmp.eq.s32.totalorder %v5840_v16, 22  ;;  %vm2845_vm13 = vcmp.eq.s32.totalorder %v5844_v24, 22 }
 0x2f5   : > { %v6109_v54 = vpop.permute.xlu1 %2314  ;;  %v6111_v27 = vpop.permute.xlu0 %2311 }
 0x2f6   : > { %9060 = vst [vmem:[#allocation251_spill] sm:$0xff] %v6109_v54  ;;  %9061 = vst [vmem:[#allocation252_spill] sm:$0xff] %v6111_v27  ;;  %2782 = vperm.xlu1 %4384, %v2743_v8   ;;  %2779 = vperm.xlu0 %4383, %v2742_v12   ;;  %v2747_v54 = vsel %vm2731_vm14, 1, %v8769_v0  ;;  %v2746_v27 = vsel %vm2730_vm15, 1, %v8769_v0  ;;  %vm2848_vm14 = vcmp.eq.s32.totalorder %v5854_v43, 22  ;;  %vm2847_vm15 = vcmp.eq.s32.totalorder %v5858_v20, 22 }
 0x2f9   : > { %v6117_v38 = vpop.permute.xlu1 %2320  ;;  %v6119_v59 = vpop.permute.xlu0 %2317 }
 0x2fa   : > { %9062 = vst [vmem:[#allocation253_spill] sm:$0xff] %v6117_v38  ;;  %9063 = vst [vmem:[#allocation254_spill] sm:$0xff] %v6119_v59  ;;  %2788 = vperm.xlu1 %4384, %v2745_v17   ;;  %2785 = vperm.xlu0 %4383, %v2744_v28   ;;  %v2850_v38 = vsel %vm2834_vm0, 1, %v8769_v0  ;;  %v2849_v59 = vsel %vm2833_vm1, 1, %v8769_v0  ;;  %vm2951_vm0 = vcmp.eq.s32.totalorder %v5756_v2, 23  ;;  %vm2950_vm1 = vcmp.eq.s32.totalorder %v5760_v19, 23 }
 0x2fd   : > { %v6125_v8 = vpop.permute.xlu1 %2326  ;;  %v6127_v12 = vpop.permute.xlu0 %2323 }
 0x2fe   : > { %9064 = vst [vmem:[#allocation255_spill] sm:$0xff] %v6125_v8  ;;  %9065 = vst [vmem:[#allocation256_spill] sm:$0xff] %v6127_v12  ;;  %2794 = vperm.xlu1 %4384, %v2747_v54   ;;  %2791 = vperm.xlu0 %4383, %v2746_v27   ;;  %v2852_v8 = vsel %vm2836_vm2, 1, %v8769_v0  ;;  %v2851_v12 = vsel %vm2835_vm3, 1, %v8769_v0  ;;  %vm2953_vm2 = vcmp.eq.s32.totalorder %v5770_v4, 23  ;;  %vm2952_vm3 = vcmp.eq.s32.totalorder %v5774_v1, 23 }
 0x2ff   : > { %v2969_v2 = vsel %vm2953_vm2, 1, %v8769_v0  ;;  %v2968_v19 = vsel %vm2952_vm3, 1, %v8769_v0  ;;  %v4274_v1 = vld [vmem:[%s8734_s1] ss:$0 sm:$0xff]  ;;  %vm2959_vm2 = vcmp.eq.s32.totalorder %v5812_v3, 23  ;;  %vm2958_vm3 = vcmp.eq.s32.totalorder %v5816_v15, 23 }
 0x301   : > { %v6133_v17 = vpop.permute.xlu1 %2401  ;;  %v6135_v28 = vpop.permute.xlu0 %2398 }
 0x302   : > { %9066 = vst [vmem:[#allocation257_spill] sm:$0xff] %v6133_v17  ;;  %9067 = vst [vmem:[#allocation258_spill] sm:$0xff] %v6135_v28  ;;  %2869 = vperm.xlu1 %4384, %v2850_v38   ;;  %2866 = vperm.xlu0 %4383, %v2849_v59   ;;  %v2854_v17 = vsel %vm2838_vm4, 1, %v8769_v0  ;;  %v2853_v28 = vsel %vm2837_vm5, 1, %v8769_v0  ;;  %vm2955_vm4 = vcmp.eq.s32.totalorder %v5784_v26, 23  ;;  %vm2954_vm5 = vcmp.eq.s32.totalorder %v5788_v7, 23 }
 0x303   : > { %v2971_v7 = vsel %vm2955_vm4, 1, %v8769_v0  ;;  %v2970_v4 = vsel %vm2954_vm5, 1, %v8769_v0  ;;  %vm350_vm4 = vcmp.eq.s32.totalorder %v4925_v56, 1  ;;  %vm349_vm5 = vcmp.eq.s32.totalorder %v4927_v57, 1 }
 0x304   : > { %v2975_v56 = vsel %vm2959_vm2, 1, %v8769_v0  ;;  %v2974_v57 = vsel %vm2958_vm3, 1, %v8769_v0  ;;  %vm2963_vm2 = vcmp.eq.s32.totalorder %v5840_v16, 23  ;;  %vm2962_vm3 = vcmp.eq.s32.totalorder %v5844_v24, 23 }
 0x305   : > { %v6141_v54 = vpop.permute.xlu1 %2407  ;;  %v6143_v27 = vpop.permute.xlu0 %2404 }
 0x306   : > { %9068 = vst [vmem:[#allocation259_spill] sm:$0xff] %v6141_v54  ;;  %9069 = vst [vmem:[#allocation260_spill] sm:$0xff] %v6143_v27  ;;  %2875 = vperm.xlu1 %4384, %v2852_v8   ;;  %2872 = vperm.xlu0 %4383, %v2851_v12   ;;  %v2856_v54 = vsel %vm2840_vm6, 1, %v8769_v0  ;;  %v2855_v27 = vsel %vm2839_vm7, 1, %v8769_v0  ;;  %vm341_vm6 = vcmp.eq.s32.totalorder %v4885_v36, 1  ;;  %vm339_vm7 = vcmp.eq.s32.totalorder %v4887_v37, 1 }
 0x307   : > { %v6220_v26 = vsel %vm341_vm6, %v4274_v1, 0.0  ;;  %vm352_vm6 = vcmp.eq.s32.totalorder %v4933_v60, 1 }
 0x308   : > { %v372_v60 = vsel %vm352_vm6, %v4274_v1, 0.0  ;;  %vm465_vm6 = vcmp.eq.s32.totalorder %v4981_v39, 1 }
 0x309   : > { %v6149_v38 = vpop.permute.xlu1 %2413  ;;  %v6151_v59 = vpop.permute.xlu0 %2410 }
 0x30a   : > { %9070 = vst [vmem:[#allocation261_spill] sm:$0xff] %v6149_v38  ;;  %9071 = vst [vmem:[#allocation262_spill] sm:$0xff] %v6151_v59  ;;  %2881 = vperm.xlu1 %4384, %v2854_v17   ;;  %2878 = vperm.xlu0 %4383, %v2853_v28   ;;  %v2858_v38 = vsel %vm2842_vm8, 1, %v8769_v0  ;;  %v2857_v59 = vsel %vm2841_vm9, 1, %v8769_v0  ;;  %vm342_vm8 = vcmp.eq.s32.totalorder %v4893_v40, 1  ;;  %vm340_vm9 = vcmp.eq.s32.totalorder %v4895_v41, 1 }
 0x30b   : > { %v362_v40 = vsel %vm342_vm8, %v4274_v1, 0.0  ;;  %v360_v41 = vsel %vm340_vm9, %v4274_v1, 0.0  ;;  %vm354_vm8 = vcmp.eq.s32.totalorder %v4941_v5, 1  ;;  %vm353_vm9 = vcmp.eq.s32.totalorder %v4943_v6, 1  ;;  %v6261_v5 = vld [vmem:[%s8734_s1 + $0x1] ss:$0 sm:$0xff] }
 0x30c   : > { %v374_v3 = vsel %vm354_vm8, %v4274_v1, 0.0  ;;  %vm467_vm8 = vcmp.eq.s32.totalorder %v4989_v47, 1 }
 0x30d   : > { %v6157_v8 = vpop.permute.xlu1 %2419  ;;  %v6159_v12 = vpop.permute.xlu0 %2416 }
 0x30e   : > { %9072 = vst [vmem:[#allocation263_spill] sm:$0xff] %v6157_v8  ;;  %9073 = vst [vmem:[#allocation264_spill] sm:$0xff] %v6159_v12  ;;  %2887 = vperm.xlu1 %4384, %v2856_v54   ;;  %2884 = vperm.xlu0 %4383, %v2855_v27   ;;  %v2860_v8 = vsel %vm2844_vm10, 1, %v8769_v0  ;;  %v2859_v12 = vsel %vm2843_vm11, 1, %v8769_v0  ;;  %vm2957_vm10 = vcmp.eq.s32.totalorder %v5798_v31, 23  ;;  %vm2956_vm11 = vcmp.eq.s32.totalorder %v5802_v11, 23 }
 0x30f   : > { %v370_v11 = vsel %vm350_vm4, %v4274_v1, 0.0  ;;  %vm463_vm4 = vcmp.eq.s32.totalorder %v4973_v33, 1  ;;  %v2979_v33 = vsel %vm2963_vm2, 1, %v8769_v0 }
 0x310   : > { %v487_v16 = vsel %vm467_vm8, %v6261_v5, %v370_v11  ;;  %vm580_vm8 = vcmp.eq.s32.totalorder %v5037_v62, 1  ;;  %v9084_v11 = vld [vmem:[#allocation10_spill] sm:$0xff] }
 0x311   : > { %v6165_v17 = vpop.permute.xlu1 %2425  ;;  %v6167_v28 = vpop.permute.xlu0 %2422 }
 0x312   : > { %9074 = vst [vmem:[#allocation265_spill] sm:$0xff] %v6165_v17  ;;  %9075 = vst [vmem:[#allocation266_spill] sm:$0xff] %v6167_v28  ;;  %2893 = vperm.xlu1 %4384, %v2858_v38   ;;  %2890 = vperm.xlu0 %4383, %v2857_v59   ;;  %v2862_v17 = vsel %vm2846_vm12, 1, %v8769_v0  ;;  %v2861_v28 = vsel %vm2845_vm13, 1, %v8769_v0  ;;  %vm344_vm12 = vcmp.eq.s32.totalorder %v4901_v44, 1  ;;  %vm343_vm13 = vcmp.eq.s32.totalorder %v4903_v45, 1 }
 0x313   : > { %v2973_v44 = vsel %vm2957_vm10, 1, %v8769_v0  ;;  %v2972_v45 = vsel %vm2956_vm11, 1, %v8769_v0  ;;  %vm2961_vm10 = vcmp.eq.s32.totalorder %v5826_v23, 23  ;;  %vm2960_vm11 = vcmp.eq.s32.totalorder %v5830_v10, 23 }
 0x315   : > { %v6173_v54 = vpop.permute.xlu1 %2431  ;;  %v6175_v27 = vpop.permute.xlu0 %2428 }
 0x316   : > { %9076 = vst [vmem:[#allocation267_spill] sm:$0xff] %v6173_v54  ;;  %9077 = vst [vmem:[#allocation268_spill] sm:$0xff] %v6175_v27  ;;  %2899 = vperm.xlu1 %4384, %v2860_v8   ;;  %2896 = vperm.xlu0 %4383, %v2859_v12   ;;  %v2864_v54 = vsel %vm2848_vm14, 1, %v8769_v0  ;;  %v2863_v27 = vsel %vm2847_vm15, 1, %v8769_v0  ;;  %vm346_vm14 = vcmp.eq.s32.totalorder %v4909_v48, 1  ;;  %vm345_vm15 = vcmp.eq.s32.totalorder %v4911_v49, 1 }
 0x317   : > { %v366_v48 = vsel %vm346_vm14, %v4274_v1, 0.0  ;;  %v365_v49 = vsel %vm345_vm15, %v4274_v1, 0.0  ;;  %vm459_vm14 = vcmp.eq.s32.totalorder %v4957_v21, 1  ;;  %vm458_vm15 = vcmp.eq.s32.totalorder %v4959_v22, 1 }
 0x318   : > { %v479_v22 = vsel %vm459_vm14, %v6261_v5, %v362_v40  ;;  %vm471_vm14 = vcmp.eq.s32.totalorder %v5005_v63, 1 }
 0x319   : > { %v6181_v38 = vpop.permute.xlu1 %2437  ;;  %v6183_v59 = vpop.permute.xlu0 %2434 }
 0x31a   : > { %9078 = vst [vmem:[#allocation269_spill] sm:$0xff] %v6181_v38  ;;  %9079 = vst [vmem:[#allocation270_spill] sm:$0xff] %v6183_v59  ;;  %2905 = vperm.xlu1 %4384, %v2862_v17   ;;  %2902 = vperm.xlu0 %4383, %v2861_v28   ;;  %v2967_v38 = vsel %vm2951_vm0, 1, %v8769_v0  ;;  %v2966_v59 = vsel %vm2950_vm1, 1, %v8769_v0  ;;  %vm348_vm0 = vcmp.eq.s32.totalorder %v4917_v52, 1  ;;  %vm347_vm1 = vcmp.eq.s32.totalorder %v4919_v53, 1 }
 0x31b   : > { %v368_v31 = vsel %vm348_vm0, %v4274_v1, 0.0  ;;  %vm461_vm0 = vcmp.eq.s32.totalorder %v4965_v29, 1  ;;  %v478_v29 = vsel %vm458_vm15, %v6261_v5, %v6220_v26  ;;  %v483_v26 = vsel %vm463_vm4, %v6261_v5, %v366_v48 }
 0x31c   : > { %vm470_vm15 = vcmp.eq.s32.totalorder %v5007_v9, 1  ;;  %vm576_vm4 = vcmp.eq.s32.totalorder %v5021_v32, 1  ;;  %v9082_v32 = vld [vmem:[#allocation8_spill] sm:$0xff] }
 0x31d   : > { %v6189_v8 = vpop.permute.xlu1 %2443  ;;  %v6191_v12 = vpop.permute.xlu0 %2440 }
 0x31e   : > { %2911 = vperm.xlu1 %4384, %v2864_v54   ;;  %2908 = vperm.xlu0 %4383, %v2863_v27  }
 0x321   : > { %v6197_v17 = vpop.permute.xlu1 %2518  ;;  %v6199_v28 = vpop.permute.xlu0 %2515 }
 0x322   : > { %2986 = vperm.xlu1 %4384, %v2967_v38   ;;  %2983 = vperm.xlu0 %4383, %v2966_v59   ;;  %v359_v38 = vsel %vm339_vm7, %v4274_v1, 0.0  ;;  %v364_v59 = vsel %vm344_vm12, %v4274_v1, 0.0  ;;  %vm351_vm7 = vcmp.eq.s32.totalorder %v4935_v61, 1  ;;  %vm457_vm12 = vcmp.eq.s32.totalorder %v4949_v13, 1 }
 0x323   : > { %v371_v61 = vsel %vm351_vm7, %v4274_v1, 0.0  ;;  %v2977_v13 = vsel %vm2961_vm10, 1, %v8769_v0  ;;  %v481_v23 = vsel %vm461_vm0, %v6261_v5, %v364_v59  ;;  %vm464_vm7 = vcmp.eq.s32.totalorder %v4983_v42, 1 }
 0x324   : > { %vm2965_vm10 = vcmp.eq.s32.totalorder %v5854_v43, 23  ;;  %v485_v42 = vsel %vm465_vm6, %v6261_v5, %v368_v31  ;;  %vm574_vm0 = vcmp.eq.s32.totalorder %v5013_v18, 1  ;;  %v491_v59 = vsel %vm471_vm14, %v6261_v5, %v374_v3  ;;  %v6370_v31 = vld [vmem:[%s4701_s26 + $0x18] sm:$0xff]  ;;  %v9087_v3 = vld [vmem:[#allocation11_spill] sm:$0xff] }
 0x325   : > { %v6205_v54 = vpop.permute.xlu1 %2524  ;;  %v6207_v27 = vpop.permute.xlu0 %2521  ;;  %vm578_vm6 = vcmp.eq.s32.totalorder %v5029_v46, 1  ;;  %vm584_vm14 = vcmp.eq.s32.totalorder %v9087_v3, 1  ;;  %v6447_v3 = vld [vmem:[%s4701_s26 + $0x30] sm:$0xff] }
 0x326   : > { %2992 = vperm.xlu1 %4384, %v2969_v2   ;;  %2989 = vperm.xlu0 %4383, %v2968_v19   ;;  %v363_v2 = vsel %vm343_vm13, %v4274_v1, 0.0  ;;  %v367_v19 = vsel %vm347_vm1, %v4274_v1, 0.0  ;;  %vm456_vm13 = vcmp.eq.s32.totalorder %v4951_v14, 1  ;;  %vm460_vm1 = vcmp.eq.s32.totalorder %v4967_v30, 1 }
 0x327   : > { %v2976_v14 = vsel %vm2960_vm11, 1, %v8769_v0  ;;  %v476_v21 = vsel %vm456_vm13, %v6261_v5, %v359_v38  ;;  %v480_v38 = vsel %vm460_vm1, %v6261_v5, %v363_v2  ;;  %vm2964_vm11 = vcmp.eq.s32.totalorder %v5858_v20, 23 }
 0x328   : > { %v484_v47 = vsel %vm464_vm7, %v6261_v5, %v367_v19  ;;  %vm468_vm13 = vcmp.eq.s32.totalorder %v4999_v58, 1  ;;  %vm573_vm1 = vcmp.eq.s32.totalorder %v5015_v25, 1  ;;  %v2981_v58 = vsel %vm2965_vm10, 1, %v8769_v0 }
 0x329   : > { %v6224_v36 = vpop.permute.xlu1 %2530  ;;  %v6226_v37 = vpop.permute.xlu0 %2527  ;;  %v2980_v63 = vsel %vm2964_vm11, 1, %v8769_v0  ;;  %vm577_vm7 = vcmp.eq.s32.totalorder %v5031_v51, 1  ;;  %vm3070_vm10 = vcmp.eq.s32.totalorder %v6370_v31, 24  ;;  %v6374_v51 = vld [vmem:[%s4701_s26 + $0x10] sm:$0xff] }
 0x32a   : > { %2998 = vperm.xlu1 %4384, %v2971_v7   ;;  %2995 = vperm.xlu0 %4383, %v2970_v4   ;;  %v369_v7 = vsel %vm349_vm5, %v4274_v1, 0.0  ;;  %v373_v4 = vsel %vm353_vm9, %v4274_v1, 0.0  ;;  %v477_v1 = vsel %vm457_vm12, %v6261_v5, %v360_v41  ;;  %vm462_vm5 = vcmp.eq.s32.totalorder %v4975_v34, 1 }
 0x32b   : > { %vm466_vm9 = vcmp.eq.s32.totalorder %v4991_v50, 1  ;;  %v2978_v34 = vsel %vm2962_vm3, 1, %v8769_v0  ;;  %v482_v39 = vsel %vm462_vm5, %v6261_v5, %v365_v49  ;;  %vm469_vm12 = vcmp.eq.s32.totalorder %v4997_v55, 1  ;;  %v6323_v55 = vld [vmem:[%s8734_s1 + $0x2] ss:$0 sm:$0xff] }
 0x32c   : > { %v486_v40 = vsel %vm466_vm9, %v6261_v5, %v369_v7  ;;  %v489_v9 = vsel %vm469_vm12, %v6261_v5, %v372_v60  ;;  %v488_v41 = vsel %vm468_vm13, %v6261_v5, %v371_v61  ;;  %v490_v43 = vsel %vm470_vm15, %v6261_v5, %v373_v4  ;;  %v9088_v4 = vld [vmem:[#allocation12_spill] sm:$0xff] }
 0x32d   : > { %v6242_v52 = vpop.permute.xlu1 %2536  ;;  %v6244_v53 = vpop.permute.xlu0 %2533  ;;  %vm575_vm5 = vcmp.eq.s32.totalorder %v5023_v35, 1  ;;  %v594_v48 = vsel %vm574_vm0, %v6323_v55, %v477_v1  ;;  %v593_v49 = vsel %vm573_vm1, %v6323_v55, %v476_v21  ;;  %vm579_vm9 = vcmp.eq.s32.totalorder %v9082_v32, 1  ;;  %v9097_v32 = vld [vmem:[#allocation19_spill] sm:$0xff] }
 0x32e   : > { %3004 = vperm.xlu1 %4384, %v2973_v44   ;;  %3001 = vperm.xlu0 %4383, %v2972_v45   ;;  %v6336_v44 = vld [vmem:[%s4701_s26 + $0x8] sm:$0xff]  ;;  %v6340_v45 = vld [vmem:[%s4701_s26] sm:$0xff]  ;;  %v596_v25 = vsel %vm576_vm4, %v6323_v55, %v479_v22  ;;  %v595_v46 = vsel %vm575_vm5, %v6323_v55, %v478_v29  ;;  %vm3069_vm11 = vcmp.eq.s32.totalorder %v6374_v51, 24  ;;  %v598_v19 = vsel %vm578_vm6, %v6323_v55, %v481_v23 }
 0x32f   : > { %vm3068_vm2 = vcmp.eq.s32.totalorder %v6336_v44, 24  ;;  %vm3067_vm3 = vcmp.eq.s32.totalorder %v6340_v45, 24  ;;  %vm581_vm13 = vcmp.eq.s32.totalorder %v9084_v11, 1  ;;  %v600_v61 = vsel %vm580_vm8, %v6323_v55, %v483_v26  ;;  %v6404_v29 = vld [vmem:[%s4701_s26 + $0x28] sm:$0xff]  ;;  %v6408_v23 = vld [vmem:[%s4701_s26 + $0x20] sm:$0xff]  ;;  %v6443_v11 = vld [vmem:[%s4701_s26 + $0x38] sm:$0xff] }
 0x330   : > { %v3084_v35 = vsel %vm3068_vm2, 1, %v8769_v0  ;;  %v3083_v18 = vsel %vm3067_vm3, 1, %v8769_v0  ;;  %v599_v5 = vsel %vm579_vm9, %v6323_v55, %v482_v39  ;;  %vm583_vm15 = vcmp.eq.s32.totalorder %v9088_v4, 1  ;;  %v9092_v26 = vld [vmem:[#allocation16_spill] sm:$0xff] }
 0x331   : > { %v6265_v6 = vpop.permute.xlu1 %2542  ;;  %v6267_v15 = vpop.permute.xlu0 %2539  ;;  %v3086_v1 = vsel %vm3070_vm10, 1, %v8769_v0  ;;  %v3085_v62 = vsel %vm3069_vm11, 1, %v8769_v0  ;;  %v601_v22 = vsel %vm581_vm13, %v6323_v55, %v484_v47  ;;  %vm3072_vm2 = vcmp.eq.s32.totalorder %v6404_v29, 24 }
 0x332   : > { %3010 = vperm.xlu1 %4384, %v2975_v56   ;;  %3007 = vperm.xlu0 %4383, %v2974_v57   ;;  %v597_v56 = vsel %vm577_vm7, %v6323_v55, %v480_v38  ;;  %v9083_v57 = vld [vmem:[#allocation9_spill] sm:$0xff]  ;;  %vm3071_vm3 = vcmp.eq.s32.totalorder %v6408_v23, 24  ;;  %v604_v38 = vsel %vm584_vm14, %v6323_v55, %v487_v16  ;;  %vm587_vm5 = vcmp.eq.s32.totalorder %v9092_v26, 1  ;;  %v9106_v26 = vld [vmem:[#allocation26_spill] sm:$0xff] }
 0x333   : > { %vm582_vm12 = vcmp.eq.s32.totalorder %v9083_v57, 1  ;;  %vm693_vm8 = vcmp.eq.s32.totalorder %v9097_v32, 1  ;;  %v607_v57 = vsel %vm587_vm5, %v6323_v55, %v490_v43  ;;  %vm3074_vm10 = vcmp.eq.s32.totalorder %v6443_v11, 24  ;;  %v6477_v32 = vld [vmem:[%s4701_s26 + $0x48] sm:$0xff] }
 0x334   : > { %v602_v21 = vsel %vm582_vm12, %v6323_v55, %v485_v42  ;;  %vm3073_vm11 = vcmp.eq.s32.totalorder %v6447_v3, 24 }
 0x335   : > { %v6288_v30 = vpop.permute.xlu1 %2548  ;;  %v6290_v10 = vpop.permute.xlu0 %2545 }
 0x336   : > { %3016 = vperm.xlu1 %4384, %v2977_v13   ;;  %3013 = vperm.xlu0 %4383, %v2976_v14   ;;  %v9089_v13 = vld [vmem:[#allocation13_spill] sm:$0xff]  ;;  %v9090_v14 = vld [vmem:[#allocation14_spill] sm:$0xff] }
 0x337   : > { %vm586_vm0 = vcmp.eq.s32.totalorder %v9089_v13, 1  ;;  %vm585_vm1 = vcmp.eq.s32.totalorder %v9090_v14, 1  ;;  %v9099_v14 = vld [vmem:[#allocation21_spill] sm:$0xff] }
 0x338   : > { %v606_v47 = vsel %vm586_vm0, %v6323_v55, %v489_v9  ;;  %v605_v16 = vsel %vm585_vm1, %v6323_v55, %v488_v41  ;;  %v3088_v9 = vsel %vm3072_vm2, 1, %v8769_v0  ;;  %v3087_v41 = vsel %vm3071_vm3, 1, %v8769_v0 }
 0x339   : > { %v6312_v50 = vpop.permute.xlu1 %2554  ;;  %v6314_v24 = vpop.permute.xlu0 %2551  ;;  %vm695_vm12 = vcmp.eq.s32.totalorder %v9099_v14, 1  ;;  %vm698_vm1 = vcmp.eq.s32.totalorder %v9106_v26, 1  ;;  %vm3076_vm2 = vcmp.eq.s32.totalorder %v6477_v32, 24  ;;  %v9107_v14 = vld [vmem:[#allocation27_spill] sm:$0xff]  ;;  %v6511_v26 = vld [vmem:[%s4701_s26 + $0x58] sm:$0xff] }
 0x33a   : > { %3022 = vperm.xlu1 %4384, %v2979_v33   ;;  %3019 = vperm.xlu0 %4383, %v2978_v34   ;;  %v603_v33 = vsel %vm583_vm15, %v6323_v55, %v486_v40  ;;  %v9091_v34 = vld [vmem:[#allocation15_spill] sm:$0xff] }
 0x33b   : > { %vm588_vm4 = vcmp.eq.s32.totalorder %v9091_v34, 1  ;;  %v6428_v40 = vld [vmem:[%s8734_s1 + $0x3] ss:$0 sm:$0xff]  ;;  %v9105_v34 = vld [vmem:[#allocation25_spill] sm:$0xff] }
 0x33c   : > { %v713_v43 = vsel %vm693_vm8, %v6428_v40, %v596_v25  ;;  %vm699_vm0 = vcmp.eq.s32.totalorder %v9105_v34, 1  ;;  %v3089_v25 = vsel %vm3073_vm11, 1, %v8769_v0 }
 0x33d   : > { %v6347_v20 = vpop.permute.xlu1 %2560  ;;  %v6349_v2 = vpop.permute.xlu0 %2557 }
 0x33e   : > { %9080 = vst [vmem:[#allocation271_spill] sm:$0xff] %v6347_v20  ;;  %9081 = vst [vmem:[#allocation272_spill] sm:$0xff] %v6349_v2  ;;  %3028 = vperm.xlu1 %4384, %v2981_v58   ;;  %3025 = vperm.xlu0 %4383, %v2980_v63   ;;  %v9095_v58 = vld [vmem:[#allocation17_spill] sm:$0xff]  ;;  %v9096_v63 = vld [vmem:[#allocation18_spill] sm:$0xff] }
 0x33f   : > { %vm691_vm6 = vcmp.eq.s32.totalorder %v9095_v58, 1  ;;  %vm690_vm7 = vcmp.eq.s32.totalorder %v9096_v63, 1  ;;  %v3090_v58 = vsel %vm3074_vm10, 1, %v8769_v0  ;;  %vm3078_vm10 = vcmp.eq.s32.totalorder %v6511_v26, 24  ;;  %v9136_v2 = vld [vmem:[#allocation47_spill] sm:$0xff] }
 0x340   : > { %v711_v4 = vsel %vm691_vm6, %v6428_v40, %v594_v48  ;;  %v710_v13 = vsel %vm690_vm7, %v6428_v40, %v593_v49  ;;  %v9104_v49 = vld [vmem:[#allocation24_spill] sm:$0xff]  ;;  %v9168_v20 = vld [vmem:[#allocation71_spill] sm:$0xff] }
 0x341   : > { %v6381_v7 = vpop.permute.xlu1 %2635  ;;  %v6383_v60 = vpop.permute.xlu0 %2632  ;;  %vm696_vm15 = vcmp.eq.s32.totalorder %v9104_v49, 1  ;;  %v9111_v49 = vld [vmem:[#allocation29_spill] sm:$0xff] }
 0x342   : > { %9085 = vst [vmem:[#allocation8_spill] sm:$0xff] %v6381_v7  ;;  %9086 = vst [vmem:[#allocation9_spill] sm:$0xff] %v6383_v60  ;;  %3103 = vperm.xlu1 %4384, %v3084_v35   ;;  %3100 = vperm.xlu0 %4383, %v3083_v18   ;;  %v9098_v35 = vld [vmem:[#allocation20_spill] sm:$0xff]  ;;  %v608_v18 = vsel %vm588_vm4, %v6323_v55, %v491_v59  ;;  %vm701_vm4 = vcmp.eq.s32.totalorder %v9107_v14, 1  ;;  %vm703_vm6 = vcmp.eq.s32.totalorder %v9111_v49, 1  ;;  %v9113_v14 = vld [vmem:[#allocation31_spill] sm:$0xff] }
 0x343   : > { %vm692_vm9 = vcmp.eq.s32.totalorder %v9098_v35, 1  ;;  %v6481_v35 = vld [vmem:[%s4701_s26 + $0x40] sm:$0xff]  ;;  %vm705_vm8 = vcmp.eq.s32.totalorder %v9113_v14, 1 }
 0x344   : > { %v712_v48 = vsel %vm692_vm9, %v6428_v40, %v595_v46  ;;  %v715_v46 = vsel %vm695_vm12, %v6428_v40, %v598_v19  ;;  %vm3075_vm3 = vcmp.eq.s32.totalorder %v6481_v35, 24 }
 0x345   : > { %v6415_v39 = vpop.permute.xlu1 %2641  ;;  %v6417_v42 = vpop.permute.xlu0 %2638 }
 0x346   : > { %9093 = vst [vmem:[#allocation10_spill] sm:$0xff] %v6415_v39  ;;  %9094 = vst [vmem:[#allocation11_spill] sm:$0xff] %v6417_v42  ;;  %3109 = vperm.xlu1 %4384, %v3086_v1   ;;  %3106 = vperm.xlu0 %4383, %v3085_v62   ;;  %v9100_v1 = vld [vmem:[#allocation22_spill] sm:$0xff]  ;;  %v9103_v62 = vld [vmem:[#allocation23_spill] sm:$0xff] }
 0x347   : > { %vm694_vm13 = vcmp.eq.s32.totalorder %v9100_v1, 1  ;;  %vm697_vm14 = vcmp.eq.s32.totalorder %v9103_v62, 1  ;;  %v9108_v1 = vld [vmem:[#allocation28_spill] sm:$0xff]  ;;  %v719_v62 = vsel %vm699_vm0, %v6428_v40, %v602_v21  ;;  %v3091_v21 = vsel %vm3075_vm3, 1, %v8769_v0  ;;  %v9128_v39 = vld [vmem:[#allocation41_spill] sm:$0xff] }
 0x348   : > { %v714_v63 = vsel %vm694_vm13, %v6428_v40, %v597_v56  ;;  %vm700_vm5 = vcmp.eq.s32.totalorder %v9108_v1, 1  ;;  %v9114_v1 = vld [vmem:[#allocation32_spill] sm:$0xff] }
 0x349   : > { %v6454_v59 = vpop.permute.xlu1 %2647  ;;  %v6456_v55 = vpop.permute.xlu0 %2644  ;;  %vm704_vm9 = vcmp.eq.s32.totalorder %v9114_v1, 1  ;;  %v720_v34 = vsel %vm700_vm5, %v6428_v40, %v603_v33  ;;  %v9115_v33 = vld [vmem:[#allocation33_spill] sm:$0xff]  ;;  %v9124_v1 = vld [vmem:[#allocation39_spill] sm:$0xff] }
 0x34a   : > { %9101 = vst [vmem:[#allocation12_spill] sm:$0xff] %v6454_v59  ;;  %9102 = vst [vmem:[#allocation13_spill] sm:$0xff] %v6456_v55  ;;  %3115 = vperm.xlu1 %4384, %v3088_v9   ;;  %3112 = vperm.xlu0 %4383, %v3087_v41   ;;  %v717_v9 = vsel %vm697_vm14, %v6428_v40, %v600_v61  ;;  %v716_v41 = vsel %vm696_vm15, %v6428_v40, %v599_v5  ;;  %v9112_v5 = vld [vmem:[#allocation30_spill] sm:$0xff]  ;;  %vm808_vm12 = vcmp.eq.s32.totalorder %v9115_v33, 1  ;;  %v9119_v55 = vld [vmem:[#allocation35_spill] sm:$0xff] }
 0x34b   : > { %v718_v61 = vsel %vm698_vm1, %v6428_v40, %v601_v22  ;;  %vm702_vm7 = vcmp.eq.s32.totalorder %v9112_v5, 1  ;;  %v721_v22 = vsel %vm701_vm4, %v6428_v40, %v604_v38  ;;  %v6527_v38 = vld [vmem:[%s8734_s1 + $0x4] ss:$0 sm:$0xff]  ;;  %v9116_v5 = vld [vmem:[#allocation34_spill] sm:$0xff]  ;;  %vm810_vm14 = vcmp.eq.s32.totalorder %v9119_v55, 1  ;;  %v9120_v59 = vld [vmem:[#allocation36_spill] sm:$0xff] }
 0x34c   : > { %v6522_v49 = vsel %vm702_vm7, %v6428_v40, %v605_v16  ;;  %vm807_vm13 = vcmp.eq.s32.totalorder %v9116_v5, 1  ;;  %v724_v16 = vsel %vm704_vm9, %v6428_v40, %v607_v57  ;;  %vm809_vm15 = vcmp.eq.s32.totalorder %v9120_v59, 1  ;;  %v9121_v33 = vld [vmem:[#allocation37_spill] sm:$0xff]  ;;  %v9122_v5 = vld [vmem:[#allocation38_spill] sm:$0xff]  ;;  %v6554_v55 = vld [vmem:[%s4701_s26 + $0x68] sm:$0xff] }
 0x34d   : > { %v6488_v19 = vpop.permute.xlu1 %2653  ;;  %v6490_v56 = vpop.permute.xlu0 %2650  ;;  %vm812_vm0 = vcmp.eq.s32.totalorder %v9121_v33, 1  ;;  %vm811_vm1 = vcmp.eq.s32.totalorder %v9122_v5, 1  ;;  %v827_v57 = vsel %vm807_vm13, %v6527_v38, %v710_v13  ;;  %v6558_v59 = vld [vmem:[%s4701_s26 + $0x60] sm:$0xff]  ;;  %v829_v14 = vsel %vm809_vm15, %v6527_v38, %v712_v48  ;;  %v9129_v48 = vld [vmem:[#allocation42_spill] sm:$0xff] }
 0x34e   : > { %9109 = vst [vmem:[#allocation14_spill] sm:$0xff] %v6488_v19  ;;  %9110 = vst [vmem:[#allocation15_spill] sm:$0xff] %v6490_v56  ;;  %3121 = vperm.xlu1 %4384, %v3090_v58   ;;  %3118 = vperm.xlu0 %4383, %v3089_v25   ;;  %v3092_v56 = vsel %vm3076_vm2, 1, %v8769_v0  ;;  %v6515_v58 = vld [vmem:[%s4701_s26 + $0x50] sm:$0xff]  ;;  %v6519_v25 = vsel %vm703_vm6, %v6428_v40, %v606_v47  ;;  %v725_v47 = vsel %vm705_vm8, %v6428_v40, %v608_v18  ;;  %v6588_v33 = vld [vmem:[%s4701_s26 + $0x78] sm:$0xff] }
 0x34f   : > { %vm3077_vm11 = vcmp.eq.s32.totalorder %v6515_v58, 24  ;;  %v828_v40 = vsel %vm808_vm12, %v6527_v38, %v711_v4  ;;  %vm3080_vm2 = vcmp.eq.s32.totalorder %v6554_v55, 24  ;;  %vm3079_vm3 = vcmp.eq.s32.totalorder %v6558_v59, 24 }
 0x350   : > { %vm814_vm4 = vcmp.eq.s32.totalorder %v9124_v1, 1  ;;  %v832_v42 = vsel %vm812_vm0, %v6527_v38, %v715_v46  ;;  %vm816_vm6 = vcmp.eq.s32.totalorder %v9128_v39, 1  ;;  %vm815_vm7 = vcmp.eq.s32.totalorder %v9129_v48, 1  ;;  %v9130_v1 = vld [vmem:[#allocation43_spill] sm:$0xff]  ;;  %v9132_v48 = vld [vmem:[#allocation45_spill] sm:$0xff] }
 0x351   : > { %v6531_v0 = vpop.permute.xlu1 %2659  ;;  %v6533_v19 = vpop.permute.xlu0 %2656  ;;  %vm818_vm8 = vcmp.eq.s32.totalorder %v9130_v1, 1  ;;  %v836_v5 = vsel %vm816_vm6, %v6527_v38, %v719_v62  ;;  %vm820_vm12 = vcmp.eq.s32.totalorder %v9132_v48, 1  ;;  %v9137_v62 = vld [vmem:[#allocation48_spill] sm:$0xff]  ;;  %v9139_v48 = vld [vmem:[#allocation50_spill] sm:$0xff] }
 0x352   : > { %9117 = vst [vmem:[#allocation16_spill] sm:$0xff] %v6531_v0  ;;  %9118 = vst [vmem:[#allocation17_spill] sm:$0xff] %v6533_v19  ;;  %3127 = vperm.xlu1 %4384, %v3092_v56   ;;  %3124 = vperm.xlu0 %4383, %v3091_v21   ;;  %v9123_v0 = vmov 0   ;;  %v830_v56 = vsel %vm810_vm14, %v6527_v38, %v713_v43  ;;  %v9125_v21 = vld [vmem:[#allocation40_spill] sm:$0xff]  ;;  %v831_v43 = vsel %vm811_vm1, %v6527_v38, %v714_v63  ;;  %vm822_vm14 = vcmp.eq.s32.totalorder %v9136_v2, 1 }
 0x353   : > { %v3094_v19 = vsel %vm3078_vm10, 1, %v9123_v0  ;;  %v3093_v18 = vsel %vm3077_vm11, 1, %v9123_v0  ;;  %vm813_vm5 = vcmp.eq.s32.totalorder %v9125_v21, 1  ;;  %v9131_v21 = vld [vmem:[#allocation44_spill] sm:$0xff]  ;;  %v3095_v46 = vsel %vm3079_vm3, 1, %v9123_v0 }
 0x354   : > { %vm817_vm9 = vcmp.eq.s32.totalorder %v9131_v21, 1  ;;  %v834_v63 = vsel %vm814_vm4, %v6527_v38, %v717_v9  ;;  %v833_v39 = vsel %vm813_vm5, %v6527_v38, %v716_v41  ;;  %vm3082_vm10 = vcmp.eq.s32.totalorder %v6588_v33, 24 }
 0x355   : > { %v6565_v4 = vpop.permute.xlu1 %2665  ;;  %v6567_v13 = vpop.permute.xlu0 %2662  ;;  %v838_v41 = vsel %vm818_vm8, %v6527_v38, %v721_v22  ;;  %v837_v7 = vsel %vm817_vm9, %v6527_v38, %v720_v34  ;;  %vm821_vm15 = vcmp.eq.s32.totalorder %v9137_v62, 1  ;;  %vm924_vm1 = vcmp.eq.s32.totalorder %v9139_v48, 1  ;;  %v9141_v62 = vld [vmem:[#allocation52_spill] sm:$0xff] }
 0x356   : > { %9126 = vst [vmem:[#allocation18_spill] sm:$0xff] %v6565_v4  ;;  %9127 = vst [vmem:[#allocation19_spill] sm:$0xff] %v6567_v13  ;;  %3133 = vperm.xlu1 %4384, %v3094_v19   ;;  %3130 = vperm.xlu0 %4383, %v3093_v18   ;;  %v3096_v13 = vsel %vm3080_vm2, 1, %v9123_v0  ;;  %v6592_v19 = vld [vmem:[%s4701_s26 + $0x70] sm:$0xff]  ;;  %v835_v18 = vsel %vm815_vm7, %v6527_v38, %v718_v61  ;;  %v9133_v4 = vld [vmem:[#allocation46_spill] sm:$0xff]  ;;  %v3098_v22 = vsel %vm3082_vm10, 1, %v9123_v0 }
 0x357   : > { %vm3081_vm11 = vcmp.eq.s32.totalorder %v6592_v19, 24  ;;  %vm819_vm13 = vcmp.eq.s32.totalorder %v9133_v4, 1  ;;  %v6614_v61 = vld [vmem:[%s8734_s1 + $0x5] ss:$0 sm:$0xff]  ;;  %v9138_v4 = vld [vmem:[#allocation49_spill] sm:$0xff]  ;;  %v840_v34 = vsel %vm820_vm12, %v6527_v38, %v6519_v25  ;;  %vm3185_vm2 = vcmp.eq.s32.totalorder %v6336_v44, 25 }
 0x358   : > { %vm925_vm0 = vcmp.eq.s32.totalorder %v9138_v4, 1  ;;  %v3097_v2 = vsel %vm3081_vm11, 1, %v9123_v0  ;;  %vm3184_vm3 = vcmp.eq.s32.totalorder %v6340_v45, 25  ;;  %v842_v1 = vsel %vm822_vm14, %v6527_v38, %v725_v47  ;;  %v9146_v47 = vld [vmem:[#allocation55_spill] sm:$0xff] }
 0x359   : > { %v6599_v60 = vpop.permute.xlu1 %2671  ;;  %v6601_v9 = vpop.permute.xlu0 %2668  ;;  %v841_v21 = vsel %vm821_vm15, %v6527_v38, %v724_v16  ;;  %vm926_vm5 = vcmp.eq.s32.totalorder %v9141_v62, 1  ;;  %v945_v25 = vsel %vm925_vm0, %v6614_v61, %v828_v40  ;;  %vm931_vm8 = vcmp.eq.s32.totalorder %v9146_v47, 1 }
 0x35a   : > { %9134 = vst [vmem:[#allocation20_spill] sm:$0xff] %v6599_v60  ;;  %9135 = vst [vmem:[#allocation21_spill] sm:$0xff] %v6601_v9  ;;  %3139 = vperm.xlu1 %4384, %v3096_v13   ;;  %3136 = vperm.xlu0 %4383, %v3095_v46   ;;  %v839_v13 = vsel %vm819_vm13, %v6527_v38, %v6522_v49  ;;  %v9140_v46 = vld [vmem:[#allocation51_spill] sm:$0xff]  ;;  %v944_v49 = vsel %vm924_vm1, %v6614_v61, %v827_v57  ;;  %v9144_v9 = vld [vmem:[#allocation53_spill] sm:$0xff]  ;;  %v3201_v16 = vsel %vm3185_vm2, 1, %v9123_v0 }
 0x35b   : > { %vm927_vm4 = vcmp.eq.s32.totalorder %v9140_v46, 1  ;;  %vm929_vm6 = vcmp.eq.s32.totalorder %v9144_v9, 1  ;;  %v9145_v60 = vld [vmem:[#allocation54_spill] sm:$0xff]  ;;  %v9147_v38 = vld [vmem:[#allocation56_spill] sm:$0xff]  ;;  %v3200_v40 = vsel %vm3184_vm3, 1, %v9123_v0  ;;  %v946_v9 = vsel %vm926_vm5, %v6614_v61, %v829_v14 }
 0x35c   : > { %vm928_vm7 = vcmp.eq.s32.totalorder %v9145_v60, 1  ;;  %vm930_vm9 = vcmp.eq.s32.totalorder %v9147_v38, 1  ;;  %v947_v57 = vsel %vm927_vm4, %v6614_v61, %v830_v56  ;;  %vm3187_vm10 = vcmp.eq.s32.totalorder %v6370_v31, 25  ;;  %v9149_v46 = vld [vmem:[#allocation58_spill] sm:$0xff]  ;;  %v9152_v38 = vld [vmem:[#allocation59_spill] sm:$0xff] }
 0x35d   : > { %v6634_v4 = vpop.permute.xlu1 %2677  ;;  %v6636_v48 = vpop.permute.xlu0 %2674  ;;  %vm3186_vm11 = vcmp.eq.s32.totalorder %v6374_v51, 25  ;;  %v949_v60 = vsel %vm929_vm6, %v6614_v61, %v832_v42  ;;  %vm932_vm13 = vcmp.eq.s32.totalorder %v9149_v46, 1  ;;  %v951_v56 = vsel %vm931_vm8, %v6614_v61, %v834_v63  ;;  %v9154_v42 = vld [vmem:[#allocation61_spill] sm:$0xff] }
 0x35e   : > { %9142 = vst [vmem:[#allocation22_spill] sm:$0xff] %v6634_v4  ;;  %9143 = vst [vmem:[#allocation23_spill] sm:$0xff] %v6636_v48  ;;  %3145 = vperm.xlu1 %4384, %v3098_v22   ;;  %3142 = vperm.xlu0 %4383, %v3097_v2   ;;  %v948_v22 = vsel %vm928_vm7, %v6614_v61, %v831_v43  ;;  %v9148_v2 = vld [vmem:[#allocation57_spill] sm:$0xff]  ;;  %v950_v14 = vsel %vm930_vm9, %v6614_v61, %v833_v39  ;;  %vm935_vm14 = vcmp.eq.s32.totalorder %v9152_v38, 1  ;;  %v9153_v48 = vld [vmem:[#allocation60_spill] sm:$0xff] }
 0x35f   : > { %vm933_vm12 = vcmp.eq.s32.totalorder %v9148_v2, 1  ;;  %vm934_vm15 = vcmp.eq.s32.totalorder %v9153_v48, 1  ;;  %vm937_vm0 = vcmp.eq.s32.totalorder %v9154_v42, 1  ;;  %v9155_v43 = vld [vmem:[#allocation62_spill] sm:$0xff]  ;;  %v3203_v2 = vsel %vm3187_vm10, 1, %v9123_v0  ;;  %v9157_v38 = vld [vmem:[#allocation64_spill] sm:$0xff] }
 0x360   : > { %vm936_vm1 = vcmp.eq.s32.totalorder %v9155_v43, 1  ;;  %v3202_v63 = vsel %vm3186_vm11, 1, %v9123_v0  ;;  %v953_v39 = vsel %vm933_vm12, %v6614_v61, %v836_v5  ;;  %v952_v46 = vsel %vm932_vm13, %v6614_v61, %v835_v18 }
 0x361   : > { %v6658_v62 = vpop.permute.xlu1 %2752  ;;  %v6660_v47 = vpop.permute.xlu0 %2749  ;;  %vm3189_vm2 = vcmp.eq.s32.totalorder %v6404_v29, 25  ;;  %vm3188_vm3 = vcmp.eq.s32.totalorder %v6408_v23, 25  ;;  %v955_v48 = vsel %vm935_vm14, %v6614_v61, %v838_v41  ;;  %vm938_vm5 = vcmp.eq.s32.totalorder %v9157_v38, 1  ;;  %v9161_v41 = vld [vmem:[#allocation66_spill] sm:$0xff] }
 0x362   : > { %9150 = vst [vmem:[#allocation24_spill] sm:$0xff] %v6658_v62  ;;  %9151 = vst [vmem:[#allocation25_spill] sm:$0xff] %v6660_v47  ;;  %3220 = vperm.xlu1 %4384, %v3201_v16   ;;  %3217 = vperm.xlu0 %4383, %v3200_v40   ;;  %v954_v16 = vsel %vm934_vm15, %v6614_v61, %v837_v7  ;;  %v9156_v40 = vld [vmem:[#allocation63_spill] sm:$0xff]  ;;  %v957_v5 = vsel %vm937_vm0, %v6614_v61, %v840_v34  ;;  %v9160_v62 = vld [vmem:[#allocation65_spill] sm:$0xff]  ;;  %vm1041_vm7 = vcmp.eq.s32.totalorder %v9161_v41, 1 }
 0x363   : > { %vm939_vm4 = vcmp.eq.s32.totalorder %v9156_v40, 1  ;;  %v956_v18 = vsel %vm936_vm1, %v6614_v61, %v839_v13  ;;  %v4280_v47 = vld [vmem:[%s8734_s1 + $0x6] ss:$0 sm:$0xff]  ;;  %vm1042_vm6 = vcmp.eq.s32.totalorder %v9160_v62, 1  ;;  %v9163_v40 = vld [vmem:[#allocation68_spill] sm:$0xff]  ;;  %v3205_v34 = vsel %vm3189_vm2, 1, %v9123_v0 }
 0x364   : > { %v9162_v7 = vld [vmem:[#allocation67_spill] sm:$0xff]  ;;  %vm1043_vm9 = vcmp.eq.s32.totalorder %v9163_v40, 1  ;;  %v3204_v13 = vsel %vm3188_vm3, 1, %v9123_v0  ;;  %v959_v38 = vsel %vm939_vm4, %v6614_v61, %v842_v1  ;;  %v958_v62 = vsel %vm938_vm5, %v6614_v61, %v841_v21  ;;  %v9164_v41 = vld [vmem:[#allocation69_spill] sm:$0xff]  ;;  %v9169_v1 = vld [vmem:[#allocation72_spill] sm:$0xff] }
 0x365   : > { %v6682_v42 = vpop.permute.xlu1 %2758  ;;  %v6684_v43 = vpop.permute.xlu0 %2755  ;;  %vm1044_vm8 = vcmp.eq.s32.totalorder %v9162_v7, 1  ;;  %vm3191_vm10 = vcmp.eq.s32.totalorder %v6443_v11, 25  ;;  %vm3190_vm11 = vcmp.eq.s32.totalorder %v6447_v3, 25  ;;  %vm1046_vm12 = vcmp.eq.s32.totalorder %v9164_v41, 1  ;;  %v9165_v7 = vld [vmem:[#allocation70_spill] sm:$0xff]  ;;  %v9170_v61 = vld [vmem:[#allocation73_spill] sm:$0xff] }
 0x366   : > { %9158 = vst [vmem:[#allocation26_spill] sm:$0xff] %v6682_v42  ;;  %9159 = vst [vmem:[#allocation27_spill] sm:$0xff] %v6684_v43  ;;  %3226 = vperm.xlu1 %4384, %v3203_v2   ;;  %3223 = vperm.xlu0 %4383, %v3202_v63   ;;  %v1062_v2 = vsel %vm1042_vm6, %v4280_v47, %v945_v25  ;;  %v1061_v63 = vsel %vm1041_vm7, %v4280_v47, %v944_v49  ;;  %vm1045_vm13 = vcmp.eq.s32.totalorder %v9165_v7, 1  ;;  %v9171_v21 = vld [vmem:[#allocation74_spill] sm:$0xff]  ;;  %v9173_v41 = vld [vmem:[#allocation76_spill] sm:$0xff] }
 0x367   : > { %v1064_v42 = vsel %vm1044_vm8, %v4280_v47, %v947_v57  ;;  %v1063_v4 = vsel %vm1043_vm9, %v4280_v47, %v946_v9  ;;  %vm1048_vm14 = vcmp.eq.s32.totalorder %v9168_v20, 1  ;;  %vm1047_vm15 = vcmp.eq.s32.totalorder %v9169_v1, 1 }
 0x368   : > { %vm1050_vm0 = vcmp.eq.s32.totalorder %v9170_v61, 1  ;;  %vm1049_vm1 = vcmp.eq.s32.totalorder %v9171_v21, 1  ;;  %v3207_v25 = vsel %vm3191_vm10, 1, %v9123_v0  ;;  %v3206_v49 = vsel %vm3190_vm11, 1, %v9123_v0 }
 0x369   : > { %v6707_v40 = vpop.permute.xlu1 %2764  ;;  %v6709_v43 = vpop.permute.xlu0 %2761  ;;  %v1066_v57 = vsel %vm1046_vm12, %v4280_v47, %v949_v60  ;;  %v1065_v9 = vsel %vm1045_vm13, %v4280_v47, %v948_v22  ;;  %vm3193_vm2 = vcmp.eq.s32.totalorder %v6477_v32, 25  ;;  %vm3192_vm3 = vcmp.eq.s32.totalorder %v6481_v35, 25  ;;  %v9177_v60 = vld [vmem:[#allocation78_spill] sm:$0xff]  ;;  %v9178_v22 = vld [vmem:[#allocation79_spill] sm:$0xff] }
 0x36a   : > { %9166 = vst [vmem:[#allocation28_spill] sm:$0xff] %v6707_v40  ;;  %9167 = vst [vmem:[#allocation29_spill] sm:$0xff] %v6709_v43  ;;  %3232 = vperm.xlu1 %4384, %v3205_v34   ;;  %3229 = vperm.xlu0 %4383, %v3204_v13   ;;  %v1068_v20 = vsel %vm1048_vm14, %v4280_v47, %v951_v56  ;;  %v1067_v34 = vsel %vm1047_vm15, %v4280_v47, %v950_v14  ;;  %v9172_v13 = vld [vmem:[#allocation75_spill] sm:$0xff]  ;;  %vm1051_vm5 = vcmp.eq.s32.totalorder %v9173_v41, 1  ;;  %v9176_v43 = vld [vmem:[#allocation77_spill] sm:$0xff] }
 0x36b   : > { %vm1052_vm4 = vcmp.eq.s32.totalorder %v9172_v13, 1  ;;  %v1070_v61 = vsel %vm1050_vm0, %v4280_v47, %v953_v39  ;;  %v1069_v21 = vsel %vm1049_vm1, %v4280_v47, %v952_v46  ;;  %vm1054_vm6 = vcmp.eq.s32.totalorder %v9176_v43, 1  ;;  %v9179_v56 = vld [vmem:[#allocation80_spill] sm:$0xff]  ;;  %v9180_v41 = vld [vmem:[#allocation81_spill] sm:$0xff]  ;;  %v9232_v40 = vld [vmem:[#allocation119_spill] sm:$0xff] }
 0x36c   : > { %vm1053_vm7 = vcmp.eq.s32.totalorder %v9177_v60, 1  ;;  %vm1056_vm8 = vcmp.eq.s32.totalorder %v9178_v22, 1  ;;  %vm1055_vm9 = vcmp.eq.s32.totalorder %v9179_v56, 1  ;;  %v3209_v14 = vsel %vm3193_vm2, 1, %v9123_v0  ;;  %v9181_v60 = vld [vmem:[#allocation82_spill] sm:$0xff] }
 0x36d   : > { %v6725_v7 = vpop.permute.xlu1 %2770  ;;  %v6727_v1 = vpop.permute.xlu0 %2767  ;;  %v3208_v13 = vsel %vm3192_vm3, 1, %v9123_v0  ;;  %v1072_v39 = vsel %vm1052_vm4, %v4280_v47, %v955_v48  ;;  %v1071_v46 = vsel %vm1051_vm5, %v4280_v47, %v954_v16  ;;  %vm3195_vm10 = vcmp.eq.s32.totalorder %v6511_v26, 25 }
 0x36e   : > { %9174 = vst [vmem:[#allocation30_spill] sm:$0xff] %v6725_v7  ;;  %9175 = vst [vmem:[#allocation31_spill] sm:$0xff] %v6727_v1  ;;  %3238 = vperm.xlu1 %4384, %v3207_v25   ;;  %3235 = vperm.xlu0 %4383, %v3206_v49   ;;  %vm3194_vm11 = vcmp.eq.s32.totalorder %v6515_v58, 25  ;;  %v1074_v43 = vsel %vm1054_vm6, %v4280_v47, %v957_v5  ;;  %v1073_v25 = vsel %vm1053_vm7, %v4280_v47, %v956_v18  ;;  %v4281_v49 = vld [vmem:[%s8734_s1 + $0x7] ss:$0 sm:$0xff]  ;;  %v9185_v7 = vld [vmem:[#allocation84_spill] sm:$0xff] }
 0x36f   : > { %vm1159_vm12 = vcmp.eq.s32.totalorder %v9180_v41, 1  ;;  %vm1158_vm13 = vcmp.eq.s32.totalorder %v9181_v60, 1  ;;  %v1076_v48 = vsel %vm1056_vm8, %v4280_v47, %v959_v38  ;;  %v1075_v16 = vsel %vm1055_vm9, %v4280_v47, %v958_v62  ;;  %v9184_v1 = vld [vmem:[#allocation83_spill] sm:$0xff]  ;;  %v9186_v5 = vld [vmem:[#allocation85_spill] sm:$0xff]  ;;  %v9187_v18 = vld [vmem:[#allocation86_spill] sm:$0xff] }
 0x370   : > { %vm1161_vm14 = vcmp.eq.s32.totalorder %v9184_v1, 1  ;;  %vm1160_vm15 = vcmp.eq.s32.totalorder %v9185_v7, 1  ;;  %vm1163_vm0 = vcmp.eq.s32.totalorder %v9186_v5, 1  ;;  %vm1162_vm1 = vcmp.eq.s32.totalorder %v9187_v18, 1  ;;  %v9188_v1 = vld [vmem:[#allocation87_spill] sm:$0xff] }
 0x371   : > { %v6746_v22 = vpop.permute.xlu1 %2776  ;;  %v6748_v56 = vpop.permute.xlu0 %2773  ;;  %v3211_v41 = vsel %vm3195_vm10, 1, %v9123_v0  ;;  %v3210_v60 = vsel %vm3194_vm11, 1, %v9123_v0  ;;  %v1179_v38 = vsel %vm1159_vm12, %v4281_v49, %v1062_v2  ;;  %v1178_v47 = vsel %vm1158_vm13, %v4281_v49, %v1061_v63  ;;  %v9193_v2 = vld [vmem:[#allocation90_spill] sm:$0xff]  ;;  %v9194_v63 = vld [vmem:[#allocation91_spill] sm:$0xff] }
 0x372   : > { %9182 = vst [vmem:[#allocation32_spill] sm:$0xff] %v6746_v22  ;;  %9183 = vst [vmem:[#allocation33_spill] sm:$0xff] %v6748_v56  ;;  %3244 = vperm.xlu1 %4384, %v3209_v14   ;;  %3241 = vperm.xlu0 %4383, %v3208_v13   ;;  %vm3197_vm2 = vcmp.eq.s32.totalorder %v6554_v55, 25  ;;  %vm3196_vm3 = vcmp.eq.s32.totalorder %v6558_v59, 25  ;;  %v1181_v62 = vsel %vm1161_vm14, %v4281_v49, %v1064_v42  ;;  %vm1165_vm4 = vcmp.eq.s32.totalorder %v9188_v1, 1  ;;  %v9189_v14 = vld [vmem:[#allocation88_spill] sm:$0xff] }
 0x373   : > { %v1180_v7 = vsel %vm1160_vm15, %v4281_v49, %v1063_v4  ;;  %vm1164_vm5 = vcmp.eq.s32.totalorder %v9189_v14, 1  ;;  %v1183_v18 = vsel %vm1163_vm0, %v4281_v49, %v1066_v57  ;;  %v1182_v56 = vsel %vm1162_vm1, %v4281_v49, %v1065_v9  ;;  %v9192_v22 = vld [vmem:[#allocation89_spill] sm:$0xff]  ;;  %v9195_v42 = vld [vmem:[#allocation92_spill] sm:$0xff]  ;;  %v9197_v14 = vld [vmem:[#allocation94_spill] sm:$0xff] }
 0x374   : > { %vm1167_vm6 = vcmp.eq.s32.totalorder %v9192_v22, 1  ;;  %vm1166_vm7 = vcmp.eq.s32.totalorder %v9193_v2, 1  ;;  %vm1169_vm8 = vcmp.eq.s32.totalorder %v9194_v63, 1  ;;  %vm1168_vm9 = vcmp.eq.s32.totalorder %v9195_v42, 1 }
 0x375   : > { %v6764_v13 = vpop.permute.xlu1 %2782  ;;  %v6766_v5 = vpop.permute.xlu0 %2779  ;;  %v3213_v4 = vsel %vm3197_vm2, 1, %v9123_v0  ;;  %v3212_v1 = vsel %vm3196_vm3, 1, %v9123_v0  ;;  %v1185_v57 = vsel %vm1165_vm4, %v4281_v49, %v1068_v20  ;;  %v1184_v9 = vsel %vm1164_vm5, %v4281_v49, %v1067_v34  ;;  %v9201_v20 = vld [vmem:[#allocation96_spill] sm:$0xff] }
 0x376   : > { %9190 = vst [vmem:[#allocation34_spill] sm:$0xff] %v6764_v13  ;;  %9191 = vst [vmem:[#allocation35_spill] sm:$0xff] %v6766_v5  ;;  %3250 = vperm.xlu1 %4384, %v3211_v41   ;;  %3247 = vperm.xlu0 %4383, %v3210_v60   ;;  %vm3199_vm10 = vcmp.eq.s32.totalorder %v6588_v33, 25  ;;  %vm3198_vm11 = vcmp.eq.s32.totalorder %v6592_v19, 25  ;;  %v1187_v22 = vsel %vm1167_vm6, %v4281_v49, %v1070_v61  ;;  %v9196_v60 = vld [vmem:[#allocation93_spill] sm:$0xff]  ;;  %vm1170_vm13 = vcmp.eq.s32.totalorder %v9197_v14, 1 }
 0x377   : > { %v1186_v41 = vsel %vm1166_vm7, %v4281_v49, %v1069_v21  ;;  %vm1171_vm12 = vcmp.eq.s32.totalorder %v9196_v60, 1  ;;  %v1189_v42 = vsel %vm1169_vm8, %v4281_v49, %v1072_v39  ;;  %v1188_v5 = vsel %vm1168_vm9, %v4281_v49, %v1071_v46  ;;  %v9200_v13 = vld [vmem:[#allocation95_spill] sm:$0xff]  ;;  %v6791_v34 = vld [vmem:[%s8734_s1 + $0x8] ss:$0 sm:$0xff]  ;;  %v9202_v61 = vld [vmem:[#allocation97_spill] sm:$0xff] }
 0x378   : > { %vm1173_vm14 = vcmp.eq.s32.totalorder %v9200_v13, 1  ;;  %vm1172_vm15 = vcmp.eq.s32.totalorder %v9201_v20, 1  ;;  %vm1276_vm0 = vcmp.eq.s32.totalorder %v9202_v61, 1  ;;  %v9203_v21 = vld [vmem:[#allocation98_spill] sm:$0xff]  ;;  %v3215_v39 = vsel %vm3199_vm10, 1, %v9123_v0  ;;  %v9204_v14 = vld [vmem:[#allocation99_spill] sm:$0xff] }
 0x379   : > { %v6782_v2 = vpop.permute.xlu1 %2788  ;;  %v6784_v63 = vpop.permute.xlu0 %2785  ;;  %vm1275_vm1 = vcmp.eq.s32.totalorder %v9203_v21, 1  ;;  %v3214_v46 = vsel %vm3198_vm11, 1, %v9123_v0  ;;  %v1191_v13 = vsel %vm1171_vm12, %v4281_v49, %v1074_v43  ;;  %vm3302_vm2 = vcmp.eq.s32.totalorder %v6336_v44, 26  ;;  %v9205_v20 = vld [vmem:[#allocation100_spill] sm:$0xff]  ;;  %v9208_v43 = vld [vmem:[#allocation101_spill] sm:$0xff] }
 0x37a   : > { %9198 = vst [vmem:[#allocation36_spill] sm:$0xff] %v6782_v2  ;;  %9199 = vst [vmem:[#allocation37_spill] sm:$0xff] %v6784_v63  ;;  %3256 = vperm.xlu1 %4384, %v3213_v4   ;;  %3253 = vperm.xlu0 %4383, %v3212_v1   ;;  %v1190_v4 = vsel %vm1170_vm13, %v4281_v49, %v1073_v25  ;;  %vm3301_vm3 = vcmp.eq.s32.totalorder %v6340_v45, 26  ;;  %v1193_v1 = vsel %vm1173_vm14, %v4281_v49, %v1076_v48  ;;  %v9209_v25 = vld [vmem:[#allocation102_spill] sm:$0xff]  ;;  %v9210_v48 = vld [vmem:[#allocation103_spill] sm:$0xff] }
 0x37b   : > { %v1192_v60 = vsel %vm1172_vm15, %v4281_v49, %v1075_v16  ;;  %vm1278_vm4 = vcmp.eq.s32.totalorder %v9204_v14, 1  ;;  %vm1277_vm5 = vcmp.eq.s32.totalorder %v9205_v20, 1  ;;  %v1296_v63 = vsel %vm1276_vm0, %v6791_v34, %v1179_v38  ;;  %v9211_v49 = vld [vmem:[#allocation104_spill] sm:$0xff]  ;;  %v9212_v20 = vld [vmem:[#allocation105_spill] sm:$0xff] }
 0x37c   : > { %v1295_v2 = vsel %vm1275_vm1, %v6791_v34, %v1178_v47  ;;  %vm1280_vm6 = vcmp.eq.s32.totalorder %v9208_v43, 1  ;;  %vm1279_vm7 = vcmp.eq.s32.totalorder %v9209_v25, 1  ;;  %vm1282_vm8 = vcmp.eq.s32.totalorder %v9210_v48, 1  ;;  %v9213_v43 = vld [vmem:[#allocation106_spill] sm:$0xff] }
 0x37d   : > { %v6805_v61 = vpop.permute.xlu1 %2794  ;;  %v6807_v21 = vpop.permute.xlu0 %2791  ;;  %vm1281_vm9 = vcmp.eq.s32.totalorder %v9211_v49, 1  ;;  %v3318_v16 = vsel %vm3302_vm2, 1, %v9123_v0  ;;  %v3317_v38 = vsel %vm3301_vm3, 1, %v9123_v0  ;;  %v1298_v47 = vsel %vm1278_vm4, %v6791_v34, %v1181_v62  ;;  %v9216_v49 = vld [vmem:[#allocation107_spill] sm:$0xff] }
 0x37e   : > { %9206 = vst [vmem:[#allocation38_spill] sm:$0xff] %v6805_v61  ;;  %9207 = vst [vmem:[#allocation39_spill] sm:$0xff] %v6807_v21  ;;  %3262 = vperm.xlu1 %4384, %v3215_v39   ;;  %3259 = vperm.xlu0 %4383, %v3214_v46   ;;  %v1297_v14 = vsel %vm1277_vm5, %v6791_v34, %v1180_v7  ;;  %vm3304_vm10 = vcmp.eq.s32.totalorder %v6370_v31, 26  ;;  %vm3303_vm11 = vcmp.eq.s32.totalorder %v6374_v51, 26  ;;  %vm1284_vm12 = vcmp.eq.s32.totalorder %v9212_v20, 1  ;;  %v9217_v21 = vld [vmem:[#allocation108_spill] sm:$0xff] }
 0x37f   : > { %v1300_v39 = vsel %vm1280_vm6, %v6791_v34, %v1183_v18  ;;  %v1299_v46 = vsel %vm1279_vm7, %v6791_v34, %v1182_v56  ;;  %vm1283_vm13 = vcmp.eq.s32.totalorder %v9213_v43, 1  ;;  %v1302_v62 = vsel %vm1282_vm8, %v6791_v34, %v1185_v57  ;;  %v9218_v18 = vld [vmem:[#allocation109_spill] sm:$0xff]  ;;  %v9219_v56 = vld [vmem:[#allocation110_spill] sm:$0xff] }
 0x380   : > { %v1301_v7 = vsel %vm1281_vm9, %v6791_v34, %v1184_v9  ;;  %vm1286_vm14 = vcmp.eq.s32.totalorder %v9216_v49, 1  ;;  %vm1285_vm15 = vcmp.eq.s32.totalorder %v9217_v21, 1  ;;  %vm1288_vm0 = vcmp.eq.s32.totalorder %v9218_v18, 1  ;;  %v9221_v49 = vld [vmem:[#allocation112_spill] sm:$0xff] }
 0x381   : > { %v6829_v25 = vpop.permute.xlu1 %2869  ;;  %v6831_v48 = vpop.permute.xlu0 %2866  ;;  %vm1287_vm1 = vcmp.eq.s32.totalorder %v9219_v56, 1  ;;  %v3320_v20 = vsel %vm3304_vm10, 1, %v9123_v0  ;;  %v3319_v57 = vsel %vm3303_vm11, 1, %v9123_v0  ;;  %v1304_v9 = vsel %vm1284_vm12, %v6791_v34, %v1187_v22 }
 0x382   : > { %9214 = vst [vmem:[#allocation40_spill] sm:$0xff] %v6829_v25  ;;  %9215 = vst [vmem:[#allocation41_spill] sm:$0xff] %v6831_v48  ;;  %3337 = vperm.xlu1 %4384, %v3318_v16   ;;  %3334 = vperm.xlu0 %4383, %v3317_v38   ;;  %v1303_v43 = vsel %vm1283_vm13, %v6791_v34, %v1186_v41  ;;  %vm3306_vm2 = vcmp.eq.s32.totalorder %v6404_v29, 26  ;;  %vm3305_vm3 = vcmp.eq.s32.totalorder %v6408_v23, 26  ;;  %v9220_v38 = vld [vmem:[#allocation111_spill] sm:$0xff]  ;;  %vm1289_vm5 = vcmp.eq.s32.totalorder %v9221_v49, 1 }
 0x383   : > { %v1306_v21 = vsel %vm1286_vm14, %v6791_v34, %v1189_v42  ;;  %v1305_v16 = vsel %vm1285_vm15, %v6791_v34, %v1188_v5  ;;  %vm1290_vm4 = vcmp.eq.s32.totalorder %v9220_v38, 1  ;;  %v1308_v22 = vsel %vm1288_vm0, %v6791_v34, %v1191_v13  ;;  %v4283_v48 = vld [vmem:[%s8734_s1 + $0x9] ss:$0 sm:$0xff]  ;;  %v9224_v25 = vld [vmem:[#allocation113_spill] sm:$0xff]  ;;  %v9225_v42 = vld [vmem:[#allocation114_spill] sm:$0xff] }
 0x384   : > { %v1307_v41 = vsel %vm1287_vm1, %v6791_v34, %v1190_v4  ;;  %vm1393_vm6 = vcmp.eq.s32.totalorder %v9224_v25, 1  ;;  %vm1392_vm7 = vcmp.eq.s32.totalorder %v9225_v42, 1  ;;  %v9226_v5 = vld [vmem:[#allocation115_spill] sm:$0xff]  ;;  %v9227_v38 = vld [vmem:[#allocation116_spill] sm:$0xff]  ;;  %v3322_v13 = vsel %vm3306_vm2, 1, %v9123_v0  ;;  %v9228_v42 = vld [vmem:[#allocation117_spill] sm:$0xff] }
 0x385   : > { %v6853_v18 = vpop.permute.xlu1 %2875  ;;  %v6855_v56 = vpop.permute.xlu0 %2872  ;;  %vm1395_vm8 = vcmp.eq.s32.totalorder %v9226_v5, 1  ;;  %vm1394_vm9 = vcmp.eq.s32.totalorder %v9227_v38, 1  ;;  %v3321_v4 = vsel %vm3305_vm3, 1, %v9123_v0  ;;  %v1310_v49 = vsel %vm1290_vm4, %v6791_v34, %v1193_v1  ;;  %v9229_v5 = vld [vmem:[#allocation118_spill] sm:$0xff]  ;;  %v9233_v1 = vld [vmem:[#allocation120_spill] sm:$0xff] }
 0x386   : > { %9222 = vst [vmem:[#allocation42_spill] sm:$0xff] %v6853_v18  ;;  %9223 = vst [vmem:[#allocation43_spill] sm:$0xff] %v6855_v56  ;;  %3343 = vperm.xlu1 %4384, %v3320_v20   ;;  %3340 = vperm.xlu0 %4383, %v3319_v57   ;;  %v1309_v25 = vsel %vm1289_vm5, %v6791_v34, %v1192_v60  ;;  %vm3308_vm10 = vcmp.eq.s32.totalorder %v6443_v11, 26  ;;  %vm3307_vm11 = vcmp.eq.s32.totalorder %v6447_v3, 26  ;;  %vm1397_vm12 = vcmp.eq.s32.totalorder %v9228_v42, 1  ;;  %v9234_v34 = vld [vmem:[#allocation121_spill] sm:$0xff] }
 0x387   : > { %v1413_v20 = vsel %vm1393_vm6, %v4283_v48, %v1296_v63  ;;  %v1412_v57 = vsel %vm1392_vm7, %v4283_v48, %v1295_v2  ;;  %vm1396_vm13 = vcmp.eq.s32.totalorder %v9229_v5, 1  ;;  %v1415_v18 = vsel %vm1395_vm8, %v4283_v48, %v1298_v47  ;;  %v9235_v63 = vld [vmem:[#allocation122_spill] sm:$0xff]  ;;  %v9237_v42 = vld [vmem:[#allocation124_spill] sm:$0xff] }
 0x388   : > { %v1414_v61 = vsel %vm1394_vm9, %v4283_v48, %v1297_v14  ;;  %vm1399_vm14 = vcmp.eq.s32.totalorder %v9232_v40, 1  ;;  %vm1398_vm15 = vcmp.eq.s32.totalorder %v9233_v1, 1  ;;  %vm1401_vm0 = vcmp.eq.s32.totalorder %v9234_v34, 1 }
 0x389   : > { %v6878_v38 = vpop.permute.xlu1 %2881  ;;  %v6880_v56 = vpop.permute.xlu0 %2878  ;;  %vm1400_vm1 = vcmp.eq.s32.totalorder %v9235_v63, 1  ;;  %v3324_v2 = vsel %vm3308_vm10, 1, %v9123_v0  ;;  %v3323_v60 = vsel %vm3307_vm11, 1, %v9123_v0  ;;  %v1417_v47 = vsel %vm1397_vm12, %v4283_v48, %v1300_v39  ;;  %v9241_v39 = vld [vmem:[#allocation126_spill] sm:$0xff] }
 0x38a   : > { %9230 = vst [vmem:[#allocation44_spill] sm:$0xff] %v6878_v38  ;;  %9231 = vst [vmem:[#allocation45_spill] sm:$0xff] %v6880_v56  ;;  %3349 = vperm.xlu1 %4384, %v3322_v13   ;;  %3346 = vperm.xlu0 %4383, %v3321_v4   ;;  %v1416_v14 = vsel %vm1396_vm13, %v4283_v48, %v1299_v46  ;;  %vm3310_vm2 = vcmp.eq.s32.totalorder %v6477_v32, 26  ;;  %vm3309_vm3 = vcmp.eq.s32.totalorder %v6481_v35, 26  ;;  %v9236_v4 = vld [vmem:[#allocation123_spill] sm:$0xff]  ;;  %vm1402_vm5 = vcmp.eq.s32.totalorder %v9237_v42, 1 }
 0x38b   : > { %v1419_v40 = vsel %vm1399_vm14, %v4283_v48, %v1302_v62  ;;  %v1418_v13 = vsel %vm1398_vm15, %v4283_v48, %v1301_v7  ;;  %vm1403_vm4 = vcmp.eq.s32.totalorder %v9236_v4, 1  ;;  %v1421_v34 = vsel %vm1401_vm0, %v4283_v48, %v1304_v9  ;;  %v9240_v56 = vld [vmem:[#allocation125_spill] sm:$0xff]  ;;  %v9242_v46 = vld [vmem:[#allocation127_spill] sm:$0xff]  ;;  %v9243_v62 = vld [vmem:[#allocation128_spill] sm:$0xff] }
 0x38c   : > { %v1420_v63 = vsel %vm1400_vm1, %v4283_v48, %v1303_v43  ;;  %vm1405_vm6 = vcmp.eq.s32.totalorder %v9240_v56, 1  ;;  %vm1404_vm7 = vcmp.eq.s32.totalorder %v9241_v39, 1  ;;  %vm1407_vm8 = vcmp.eq.s32.totalorder %v9242_v46, 1  ;;  %v9244_v42 = vld [vmem:[#allocation129_spill] sm:$0xff]  ;;  %v9245_v39 = vld [vmem:[#allocation130_spill] sm:$0xff]  ;;  %v9423_v38 = vld [vmem:[#allocation263_spill] sm:$0xff] }
 0x38d   : > { %v6896_v5 = vpop.permute.xlu1 %2887  ;;  %v6898_v1 = vpop.permute.xlu0 %2884  ;;  %vm1406_vm9 = vcmp.eq.s32.totalorder %v9243_v62, 1  ;;  %v3326_v7 = vsel %vm3310_vm2, 1, %v9123_v0  ;;  %v3325_v4 = vsel %vm3309_vm3, 1, %v9123_v0  ;;  %v1423_v9 = vsel %vm1403_vm4, %v4283_v48, %v1306_v21 }
 0x38e   : > { %9238 = vst [vmem:[#allocation46_spill] sm:$0xff] %v6896_v5  ;;  %9239 = vst [vmem:[#allocation47_spill] sm:$0xff] %v6898_v1  ;;  %3355 = vperm.xlu1 %4384, %v3324_v2   ;;  %3352 = vperm.xlu0 %4383, %v3323_v60   ;;  %v1422_v43 = vsel %vm1402_vm5, %v4283_v48, %v1305_v16  ;;  %vm3312_vm10 = vcmp.eq.s32.totalorder %v6511_v26, 26  ;;  %vm3311_vm11 = vcmp.eq.s32.totalorder %v6515_v58, 26  ;;  %v4284_v60 = vld [vmem:[%s8734_s1 + $0xa] ss:$0 sm:$0xff] }
 0x38f   : > { %v1425_v56 = vsel %vm1405_vm6, %v4283_v48, %v1308_v22  ;;  %v1424_v2 = vsel %vm1404_vm7, %v4283_v48, %v1307_v41  ;;  %vm1510_vm12 = vcmp.eq.s32.totalorder %v9244_v42, 1  ;;  %vm1509_vm13 = vcmp.eq.s32.totalorder %v9245_v39, 1  ;;  %v9248_v1 = vld [vmem:[#allocation131_spill] sm:$0xff]  ;;  %v9249_v5 = vld [vmem:[#allocation132_spill] sm:$0xff]  ;;  %v9250_v22 = vld [vmem:[#allocation133_spill] sm:$0xff] }
 0x390   : > { %v1427_v21 = vsel %vm1407_vm8, %v4283_v48, %v1310_v49  ;;  %v1426_v16 = vsel %vm1406_vm9, %v4283_v48, %v1309_v25  ;;  %vm1512_vm14 = vcmp.eq.s32.totalorder %v9248_v1, 1  ;;  %vm1511_vm15 = vcmp.eq.s32.totalorder %v9249_v5, 1  ;;  %v9251_v41 = vld [vmem:[#allocation134_spill] sm:$0xff]  ;;  %v9252_v1 = vld [vmem:[#allocation135_spill] sm:$0xff] }
 0x391   : > { %v6917_v46 = vpop.permute.xlu1 %2893  ;;  %v6919_v62 = vpop.permute.xlu0 %2890  ;;  %vm1514_vm0 = vcmp.eq.s32.totalorder %v9250_v22, 1  ;;  %vm1513_vm1 = vcmp.eq.s32.totalorder %v9251_v41, 1  ;;  %v3328_v42 = vsel %vm3312_vm10, 1, %v9123_v0  ;;  %v3327_v39 = vsel %vm3311_vm11, 1, %v9123_v0 }
 0x392   : > { %9246 = vst [vmem:[#allocation48_spill] sm:$0xff] %v6917_v46  ;;  %9247 = vst [vmem:[#allocation49_spill] sm:$0xff] %v6919_v62  ;;  %3361 = vperm.xlu1 %4384, %v3326_v7   ;;  %3358 = vperm.xlu0 %4383, %v3325_v4   ;;  %v1530_v49 = vsel %vm1510_vm12, %v4284_v60, %v1413_v20  ;;  %v1529_v48 = vsel %vm1509_vm13, %v4284_v60, %v1412_v57  ;;  %vm3314_vm2 = vcmp.eq.s32.totalorder %v6554_v55, 26  ;;  %v9253_v7 = vld [vmem:[#allocation136_spill] sm:$0xff]  ;;  %v9256_v46 = vld [vmem:[#allocation137_spill] sm:$0xff] }
 0x393   : > { %vm3313_vm3 = vcmp.eq.s32.totalorder %v6558_v59, 26  ;;  %v1532_v25 = vsel %vm1512_vm14, %v4284_v60, %v1415_v18  ;;  %v1531_v5 = vsel %vm1511_vm15, %v4284_v60, %v1414_v61  ;;  %vm1516_vm4 = vcmp.eq.s32.totalorder %v9252_v1, 1  ;;  %v9257_v20 = vld [vmem:[#allocation138_spill] sm:$0xff]  ;;  %v9258_v57 = vld [vmem:[#allocation139_spill] sm:$0xff]  ;;  %v9259_v18 = vld [vmem:[#allocation140_spill] sm:$0xff] }
 0x394   : > { %vm1515_vm5 = vcmp.eq.s32.totalorder %v9253_v7, 1  ;;  %v1534_v41 = vsel %vm1514_vm0, %v4284_v60, %v1417_v47  ;;  %v1533_v62 = vsel %vm1513_vm1, %v4284_v60, %v1416_v14  ;;  %vm1518_vm6 = vcmp.eq.s32.totalorder %v9256_v46, 1  ;;  %v9261_v7 = vld [vmem:[#allocation142_spill] sm:$0xff] }
 0x395   : > { %v6935_v4 = vpop.permute.xlu1 %2899  ;;  %v6937_v22 = vpop.permute.xlu0 %2896  ;;  %vm1517_vm7 = vcmp.eq.s32.totalorder %v9257_v20, 1  ;;  %vm1520_vm8 = vcmp.eq.s32.totalorder %v9258_v57, 1  ;;  %vm1519_vm9 = vcmp.eq.s32.totalorder %v9259_v18, 1  ;;  %v3330_v61 = vsel %vm3314_vm2, 1, %v9123_v0 }
 0x396   : > { %9254 = vst [vmem:[#allocation50_spill] sm:$0xff] %v6935_v4  ;;  %9255 = vst [vmem:[#allocation51_spill] sm:$0xff] %v6937_v22  ;;  %3367 = vperm.xlu1 %4384, %v3328_v42   ;;  %3364 = vperm.xlu0 %4383, %v3327_v39   ;;  %v3329_v1 = vsel %vm3313_vm3, 1, %v9123_v0  ;;  %v1536_v47 = vsel %vm1516_vm4, %v4284_v60, %v1419_v40  ;;  %v1535_v14 = vsel %vm1515_vm5, %v4284_v60, %v1418_v13  ;;  %v9260_v39 = vld [vmem:[#allocation141_spill] sm:$0xff]  ;;  %v9264_v4 = vld [vmem:[#allocation143_spill] sm:$0xff] }
 0x397   : > { %vm3316_vm10 = vcmp.eq.s32.totalorder %v6588_v33, 26  ;;  %vm3315_vm11 = vcmp.eq.s32.totalorder %v6592_v19, 26  ;;  %v1538_v46 = vsel %vm1518_vm6, %v4284_v60, %v1421_v34  ;;  %v1537_v42 = vsel %vm1517_vm7, %v4284_v60, %v1420_v63  ;;  %v9265_v40 = vld [vmem:[#allocation144_spill] sm:$0xff]  ;;  %v9266_v34 = vld [vmem:[#allocation145_spill] sm:$0xff]  ;;  %v9267_v63 = vld [vmem:[#allocation146_spill] sm:$0xff] }
 0x398   : > { %vm1522_vm12 = vcmp.eq.s32.totalorder %v9260_v39, 1  ;;  %vm1521_vm13 = vcmp.eq.s32.totalorder %v9261_v7, 1  ;;  %v1540_v18 = vsel %vm1520_vm8, %v4284_v60, %v1423_v9  ;;  %v1539_v22 = vsel %vm1519_vm9, %v4284_v60, %v1422_v43  ;;  %v6962_v13 = vld [vmem:[%s8734_s1 + $0xb] ss:$0 sm:$0xff]  ;;  %v9268_v7 = vld [vmem:[#allocation147_spill] sm:$0xff] }
 0x399   : > { %v6953_v20 = vpop.permute.xlu1 %2905  ;;  %v6955_v57 = vpop.permute.xlu0 %2902  ;;  %vm1524_vm14 = vcmp.eq.s32.totalorder %v9264_v4, 1  ;;  %vm1523_vm15 = vcmp.eq.s32.totalorder %v9265_v40, 1  ;;  %vm1627_vm0 = vcmp.eq.s32.totalorder %v9266_v34, 1  ;;  %vm1626_vm1 = vcmp.eq.s32.totalorder %v9267_v63, 1  ;;  %v9269_v40 = vld [vmem:[#allocation148_spill] sm:$0xff] }
 0x39a   : > { %9262 = vst [vmem:[#allocation52_spill] sm:$0xff] %v6953_v20  ;;  %9263 = vst [vmem:[#allocation53_spill] sm:$0xff] %v6955_v57  ;;  %3373 = vperm.xlu1 %4384, %v3330_v61   ;;  %3370 = vperm.xlu0 %4383, %v3329_v1   ;;  %v3332_v9 = vsel %vm3316_vm10, 1, %v9123_v0  ;;  %v3331_v43 = vsel %vm3315_vm11, 1, %v9123_v0  ;;  %v1542_v4 = vsel %vm1522_vm12, %v4284_v60, %v1425_v56  ;;  %vm3419_vm2 = vcmp.eq.s32.totalorder %v6336_v44, 27  ;;  %v9272_v56 = vld [vmem:[#allocation149_spill] sm:$0xff] }
 0x39b   : > { %v1541_v61 = vsel %vm1521_vm13, %v4284_v60, %v1424_v2  ;;  %vm3418_vm3 = vcmp.eq.s32.totalorder %v6340_v45, 27  ;;  %v1544_v1 = vsel %vm1524_vm14, %v4284_v60, %v1427_v21  ;;  %v1543_v39 = vsel %vm1523_vm15, %v4284_v60, %v1426_v16  ;;  %v9273_v2 = vld [vmem:[#allocation150_spill] sm:$0xff]  ;;  %v9274_v21 = vld [vmem:[#allocation151_spill] sm:$0xff]  ;;  %v9275_v60 = vld [vmem:[#allocation152_spill] sm:$0xff] }
 0x39c   : > { %vm1629_vm4 = vcmp.eq.s32.totalorder %v9268_v7, 1  ;;  %vm1628_vm5 = vcmp.eq.s32.totalorder %v9269_v40, 1  ;;  %v1647_v57 = vsel %vm1627_vm0, %v6962_v13, %v1530_v49  ;;  %v1646_v20 = vsel %vm1626_vm1, %v6962_v13, %v1529_v48  ;;  %v9276_v40 = vld [vmem:[#allocation153_spill] sm:$0xff]  ;;  %v9277_v44 = vld [vmem:[#allocation154_spill] sm:$0xff] }
 0x39d   : > { %v6976_v34 = vpop.permute.xlu1 %2911  ;;  %v6978_v63 = vpop.permute.xlu0 %2908  ;;  %vm1631_vm6 = vcmp.eq.s32.totalorder %v9272_v56, 1  ;;  %vm1630_vm7 = vcmp.eq.s32.totalorder %v9273_v2, 1  ;;  %vm1633_vm8 = vcmp.eq.s32.totalorder %v9274_v21, 1  ;;  %vm1632_vm9 = vcmp.eq.s32.totalorder %v9275_v60, 1  ;;  %v9280_v2 = vld [vmem:[#allocation155_spill] sm:$0xff]  ;;  %v9281_v21 = vld [vmem:[#allocation156_spill] sm:$0xff] }
 0x39e   : > { %9270 = vst [vmem:[#allocation54_spill] sm:$0xff] %v6976_v34  ;;  %9271 = vst [vmem:[#allocation55_spill] sm:$0xff] %v6978_v63  ;;  %3379 = vperm.xlu1 %4384, %v3332_v9   ;;  %3376 = vperm.xlu0 %4383, %v3331_v43   ;;  %v3435_v16 = vsel %vm3419_vm2, 1, %v9123_v0  ;;  %v3434_v49 = vsel %vm3418_vm3, 1, %v9123_v0  ;;  %v1649_v48 = vsel %vm1629_vm4, %v6962_v13, %v1532_v25  ;;  %vm3421_vm10 = vcmp.eq.s32.totalorder %v6370_v31, 27  ;;  %v9285_v31 = vld [vmem:[#allocation160_spill] sm:$0xff] }
 0x39f   : > { %v1648_v7 = vsel %vm1628_vm5, %v6962_v13, %v1531_v5  ;;  %vm3420_vm11 = vcmp.eq.s32.totalorder %v6374_v51, 27  ;;  %v1651_v9 = vsel %vm1631_vm6, %v6962_v13, %v1534_v41  ;;  %v1650_v43 = vsel %vm1630_vm7, %v6962_v13, %v1533_v62  ;;  %v9282_v41 = vld [vmem:[#allocation157_spill] sm:$0xff]  ;;  %v9283_v62 = vld [vmem:[#allocation158_spill] sm:$0xff]  ;;  %v9392_v34 = vld [vmem:[#allocation239_spill] sm:$0xff] }
 0x3a0   : > { %vm1635_vm12 = vcmp.eq.s32.totalorder %v9276_v40, 1  ;;  %vm1634_vm13 = vcmp.eq.s32.totalorder %v9277_v44, 1  ;;  %v1653_v25 = vsel %vm1633_vm8, %v6962_v13, %v1536_v47  ;;  %v1652_v5 = vsel %vm1632_vm9, %v6962_v13, %v1535_v14  ;;  %v9284_v44 = vld [vmem:[#allocation159_spill] sm:$0xff] }
 0x3a1   : > { %v7000_v56 = vpop.permute.xlu1 %2986  ;;  %v7002_v45 = vpop.permute.xlu0 %2983  ;;  %vm1637_vm14 = vcmp.eq.s32.totalorder %v9280_v2, 1  ;;  %vm1636_vm15 = vcmp.eq.s32.totalorder %v9281_v21, 1  ;;  %vm1639_vm0 = vcmp.eq.s32.totalorder %v9282_v41, 1  ;;  %vm1638_vm1 = vcmp.eq.s32.totalorder %v9283_v62, 1  ;;  %v4286_v21 = vld [vmem:[%s8734_s1 + $0xc] ss:$0 sm:$0xff] }
 0x3a2   : > { %9278 = vst [vmem:[#allocation56_spill] sm:$0xff] %v7000_v56  ;;  %9279 = vst [vmem:[#allocation57_spill] sm:$0xff] %v7002_v45  ;;  %3454 = vperm.xlu1 %4384, %v3435_v16   ;;  %3451 = vperm.xlu0 %4383, %v3434_v49   ;;  %v3437_v60 = vsel %vm3421_vm10, 1, %v9123_v0  ;;  %v3436_v47 = vsel %vm3420_vm11, 1, %v9123_v0  ;;  %v1655_v14 = vsel %vm1635_vm12, %v6962_v13, %v1538_v46  ;;  %vm3423_vm2 = vcmp.eq.s32.totalorder %v6404_v29, 27  ;;  %v9288_v41 = vld [vmem:[#allocation161_spill] sm:$0xff] }
 0x3a3   : > { %v1654_v40 = vsel %vm1634_vm13, %v6962_v13, %v1537_v42  ;;  %vm3422_vm3 = vcmp.eq.s32.totalorder %v6408_v23, 27  ;;  %v1657_v16 = vsel %vm1637_vm14, %v6962_v13, %v1540_v18  ;;  %v1656_v49 = vsel %vm1636_vm15, %v6962_v13, %v1539_v22  ;;  %v9289_v18 = vld [vmem:[#allocation162_spill] sm:$0xff]  ;;  %v9290_v22 = vld [vmem:[#allocation163_spill] sm:$0xff]  ;;  %v9291_v62 = vld [vmem:[#allocation164_spill] sm:$0xff] }
 0x3a4   : > { %vm1641_vm4 = vcmp.eq.s32.totalorder %v9284_v44, 1  ;;  %vm1640_vm5 = vcmp.eq.s32.totalorder %v9285_v31, 1  ;;  %v1659_v46 = vsel %vm1639_vm0, %v6962_v13, %v1542_v4  ;;  %v1658_v42 = vsel %vm1638_vm1, %v6962_v13, %v1541_v61  ;;  %v9384_v45 = vld [vmem:[#allocation233_spill] sm:$0xff] }
 0x3a5   : > { %v7024_v2 = vpop.permute.xlu1 %2992  ;;  %v7026_v51 = vpop.permute.xlu0 %2989  ;;  %vm1744_vm6 = vcmp.eq.s32.totalorder %v9288_v41, 1  ;;  %vm1743_vm7 = vcmp.eq.s32.totalorder %v9289_v18, 1  ;;  %vm1746_vm8 = vcmp.eq.s32.totalorder %v9290_v22, 1  ;;  %vm1745_vm9 = vcmp.eq.s32.totalorder %v9291_v62, 1  ;;  %v9292_v41 = vld [vmem:[#allocation165_spill] sm:$0xff]  ;;  %v9293_v18 = vld [vmem:[#allocation166_spill] sm:$0xff] }
 0x3a6   : > { %9286 = vst [vmem:[#allocation58_spill] sm:$0xff] %v7024_v2  ;;  %9287 = vst [vmem:[#allocation59_spill] sm:$0xff] %v7026_v51  ;;  %3460 = vperm.xlu1 %4384, %v3437_v60   ;;  %3457 = vperm.xlu0 %4383, %v3436_v47   ;;  %v3439_v4 = vsel %vm3423_vm2, 1, %v9123_v0  ;;  %v3438_v61 = vsel %vm3422_vm3, 1, %v9123_v0  ;;  %v1661_v44 = vsel %vm1641_vm4, %v6962_v13, %v1544_v1  ;;  %vm3425_vm10 = vcmp.eq.s32.totalorder %v6443_v11, 27  ;;  %v9296_v51 = vld [vmem:[#allocation167_spill] sm:$0xff] }
 0x3a7   : > { %v1660_v31 = vsel %vm1640_vm5, %v6962_v13, %v1543_v39  ;;  %vm3424_vm11 = vcmp.eq.s32.totalorder %v6447_v3, 27  ;;  %v1764_v60 = vsel %vm1744_vm6, %v4286_v21, %v1647_v57  ;;  %v1763_v47 = vsel %vm1743_vm7, %v4286_v21, %v1646_v20  ;;  %v9297_v1 = vld [vmem:[#allocation168_spill] sm:$0xff]  ;;  %v9298_v13 = vld [vmem:[#allocation169_spill] sm:$0xff]  ;;  %v9299_v57 = vld [vmem:[#allocation170_spill] sm:$0xff] }
 0x3a8   : > { %vm1748_vm12 = vcmp.eq.s32.totalorder %v9292_v41, 1  ;;  %vm1747_vm13 = vcmp.eq.s32.totalorder %v9293_v18, 1  ;;  %v1766_v23 = vsel %vm1746_vm8, %v4286_v21, %v1649_v48  ;;  %v1765_v62 = vsel %vm1745_vm9, %v4286_v21, %v1648_v7  ;;  %v9301_v41 = vld [vmem:[#allocation172_spill] sm:$0xff]  ;;  %v9304_v3 = vld [vmem:[#allocation173_spill] sm:$0xff] }
 0x3a9   : > { %v7049_v29 = vpop.permute.xlu1 %2998  ;;  %v7051_v22 = vpop.permute.xlu0 %2995  ;;  %vm1750_vm14 = vcmp.eq.s32.totalorder %v9296_v51, 1  ;;  %vm1749_vm15 = vcmp.eq.s32.totalorder %v9297_v1, 1  ;;  %vm1752_vm0 = vcmp.eq.s32.totalorder %v9298_v13, 1  ;;  %vm1751_vm1 = vcmp.eq.s32.totalorder %v9299_v57, 1  ;;  %v9377_v2 = vld [vmem:[#allocation228_spill] sm:$0xff] }
 0x3aa   : > { %9294 = vst [vmem:[#allocation60_spill] sm:$0xff] %v7049_v29  ;;  %9295 = vst [vmem:[#allocation61_spill] sm:$0xff] %v7051_v22  ;;  %3466 = vperm.xlu1 %4384, %v3439_v4   ;;  %3463 = vperm.xlu0 %4383, %v3438_v61   ;;  %v3441_v20 = vsel %vm3425_vm10, 1, %v9123_v0  ;;  %v3440_v39 = vsel %vm3424_vm11, 1, %v9123_v0  ;;  %v1768_v48 = vsel %vm1748_vm12, %v4286_v21, %v1651_v9  ;;  %vm3427_vm2 = vcmp.eq.s32.totalorder %v6477_v32, 27  ;;  %v9300_v61 = vld [vmem:[#allocation171_spill] sm:$0xff] }
 0x3ab   : > { %v1767_v7 = vsel %vm1747_vm13, %v4286_v21, %v1650_v43  ;;  %vm3426_vm3 = vcmp.eq.s32.totalorder %v6481_v35, 27  ;;  %v1770_v51 = vsel %vm1750_vm14, %v4286_v21, %v1653_v25  ;;  %v1769_v4 = vsel %vm1749_vm15, %v4286_v21, %v1652_v5  ;;  %v9305_v9 = vld [vmem:[#allocation174_spill] sm:$0xff]  ;;  %v9306_v43 = vld [vmem:[#allocation175_spill] sm:$0xff]  ;;  %v9307_v25 = vld [vmem:[#allocation176_spill] sm:$0xff] }
 0x3ac   : > { %vm1754_vm4 = vcmp.eq.s32.totalorder %v9300_v61, 1  ;;  %vm1753_vm5 = vcmp.eq.s32.totalorder %v9301_v41, 1  ;;  %v1772_v1 = vsel %vm1752_vm0, %v4286_v21, %v1655_v14  ;;  %v1771_v13 = vsel %vm1751_vm1, %v4286_v21, %v1654_v40  ;;  %v7086_v61 = vld [vmem:[%s8734_s1 + $0xd] ss:$0 sm:$0xff]  ;;  %v9308_v41 = vld [vmem:[#allocation177_spill] sm:$0xff]  ;;  %v9309_v32 = vld [vmem:[#allocation178_spill] sm:$0xff] }
 0x3ad   : > { %v7067_v18 = vpop.permute.xlu1 %3004  ;;  %v7069_v11 = vpop.permute.xlu0 %3001  ;;  %vm1756_vm6 = vcmp.eq.s32.totalorder %v9304_v3, 1  ;;  %vm1755_vm7 = vcmp.eq.s32.totalorder %v9305_v9, 1  ;;  %vm1758_vm8 = vcmp.eq.s32.totalorder %v9306_v43, 1  ;;  %vm1757_vm9 = vcmp.eq.s32.totalorder %v9307_v25, 1  ;;  %v9312_v9 = vld [vmem:[#allocation179_spill] sm:$0xff]  ;;  %v9313_v43 = vld [vmem:[#allocation180_spill] sm:$0xff] }
 0x3ae   : > { %9302 = vst [vmem:[#allocation62_spill] sm:$0xff] %v7067_v18  ;;  %9303 = vst [vmem:[#allocation63_spill] sm:$0xff] %v7069_v11  ;;  %3472 = vperm.xlu1 %4384, %v3441_v20   ;;  %3469 = vperm.xlu0 %4383, %v3440_v39   ;;  %v3443_v5 = vsel %vm3427_vm2, 1, %v9123_v0  ;;  %v3442_v57 = vsel %vm3426_vm3, 1, %v9123_v0  ;;  %v1774_v14 = vsel %vm1754_vm4, %v4286_v21, %v1657_v16  ;;  %vm3429_vm10 = vcmp.eq.s32.totalorder %v6511_v26, 27  ;;  %v9317_v26 = vld [vmem:[#allocation184_spill] sm:$0xff] }
 0x3af   : > { %v1773_v40 = vsel %vm1753_vm5, %v4286_v21, %v1656_v49  ;;  %vm3428_vm11 = vcmp.eq.s32.totalorder %v6515_v58, 27  ;;  %v1776_v20 = vsel %vm1756_vm6, %v4286_v21, %v1659_v46  ;;  %v1775_v39 = vsel %vm1755_vm7, %v4286_v21, %v1658_v42  ;;  %v9314_v46 = vld [vmem:[#allocation181_spill] sm:$0xff]  ;;  %v9315_v42 = vld [vmem:[#allocation182_spill] sm:$0xff]  ;;  %v9376_v29 = vld [vmem:[#allocation227_spill] sm:$0xff] }
 0x3b0   : > { %vm1861_vm12 = vcmp.eq.s32.totalorder %v9308_v41, 1  ;;  %vm1860_vm13 = vcmp.eq.s32.totalorder %v9309_v32, 1  ;;  %v1778_v16 = vsel %vm1758_vm8, %v4286_v21, %v1661_v44  ;;  %v1777_v49 = vsel %vm1757_vm9, %v4286_v21, %v1660_v31  ;;  %v9368_v18 = vld [vmem:[#allocation221_spill] sm:$0xff] }
 0x3b1   : > { %v7090_v3 = vpop.permute.xlu1 %3010  ;;  %v7092_v35 = vpop.permute.xlu0 %3007  ;;  %vm1863_vm14 = vcmp.eq.s32.totalorder %v9312_v9, 1  ;;  %vm1862_vm15 = vcmp.eq.s32.totalorder %v9313_v43, 1  ;;  %vm1865_vm0 = vcmp.eq.s32.totalorder %v9314_v46, 1  ;;  %vm1864_vm1 = vcmp.eq.s32.totalorder %v9315_v42, 1  ;;  %v9320_v9 = vld [vmem:[#allocation185_spill] sm:$0xff]  ;;  %v9321_v43 = vld [vmem:[#allocation186_spill] sm:$0xff] }
 0x3b2   : > { %9310 = vst [vmem:[#allocation64_spill] sm:$0xff] %v7090_v3  ;;  %9311 = vst [vmem:[#allocation65_spill] sm:$0xff] %v7092_v35  ;;  %3478 = vperm.xlu1 %4384, %v3443_v5   ;;  %3475 = vperm.xlu0 %4383, %v3442_v57   ;;  %v3445_v25 = vsel %vm3429_vm10, 1, %v9123_v0  ;;  %v3444_v41 = vsel %vm3428_vm11, 1, %v9123_v0  ;;  %v1881_v21 = vsel %vm1861_vm12, %v7086_v61, %v1764_v60  ;;  %vm3431_vm2 = vcmp.eq.s32.totalorder %v6554_v55, 27  ;;  %v9316_v57 = vld [vmem:[#allocation183_spill] sm:$0xff] }
 0x3b3   : > { %v1880_v44 = vsel %vm1860_vm13, %v7086_v61, %v1763_v47  ;;  %vm3430_vm3 = vcmp.eq.s32.totalorder %v6558_v59, 27  ;;  %v1883_v31 = vsel %vm1863_vm14, %v7086_v61, %v1766_v23  ;;  %v1882_v5 = vsel %vm1862_vm15, %v7086_v61, %v1765_v62  ;;  %v9322_v23 = vld [vmem:[#allocation187_spill] sm:$0xff]  ;;  %v9323_v62 = vld [vmem:[#allocation188_spill] sm:$0xff]  ;;  %v9325_v55 = vld [vmem:[#allocation190_spill] sm:$0xff] }
 0x3b4   : > { %vm1867_vm4 = vcmp.eq.s32.totalorder %v9316_v57, 1  ;;  %vm1866_vm5 = vcmp.eq.s32.totalorder %v9317_v26, 1  ;;  %v1885_v60 = vsel %vm1865_vm0, %v7086_v61, %v1768_v48  ;;  %v1884_v47 = vsel %vm1864_vm1, %v7086_v61, %v1767_v7  ;;  %v9324_v57 = vld [vmem:[#allocation189_spill] sm:$0xff]  ;;  %v9357_v35 = vld [vmem:[#allocation214_spill] sm:$0xff]  ;;  %v9360_v3 = vld [vmem:[#allocation215_spill] sm:$0xff] }
 0x3b5   : > { %v7112_v32 = vpop.permute.xlu1 %3016  ;;  %v7114_v58 = vpop.permute.xlu0 %3013  ;;  %vm1869_vm6 = vcmp.eq.s32.totalorder %v9320_v9, 1  ;;  %vm1868_vm7 = vcmp.eq.s32.totalorder %v9321_v43, 1  ;;  %vm1871_vm8 = vcmp.eq.s32.totalorder %v9322_v23, 1  ;;  %vm1870_vm9 = vcmp.eq.s32.totalorder %v9323_v62, 1  ;;  %v9328_v9 = vld [vmem:[#allocation191_spill] sm:$0xff]  ;;  %v9329_v43 = vld [vmem:[#allocation192_spill] sm:$0xff] }
 0x3b6   : > { %9318 = vst [vmem:[#allocation66_spill] sm:$0xff] %v7112_v32  ;;  %9319 = vst [vmem:[#allocation67_spill] sm:$0xff] %v7114_v58  ;;  %3484 = vperm.xlu1 %4384, %v3445_v25   ;;  %3481 = vperm.xlu0 %4383, %v3444_v41   ;;  %v3447_v46 = vsel %vm3431_vm2, 1, %v9123_v0  ;;  %v3446_v48 = vsel %vm3430_vm3, 1, %v9123_v0  ;;  %v1887_v7 = vsel %vm1867_vm4, %v7086_v61, %v1770_v51  ;;  %vm3433_vm10 = vcmp.eq.s32.totalorder %v6588_v33, 27  ;;  %v9331_v23 = vld [vmem:[#allocation194_spill] sm:$0xff] }
 0x3b7   : > { %v1886_v42 = vsel %vm1866_vm5, %v7086_v61, %v1769_v4  ;;  %vm3432_vm11 = vcmp.eq.s32.totalorder %v6592_v19, 27  ;;  %v1889_v25 = vsel %vm1869_vm6, %v7086_v61, %v1772_v1  ;;  %v1888_v41 = vsel %vm1868_vm7, %v7086_v61, %v1771_v13  ;;  %v7147_v1 = vld [vmem:[%s8734_s1 + $0xe] ss:$0 sm:$0xff]  ;;  %v9330_v13 = vld [vmem:[#allocation193_spill] sm:$0xff] }
 0x3b8   : > { %vm1873_vm12 = vcmp.eq.s32.totalorder %v9324_v57, 1  ;;  %vm1872_vm13 = vcmp.eq.s32.totalorder %v9325_v55, 1  ;;  %v1891_v51 = vsel %vm1871_vm8, %v7086_v61, %v1774_v14  ;;  %v1890_v4 = vsel %vm1870_vm9, %v7086_v61, %v1773_v40  ;;  %v7164_v57 = vld [vmem:[%s4701_s26] sm:$0xff]  ;;  %v9333_v19 = vld [vmem:[#allocation196_spill] sm:$0xff]  ;;  %v9356_v32 = vld [vmem:[#allocation213_spill] sm:$0xff] }
 0x3b9   : > { %v7136_v26 = vpop.permute.xlu1 %3022  ;;  %v7138_v59 = vpop.permute.xlu0 %3019  ;;  %vm1875_vm14 = vcmp.eq.s32.totalorder %v9328_v9, 1  ;;  %vm1874_vm15 = vcmp.eq.s32.totalorder %v9329_v43, 1  ;;  %vm1978_vm0 = vcmp.eq.s32.totalorder %v9330_v13, 1  ;;  %vm1977_vm1 = vcmp.eq.s32.totalorder %v9331_v23, 1  ;;  %v9332_v9 = vld [vmem:[#allocation195_spill] sm:$0xff]  ;;  %v7194_v13 = vld [vmem:[%s4701_s26 + $0x18] sm:$0xff] }
 0x3ba   : > { %9326 = vst [vmem:[#allocation68_spill] sm:$0xff] %v7136_v26  ;;  %9327 = vst [vmem:[#allocation69_spill] sm:$0xff] %v7138_v59  ;;  %3490 = vperm.xlu1 %4384, %v3447_v46   ;;  %3487 = vperm.xlu0 %4383, %v3446_v48   ;;  %v3449_v14 = vsel %vm3433_vm10, 1, %v9123_v0  ;;  %v3448_v40 = vsel %vm3432_vm11, 1, %v9123_v0  ;;  %v1893_v62 = vsel %vm1873_vm12, %v7086_v61, %v1776_v20  ;;  %v7160_v48 = vld [vmem:[%s4701_s26 + $0x8] sm:$0xff]  ;;  %vm3535_vm3 = vcmp.eq.s32.totalorder %v7164_v57, 28 }
 0x3bb   : > { %v1892_v46 = vsel %vm1872_vm13, %v7086_v61, %v1775_v39  ;;  %vm3536_vm2 = vcmp.eq.s32.totalorder %v7160_v48, 28  ;;  %v1895_v55 = vsel %vm1875_vm14, %v7086_v61, %v1778_v16  ;;  %v1894_v33 = vsel %vm1874_vm15, %v7086_v61, %v1777_v49  ;;  %v9336_v59 = vld [vmem:[#allocation197_spill] sm:$0xff]  ;;  %v9337_v61 = vld [vmem:[#allocation198_spill] sm:$0xff]  ;;  %v9338_v49 = vld [vmem:[#allocation199_spill] sm:$0xff] }
 0x3bc   : > { %vm1980_vm4 = vcmp.eq.s32.totalorder %v9332_v9, 1  ;;  %vm1979_vm5 = vcmp.eq.s32.totalorder %v9333_v19, 1  ;;  %v1998_v43 = vsel %vm1978_vm0, %v7147_v1, %v1881_v21  ;;  %v1997_v16 = vsel %vm1977_vm1, %v7147_v1, %v1880_v44  ;;  %v9339_v9 = vld [vmem:[#allocation200_spill] sm:$0xff]  ;;  %v7198_v23 = vld [vmem:[%s4701_s26 + $0x10] sm:$0xff]  ;;  %v9344_v26 = vld [vmem:[#allocation203_spill] sm:$0xff] }
 0x3bd   : > { %v7171_v20 = vpop.permute.xlu1 %3028  ;;  %v7173_v39 = vpop.permute.xlu0 %3025  ;;  %vm1982_vm6 = vcmp.eq.s32.totalorder %v9336_v59, 1  ;;  %vm1981_vm7 = vcmp.eq.s32.totalorder %v9337_v61, 1  ;;  %vm1984_vm8 = vcmp.eq.s32.totalorder %v9338_v49, 1  ;;  %vm1983_vm9 = vcmp.eq.s32.totalorder %v9339_v9, 1  ;;  %v9340_v61 = vld [vmem:[#allocation201_spill] sm:$0xff]  ;;  %v7228_v49 = vld [vmem:[%s4701_s26 + $0x28] sm:$0xff] }
 0x3be   : > { %9334 = vst [vmem:[#allocation70_spill] sm:$0xff] %v7171_v20  ;;  %9335 = vst [vmem:[#allocation71_spill] sm:$0xff] %v7173_v39  ;;  %3496 = vperm.xlu1 %4384, %v3449_v14   ;;  %3493 = vperm.xlu0 %4383, %v3448_v40   ;;  %v3552_v19 = vsel %vm3536_vm2, 1, %v9123_v0  ;;  %v3551_v21 = vsel %vm3535_vm3, 1, %v9123_v0  ;;  %v2000_v44 = vsel %vm1980_vm4, %v7147_v1, %v1883_v31  ;;  %vm3538_vm10 = vcmp.eq.s32.totalorder %v7194_v13, 28  ;;  %v9341_v39 = vld [vmem:[#allocation202_spill] sm:$0xff] }
 0x3bf   : > { %v1999_v59 = vsel %vm1979_vm5, %v7147_v1, %v1882_v5  ;;  %vm3537_vm11 = vcmp.eq.s32.totalorder %v7198_v23, 28  ;;  %v2002_v14 = vsel %vm1982_vm6, %v7147_v1, %v1885_v60  ;;  %v2001_v40 = vsel %vm1981_vm7, %v7147_v1, %v1884_v47  ;;  %v9345_v47 = vld [vmem:[#allocation204_spill] sm:$0xff]  ;;  %v7232_v9 = vld [vmem:[%s4701_s26 + $0x20] sm:$0xff] }
 0x3c0   : > { %vm1986_vm12 = vcmp.eq.s32.totalorder %v9340_v61, 1  ;;  %vm1985_vm13 = vcmp.eq.s32.totalorder %v9341_v39, 1  ;;  %v2004_v20 = vsel %vm1984_vm8, %v7147_v1, %v1887_v7  ;;  %v2003_v60 = vsel %vm1983_vm9, %v7147_v1, %v1886_v42  ;;  %v9346_v39 = vld [vmem:[#allocation205_spill] sm:$0xff]  ;;  %v9347_v61 = vld [vmem:[#allocation206_spill] sm:$0xff] }
 0x3c1   : > { %v7205_v31 = vpop.permute.xlu1 %3103  ;;  %v7207_v5 = vpop.permute.xlu0 %3100  ;;  %vm1988_vm14 = vcmp.eq.s32.totalorder %v9344_v26, 1  ;;  %vm1987_vm15 = vcmp.eq.s32.totalorder %v9345_v47, 1  ;;  %vm1990_vm0 = vcmp.eq.s32.totalorder %v9346_v39, 1  ;;  %vm1989_vm1 = vcmp.eq.s32.totalorder %v9347_v61, 1  ;;  %v9348_v47 = vld [vmem:[#allocation207_spill] sm:$0xff]  ;;  %v9355_v39 = vld [vmem:[#allocation212_spill] sm:$0xff] }
 0x3c2   : > { %9342 = vst [vmem:[#allocation72_spill] sm:$0xff] %v7205_v31  ;;  %9343 = vst [vmem:[#allocation73_spill] sm:$0xff] %v7207_v5  ;;  %3571 = vperm.xlu1 %4384, %v3552_v19   ;;  %3568 = vperm.xlu0 %4383, %v3551_v21   ;;  %v3554_v5 = vsel %vm3538_vm10, 1, %v9123_v0  ;;  %v3553_v7 = vsel %vm3537_vm11, 1, %v9123_v0  ;;  %v2006_v42 = vsel %vm1986_vm12, %v7147_v1, %v1889_v25  ;;  %vm3540_vm2 = vcmp.eq.s32.totalorder %v7228_v49, 28  ;;  %v9349_v31 = vld [vmem:[#allocation208_spill] sm:$0xff] }
 0x3c3   : > { %v2005_v26 = vsel %vm1985_vm13, %v7147_v1, %v1888_v41  ;;  %vm3539_vm3 = vcmp.eq.s32.totalorder %v7232_v9, 28  ;;  %v2008_v19 = vsel %vm1988_vm14, %v7147_v1, %v1891_v51  ;;  %v2007_v21 = vsel %vm1987_vm15, %v7147_v1, %v1890_v4  ;;  %v7252_v4 = vld [vmem:[%s8734_s1 + $0xf] ss:$0 sm:$0xff] }
 0x3c4   : > { %vm1992_vm4 = vcmp.eq.s32.totalorder %v9348_v47, 1  ;;  %vm1991_vm5 = vcmp.eq.s32.totalorder %v9349_v31, 1  ;;  %v2010_v58 = vsel %vm1990_vm0, %v7147_v1, %v1893_v62  ;;  %v2009_v51 = vsel %vm1989_vm1, %v7147_v1, %v1892_v46  ;;  %v9352_v31 = vld [vmem:[#allocation209_spill] sm:$0xff]  ;;  %v9353_v47 = vld [vmem:[#allocation210_spill] sm:$0xff] }
 0x3c5   : > { %v7239_v25 = vpop.permute.xlu1 %3109  ;;  %v7241_v41 = vpop.permute.xlu0 %3106  ;;  %vm2095_vm6 = vcmp.eq.s32.totalorder %v9352_v31, 1  ;;  %vm2094_vm7 = vcmp.eq.s32.totalorder %v9353_v47, 1  ;;  %vm2096_vm9 = vcmp.eq.s32.totalorder %v9355_v39, 1  ;;  %v3556_v62 = vsel %vm3540_vm2, 1, %v9123_v0  ;;  %v7305_v39 = vld [vmem:[%s4701_s26 + $0x40] sm:$0xff] }
 0x3c6   : > { %9350 = vst [vmem:[#allocation74_spill] sm:$0xff] %v7239_v25  ;;  %9351 = vst [vmem:[#allocation75_spill] sm:$0xff] %v7241_v41  ;;  %3577 = vperm.xlu1 %4384, %v3554_v5   ;;  %3574 = vperm.xlu0 %4383, %v3553_v7   ;;  %v9354_v41 = vld [vmem:[#allocation211_spill] sm:$0xff]  ;;  %v3555_v46 = vsel %vm3539_vm3, 1, %v9123_v0  ;;  %v2012_v61 = vsel %vm1992_vm4, %v7147_v1, %v1895_v55  ;;  %v2011_v31 = vsel %vm1991_vm5, %v7147_v1, %v1894_v33  ;;  %v7267_v25 = vld [vmem:[%s4701_s26 + $0x38] sm:$0xff] }
 0x3c7   : > { %vm2097_vm8 = vcmp.eq.s32.totalorder %v9354_v41, 1  ;;  %vm3542_vm10 = vcmp.eq.s32.totalorder %v7267_v25, 28  ;;  %v7271_v5 = vld [vmem:[%s4701_s26 + $0x30] sm:$0xff]  ;;  %v2115_v7 = vsel %vm2095_vm6, %v7252_v4, %v1998_v43  ;;  %v2114_v47 = vsel %vm2094_vm7, %v7252_v4, %v1997_v16  ;;  %v9361_v16 = vld [vmem:[#allocation216_spill] sm:$0xff] }
 0x3c8   : > { %vm3541_vm11 = vcmp.eq.s32.totalorder %v7271_v5, 28  ;;  %vm2099_vm12 = vcmp.eq.s32.totalorder %v9356_v32, 1  ;;  %vm2098_vm13 = vcmp.eq.s32.totalorder %v9357_v35, 1  ;;  %v2117_v33 = vsel %vm2097_vm8, %v7252_v4, %v2000_v44  ;;  %v9362_v35 = vld [vmem:[#allocation217_spill] sm:$0xff]  ;;  %v9363_v32 = vld [vmem:[#allocation218_spill] sm:$0xff]  ;;  %v7301_v41 = vld [vmem:[%s4701_s26 + $0x48] sm:$0xff] }
 0x3c9   : > { %v7278_v55 = vpop.permute.xlu1 %3115  ;;  %v7280_v1 = vpop.permute.xlu0 %3112  ;;  %v2116_v43 = vsel %vm2096_vm9, %v7252_v4, %v1999_v59  ;;  %vm2101_vm14 = vcmp.eq.s32.totalorder %v9360_v3, 1  ;;  %vm2100_vm15 = vcmp.eq.s32.totalorder %v9361_v16, 1  ;;  %vm2103_vm0 = vcmp.eq.s32.totalorder %v9362_v35, 1  ;;  %v9364_v16 = vld [vmem:[#allocation219_spill] sm:$0xff]  ;;  %v7335_v35 = vld [vmem:[%s4701_s26 + $0x58] sm:$0xff] }
 0x3ca   : > { %9358 = vst [vmem:[#allocation76_spill] sm:$0xff] %v7278_v55  ;;  %9359 = vst [vmem:[#allocation77_spill] sm:$0xff] %v7280_v1  ;;  %3583 = vperm.xlu1 %4384, %v3556_v62   ;;  %3580 = vperm.xlu0 %4383, %v3555_v46   ;;  %vm2102_vm1 = vcmp.eq.s32.totalorder %v9363_v32, 1  ;;  %v3558_v1 = vsel %vm3542_vm10, 1, %v9123_v0  ;;  %v3557_v44 = vsel %vm3541_vm11, 1, %v9123_v0  ;;  %v2119_v59 = vsel %vm2099_vm12, %v7252_v4, %v2002_v14  ;;  %v9365_v55 = vld [vmem:[#allocation220_spill] sm:$0xff] }
 0x3cb   : > { %v2118_v3 = vsel %vm2098_vm13, %v7252_v4, %v2001_v40  ;;  %vm3544_vm2 = vcmp.eq.s32.totalorder %v7301_v41, 28  ;;  %vm3543_vm3 = vcmp.eq.s32.totalorder %v7305_v39, 28  ;;  %v2121_v62 = vsel %vm2101_vm14, %v7252_v4, %v2004_v20 }
 0x3cc   : > { %v2120_v46 = vsel %vm2100_vm15, %v7252_v4, %v2003_v60  ;;  %vm2105_vm4 = vcmp.eq.s32.totalorder %v9364_v16, 1  ;;  %vm2104_vm5 = vcmp.eq.s32.totalorder %v9365_v55, 1  ;;  %v2123_v11 = vsel %vm2103_vm0, %v7252_v4, %v2006_v42  ;;  %v9369_v60 = vld [vmem:[#allocation222_spill] sm:$0xff]  ;;  %v9370_v55 = vld [vmem:[#allocation223_spill] sm:$0xff]  ;;  %v9371_v16 = vld [vmem:[#allocation224_spill] sm:$0xff] }
 0x3cd   : > { %v7312_v14 = vpop.permute.xlu1 %3121  ;;  %v7314_v40 = vpop.permute.xlu0 %3118  ;;  %v2122_v20 = vsel %vm2102_vm1, %v7252_v4, %v2005_v26  ;;  %vm2107_vm6 = vcmp.eq.s32.totalorder %v9368_v18, 1  ;;  %vm2106_vm7 = vcmp.eq.s32.totalorder %v9369_v60, 1  ;;  %vm2109_vm8 = vcmp.eq.s32.totalorder %v9370_v55, 1  ;;  %v9373_v60 = vld [vmem:[#allocation226_spill] sm:$0xff] }
 0x3ce   : > { %9366 = vst [vmem:[#allocation78_spill] sm:$0xff] %v7312_v14  ;;  %9367 = vst [vmem:[#allocation79_spill] sm:$0xff] %v7314_v40  ;;  %3589 = vperm.xlu1 %4384, %v3558_v1   ;;  %3586 = vperm.xlu0 %4383, %v3557_v44   ;;  %vm2108_vm9 = vcmp.eq.s32.totalorder %v9371_v16, 1  ;;  %v3560_v40 = vsel %vm3544_vm2, 1, %v9123_v0  ;;  %v3559_v42 = vsel %vm3543_vm3, 1, %v9123_v0  ;;  %v2125_v26 = vsel %vm2105_vm4, %v7252_v4, %v2008_v19  ;;  %v7339_v1 = vld [vmem:[%s4701_s26 + $0x50] sm:$0xff] }
 0x3cf   : > { %v2124_v18 = vsel %vm2104_vm5, %v7252_v4, %v2007_v21  ;;  %vm3546_vm10 = vcmp.eq.s32.totalorder %v7335_v35, 28  ;;  %vm3545_vm11 = vcmp.eq.s32.totalorder %v7339_v1, 28  ;;  %v7343_v32 = vsel %vm2107_vm6, %v7252_v4, %v2010_v58  ;;  %v7351_v19 = vld [vmem:[%s8734_s1 + $0x10] ss:$0 sm:$0xff]  ;;  %v9380_v16 = vld [vmem:[#allocation231_spill] sm:$0xff] }
 0x3d0   : > { %v7346_v44 = vsel %vm2106_vm7, %v7252_v4, %v2009_v51  ;;  %v9372_v21 = vld [vmem:[#allocation225_spill] sm:$0xff]  ;;  %vm2211_vm13 = vcmp.eq.s32.totalorder %v9373_v60, 1  ;;  %v2129_v58 = vsel %vm2109_vm8, %v7252_v4, %v2012_v61  ;;  %v2128_v51 = vsel %vm2108_vm9, %v7252_v4, %v2011_v31  ;;  %v9379_v60 = vld [vmem:[#allocation230_spill] sm:$0xff]  ;;  %v7378_v31 = vld [vmem:[%s4701_s26 + $0x68] sm:$0xff] }
 0x3d1   : > { %vm2212_vm12 = vcmp.eq.s32.totalorder %v9372_v21, 1  ;;  %v7355_v14 = vpop.permute.xlu1 %3127  ;;  %v7357_v22 = vpop.permute.xlu0 %3124  ;;  %vm2214_vm14 = vcmp.eq.s32.totalorder %v9376_v29, 1  ;;  %vm2213_vm15 = vcmp.eq.s32.totalorder %v9377_v2, 1  ;;  %v9378_v21 = vld [vmem:[#allocation229_spill] sm:$0xff]  ;;  %vm2215_vm1 = vcmp.eq.s32.totalorder %v9379_v60, 1  ;;  %v7382_v2 = vld [vmem:[%s4701_s26 + $0x60] sm:$0xff] }
 0x3d2   : > { %9374 = vst [vmem:[#allocation80_spill] sm:$0xff] %v7355_v14  ;;  %9375 = vst [vmem:[#allocation81_spill] sm:$0xff] %v7357_v22  ;;  %3595 = vperm.xlu1 %4384, %v3560_v40   ;;  %3592 = vperm.xlu0 %4383, %v3559_v42   ;;  %vm2216_vm0 = vcmp.eq.s32.totalorder %v9378_v21, 1  ;;  %v3562_v22 = vsel %vm3546_vm10, 1, %v9123_v0  ;;  %v3561_v61 = vsel %vm3545_vm11, 1, %v9123_v0  ;;  %v2232_v4 = vsel %vm2212_vm12, %v7351_v19, %v2115_v7  ;;  %v9381_v42 = vld [vmem:[#allocation232_spill] sm:$0xff] }
 0x3d3   : > { %v2231_v29 = vsel %vm2211_vm13, %v7351_v19, %v2114_v47  ;;  %vm3548_vm2 = vcmp.eq.s32.totalorder %v7378_v31, 28  ;;  %vm3547_vm3 = vcmp.eq.s32.totalorder %v7382_v2, 28  ;;  %v2234_v40 = vsel %vm2214_vm14, %v7351_v19, %v2117_v33  ;;  %v7412_v21 = vld [vmem:[%s4701_s26 + $0x78] sm:$0xff] }
 0x3d4   : > { %v2233_v55 = vsel %vm2213_vm15, %v7351_v19, %v2116_v43  ;;  %vm2218_vm4 = vcmp.eq.s32.totalorder %v9380_v16, 1  ;;  %vm2217_vm5 = vcmp.eq.s32.totalorder %v9381_v42, 1  ;;  %v2236_v14 = vsel %vm2216_vm0, %v7351_v19, %v2119_v59  ;;  %v9385_v43 = vld [vmem:[#allocation234_spill] sm:$0xff]  ;;  %v9386_v16 = vld [vmem:[#allocation235_spill] sm:$0xff]  ;;  %v9387_v42 = vld [vmem:[#allocation236_spill] sm:$0xff] }
 0x3d5   : > { %v7389_v7 = vpop.permute.xlu1 %3133  ;;  %v7391_v47 = vpop.permute.xlu0 %3130  ;;  %v2235_v33 = vsel %vm2215_vm1, %v7351_v19, %v2118_v3  ;;  %vm2220_vm6 = vcmp.eq.s32.totalorder %v9384_v45, 1  ;;  %vm2219_vm7 = vcmp.eq.s32.totalorder %v9385_v43, 1  ;;  %vm2222_vm8 = vcmp.eq.s32.totalorder %v9386_v16, 1  ;;  %v9388_v43 = vld [vmem:[#allocation237_spill] sm:$0xff] }
 0x3d6   : > { %9382 = vst [vmem:[#allocation82_spill] sm:$0xff] %v7389_v7  ;;  %9383 = vst [vmem:[#allocation83_spill] sm:$0xff] %v7391_v47  ;;  %3601 = vperm.xlu1 %4384, %v3562_v22   ;;  %3598 = vperm.xlu0 %4383, %v3561_v61   ;;  %vm2221_vm9 = vcmp.eq.s32.totalorder %v9387_v42, 1  ;;  %v3564_v47 = vsel %vm3548_vm2, 1, %v9123_v0  ;;  %v3563_v59 = vsel %vm3547_vm3, 1, %v9123_v0  ;;  %v2238_v3 = vsel %vm2218_vm4, %v7351_v19, %v2121_v62  ;;  %v7416_v22 = vld [vmem:[%s4701_s26 + $0x70] sm:$0xff] }
 0x3d7   : > { %v2237_v45 = vsel %vm2217_vm5, %v7351_v19, %v2120_v46  ;;  %vm3550_vm10 = vcmp.eq.s32.totalorder %v7412_v21, 28  ;;  %vm3549_vm11 = vcmp.eq.s32.totalorder %v7416_v22, 28  ;;  %v2240_v60 = vsel %vm2220_vm6, %v7351_v19, %v2123_v11  ;;  %v9389_v7 = vld [vmem:[#allocation238_spill] sm:$0xff]  ;;  %v9393_v11 = vld [vmem:[#allocation240_spill] sm:$0xff] }
 0x3d8   : > { %v2239_v61 = vsel %vm2219_vm7, %v7351_v19, %v2122_v20  ;;  %vm2224_vm12 = vcmp.eq.s32.totalorder %v9388_v43, 1  ;;  %vm2223_vm13 = vcmp.eq.s32.totalorder %v9389_v7, 1  ;;  %v2242_v46 = vsel %vm2222_vm8, %v7351_v19, %v2125_v26  ;;  %v7438_v20 = vld [vmem:[%s8734_s1 + $0x11] ss:$0 sm:$0xff]  ;;  %v9395_v43 = vld [vmem:[#allocation242_spill] sm:$0xff] }
 0x3d9   : > { %v7423_v56 = vpop.permute.xlu1 %3139  ;;  %v7425_v62 = vpop.permute.xlu0 %3136  ;;  %v2241_v63 = vsel %vm2221_vm9, %v7351_v19, %v2124_v18  ;;  %vm2226_vm14 = vcmp.eq.s32.totalorder %v9392_v34, 1  ;;  %vm2225_vm15 = vcmp.eq.s32.totalorder %v9393_v11, 1  ;;  %v9394_v7 = vld [vmem:[#allocation241_spill] sm:$0xff]  ;;  %vm2328_vm1 = vcmp.eq.s32.totalorder %v9395_v43, 1  ;;  %v9397_v11 = vld [vmem:[#allocation244_spill] sm:$0xff] }
 0x3da   : > { %9390 = vst [vmem:[#allocation84_spill] sm:$0xff] %v7423_v56  ;;  %9391 = vst [vmem:[#allocation85_spill] sm:$0xff] %v7425_v62  ;;  %3607 = vperm.xlu1 %4384, %v3564_v47   ;;  %3604 = vperm.xlu0 %4383, %v3563_v59   ;;  %vm2329_vm0 = vcmp.eq.s32.totalorder %v9394_v7, 1  ;;  %v3566_v26 = vsel %vm3550_vm10, 1, %v9123_v0  ;;  %v3565_v34 = vsel %vm3549_vm11, 1, %v9123_v0  ;;  %v2244_v18 = vsel %vm2224_vm12, %v7351_v19, %v7343_v32  ;;  %v9396_v59 = vld [vmem:[#allocation243_spill] sm:$0xff] }
 0x3db   : > { %v2243_v47 = vsel %vm2223_vm13, %v7351_v19, %v7346_v44  ;;  %vm3653_vm2 = vcmp.eq.s32.totalorder %v7160_v48, 29  ;;  %vm3652_vm3 = vcmp.eq.s32.totalorder %v7164_v57, 29  ;;  %v2246_v16 = vsel %vm2226_vm14, %v7351_v19, %v2129_v58  ;;  %v9400_v62 = vld [vmem:[#allocation245_spill] sm:$0xff]  ;;  %v9401_v56 = vld [vmem:[#allocation246_spill] sm:$0xff]  ;;  %v9402_v58 = vld [vmem:[#allocation247_spill] sm:$0xff] }
 0x3dc   : > { %v2245_v42 = vsel %vm2225_vm15, %v7351_v19, %v2128_v51  ;;  %vm2331_vm4 = vcmp.eq.s32.totalorder %v9396_v59, 1  ;;  %vm2330_vm5 = vcmp.eq.s32.totalorder %v9397_v11, 1  ;;  %v2349_v32 = vsel %vm2329_vm0, %v7438_v20, %v2232_v4  ;;  %v9403_v19 = vld [vmem:[#allocation248_spill] sm:$0xff]  ;;  %v9405_v59 = vld [vmem:[#allocation250_spill] sm:$0xff] }
 0x3dd   : > { %v7458_v7 = vpop.permute.xlu1 %3145  ;;  %v7460_v43 = vpop.permute.xlu0 %3142  ;;  %v2348_v44 = vsel %vm2328_vm1, %v7438_v20, %v2231_v29  ;;  %vm2333_vm6 = vcmp.eq.s32.totalorder %v9400_v62, 1  ;;  %vm2332_vm7 = vcmp.eq.s32.totalorder %v9401_v56, 1  ;;  %vm2335_vm8 = vcmp.eq.s32.totalorder %v9402_v58, 1 }
 0x3de   : > { %9398 = vst [vmem:[#allocation86_spill] sm:$0xff] %v7458_v7  ;;  %9399 = vst [vmem:[#allocation87_spill] sm:$0xff] %v7460_v43  ;;  %3613 = vperm.xlu1 %4384, %v3566_v26   ;;  %3610 = vperm.xlu0 %4383, %v3565_v34   ;;  %vm2334_vm9 = vcmp.eq.s32.totalorder %v9403_v19, 1  ;;  %v3669_v51 = vsel %vm3653_vm2, 1, %v9123_v0  ;;  %v3668_v4 = vsel %vm3652_vm3, 1, %v9123_v0  ;;  %v2351_v29 = vsel %vm2331_vm4, %v7438_v20, %v2234_v40  ;;  %v9404_v34 = vld [vmem:[#allocation249_spill] sm:$0xff] }
 0x3df   : > { %v2350_v62 = vsel %vm2330_vm5, %v7438_v20, %v2233_v55  ;;  %vm3655_vm10 = vcmp.eq.s32.totalorder %v7194_v13, 29  ;;  %vm3654_vm11 = vcmp.eq.s32.totalorder %v7198_v23, 29  ;;  %v2353_v56 = vsel %vm2333_vm6, %v7438_v20, %v2236_v14  ;;  %v9408_v19 = vld [vmem:[#allocation251_spill] sm:$0xff]  ;;  %v9409_v43 = vld [vmem:[#allocation252_spill] sm:$0xff]  ;;  %v9410_v14 = vld [vmem:[#allocation253_spill] sm:$0xff] }
 0x3e0   : > { %v2352_v26 = vsel %vm2332_vm7, %v7438_v20, %v2235_v33  ;;  %vm2337_vm12 = vcmp.eq.s32.totalorder %v9404_v34, 1  ;;  %vm2336_vm13 = vcmp.eq.s32.totalorder %v9405_v59, 1  ;;  %v2355_v40 = vsel %vm2335_vm8, %v7438_v20, %v2238_v3  ;;  %v9411_v33 = vld [vmem:[#allocation254_spill] sm:$0xff] }
 0x3e1   : > { %v7482_v11 = vpop.permute.xlu1 %3220  ;;  %v7484_v58 = vpop.permute.xlu0 %3217  ;;  %v2354_v55 = vsel %vm2334_vm9, %v7438_v20, %v2237_v45  ;;  %vm2339_vm14 = vcmp.eq.s32.totalorder %v9408_v19, 1  ;;  %vm2338_vm15 = vcmp.eq.s32.totalorder %v9409_v43, 1  ;;  %vm2341_vm0 = vcmp.eq.s32.totalorder %v9410_v14, 1  ;;  %v9413_v19 = vld [vmem:[#allocation256_spill] sm:$0xff] }
 0x3e2   : > { %9406 = vst [vmem:[#allocation88_spill] sm:$0xff] %v7482_v11  ;;  %9407 = vst [vmem:[#allocation89_spill] sm:$0xff] %v7484_v58  ;;  %3688 = vperm.xlu1 %4384, %v3669_v51   ;;  %3685 = vperm.xlu0 %4383, %v3668_v4   ;;  %vm2340_vm1 = vcmp.eq.s32.totalorder %v9411_v33, 1  ;;  %v3671_v34 = vsel %vm3655_vm10, 1, %v9123_v0  ;;  %v3670_v3 = vsel %vm3654_vm11, 1, %v9123_v0  ;;  %v2357_v45 = vsel %vm2337_vm12, %v7438_v20, %v2240_v60  ;;  %v9412_v4 = vld [vmem:[#allocation255_spill] sm:$0xff] }
 0x3e3   : > { %v2356_v59 = vsel %vm2336_vm13, %v7438_v20, %v2239_v61  ;;  %vm3657_vm2 = vcmp.eq.s32.totalorder %v7228_v49, 29  ;;  %vm3656_vm3 = vcmp.eq.s32.totalorder %v7232_v9, 29  ;;  %v2359_v43 = vsel %vm2339_vm14, %v7438_v20, %v2242_v46  ;;  %v4292_v58 = vld [vmem:[%s8734_s1 + $0x12] ss:$0 sm:$0xff]  ;;  %v9417_v46 = vld [vmem:[#allocation258_spill] sm:$0xff] }
 0x3e4   : > { %v2358_v51 = vsel %vm2338_vm15, %v7438_v20, %v2241_v63  ;;  %vm2343_vm4 = vcmp.eq.s32.totalorder %v9412_v4, 1  ;;  %vm2342_vm5 = vcmp.eq.s32.totalorder %v9413_v19, 1  ;;  %v2361_v60 = vsel %vm2341_vm0, %v7438_v20, %v2244_v18  ;;  %v9416_v11 = vld [vmem:[#allocation257_spill] sm:$0xff]  ;;  %v9418_v63 = vld [vmem:[#allocation259_spill] sm:$0xff]  ;;  %v9419_v4 = vld [vmem:[#allocation260_spill] sm:$0xff] }
 0x3e5   : > { %v7506_v14 = vpop.permute.xlu1 %3226  ;;  %v7508_v33 = vpop.permute.xlu0 %3223  ;;  %v2360_v61 = vsel %vm2340_vm1, %v7438_v20, %v2243_v47  ;;  %vm2446_vm6 = vcmp.eq.s32.totalorder %v9416_v11, 1  ;;  %vm2445_vm7 = vcmp.eq.s32.totalorder %v9417_v46, 1  ;;  %vm2448_vm8 = vcmp.eq.s32.totalorder %v9418_v63, 1  ;;  %v9420_v46 = vld [vmem:[#allocation261_spill] sm:$0xff]  ;;  %v9421_v63 = vld [vmem:[#allocation262_spill] sm:$0xff] }
 0x3e6   : > { %9414 = vst [vmem:[#allocation90_spill] sm:$0xff] %v7506_v14  ;;  %9415 = vst [vmem:[#allocation91_spill] sm:$0xff] %v7508_v33  ;;  %3694 = vperm.xlu1 %4384, %v3671_v34   ;;  %3691 = vperm.xlu0 %4383, %v3670_v3   ;;  %vm2447_vm9 = vcmp.eq.s32.totalorder %v9419_v4, 1  ;;  %v3673_v18 = vsel %vm3657_vm2, 1, %v9123_v0  ;;  %v3672_v47 = vsel %vm3656_vm3, 1, %v9123_v0  ;;  %v2363_v19 = vsel %vm2343_vm4, %v7438_v20, %v2246_v16  ;;  %v9424_v16 = vld [vmem:[#allocation264_spill] sm:$0xff] }
 0x3e7   : > { %v2362_v11 = vsel %vm2342_vm5, %v7438_v20, %v2245_v42  ;;  %vm3659_vm10 = vcmp.eq.s32.totalorder %v7267_v25, 29  ;;  %vm3658_vm11 = vcmp.eq.s32.totalorder %v7271_v5, 29  ;;  %v2466_v34 = vsel %vm2446_vm6, %v4292_v58, %v2349_v32  ;;  %v9425_v20 = vld [vmem:[#allocation265_spill] sm:$0xff]  ;;  %v9426_v42 = vld [vmem:[#allocation266_spill] sm:$0xff] }
 0x3e8   : > { %v2465_v3 = vsel %vm2445_vm7, %v4292_v58, %v2348_v44  ;;  %vm2450_vm12 = vcmp.eq.s32.totalorder %v9420_v46, 1  ;;  %vm2449_vm13 = vcmp.eq.s32.totalorder %v9421_v63, 1  ;;  %v2468_v14 = vsel %vm2448_vm8, %v4292_v58, %v2351_v29  ;;  %v9428_v46 = vld [vmem:[#allocation268_spill] sm:$0xff] }
 0x3e9   : > { %v7531_v4 = vpop.permute.xlu1 %3232  ;;  %v7533_v33 = vpop.permute.xlu0 %3229  ;;  %v2467_v7 = vsel %vm2447_vm9, %v4292_v58, %v2350_v62  ;;  %vm2452_vm14 = vcmp.eq.s32.totalorder %v9423_v38, 1  ;;  %vm2451_vm15 = vcmp.eq.s32.totalorder %v9424_v16, 1  ;;  %vm2454_vm0 = vcmp.eq.s32.totalorder %v9425_v20, 1 }
 0x3ea   : > { %9422 = vst [vmem:[#allocation92_spill] sm:$0xff] %v7533_v33  ;;  %3700 = vperm.xlu1 %4384, %v3673_v18   ;;  %3697 = vperm.xlu0 %4383, %v3672_v47   ;;  %vm2453_vm1 = vcmp.eq.s32.totalorder %v9426_v42, 1  ;;  %v3675_v32 = vsel %vm3659_vm10, 1, %v9123_v0  ;;  %v3674_v44 = vsel %vm3658_vm11, 1, %v9123_v0  ;;  %v2470_v29 = vsel %vm2450_vm12, %v4292_v58, %v2353_v56  ;;  %v9427_v47 = vld [vmem:[#allocation267_spill] sm:$0xff]  ;;  %v9429_v33 = vld [vmem:[#allocation269_spill] sm:$0xff] }
 0x3eb   : > { %v2469_v62 = vsel %vm2449_vm13, %v4292_v58, %v2352_v26  ;;  %vm3661_vm2 = vcmp.eq.s32.totalorder %v7301_v41, 29  ;;  %vm3660_vm3 = vcmp.eq.s32.totalorder %v7305_v39, 29  ;;  %v2472_v38 = vsel %vm2452_vm14, %v4292_v58, %v2355_v40  ;;  %v9430_v56 = vld [vmem:[#allocation270_spill] sm:$0xff] }
 0x3ec   : > { %v2471_v18 = vsel %vm2451_vm15, %v4292_v58, %v2354_v55  ;;  %vm2456_vm4 = vcmp.eq.s32.totalorder %v9427_v47, 1  ;;  %vm2455_vm5 = vcmp.eq.s32.totalorder %v9428_v46, 1  ;;  %v2474_v20 = vsel %vm2454_vm0, %v4292_v58, %v2357_v45 }
 0x3ed   : > { %v7549_v63 = vpop.permute.xlu1 %3238  ;;  %v7551_v16 = vpop.permute.xlu0 %3235  ;;  %v2473_v42 = vsel %vm2453_vm1, %v4292_v58, %v2356_v59  ;;  %vm2458_vm6 = vcmp.eq.s32.totalorder %v9429_v33, 1  ;;  %vm2457_vm7 = vcmp.eq.s32.totalorder %v9430_v56, 1  ;;  %vm2460_vm8 = vcmp.eq.s32.totalorder %v6189_v8, 1  ;;  %v4293_v8 = vld [vmem:[%s8734_s1 + $0x13] ss:$0 sm:$0xff]  ;;  %v9442_v56 = vld [vmem:[#allocation11_spill] sm:$0xff] }
 0x3ee   : > { %3706 = vperm.xlu1 %4384, %v3675_v32   ;;  %3703 = vperm.xlu0 %4383, %v3674_v44   ;;  %vm2459_vm9 = vcmp.eq.s32.totalorder %v6191_v12, 1  ;;  %v3677_v26 = vsel %vm3661_vm2, 1, %v9123_v0  ;;  %v3676_v40 = vsel %vm3660_vm3, 1, %v9123_v0  ;;  %v2476_v55 = vsel %vm2456_vm4, %v4292_v58, %v2359_v43  ;;  %v9438_v44 = vld [vmem:[#allocation272_spill] sm:$0xff] }
 0x3ef   : > { %v2475_v45 = vsel %vm2455_vm5, %v4292_v58, %v2358_v51  ;;  %vm3663_vm10 = vcmp.eq.s32.totalorder %v7335_v35, 29  ;;  %vm3662_vm11 = vcmp.eq.s32.totalorder %v7339_v1, 29  ;;  %v2478_v59 = vsel %vm2458_vm6, %v4292_v58, %v2361_v60 }
 0x3f0   : > { %v2477_v33 = vsel %vm2457_vm7, %v4292_v58, %v2360_v61  ;;  %vm2563_vm12 = vcmp.eq.s32.totalorder %v6197_v17, 1  ;;  %vm2562_vm13 = vcmp.eq.s32.totalorder %v6199_v28, 1  ;;  %v2480_v43 = vsel %vm2460_vm8, %v4292_v58, %v2363_v19 }
 0x3f1   : > { %v7570_v12 = vpop.permute.xlu1 %3244  ;;  %v7572_v32 = vpop.permute.xlu0 %3241  ;;  %v2479_v51 = vsel %vm2459_vm9, %v4292_v58, %v2362_v11  ;;  %vm2565_vm14 = vcmp.eq.s32.totalorder %v6205_v54, 1  ;;  %vm2564_vm15 = vcmp.eq.s32.totalorder %v6207_v27, 1  ;;  %vm2567_vm0 = vcmp.eq.s32.totalorder %v6224_v36, 1 }
 0x3f2   : > { %9431 = vst [vmem:[#allocation93_spill] sm:$0xff] %v7570_v12  ;;  %9432 = vst [vmem:[#allocation94_spill] sm:$0xff] %v7572_v32  ;;  %3712 = vperm.xlu1 %4384, %v3677_v26   ;;  %3709 = vperm.xlu0 %4383, %v3676_v40   ;;  %vm2566_vm1 = vcmp.eq.s32.totalorder %v6226_v37, 1  ;;  %v3679_v17 = vsel %vm3663_vm10, 1, %v9123_v0  ;;  %v3678_v28 = vsel %vm3662_vm11, 1, %v9123_v0  ;;  %v2583_v60 = vsel %vm2563_vm12, %v4293_v8, %v2466_v34  ;;  %v4452_v12 = vld [vmem:[%s4701_s26 + $0x10] sm:$0xff] }
 0x3f3   : > { %v2582_v58 = vsel %vm2562_vm13, %v4293_v8, %v2465_v3  ;;  %vm3665_vm2 = vcmp.eq.s32.totalorder %v7378_v31, 29  ;;  %vm3664_vm3 = vcmp.eq.s32.totalorder %v7382_v2, 29  ;;  %v2585_v54 = vsel %vm2565_vm14, %v4293_v8, %v2468_v14  ;;  %v9437_v3 = vld [vmem:[#allocation271_spill] sm:$0xff] }
 0x3f4   : > { %v2584_v27 = vsel %vm2564_vm15, %v4293_v8, %v2467_v7  ;;  %vm2569_vm4 = vcmp.eq.s32.totalorder %v6242_v52, 1  ;;  %vm2568_vm5 = vcmp.eq.s32.totalorder %v6244_v53, 1  ;;  %v2587_v61 = vsel %vm2567_vm0, %v4293_v8, %v2470_v29  ;;  %v7615_v29 = vld [vmem:[%s8734_s1 + $0x14] ss:$0 sm:$0xff] }
 0x3f5   : > { %v7588_v36 = vpop.permute.xlu1 %3250  ;;  %v7590_v37 = vpop.permute.xlu0 %3247  ;;  %v2586_v19 = vsel %vm2566_vm1, %v4293_v8, %v2469_v62  ;;  %vm2571_vm6 = vcmp.eq.s32.totalorder %v6265_v6, 1  ;;  %vm2570_vm7 = vcmp.eq.s32.totalorder %v6267_v15, 1  ;;  %vm2573_vm8 = vcmp.eq.s32.totalorder %v6288_v30, 1 }
 0x3f6   : > { %9433 = vst [vmem:[#allocation95_spill] sm:$0xff] %v7588_v36  ;;  %9434 = vst [vmem:[#allocation96_spill] sm:$0xff] %v7590_v37  ;;  %3718 = vperm.xlu1 %4384, %v3679_v17   ;;  %3715 = vperm.xlu0 %4383, %v3678_v28   ;;  %vm2572_vm9 = vcmp.eq.s32.totalorder %v6290_v10, 1  ;;  %v3681_v52 = vsel %vm3665_vm2, 1, %v9123_v0  ;;  %v3680_v53 = vsel %vm3664_vm3, 1, %v9123_v0  ;;  %v2589_v7 = vsel %vm2569_vm4, %v4293_v8, %v2472_v38 }
 0x3f7   : > { %v2588_v14 = vsel %vm2568_vm5, %v4293_v8, %v2471_v18  ;;  %vm3667_vm10 = vcmp.eq.s32.totalorder %v7412_v21, 29  ;;  %vm3666_vm11 = vcmp.eq.s32.totalorder %v7416_v22, 29  ;;  %v2591_v6 = vsel %vm2571_vm6, %v4293_v8, %v2474_v20  ;;  %v7973_v36 = vld [vmem:[%s8734_s1 + $0x18] ss:$0 sm:$0xff] }
 0x3f8   : > { %v2590_v15 = vsel %vm2570_vm7, %v4293_v8, %v2473_v42  ;;  %vm2575_vm12 = vcmp.eq.s32.totalorder %v6312_v50, 1  ;;  %vm2574_vm13 = vcmp.eq.s32.totalorder %v6314_v24, 1  ;;  %v2593_v11 = vsel %vm2573_vm8, %v4293_v8, %v2476_v55  ;;  %v9439_v50 = vld [vmem:[#allocation8_spill] sm:$0xff]  ;;  %v9440_v24 = vld [vmem:[#allocation9_spill] sm:$0xff]  ;;  %v9441_v42 = vld [vmem:[#allocation10_spill] sm:$0xff] }
 0x3f9   : > { %v7606_v30 = vpop.permute.xlu1 %3256  ;;  %v7608_v10 = vpop.permute.xlu0 %3253  ;;  %v2592_v34 = vsel %vm2572_vm9, %v4293_v8, %v2475_v45  ;;  %vm2577_vm14 = vcmp.eq.s32.totalorder %v9437_v3, 1  ;;  %vm2576_vm15 = vcmp.eq.s32.totalorder %v9438_v44, 1  ;;  %vm2680_vm0 = vcmp.eq.s32.totalorder %v9439_v50, 1  ;;  %v9448_v3 = vld [vmem:[#allocation17_spill] sm:$0xff] }
 0x3fa   : > { %9435 = vst [vmem:[#allocation97_spill] sm:$0xff] %v7606_v30  ;;  %9436 = vst [vmem:[#allocation98_spill] sm:$0xff] %v7608_v10  ;;  %3724 = vperm.xlu1 %4384, %v3681_v52   ;;  %3721 = vperm.xlu0 %4383, %v3680_v53   ;;  %vm2679_vm1 = vcmp.eq.s32.totalorder %v9440_v24, 1  ;;  %v3683_v62 = vsel %vm3667_vm10, 1, %v9123_v0  ;;  %v3682_v38 = vsel %vm3666_vm11, 1, %v9123_v0  ;;  %v2595_v18 = vsel %vm2575_vm12, %v4293_v8, %v2478_v59  ;;  %v9443_v59 = vld [vmem:[#allocation12_spill] sm:$0xff] }
 0x3fb   : > { %v2594_v47 = vsel %vm2574_vm13, %v4293_v8, %v2477_v33  ;;  %vm3770_vm2 = vcmp.eq.s32.totalorder %v7160_v48, 30  ;;  %vm3769_vm3 = vcmp.eq.s32.totalorder %v7164_v57, 30  ;;  %v2597_v46 = vsel %vm2577_vm14, %v4293_v8, %v2480_v43  ;;  %v9444_v33 = vld [vmem:[#allocation13_spill] sm:$0xff]  ;;  %v9445_v43 = vld [vmem:[#allocation14_spill] sm:$0xff]  ;;  %v9447_v53 = vld [vmem:[#allocation16_spill] sm:$0xff] }
 0x3fc   : > { %v2596_v20 = vsel %vm2576_vm15, %v4293_v8, %v2479_v51  ;;  %vm2682_vm4 = vcmp.eq.s32.totalorder %v9441_v42, 1  ;;  %vm2681_vm5 = vcmp.eq.s32.totalorder %v9442_v56, 1  ;;  %v2700_v55 = vsel %vm2680_vm0, %v7615_v29, %v2583_v60  ;;  %v9446_v8 = vld [vmem:[#allocation15_spill] sm:$0xff]  ;;  %v9449_v24 = vld [vmem:[#allocation18_spill] sm:$0xff] }
 0x3fd   : > { %v7629_v26 = vpop.permute.xlu1 %3262  ;;  %v7631_v40 = vpop.permute.xlu0 %3259  ;;  %v2699_v45 = vsel %vm2679_vm1, %v7615_v29, %v2582_v58  ;;  %vm2684_vm6 = vcmp.eq.s32.totalorder %v9443_v59, 1  ;;  %vm2683_vm7 = vcmp.eq.s32.totalorder %v9444_v33, 1  ;;  %vm2686_vm8 = vcmp.eq.s32.totalorder %v9445_v43, 1  ;;  %v9453_v33 = vld [vmem:[#allocation22_spill] sm:$0xff]  ;;  %v9454_v43 = vld [vmem:[#allocation23_spill] sm:$0xff] }
 0x3fe   : > { %3730 = vperm.xlu1 %4384, %v3683_v62   ;;  %3727 = vperm.xlu0 %4383, %v3682_v38   ;;  %vm2685_vm9 = vcmp.eq.s32.totalorder %v9446_v8, 1  ;;  %v3786_v51 = vsel %vm3770_vm2, 1, %v9123_v0  ;;  %v3785_v17 = vsel %vm3769_vm3, 1, %v9123_v0  ;;  %v2702_v28 = vsel %vm2682_vm4, %v7615_v29, %v2585_v54  ;;  %v9450_v62 = vld [vmem:[#allocation19_spill] sm:$0xff]  ;;  %v9477_v10 = vld [vmem:[#allocation42_spill] sm:$0xff] }
 0x3ff   : > { %v2701_v60 = vsel %vm2681_vm5, %v7615_v29, %v2584_v27  ;;  %vm3772_vm10 = vcmp.eq.s32.totalorder %v7194_v13, 30  ;;  %vm3771_vm11 = vcmp.eq.s32.totalorder %v7198_v23, 30  ;;  %v2704_v58 = vsel %vm2684_vm6, %v7615_v29, %v2587_v61  ;;  %v9451_v61 = vld [vmem:[#allocation20_spill] sm:$0xff]  ;;  %v9478_v30 = vld [vmem:[#allocation43_spill] sm:$0xff] }
 0x400   : > { %v2703_v52 = vsel %vm2683_vm7, %v7615_v29, %v2586_v19  ;;  %vm2688_vm12 = vcmp.eq.s32.totalorder %v9447_v53, 1  ;;  %vm2687_vm13 = vcmp.eq.s32.totalorder %v9448_v3, 1  ;;  %v2706_v54 = vsel %vm2686_vm8, %v7615_v29, %v2589_v7  ;;  %v9452_v19 = vld [vmem:[#allocation21_spill] sm:$0xff]  ;;  %v9455_v53 = vld [vmem:[#allocation24_spill] sm:$0xff]  ;;  %v9458_v3 = vld [vmem:[#allocation27_spill] sm:$0xff] }
 0x401   : > { %v7653_v44 = vpop.permute.xlu1 %3337  ;;  %v7655_v50 = vpop.permute.xlu0 %3334  ;;  %v2705_v27 = vsel %vm2685_vm9, %v7615_v29, %v2588_v14  ;;  %vm2690_vm14 = vcmp.eq.s32.totalorder %v9449_v24, 1  ;;  %vm2689_vm15 = vcmp.eq.s32.totalorder %v9450_v62, 1  ;;  %vm2692_vm0 = vcmp.eq.s32.totalorder %v9451_v61, 1 }
 0x402   : > { %3805 = vperm.xlu1 %4384, %v3786_v51   ;;  %3802 = vperm.xlu0 %4383, %v3785_v17   ;;  %vm2691_vm1 = vcmp.eq.s32.totalorder %v9452_v19, 1  ;;  %v3788_v38 = vsel %vm3772_vm10, 1, %v9123_v0  ;;  %v3787_v7 = vsel %vm3771_vm11, 1, %v9123_v0  ;;  %v2708_v14 = vsel %vm2688_vm12, %v7615_v29, %v2591_v6  ;;  %v4295_v17 = vld [vmem:[%s8734_s1 + $0x15] ss:$0 sm:$0xff] }
 0x403   : > { %v2707_v42 = vsel %vm2687_vm13, %v7615_v29, %v2590_v15  ;;  %vm3774_vm2 = vcmp.eq.s32.totalorder %v7228_v49, 30  ;;  %vm3773_vm3 = vcmp.eq.s32.totalorder %v7232_v9, 30  ;;  %v2710_v56 = vsel %vm2690_vm14, %v7615_v29, %v2593_v11  ;;  %v9456_v11 = vld [vmem:[#allocation25_spill] sm:$0xff] }
 0x404   : > { %v2709_v59 = vsel %vm2689_vm15, %v7615_v29, %v2592_v34  ;;  %vm2694_vm4 = vcmp.eq.s32.totalorder %v9453_v33, 1  ;;  %vm2693_vm5 = vcmp.eq.s32.totalorder %v9454_v43, 1  ;;  %v2712_v6 = vsel %vm2692_vm0, %v7615_v29, %v2595_v18  ;;  %v9457_v34 = vld [vmem:[#allocation26_spill] sm:$0xff] }
 0x405   : > { %v7677_v8 = vpop.permute.xlu1 %3343  ;;  %v7679_v51 = vpop.permute.xlu0 %3340  ;;  %v2711_v15 = vsel %vm2691_vm1, %v7615_v29, %v2594_v47  ;;  %vm2797_vm6 = vcmp.eq.s32.totalorder %v9455_v53, 1  ;;  %vm2796_vm7 = vcmp.eq.s32.totalorder %v9456_v11, 1  ;;  %vm2799_vm8 = vcmp.eq.s32.totalorder %v9457_v34, 1  ;;  %v9461_v34 = vld [vmem:[#allocation30_spill] sm:$0xff] }
 0x406   : > { %3811 = vperm.xlu1 %4384, %v3788_v38   ;;  %3808 = vperm.xlu0 %4383, %v3787_v7   ;;  %vm2798_vm9 = vcmp.eq.s32.totalorder %v9458_v3, 1  ;;  %v3790_v18 = vsel %vm3774_vm2, 1, %v9123_v0  ;;  %v3789_v47 = vsel %vm3773_vm3, 1, %v9123_v0  ;;  %v2714_v24 = vsel %vm2694_vm4, %v7615_v29, %v2597_v46  ;;  %v9459_v38 = vld [vmem:[#allocation28_spill] sm:$0xff]  ;;  %v9460_v7 = vld [vmem:[#allocation29_spill] sm:$0xff]  ;;  %v9462_v46 = vld [vmem:[#allocation31_spill] sm:$0xff] }
 0x407   : > { %v2713_v62 = vsel %vm2693_vm5, %v7615_v29, %v2596_v20  ;;  %vm3776_vm10 = vcmp.eq.s32.totalorder %v7267_v25, 30  ;;  %vm3775_vm11 = vcmp.eq.s32.totalorder %v7271_v5, 30  ;;  %v2817_v61 = vsel %vm2797_vm6, %v4295_v17, %v2700_v55  ;;  %v9463_v29 = vld [vmem:[#allocation32_spill] sm:$0xff]  ;;  %v9464_v20 = vld [vmem:[#allocation33_spill] sm:$0xff] }
 0x408   : > { %v2816_v19 = vsel %vm2796_vm7, %v4295_v17, %v2699_v45  ;;  %vm2801_vm12 = vcmp.eq.s32.totalorder %v9459_v38, 1  ;;  %vm2800_vm13 = vcmp.eq.s32.totalorder %v9460_v7, 1  ;;  %v2819_v53 = vsel %vm2799_vm8, %v4295_v17, %v2702_v28  ;;  %v9466_v38 = vld [vmem:[#allocation35_spill] sm:$0xff] }
 0x409   : > { %v7702_v33 = vpop.permute.xlu1 %3349  ;;  %v7704_v43 = vpop.permute.xlu0 %3346  ;;  %v2818_v11 = vsel %vm2798_vm9, %v4295_v17, %v2701_v60  ;;  %vm2803_vm14 = vcmp.eq.s32.totalorder %v9461_v34, 1  ;;  %vm2802_vm15 = vcmp.eq.s32.totalorder %v9462_v46, 1  ;;  %vm2805_vm0 = vcmp.eq.s32.totalorder %v9463_v29, 1 }
 0x40a   : > { %3817 = vperm.xlu1 %4384, %v3790_v18   ;;  %3814 = vperm.xlu0 %4383, %v3789_v47   ;;  %vm2804_vm1 = vcmp.eq.s32.totalorder %v9464_v20, 1  ;;  %v3792_v55 = vsel %vm3776_vm10, 1, %v9123_v0  ;;  %v3791_v45 = vsel %vm3775_vm11, 1, %v9123_v0  ;;  %v2821_v28 = vsel %vm2801_vm12, %v4295_v17, %v2704_v58  ;;  %v9465_v47 = vld [vmem:[#allocation34_spill] sm:$0xff]  ;;  %v9469_v20 = vld [vmem:[#allocation36_spill] sm:$0xff]  ;;  %v9470_v58 = vld [vmem:[#allocation37_spill] sm:$0xff] }
 0x40b   : > { %v2820_v60 = vsel %vm2800_vm13, %v4295_v17, %v2703_v52  ;;  %vm3778_vm2 = vcmp.eq.s32.totalorder %v7301_v41, 30  ;;  %vm3777_vm3 = vcmp.eq.s32.totalorder %v7305_v39, 30  ;;  %v2823_v3 = vsel %vm2803_vm14, %v4295_v17, %v2706_v54  ;;  %v9471_v52 = vld [vmem:[#allocation38_spill] sm:$0xff]  ;;  %v9472_v54 = vld [vmem:[#allocation39_spill] sm:$0xff] }
 0x40c   : > { %v2822_v18 = vsel %vm2802_vm15, %v4295_v17, %v2705_v27  ;;  %vm2807_vm4 = vcmp.eq.s32.totalorder %v9465_v47, 1  ;;  %vm2806_vm5 = vcmp.eq.s32.totalorder %v9466_v38, 1  ;;  %v2825_v46 = vsel %vm2805_vm0, %v4295_v17, %v2708_v14  ;;  %v4296_v38 = vld [vmem:[%s8734_s1 + $0x16] ss:$0 sm:$0xff] }
 0x40d   : > { %v7720_v7 = vpop.permute.xlu1 %3355  ;;  %v7722_v34 = vpop.permute.xlu0 %3352  ;;  %v2824_v29 = vsel %vm2804_vm1, %v4295_v17, %v2707_v42  ;;  %vm2809_vm6 = vcmp.eq.s32.totalorder %v9469_v20, 1  ;;  %vm2808_vm7 = vcmp.eq.s32.totalorder %v9470_v58, 1  ;;  %vm2811_vm8 = vcmp.eq.s32.totalorder %v9471_v52, 1  ;;  %v9473_v20 = vld [vmem:[#allocation40_spill] sm:$0xff]  ;;  %v9474_v58 = vld [vmem:[#allocation41_spill] sm:$0xff] }
 0x40e   : > { %9467 = vst [vmem:[#allocation99_spill] sm:$0xff] %v7720_v7  ;;  %9468 = vst [vmem:[#allocation100_spill] sm:$0xff] %v7722_v34  ;;  %3823 = vperm.xlu1 %4384, %v3792_v55   ;;  %3820 = vperm.xlu0 %4383, %v3791_v45   ;;  %vm2810_vm9 = vcmp.eq.s32.totalorder %v9472_v54, 1  ;;  %v3794_v27 = vsel %vm3778_vm2, 1, %v9123_v0  ;;  %v3793_v47 = vsel %vm3777_vm3, 1, %v9123_v0  ;;  %v2827_v14 = vsel %vm2807_vm4, %v4295_v17, %v2710_v56  ;;  %v9515_v34 = vld [vmem:[#allocation74_spill] sm:$0xff] }
 0x40f   : > { %v2826_v42 = vsel %vm2806_vm5, %v4295_v17, %v2709_v59  ;;  %vm3780_vm10 = vcmp.eq.s32.totalorder %v7335_v35, 30  ;;  %vm3779_vm11 = vcmp.eq.s32.totalorder %v7339_v1, 30  ;;  %v2829_v55 = vsel %vm2809_vm6, %v4295_v17, %v2712_v6  ;;  %v9479_v6 = vld [vmem:[#allocation44_spill] sm:$0xff]  ;;  %v9521_v7 = vld [vmem:[#allocation78_spill] sm:$0xff] }
 0x410   : > { %v2828_v45 = vsel %vm2808_vm7, %v4295_v17, %v2711_v15  ;;  %vm2914_vm12 = vcmp.eq.s32.totalorder %v9473_v20, 1  ;;  %vm2913_vm13 = vcmp.eq.s32.totalorder %v9474_v58, 1  ;;  %v2831_v56 = vsel %vm2811_vm8, %v4295_v17, %v2714_v24  ;;  %v9480_v15 = vld [vmem:[#allocation45_spill] sm:$0xff] }
 0x411   : > { %v7741_v52 = vpop.permute.xlu1 %3361  ;;  %v7743_v54 = vpop.permute.xlu0 %3358  ;;  %v2830_v59 = vsel %vm2810_vm9, %v4295_v17, %v2713_v62  ;;  %vm2916_vm14 = vcmp.eq.s32.totalorder %v9477_v10, 1  ;;  %vm2915_vm15 = vcmp.eq.s32.totalorder %v9478_v30, 1  ;;  %vm2918_vm0 = vcmp.eq.s32.totalorder %v9479_v6, 1  ;;  %v9481_v62 = vld [vmem:[#allocation46_spill] sm:$0xff] }
 0x412   : > { %9475 = vst [vmem:[#allocation101_spill] sm:$0xff] %v7741_v52  ;;  %9476 = vst [vmem:[#allocation102_spill] sm:$0xff] %v7743_v54  ;;  %3829 = vperm.xlu1 %4384, %v3794_v27   ;;  %3826 = vperm.xlu0 %4383, %v3793_v47   ;;  %vm2917_vm1 = vcmp.eq.s32.totalorder %v9480_v15, 1  ;;  %v3796_v20 = vsel %vm3780_vm10, 1, %v9123_v0  ;;  %v3795_v58 = vsel %vm3779_vm11, 1, %v9123_v0  ;;  %v2934_v24 = vsel %vm2914_vm12, %v4296_v38, %v2817_v61  ;;  %v9482_v27 = vld [vmem:[#allocation47_spill] sm:$0xff] }
 0x413   : > { %v2933_v17 = vsel %vm2913_vm13, %v4296_v38, %v2816_v19  ;;  %vm3782_vm2 = vcmp.eq.s32.totalorder %v7378_v31, 30  ;;  %vm3781_vm3 = vcmp.eq.s32.totalorder %v7382_v2, 30  ;;  %v2936_v30 = vsel %vm2916_vm14, %v4296_v38, %v2819_v53  ;;  %v9485_v61 = vld [vmem:[#allocation48_spill] sm:$0xff]  ;;  %v9486_v19 = vld [vmem:[#allocation49_spill] sm:$0xff]  ;;  %v9487_v53 = vld [vmem:[#allocation50_spill] sm:$0xff] }
 0x414   : > { %v2935_v10 = vsel %vm2915_vm15, %v4296_v38, %v2818_v11  ;;  %vm2920_vm4 = vcmp.eq.s32.totalorder %v9481_v62, 1  ;;  %vm2919_vm5 = vcmp.eq.s32.totalorder %v9482_v27, 1  ;;  %v7763_v15 = vsel %vm2918_vm0, %v4296_v38, %v2821_v28  ;;  %v9488_v11 = vld [vmem:[#allocation51_spill] sm:$0xff] }
 0x415   : > { %v7759_v47 = vpop.permute.xlu1 %3367  ;;  %v7761_v6 = vpop.permute.xlu0 %3364  ;;  %v7765_v37 = vsel %vm2917_vm1, %v4296_v38, %v2820_v60  ;;  %vm2922_vm6 = vcmp.eq.s32.totalorder %v9485_v61, 1  ;;  %vm2921_vm7 = vcmp.eq.s32.totalorder %v9486_v19, 1  ;;  %vm2924_vm8 = vcmp.eq.s32.totalorder %v9487_v53, 1  ;;  %v9489_v61 = vld [vmem:[#allocation52_spill] sm:$0xff]  ;;  %v9490_v19 = vld [vmem:[#allocation53_spill] sm:$0xff] }
 0x416   : > { %9483 = vst [vmem:[#allocation103_spill] sm:$0xff] %v7759_v47  ;;  %9484 = vst [vmem:[#allocation104_spill] sm:$0xff] %v7761_v6  ;;  %3835 = vperm.xlu1 %4384, %v3796_v20   ;;  %3832 = vperm.xlu0 %4383, %v3795_v58   ;;  %vm2923_vm9 = vcmp.eq.s32.totalorder %v9488_v11, 1  ;;  %v3798_v62 = vsel %vm3782_vm2, 1, %v9123_v0  ;;  %v3797_v28 = vsel %vm3781_vm3, 1, %v9123_v0  ;;  %v7777_v60 = vsel %vm2920_vm4, %v4296_v38, %v2823_v3  ;;  %v9493_v6 = vld [vmem:[#allocation54_spill] sm:$0xff] }
 0x417   : > { %v7779_v27 = vsel %vm2919_vm5, %v4296_v38, %v2822_v18  ;;  %vm3784_vm10 = vcmp.eq.s32.totalorder %v7412_v21, 30  ;;  %vm3783_vm11 = vcmp.eq.s32.totalorder %v7416_v22, 30  ;;  %v7783_v20 = vsel %vm2922_vm6, %v4296_v38, %v2825_v46  ;;  %v9494_v47 = vld [vmem:[#allocation55_spill] sm:$0xff] }
 0x418   : > { %v7785_v58 = vsel %vm2921_vm7, %v4296_v38, %v2824_v29  ;;  %vm2926_vm12 = vcmp.eq.s32.totalorder %v9489_v61, 1  ;;  %vm2925_vm13 = vcmp.eq.s32.totalorder %v9490_v19, 1  ;;  %v7793_v3 = vsel %vm2924_vm8, %v4296_v38, %v2827_v14 }
 0x419   : > { %v7789_v53 = vpop.permute.xlu1 %3373  ;;  %v7791_v11 = vpop.permute.xlu0 %3370  ;;  %v7795_v18 = vsel %vm2923_vm9, %v4296_v38, %v2826_v42  ;;  %vm2928_vm14 = vcmp.eq.s32.totalorder %v9493_v6, 1  ;;  %vm2927_vm15 = vcmp.eq.s32.totalorder %v9494_v47, 1  ;;  %v3800_v46 = vsel %vm3784_vm10, 1, %v9123_v0  ;;  %v7810_v42 = vld [vmem:[%s8734_s1 + $0x17] ss:$0 sm:$0xff]  ;;  %v9495_v47 = vld [vmem:[#allocation56_spill] sm:$0xff] }
 0x41a   : > { %9491 = vst [vmem:[#allocation105_spill] sm:$0xff] %v7789_v53  ;;  %9492 = vst [vmem:[#allocation106_spill] sm:$0xff] %v7791_v11  ;;  %3841 = vperm.xlu1 %4384, %v3798_v62   ;;  %3838 = vperm.xlu0 %4383, %v3797_v28   ;;  %v3799_v29 = vsel %vm3783_vm11, 1, %v9123_v0  ;;  %vm3887_vm0 = vcmp.eq.s32.totalorder %v7160_v48, 31  ;;  %vm3886_vm1 = vcmp.eq.s32.totalorder %v7164_v57, 31  ;;  %v7803_v61 = vsel %vm2926_vm12, %v4296_v38, %v2829_v55  ;;  %v9496_v6 = vld [vmem:[#allocation57_spill] sm:$0xff] }
 0x41b   : > { %v7805_v14 = vsel %vm2925_vm13, %v4296_v38, %v2828_v45  ;;  %vm3031_vm2 = vcmp.eq.s32.totalorder %v9495_v47, 1  ;;  %vm3030_vm3 = vcmp.eq.s32.totalorder %v9496_v6, 1  ;;  %v7814_v62 = vsel %vm2928_vm14, %v4296_v38, %v2831_v56  ;;  %v9497_v55 = vld [vmem:[#allocation58_spill] sm:$0xff]  ;;  %v9498_v45 = vld [vmem:[#allocation59_spill] sm:$0xff] }
 0x41c   : > { %v7816_v28 = vsel %vm2927_vm15, %v4296_v38, %v2830_v59  ;;  %vm3889_vm4 = vcmp.eq.s32.totalorder %v7194_v13, 31  ;;  %vm3888_vm5 = vcmp.eq.s32.totalorder %v7198_v23, 31  ;;  %vm3033_vm6 = vcmp.eq.s32.totalorder %v9497_v55, 1  ;;  %v9499_v23 = vld [vmem:[#allocation60_spill] sm:$0xff]  ;;  %v9501_v6 = vld [vmem:[#allocation62_spill] sm:$0xff]  ;;  %v9502_v55 = vld [vmem:[#allocation63_spill] sm:$0xff] }
 0x41d   : > { %v7818_v19 = vpop.permute.xlu1 %3379  ;;  %v7820_v11 = vpop.permute.xlu0 %3376  ;;  %vm3032_vm7 = vcmp.eq.s32.totalorder %v9498_v45, 1  ;;  %v3903_v56 = vsel %vm3887_vm0, 1, %v9123_v0  ;;  %v3902_v38 = vsel %vm3886_vm1, 1, %v9123_v0  ;;  %v7833_v59 = vsel %vm3031_vm2, %v7810_v42, %v2934_v24  ;;  %v4450_v53 = vld [vmem:[%s4701_s26] sm:$0xff] }
 0x41e   : > { %3847 = vperm.xlu1 %4384, %v3800_v46   ;;  %3844 = vperm.xlu0 %4383, %v3799_v29   ;;  %v7836_v13 = vsel %vm3030_vm3, %v7810_v42, %v2933_v17  ;;  %vm3891_vm8 = vcmp.eq.s32.totalorder %v7228_v49, 31  ;;  %vm3890_vm9 = vcmp.eq.s32.totalorder %v7232_v9, 31  ;;  %vm3035_vm10 = vcmp.eq.s32.totalorder %v9499_v23, 1  ;;  %v9500_v46 = vld [vmem:[#allocation61_spill] sm:$0xff]  ;;  %v9503_v49 = vld [vmem:[#allocation64_spill] sm:$0xff] }
 0x41f   : > { %vm3034_vm11 = vcmp.eq.s32.totalorder %v9500_v46, 1  ;;  %v3905_v48 = vsel %vm3889_vm4, 1, %v9123_v0  ;;  %v3904_v29 = vsel %vm3888_vm5, 1, %v9123_v0  ;;  %v7845_v57 = vsel %vm3033_vm6, %v7810_v42, %v2936_v30  ;;  %v9504_v9 = vld [vmem:[#allocation65_spill] sm:$0xff]  ;;  %v9505_v46 = vld [vmem:[#allocation66_spill] sm:$0xff] }
 0x420   : > { %v7848_v24 = vsel %vm3032_vm7, %v7810_v42, %v2935_v10  ;;  %vm3893_vm12 = vcmp.eq.s32.totalorder %v7267_v25, 31  ;;  %vm3892_vm13 = vcmp.eq.s32.totalorder %v7271_v5, 31  ;;  %vm3037_vm14 = vcmp.eq.s32.totalorder %v9501_v6, 1  ;;  %v9506_v6 = vld [vmem:[#allocation67_spill] sm:$0xff] }
 0x421   : > { %v7850_v17 = vpop.permute.xlu1 %3454  ;;  %v7852_v47 = vpop.permute.xlu0 %3451  ;;  %vm3036_vm15 = vcmp.eq.s32.totalorder %v9502_v55, 1  ;;  %v3907_v30 = vsel %vm3891_vm8, 1, %v9123_v0  ;;  %v3906_v10 = vsel %vm3890_vm9, 1, %v9123_v0  ;;  %v7868_v25 = vsel %vm3035_vm10, %v7810_v42, %v7763_v15 }
 0x422   : > { %3922 = vperm.xlu1 %4384, %v3903_v56   ;;  %3919 = vperm.xlu0 %4383, %v3902_v38   ;;  %v7874_v5 = vsel %vm3034_vm11, %v7810_v42, %v7765_v37  ;;  %vm3895_vm0 = vcmp.eq.s32.totalorder %v7301_v41, 31  ;;  %vm3894_vm1 = vcmp.eq.s32.totalorder %v7305_v39, 31  ;;  %vm3039_vm2 = vcmp.eq.s32.totalorder %v9503_v49, 1  ;;  %v9507_v41 = vld [vmem:[#allocation68_spill] sm:$0xff]  ;;  %v9508_v39 = vld [vmem:[#allocation69_spill] sm:$0xff] }
 0x423   : > { %vm3038_vm3 = vcmp.eq.s32.totalorder %v9504_v9, 1  ;;  %v3909_v45 = vsel %vm3893_vm12, 1, %v9123_v0  ;;  %v3908_v56 = vsel %vm3892_vm13, 1, %v9123_v0  ;;  %v7884_v15 = vsel %vm3037_vm14, %v7810_v42, %v7777_v60  ;;  %v9509_v9 = vld [vmem:[#allocation70_spill] sm:$0xff] }
 0x424   : > { %v7888_v37 = vsel %vm3036_vm15, %v7810_v42, %v7779_v27  ;;  %vm3897_vm4 = vcmp.eq.s32.totalorder %v7335_v35, 31  ;;  %vm3896_vm5 = vcmp.eq.s32.totalorder %v7339_v1, 31  ;;  %vm3041_vm6 = vcmp.eq.s32.totalorder %v9505_v46, 1  ;;  %v9510_v46 = vld [vmem:[#allocation71_spill] sm:$0xff] }
 0x425   : > { %v7890_v38 = vpop.permute.xlu1 %3460  ;;  %v7892_v23 = vpop.permute.xlu0 %3457  ;;  %vm3040_vm7 = vcmp.eq.s32.totalorder %v9506_v6, 1  ;;  %v7901_v60 = vsel %vm3895_vm0, 1, %v9123_v0  ;;  %v7906_v27 = vsel %vm3894_vm1, 1, %v9123_v0  ;;  %v7912_v35 = vsel %vm3039_vm2, %v7810_v42, %v7783_v20 }
 0x426   : > { %3928 = vperm.xlu1 %4384, %v3905_v48   ;;  %3925 = vperm.xlu0 %4383, %v3904_v29   ;;  %v7918_v1 = vsel %vm3038_vm3, %v7810_v42, %v7785_v58  ;;  %vm3899_vm8 = vcmp.eq.s32.totalorder %v7378_v31, 31  ;;  %vm3898_vm9 = vcmp.eq.s32.totalorder %v7382_v2, 31  ;;  %vm3043_vm10 = vcmp.eq.s32.totalorder %v9507_v41, 1  ;;  %v9511_v41 = vld [vmem:[#allocation72_spill] sm:$0xff] }
 0x427   : > { %vm3042_vm11 = vcmp.eq.s32.totalorder %v9508_v39, 1  ;;  %v7925_v48 = vsel %vm3897_vm4, 1, %v9123_v0  ;;  %v7928_v20 = vsel %vm3896_vm5, 1, %v9123_v0  ;;  %v7932_v29 = vsel %vm3041_vm6, %v7810_v42, %v7793_v3 }
 0x428   : > { %v7936_v58 = vsel %vm3040_vm7, %v7810_v42, %v7795_v18  ;;  %vm3901_vm12 = vcmp.eq.s32.totalorder %v7412_v21, 31  ;;  %vm3900_vm13 = vcmp.eq.s32.totalorder %v7416_v22, 31  ;;  %vm3045_vm14 = vcmp.eq.s32.totalorder %v9509_v9, 1  ;;  %v4451_v22 = vld [vmem:[%s4701_s26 + $0x18] sm:$0xff] }
 0x429   : > { %v7938_v55 = vpop.permute.xlu1 %3466  ;;  %v7940_v49 = vpop.permute.xlu0 %3463  ;;  %vm3044_vm15 = vcmp.eq.s32.totalorder %v9510_v46, 1  ;;  %v7949_v3 = vsel %vm3899_vm8, 1, %v9123_v0  ;;  %v7954_v18 = vsel %vm3898_vm9, 1, %v9123_v0  ;;  %v7960_v6 = vsel %vm3043_vm10, %v7810_v42, %v7803_v61  ;;  %v9512_v61 = vld [vmem:[#allocation73_spill] sm:$0xff]  ;;  %v4454_v46 = vld [vmem:[%s4701_s26 + $0x20] sm:$0xff] }
 0x42a   : > { %3934 = vperm.xlu1 %4384, %v3907_v30   ;;  %3931 = vperm.xlu0 %4383, %v3906_v10   ;;  %v7966_v30 = vsel %vm3042_vm11, %v7810_v42, %v7805_v14  ;;  %v4449_v10 = vld [vmem:[%s4701_s26 + $0x8] sm:$0xff]  ;;  %vm4003_vm1 = vcmp.eq.s32.totalorder %v4450_v53, 32  ;;  %vm3148_vm2 = vcmp.eq.s32.totalorder %v9511_v41, 1  ;;  %vm3147_vm3 = vcmp.eq.s32.totalorder %v9512_v61, 1 }
 0x42b   : > { %vm4004_vm0 = vcmp.eq.s32.totalorder %v4449_v10, 32  ;;  %v7980_v39 = vsel %vm3901_vm12, 1, %v9123_v0  ;;  %v7985_v14 = vsel %vm3900_vm13, 1, %v9123_v0  ;;  %v7991_v54 = vsel %vm3045_vm14, %v7810_v42, %v7814_v62  ;;  %v9516_v62 = vld [vmem:[#allocation75_spill] sm:$0xff]  ;;  %v9517_v53 = vld [vmem:[#allocation76_spill] sm:$0xff]  ;;  %v9518_v10 = vld [vmem:[#allocation77_spill] sm:$0xff] }
 0x42c   : > { %v7997_v52 = vsel %vm3044_vm15, %v7810_v42, %v7816_v28  ;;  %vm4006_vm4 = vcmp.eq.s32.totalorder %v4451_v22, 32  ;;  %vm4005_vm5 = vcmp.eq.s32.totalorder %v4452_v12, 32  ;;  %vm3150_vm6 = vcmp.eq.s32.totalorder %v9515_v34, 1  ;;  %v4455_v12 = vld [vmem:[%s4701_s26 + $0x38] sm:$0xff]  ;;  %v9522_v34 = vld [vmem:[#allocation79_spill] sm:$0xff] }
 0x42d   : > { %v7999_v21 = vpop.permute.xlu1 %3472  ;;  %v8001_v32 = vpop.permute.xlu0 %3469  ;;  %vm3149_vm7 = vcmp.eq.s32.totalorder %v9516_v62, 1  ;;  %v8009_v9 = vsel %vm4004_vm0, 1, %v9123_v0  ;;  %v8013_v42 = vsel %vm4003_vm1, 1, %v9123_v0  ;;  %v8019_v28 = vsel %vm3148_vm2, %v7973_v36, %v7833_v59 }
 0x42e   : > { %9513 = vst [vmem:[#allocation107_spill] sm:$0xff] %v7999_v21  ;;  %9514 = vst [vmem:[#allocation108_spill] sm:$0xff] %v8001_v32  ;;  %3940 = vperm.xlu1 %4384, %v3909_v45   ;;  %3937 = vperm.xlu0 %4383, %v3908_v56   ;;  %v8025_v45 = vsel %vm3147_vm3, %v7973_v36, %v7836_v13  ;;  %v4453_v56 = vld [vmem:[%s4701_s26 + $0x28] sm:$0xff]  ;;  %vm4007_vm9 = vcmp.eq.s32.totalorder %v4454_v46, 32  ;;  %vm3152_vm10 = vcmp.eq.s32.totalorder %v9517_v53, 1  ;;  %vm3151_vm11 = vcmp.eq.s32.totalorder %v9518_v10, 1 }
 0x42f   : > { %vm4008_vm8 = vcmp.eq.s32.totalorder %v4453_v56, 32  ;;  %v8033_v41 = vsel %vm4006_vm4, 1, %v9123_v0  ;;  %v8037_v59 = vsel %vm4005_vm5, 1, %v9123_v0  ;;  %v8043_v13 = vsel %vm3150_vm6, %v7973_v36, %v7845_v57  ;;  %v4456_v21 = vld [vmem:[%s4701_s26 + $0x30] sm:$0xff]  ;;  %v4458_v56 = vld [vmem:[%s4701_s26 + $0x40] sm:$0xff]  ;;  %v9524_v46 = vld [vmem:[#allocation80_spill] sm:$0xff] }
 0x430   : > { %v8049_v61 = vsel %vm3149_vm7, %v7973_v36, %v7848_v24  ;;  %vm4010_vm12 = vcmp.eq.s32.totalorder %v4455_v12, 32  ;;  %vm4009_vm13 = vcmp.eq.s32.totalorder %v4456_v21, 32  ;;  %vm3154_vm14 = vcmp.eq.s32.totalorder %v9521_v7, 1  ;;  %v4460_v21 = vld [vmem:[%s4701_s26 + $0x50] sm:$0xff] }
 0x431   : > { %v8051_v22 = vpop.permute.xlu1 %3478  ;;  %v8053_v32 = vpop.permute.xlu0 %3475  ;;  %vm3153_vm15 = vcmp.eq.s32.totalorder %v9522_v34, 1  ;;  %v8063_v57 = vsel %vm4008_vm8, 1, %v9123_v0  ;;  %v8067_v24 = vsel %vm4007_vm9, 1, %v9123_v0  ;;  %v8073_v62 = vsel %vm3152_vm10, %v7973_v36, %v7868_v25  ;;  %v9531_v34 = vld [vmem:[#allocation85_spill] sm:$0xff] }
 0x432   : > { %9519 = vst [vmem:[#allocation109_spill] sm:$0xff] %v8051_v22  ;;  %9520 = vst [vmem:[#allocation110_spill] sm:$0xff] %v8053_v32  ;;  %3946 = vperm.xlu1 %4384, %v7901_v60   ;;  %3943 = vperm.xlu0 %4383, %v7906_v27   ;;  %v8079_v60 = vsel %vm3151_vm11, %v7973_v36, %v7874_v5  ;;  %v4457_v27 = vld [vmem:[%s4701_s26 + $0x48] sm:$0xff]  ;;  %vm4011_vm1 = vcmp.eq.s32.totalorder %v4458_v56, 32  ;;  %vm3156_vm2 = vcmp.eq.s32.totalorder %v9524_v46, 1  ;;  %v9525_v32 = vld [vmem:[#allocation81_spill] sm:$0xff] }
 0x433   : > { %9523 = vst [vmem:[#allocation111_spill] sm:$0xff] %v8067_v24  ;;  %vm4012_vm0 = vcmp.eq.s32.totalorder %v4457_v27, 32  ;;  %vm3155_vm3 = vcmp.eq.s32.totalorder %v9525_v32, 1  ;;  %v8087_v53 = vsel %vm4010_vm12, 1, %v9123_v0  ;;  %v8091_v25 = vsel %vm4009_vm13, 1, %v9123_v0  ;;  %v9529_v24 = vld [vmem:[#allocation83_spill] sm:$0xff] }
 0x434   : > { %9526 = vst [vmem:[#allocation112_spill] sm:$0xff] %v8087_v53  ;;  %9527 = vst [vmem:[#allocation113_spill] sm:$0xff] %v8091_v25  ;;  %v8097_v5 = vsel %vm3154_vm14, %v7973_v36, %v7884_v15  ;;  %v8103_v10 = vsel %vm3153_vm15, %v7973_v36, %v7888_v37  ;;  %v4459_v53 = vld [vmem:[%s4701_s26 + $0x58] sm:$0xff]  ;;  %vm4013_vm5 = vcmp.eq.s32.totalorder %v4460_v21, 32  ;;  %vm3157_vm7 = vcmp.eq.s32.totalorder %v9529_v24, 1  ;;  %v9533_v56 = vld [vmem:[#allocation87_spill] sm:$0xff] }
 0x435   : > { %v8105_v22 = vpop.permute.xlu1 %3484  ;;  %v8107_v12 = vpop.permute.xlu0 %3481  ;;  %vm4014_vm4 = vcmp.eq.s32.totalorder %v4459_v53, 32  ;;  %v9528_v25 = vld [vmem:[#allocation82_spill] sm:$0xff]  ;;  %v8117_v7 = vsel %vm4012_vm0, 1, %v9123_v0  ;;  %v8121_v15 = vsel %vm4011_vm1, 1, %v9123_v0  ;;  %v8127_v37 = vsel %vm3156_vm2, %v7973_v36, %v7912_v35 }
 0x436   : > { %vm3158_vm6 = vcmp.eq.s32.totalorder %v9528_v25, 1  ;;  %3952 = vperm.xlu1 %4384, %v7925_v48   ;;  %3949 = vperm.xlu0 %4383, %v7928_v20   ;;  %v8133_v48 = vsel %vm3155_vm3, %v7973_v36, %v7918_v1  ;;  %vm4016_vm8 = vcmp.eq.s32.totalorder %v7378_v31, 32  ;;  %vm4015_vm9 = vcmp.eq.s32.totalorder %v7382_v2, 32  ;;  %v9530_v20 = vld [vmem:[#allocation84_spill] sm:$0xff]  ;;  %v9532_v1 = vld [vmem:[#allocation86_spill] sm:$0xff] }
 0x437   : > { %vm3160_vm10 = vcmp.eq.s32.totalorder %v9530_v20, 1  ;;  %vm3159_vm11 = vcmp.eq.s32.totalorder %v9531_v34, 1  ;;  %v8140_v24 = vsel %vm4014_vm4, 1, %v9123_v0  ;;  %v8143_v35 = vsel %vm4013_vm5, 1, %v9123_v0  ;;  %v8212_v21 = vld [vmem:[%s8734_s1 + $0x1b] ss:$0 sm:$0xff] }
 0x438   : > { %v8147_v27 = vsel %vm3158_vm6, %v7973_v36, %v7932_v29  ;;  %v8151_v32 = vsel %vm3157_vm7, %v7973_v36, %v7936_v58  ;;  %vm3162_vm12 = vcmp.eq.s32.totalorder %v9532_v1, 1  ;;  %vm3161_vm13 = vcmp.eq.s32.totalorder %v9533_v56, 1  ;;  %v9537_v56 = vld [vmem:[#allocation91_spill] sm:$0xff] }
 0x439   : > { %v8155_v46 = vpop.permute.xlu1 %3490  ;;  %v8157_v53 = vpop.permute.xlu0 %3487  ;;  %vm3279_vm14 = vcmp.eq.s32.totalorder %v7629_v26, 1  ;;  %vm3278_vm15 = vcmp.eq.s32.totalorder %v7631_v40, 1  ;;  %v8166_v29 = vsel %vm4016_vm8, 1, %v9123_v0  ;;  %v8171_v58 = vsel %vm4015_vm9, 1, %v9123_v0 }
 0x43a   : > { %3958 = vperm.xlu1 %4384, %v7949_v3   ;;  %3955 = vperm.xlu0 %4383, %v7954_v18   ;;  %v8177_v26 = vsel %vm3160_vm10, %v7973_v36, %v7960_v6  ;;  %v8183_v40 = vsel %vm3159_vm11, %v7973_v36, %v7966_v30  ;;  %vm3396_vm0 = vcmp.eq.s32.totalorder %v7818_v19, 1  ;;  %vm3395_vm1 = vcmp.eq.s32.totalorder %v7820_v11, 1  ;;  %v8194_v3 = vld [vmem:[%s8734_s1 + $0x19] ss:$0 sm:$0xff]  ;;  %v9534_v18 = vld [vmem:[#allocation88_spill] sm:$0xff]  ;;  %v9535_v6 = vld [vmem:[#allocation89_spill] sm:$0xff] }
 0x43b   : > { %v3182_v31 = vsel %vm3162_vm12, %v7973_v36, %v7991_v54  ;;  %v3181_v2 = vsel %vm3161_vm13, %v7973_v36, %v7997_v52  ;;  %vm3265_vm2 = vcmp.eq.s32.totalorder %v9534_v18, 1  ;;  %vm3264_vm3 = vcmp.eq.s32.totalorder %v9535_v6, 1  ;;  %v8203_v54 = vld [vmem:[%s8734_s1 + $0x1a] ss:$0 sm:$0xff] }
 0x43c   : > { %v3299_v30 = vsel %vm3279_vm14, %v8194_v3, %v3182_v31  ;;  %v3298_v19 = vsel %vm3278_vm15, %v8194_v3, %v3181_v2  ;;  %vm3382_vm4 = vcmp.eq.s32.totalorder %v7653_v44, 1  ;;  %vm3381_vm5 = vcmp.eq.s32.totalorder %v7655_v50, 1  ;;  %v8238_v31 = vld [vmem:[%s8734_s1 + $0x1c] ss:$0 sm:$0xff] }
 0x43d   : > { %v3497_v36 = vpop.permute.xlu1 %3496  ;;  %v3494_v52 = vpop.permute.xlu0 %3493  ;;  %v3416_v11 = vsel %vm3396_vm0, %v8203_v54, %v3299_v30  ;;  %v3415_v25 = vsel %vm3395_vm1, %v8203_v54, %v3298_v19  ;;  %vm3499_vm8 = vcmp.eq.s32.totalorder %v7850_v17, 1  ;;  %vm3498_vm9 = vcmp.eq.s32.totalorder %v7852_v47, 1 }
 0x43e   : > { %vm3513_vm6 = vcmp.eq.s32.totalorder %v3497_v36, 1  ;;  %vm3512_vm7 = vcmp.eq.s32.totalorder %v3494_v52, 1  ;;  %3964 = vperm.xlu1 %4384, %v7980_v39   ;;  %3961 = vperm.xlu0 %4383, %v7985_v14   ;;  %v3285_v1 = vsel %vm3265_vm2, %v8194_v3, %v8019_v28  ;;  %v3284_v39 = vsel %vm3264_vm3, %v8194_v3, %v8025_v45  ;;  %v9536_v14 = vld [vmem:[#allocation90_spill] sm:$0xff] }
 0x43f   : > { %v8219_v20 = vsel %vm3513_vm6, %v8212_v21, %v3416_v11  ;;  %v8222_v34 = vsel %vm3512_vm7, %v8212_v21, %v3415_v25  ;;  %vm3267_vm10 = vcmp.eq.s32.totalorder %v9536_v14, 1  ;;  %vm3266_vm11 = vcmp.eq.s32.totalorder %v9537_v56, 1  ;;  %v9542_v25 = vld [vmem:[#allocation107_spill] sm:$0xff]  ;;  %v9544_v56 = vld [vmem:[#allocation93_spill] sm:$0xff] }
 0x440   : > { %v3402_v2 = vsel %vm3382_vm4, %v8203_v54, %v3285_v1  ;;  %v3401_v28 = vsel %vm3381_vm5, %v8203_v54, %v3284_v39  ;;  %vm3384_vm12 = vcmp.eq.s32.totalorder %v7677_v8, 1  ;;  %vm3383_vm13 = vcmp.eq.s32.totalorder %v7679_v51, 1 }
 0x441   : > { %v3572_v45 = vpop.permute.xlu1 %3571  ;;  %v3569_v18 = vpop.permute.xlu0 %3568  ;;  %v3519_v6 = vsel %vm3499_vm8, %v8212_v21, %v3402_v2  ;;  %v3518_v30 = vsel %vm3498_vm9, %v8212_v21, %v3401_v28  ;;  %vm3501_vm0 = vcmp.eq.s32.totalorder %v7890_v38, 1  ;;  %vm3500_vm1 = vcmp.eq.s32.totalorder %v7892_v23, 1  ;;  %v9538_v38 = vld [vmem:[#allocation92_spill] sm:$0xff]  ;;  %v9545_v2 = vld [vmem:[#allocation94_spill] sm:$0xff] }
 0x442   : > { %vm3616_vm14 = vcmp.eq.s32.totalorder %v3572_v45, 1  ;;  %vm3615_vm15 = vcmp.eq.s32.totalorder %v3569_v18, 1  ;;  %4039 = vperm.xlu1 %4384, %v8009_v9   ;;  %4036 = vperm.xlu0 %4383, %v8013_v42   ;;  %v3287_v17 = vsel %vm3267_vm10, %v8194_v3, %v8043_v13  ;;  %v3286_v47 = vsel %vm3266_vm11, %v8194_v3, %v8049_v61  ;;  %v9546_v18 = vld [vmem:[#allocation101_spill] sm:$0xff] }
 0x443   : > { %v8259_v44 = vsel %vm3616_vm14, %v8238_v31, %v3519_v6  ;;  %v8262_v50 = vsel %vm3615_vm15, %v8238_v31, %v3518_v30  ;;  %vm3269_vm2 = vcmp.eq.s32.totalorder %v7531_v4, 1  ;;  %vm3268_vm3 = vcmp.eq.s32.totalorder %v9538_v38, 1  ;;  %v9540_v4 = vld [vmem:[#allocation100_spill] sm:$0xff]  ;;  %v9551_v38 = vld [vmem:[#allocation110_spill] sm:$0xff] }
 0x444   : > { %v3404_v23 = vsel %vm3384_vm12, %v8203_v54, %v3287_v17  ;;  %v3403_v9 = vsel %vm3383_vm13, %v8203_v54, %v3286_v47  ;;  %vm3386_vm4 = vcmp.eq.s32.totalorder %v7702_v33, 1  ;;  %vm3385_vm5 = vcmp.eq.s32.totalorder %v7704_v43, 1  ;;  %v9541_v33 = vld [vmem:[#allocation111_spill] sm:$0xff]  ;;  %v9543_v43 = vld [vmem:[#allocation108_spill] sm:$0xff]  ;;  %v9549_v17 = vld [vmem:[#allocation113_spill] sm:$0xff] }
 0x445   : > { %v3578_v42 = vpop.permute.xlu1 %3577  ;;  %v3575_v13 = vpop.permute.xlu0 %3574  ;;  %v3521_v61 = vsel %vm3501_vm0, %v8212_v21, %v3404_v23  ;;  %v3520_v19 = vsel %vm3500_vm1, %v8212_v21, %v3403_v9  ;;  %vm3503_vm8 = vcmp.eq.s32.totalorder %v7938_v55, 1  ;;  %vm3502_vm9 = vcmp.eq.s32.totalorder %v7940_v49, 1  ;;  %v9548_v30 = vld [vmem:[#allocation112_spill] sm:$0xff]  ;;  %v9550_v47 = vld [vmem:[#allocation109_spill] sm:$0xff] }
 0x446   : > { %vm3618_vm6 = vcmp.eq.s32.totalorder %v3578_v42, 1  ;;  %vm3617_vm7 = vcmp.eq.s32.totalorder %v3575_v13, 1  ;;  %4045 = vperm.xlu1 %4384, %v8033_v41   ;;  %4042 = vperm.xlu0 %4383, %v8037_v59   ;;  %v3289_v36 = vsel %vm3269_vm2, %v8194_v3, %v8073_v62  ;;  %v3288_v41 = vsel %vm3268_vm3, %v8194_v3, %v8079_v60  ;;  %v9539_v59 = vld [vmem:[#allocation99_spill] sm:$0xff] }
 0x447   : > { %v8289_v8 = vsel %vm3618_vm6, %v8238_v31, %v3521_v61  ;;  %v8292_v51 = vsel %vm3617_vm7, %v8238_v31, %v3520_v19  ;;  %vm3271_vm10 = vcmp.eq.s32.totalorder %v7549_v63, 1  ;;  %vm3270_vm11 = vcmp.eq.s32.totalorder %v7551_v16, 1  ;;  %v9547_v63 = vld [vmem:[#allocation102_spill] sm:$0xff]  ;;  %v9552_v61 = vld [vmem:[#allocation95_spill] sm:$0xff]  ;;  %v9553_v19 = vld [vmem:[#allocation96_spill] sm:$0xff] }
 0x448   : > { %v3406_v55 = vsel %vm3386_vm4, %v8203_v54, %v3289_v36  ;;  %v3405_v49 = vsel %vm3385_vm5, %v8203_v54, %v3288_v41  ;;  %vm3388_vm12 = vcmp.eq.s32.totalorder %v9539_v59, 1  ;;  %vm3387_vm13 = vcmp.eq.s32.totalorder %v9540_v4, 1 }
 0x449   : > { %v3584_v62 = vpop.permute.xlu1 %3583  ;;  %v3581_v52 = vpop.permute.xlu0 %3580  ;;  %v3523_v60 = vsel %vm3503_vm8, %v8212_v21, %v3406_v55  ;;  %v3522_v11 = vsel %vm3502_vm9, %v8212_v21, %v3405_v49  ;;  %vm3505_vm0 = vcmp.eq.s32.totalorder %v9542_v25, 1  ;;  %vm3504_vm1 = vcmp.eq.s32.totalorder %v9543_v43, 1  ;;  %v9554_v55 = vld [vmem:[#allocation103_spill] sm:$0xff] }
 0x44a   : > { %vm3620_vm14 = vcmp.eq.s32.totalorder %v3584_v62, 1  ;;  %vm3619_vm15 = vcmp.eq.s32.totalorder %v3581_v52, 1  ;;  %4051 = vperm.xlu1 %4384, %v8063_v57   ;;  %4048 = vperm.xlu0 %4383, %v9541_v33   ;;  %v3291_v14 = vsel %vm3271_vm10, %v8194_v3, %v8097_v5  ;;  %v3290_v57 = vsel %vm3270_vm11, %v8194_v3, %v8103_v10  ;;  %v9558_v33 = vld [vmem:[#allocation105_spill] sm:$0xff] }
 0x44b   : > { %v8319_v1 = vsel %vm3620_vm14, %v8238_v31, %v3523_v60  ;;  %v8322_v39 = vsel %vm3619_vm15, %v8238_v31, %v3522_v11  ;;  %vm3273_vm2 = vcmp.eq.s32.totalorder %v9544_v56, 1  ;;  %vm3272_vm3 = vcmp.eq.s32.totalorder %v9545_v2, 1 }
 0x44c   : > { %v3408_v28 = vsel %vm3388_vm12, %v8203_v54, %v3291_v14  ;;  %v3407_v45 = vsel %vm3387_vm13, %v8203_v54, %v3290_v57  ;;  %vm3390_vm4 = vcmp.eq.s32.totalorder %v9546_v18, 1  ;;  %vm3389_vm5 = vcmp.eq.s32.totalorder %v9547_v63, 1 }
 0x44d   : > { %v3590_v5 = vpop.permute.xlu1 %3589  ;;  %v3587_v6 = vpop.permute.xlu0 %3586  ;;  %v3525_v16 = vsel %vm3505_vm0, %v8212_v21, %v3408_v28  ;;  %v3524_v10 = vsel %vm3504_vm1, %v8212_v21, %v3407_v45  ;;  %vm3507_vm8 = vcmp.eq.s32.totalorder %v9550_v47, 1  ;;  %vm3506_vm9 = vcmp.eq.s32.totalorder %v9551_v38, 1 }
 0x44e   : > { %vm3622_vm6 = vcmp.eq.s32.totalorder %v3590_v5, 1  ;;  %vm3621_vm7 = vcmp.eq.s32.totalorder %v3587_v6, 1  ;;  %4057 = vperm.xlu1 %4384, %v9548_v30   ;;  %4054 = vperm.xlu0 %4383, %v9549_v17   ;;  %v3293_v42 = vsel %vm3273_vm2, %v8194_v3, %v8127_v37  ;;  %v3292_v13 = vsel %vm3272_vm3, %v8194_v3, %v8133_v48  ;;  %v9555_v37 = vld [vmem:[#allocation104_spill] sm:$0xff] }
 0x44f   : > { %v8349_v23 = vsel %vm3622_vm6, %v8238_v31, %v3525_v16  ;;  %v8352_v9 = vsel %vm3621_vm7, %v8238_v31, %v3524_v10  ;;  %vm3275_vm10 = vcmp.eq.s32.totalorder %v9552_v61, 1  ;;  %vm3274_vm11 = vcmp.eq.s32.totalorder %v9553_v19, 1 }
 0x450   : > { %v3410_v36 = vsel %vm3390_vm4, %v8203_v54, %v3293_v42  ;;  %v3409_v41 = vsel %vm3389_vm5, %v8203_v54, %v3292_v13  ;;  %vm3392_vm12 = vcmp.eq.s32.totalorder %v9554_v55, 1  ;;  %vm3391_vm13 = vcmp.eq.s32.totalorder %v9555_v37, 1 }
 0x451   : > { %v3596_v49 = vpop.permute.xlu1 %3595  ;;  %v3593_v59 = vpop.permute.xlu0 %3592  ;;  %v3527_v48 = vsel %vm3507_vm8, %v8212_v21, %v3410_v36  ;;  %v3526_v4 = vsel %vm3506_vm9, %v8212_v21, %v3409_v41  ;;  %vm3509_vm0 = vcmp.eq.s32.totalorder %v8105_v22, 1  ;;  %vm3508_vm1 = vcmp.eq.s32.totalorder %v8107_v12, 1  ;;  %v9557_v22 = vld [vmem:[#allocation98_spill] sm:$0xff] }
 0x452   : > { %vm3624_vm14 = vcmp.eq.s32.totalorder %v3596_v49, 1  ;;  %vm3623_vm15 = vcmp.eq.s32.totalorder %v3593_v59, 1  ;;  %4063 = vperm.xlu1 %4384, %v8117_v7   ;;  %4060 = vperm.xlu0 %4383, %v8121_v15   ;;  %v3295_v60 = vsel %vm3275_vm10, %v8194_v3, %v8147_v27  ;;  %v3294_v7 = vsel %vm3274_vm11, %v8194_v3, %v8151_v32  ;;  %v9556_v15 = vld [vmem:[#allocation97_spill] sm:$0xff]  ;;  %v9559_v27 = vld [vmem:[#allocation106_spill] sm:$0xff] }
 0x453   : > { %v8379_v62 = vsel %vm3624_vm14, %v8238_v31, %v3527_v48  ;;  %v8382_v52 = vsel %vm3623_vm15, %v8238_v31, %v3526_v4  ;;  %vm3277_vm2 = vcmp.eq.s32.totalorder %v9556_v15, 1  ;;  %vm3276_vm3 = vcmp.eq.s32.totalorder %v9557_v22, 1 }
 0x454   : > { %v3412_v12 = vsel %vm3392_vm12, %v8203_v54, %v3295_v60  ;;  %v3411_v11 = vsel %vm3391_vm13, %v8203_v54, %v3294_v7  ;;  %vm3394_vm4 = vcmp.eq.s32.totalorder %v9558_v33, 1  ;;  %vm3393_vm5 = vcmp.eq.s32.totalorder %v9559_v27, 1 }
 0x455   : > { %v3602_v25 = vpop.permute.xlu1 %3601  ;;  %v3599_v32 = vpop.permute.xlu0 %3598  ;;  %v3529_v43 = vsel %vm3509_vm0, %v8212_v21, %v3412_v12  ;;  %v3528_v14 = vsel %vm3508_vm1, %v8212_v21, %v3411_v11  ;;  %vm3511_vm8 = vcmp.eq.s32.totalorder %v8155_v46, 1  ;;  %vm3510_vm9 = vcmp.eq.s32.totalorder %v8157_v53, 1  ;;  %v4462_v46 = vld [vmem:[%s4701_s26 + $0x70] sm:$0xff] }
 0x456   : > { %vm3626_vm6 = vcmp.eq.s32.totalorder %v3602_v25, 1  ;;  %vm3625_vm7 = vcmp.eq.s32.totalorder %v3599_v32, 1  ;;  %4069 = vperm.xlu1 %4384, %v8140_v24   ;;  %4066 = vperm.xlu0 %4383, %v8143_v35   ;;  %v3297_v2 = vsel %vm3277_vm2, %v8194_v3, %v8177_v26  ;;  %v3296_v24 = vsel %vm3276_vm3, %v8194_v3, %v8183_v40  ;;  %v4461_v35 = vld [vmem:[%s4701_s26 + $0x78] sm:$0xff] }
 0x457   : > { %v8409_v57 = vsel %vm3626_vm6, %v8238_v31, %v3529_v43  ;;  %v8412_v56 = vsel %vm3625_vm7, %v8238_v31, %v3528_v14  ;;  %vm4018_vm10 = vcmp.eq.s32.totalorder %v4461_v35, 32  ;;  %vm4017_vm11 = vcmp.eq.s32.totalorder %v4462_v46, 32 }
 0x458   : > { %v3414_v53 = vsel %vm3394_vm4, %v8203_v54, %v3297_v2  ;;  %v3413_v28 = vsel %vm3393_vm5, %v8203_v54, %v3296_v24  ;;  %v4034_v5 = vsel %vm4018_vm10, 1, %v9123_v0  ;;  %v4033_v54 = vsel %vm4017_vm11, 1, %v9123_v0 }
 0x459   : > { %v3608_v45 = vpop.permute.xlu1 %3607  ;;  %v3605_v18 = vpop.permute.xlu0 %3604  ;;  %v3531_v26 = vsel %vm3511_vm8, %v8212_v21, %v3414_v53  ;;  %v3530_v63 = vsel %vm3510_vm9, %v8212_v21, %v3413_v28 }
 0x45a   : > { %vm3628_vm12 = vcmp.eq.s32.totalorder %v3608_v45, 1  ;;  %vm3627_vm13 = vcmp.eq.s32.totalorder %v3605_v18, 1  ;;  %4075 = vperm.xlu1 %4384, %v8166_v29   ;;  %4072 = vperm.xlu0 %4383, %v8171_v58   ;;  %v4303_v58 = vld [vmem:[%s8734_s1 + $0x1d] ss:$0 sm:$0xff] }
 0x45b   : > { %v3648_v40 = vsel %vm3628_vm12, %v8238_v31, %v3531_v26  ;;  %v3647_v3 = vsel %vm3627_vm13, %v8238_v31, %v3530_v63 }
 0x45d   : > { %v3614_v6 = vpop.permute.xlu1 %3613  ;;  %v3611_v16 = vpop.permute.xlu0 %3610 }
 0x45e   : > { %vm3630_vm14 = vcmp.eq.s32.totalorder %v3614_v6, 1  ;;  %vm3629_vm15 = vcmp.eq.s32.totalorder %v3611_v16, 1  ;;  %4081 = vperm.xlu1 %4384, %v4034_v5   ;;  %4078 = vperm.xlu0 %4383, %v4033_v54  }
 0x45f   : > { %v3650_v21 = vsel %vm3630_vm14, %v8238_v31, %v8219_v20  ;;  %v3649_v29 = vsel %vm3629_vm15, %v8238_v31, %v8222_v34 }
 0x461   : > { %v3689_v10 = vpop.permute.xlu1 %3688  ;;  %v3686_v30 = vpop.permute.xlu0 %3685 }
 0x462   : > { %vm3733_vm0 = vcmp.eq.s32.totalorder %v3689_v10, 1  ;;  %vm3732_vm1 = vcmp.eq.s32.totalorder %v3686_v30, 1  ;;  %v8540_v10 = vld [vmem:[%s8734_s1 + $0x1e] ss:$0 sm:$0xff]  ;;  %v8545_v30 = vld [vmem:[%s8734_s1 + $0x1f] ss:$0 sm:$0xff] }
 0x463   : > { %v8446_v0 = vsel %vm3733_vm0, %v4303_v58, %v8259_v44  ;;  %v8449_v17 = vsel %vm3732_vm1, %v4303_v58, %v8262_v50 }
 0x465   : > { %v3695_v47 = vpop.permute.xlu1 %3694  ;;  %v3692_v38 = vpop.permute.xlu0 %3691 }
 0x466   : > { %vm3735_vm2 = vcmp.eq.s32.totalorder %v3695_v47, 1  ;;  %vm3734_vm3 = vcmp.eq.s32.totalorder %v3692_v38, 1  ;;  %v8552_v47 = vld [vmem:[%s8734_s1 + $0x20] ss:$0 sm:$0xff] }
 0x467   : > { %v8452_v20 = vsel %vm3735_vm2, %v4303_v58, %v8289_v8  ;;  %v8455_v34 = vsel %vm3734_vm3, %v4303_v58, %v8292_v51 }
 0x469   : > { %v3701_v31 = vpop.permute.xlu1 %3700  ;;  %v3698_v42 = vpop.permute.xlu0 %3697 }
 0x46a   : > { %vm3737_vm4 = vcmp.eq.s32.totalorder %v3701_v31, 1  ;;  %vm3736_vm5 = vcmp.eq.s32.totalorder %v3698_v42, 1  ;;  %v243_v42 = vld [vmem:[#allocation2 + $0x8] sm:$0xff] }
 0x46b   : > { %v8458_v44 = vsel %vm3737_vm4, %v4303_v58, %v8319_v1  ;;  %v8461_v50 = vsel %vm3736_vm5, %v4303_v58, %v8322_v39 }
 0x46d   : > { %v3707_v13 = vpop.permute.xlu1 %3706  ;;  %v3704_v61 = vpop.permute.xlu0 %3703 }
 0x46e   : > { %vm3739_vm6 = vcmp.eq.s32.totalorder %v3707_v13, 1  ;;  %vm3738_vm7 = vcmp.eq.s32.totalorder %v3704_v61, 1  ;;  %v242_v61 = vld [vmem:[#allocation2] sm:$0xff] }
 0x46f   : > { %v8464_v8 = vsel %vm3739_vm6, %v4303_v58, %v8349_v23  ;;  %v8467_v51 = vsel %vm3738_vm7, %v4303_v58, %v8352_v9 }
 0x471   : > { %v3713_v19 = vpop.permute.xlu1 %3712  ;;  %v3710_v36 = vpop.permute.xlu0 %3709 }
 0x472   : > { %vm3741_vm8 = vcmp.eq.s32.totalorder %v3713_v19, 1  ;;  %vm3740_vm9 = vcmp.eq.s32.totalorder %v3710_v36, 1 }
 0x473   : > { %v8470_v1 = vsel %vm3741_vm8, %v4303_v58, %v8379_v62  ;;  %v8473_v39 = vsel %vm3740_vm9, %v4303_v58, %v8382_v52 }
 0x475   : > { %v3719_v41 = vpop.permute.xlu1 %3718  ;;  %v3716_v55 = vpop.permute.xlu0 %3715 }
 0x476   : > { %vm3743_vm10 = vcmp.eq.s32.totalorder %v3719_v41, 1  ;;  %vm3742_vm11 = vcmp.eq.s32.totalorder %v3716_v55, 1 }
 0x477   : > { %v8476_v23 = vsel %vm3743_vm10, %v4303_v58, %v8409_v57  ;;  %v8479_v9 = vsel %vm3742_vm11, %v4303_v58, %v8412_v56 }
 0x479   : > { %v3725_v37 = vpop.permute.xlu1 %3724  ;;  %v3722_v49 = vpop.permute.xlu0 %3721 }
 0x47a   : > { %vm3745_vm12 = vcmp.eq.s32.totalorder %v3725_v37, 1  ;;  %vm3744_vm13 = vcmp.eq.s32.totalorder %v3722_v49, 1 }
 0x47b   : > { %v8481_v59 = vsel %vm3745_vm12, %v4303_v58, %v3648_v40  ;;  %v8483_v48 = vsel %vm3744_vm13, %v4303_v58, %v3647_v3 }
 0x47d   : > { %v3731_v4 = vpop.permute.xlu1 %3730  ;;  %v3728_v62 = vpop.permute.xlu0 %3727 }
 0x47e   : > { %vm3747_vm14 = vcmp.eq.s32.totalorder %v3731_v4, 1  ;;  %vm3746_vm15 = vcmp.eq.s32.totalorder %v3728_v62, 1  ;;  %v245_v62 = vld [vmem:[#allocation2 + $0x18] sm:$0xff] }
 0x47f   : > { %v8485_v52 = vsel %vm3747_vm14, %v4303_v58, %v3650_v21  ;;  %v8487_v60 = vsel %vm3746_vm15, %v4303_v58, %v3649_v29 }
 0x481   : > { %v3806_v7 = vpop.permute.xlu1 %3805  ;;  %v3803_v15 = vpop.permute.xlu0 %3802 }
 0x482   : > { %vm3850_vm0 = vcmp.eq.s32.totalorder %v3806_v7, 1  ;;  %vm3849_vm1 = vcmp.eq.s32.totalorder %v3803_v15, 1  ;;  %v244_v15 = vld [vmem:[#allocation2 + $0x10] sm:$0xff] }
 0x483   : > { %v3870_v38 = vsel %vm3850_vm0, %v8540_v10, %v8446_v0  ;;  %v3869_v31 = vsel %vm3849_vm1, %v8540_v10, %v8449_v17 }
 0x485   : > { %v3812_v22 = vpop.permute.xlu1 %3811  ;;  %v3809_v12 = vpop.permute.xlu0 %3808 }
 0x486   : > { %vm3852_vm4 = vcmp.eq.s32.totalorder %v3812_v22, 1  ;;  %vm3851_vm5 = vcmp.eq.s32.totalorder %v3809_v12, 1 }
 0x487   : > { %v3872_v49 = vsel %vm3852_vm4, %v8540_v10, %v8452_v20  ;;  %v3871_v4 = vsel %vm3851_vm5, %v8540_v10, %v8455_v34 }
 0x489   : > { %v8489_v11 = vpop.permute.xlu1 %3817  ;;  %v8491_v33 = vpop.permute.xlu0 %3814 }
 0x48a   : > { %vm3854_vm10 = vcmp.eq.s32.totalorder %v8489_v11, 1  ;;  %vm3853_vm11 = vcmp.eq.s32.totalorder %v8491_v33, 1 }
 0x48d   : > { %v8493_v27 = vpop.permute.xlu1 %3823  ;;  %v8495_v25 = vpop.permute.xlu0 %3820 }
 0x48e   : > { %vm3856_vm0 = vcmp.eq.s32.totalorder %v8493_v27, 1  ;;  %vm3855_vm1 = vcmp.eq.s32.totalorder %v8495_v25, 1 }
 0x491   : > { %v8497_v32 = vpop.permute.xlu1 %3829  ;;  %v8499_v43 = vpop.permute.xlu0 %3826 }
 0x495   : > { %v8501_v14 = vpop.permute.xlu1 %3835  ;;  %v8503_v57 = vpop.permute.xlu0 %3832 }
 0x499   : > { %v8505_v56 = vpop.permute.xlu1 %3841  ;;  %v8507_v2 = vpop.permute.xlu0 %3838 }
 0x49d   : > { %v8509_v24 = vpop.permute.xlu1 %3847  ;;  %v8511_v35 = vpop.permute.xlu0 %3844 }
 0x4a1   : > { %v3923_v46 = vpop.permute.xlu1 %3922  ;;  %v3920_v53 = vpop.permute.xlu0 %3919 }
 0x4a2   : > { %vm3967_vm2 = vcmp.eq.s32.totalorder %v3923_v46, 1  ;;  %vm3966_vm3 = vcmp.eq.s32.totalorder %v3920_v53, 1 }
 0x4a3   : > { %v3987_v36 = vsel %vm3967_vm2, %v8545_v30, %v3870_v38  ;;  %v3986_v41 = vsel %vm3966_vm3, %v8545_v30, %v3869_v31  ;;  %v246_v31 = vld [vmem:[#allocation2 + $0x20] sm:$0xff] }
 0x4a5   : > { %v3929_v28 = vpop.permute.xlu1 %3928  ;;  %v3926_v45 = vpop.permute.xlu0 %3925 }
 0x4a6   : > { %vm3969_vm8 = vcmp.eq.s32.totalorder %v3929_v28, 1  ;;  %vm3968_vm9 = vcmp.eq.s32.totalorder %v3926_v45, 1  ;;  %v3874_v45 = vsel %vm3854_vm10, %v8540_v10, %v8458_v44 }
 0x4a7   : > { %v3989_v53 = vsel %vm3969_vm8, %v8545_v30, %v3872_v49  ;;  %v3988_v28 = vsel %vm3968_vm9, %v8545_v30, %v3871_v4  ;;  %v250_v4 = vld [vmem:[#allocation2 + $0x40] sm:$0xff] }
 0x4a9   : > { %v8513_v18 = vpop.permute.xlu1 %3934  ;;  %v8515_v26 = vpop.permute.xlu0 %3931 }
 0x4aa   : > { %vm3971_vm14 = vcmp.eq.s32.totalorder %v8513_v18, 1  ;;  %vm3970_vm15 = vcmp.eq.s32.totalorder %v8515_v26, 1  ;;  %v3873_v18 = vsel %vm3853_vm11, %v8540_v10, %v8461_v50  ;;  %v247_v26 = vld [vmem:[#allocation2 + $0x28] sm:$0xff] }
 0x4ad   : > { %v8517_v63 = vpop.permute.xlu1 %3940  ;;  %v8519_v40 = vpop.permute.xlu0 %3937 }
 0x4ae   : > { %vm3973_vm4 = vcmp.eq.s32.totalorder %v8517_v63, 1  ;;  %vm3972_vm5 = vcmp.eq.s32.totalorder %v8519_v40, 1  ;;  %v3875_v63 = vsel %vm3855_vm1, %v8540_v10, %v8467_v51  ;;  %v249_v40 = vld [vmem:[#allocation2 + $0x38] sm:$0xff] }
 0x4b1   : > { %v8521_v3 = vpop.permute.xlu1 %3946  ;;  %v8523_v5 = vpop.permute.xlu0 %3943 }
 0x4b2   : > { %vm3975_vm10 = vcmp.eq.s32.totalorder %v8521_v3, 1  ;;  %vm3974_vm11 = vcmp.eq.s32.totalorder %v8523_v5, 1  ;;  %v251_v5 = vld [vmem:[#allocation2 + $0x48] sm:$0xff] }
 0x4b5   : > { %v8525_v54 = vpop.permute.xlu1 %3952  ;;  %v8527_v6 = vpop.permute.xlu0 %3949 }
 0x4b6   : > { %vm3976_vm1 = vcmp.eq.s32.totalorder %v8527_v6, 1  ;;  %v253_v6 = vld [vmem:[#allocation2 + $0x58] sm:$0xff] }
 0x4b9   : > { %v8529_v16 = vpop.permute.xlu1 %3958  ;;  %v8531_v21 = vpop.permute.xlu0 %3955 }
 0x4bd   : > { %v8533_v29 = vpop.permute.xlu1 %3964  ;;  %v8535_v58 = vpop.permute.xlu0 %3961 }
 0x4c1   : > { %v4040_v13 = vpop.permute.xlu1 %4039  ;;  %v4037_v19 = vpop.permute.xlu0 %4036 }
 0x4c2   : > { %vm4084_vm6 = vcmp.eq.s32.totalorder %v4040_v13, 1  ;;  %vm4083_vm7 = vcmp.eq.s32.totalorder %v4037_v19, 1  ;;  %v3991_v13 = vsel %vm3971_vm14, %v8545_v30, %v3874_v45  ;;  %v3876_v19 = vsel %vm3856_vm0, %v8540_v10, %v8464_v8 }
 0x4c3   : > { %v4104_v55 = vsel %vm4084_vm6, %v8552_v47, %v3987_v36  ;;  %v4103_v0 = vsel %vm4083_vm7, %v8552_v47, %v3986_v41  ;;  %vm3858_vm6 = vcmp.eq.s32.totalorder %v8497_v32, 1  ;;  %vm3857_vm7 = vcmp.eq.s32.totalorder %v8499_v43, 1  ;;  %v248_v41 = vld [vmem:[#allocation2 + $0x30] sm:$0xff] }
 0x4c4   : > { %v4120_v37 = vadd.f32 %v4104_v55, %v243_v42  ;;  %v4119_v17 = vadd.f32 %v4103_v0, %v242_v61  ;;  %v3990_v61 = vsel %vm3970_vm15, %v8545_v30, %v3873_v18  ;;  %v3993_v0 = vsel %vm3973_vm4, %v8545_v30, %v3876_v19  ;;  %v254_v18 = vld [vmem:[#allocation2 + $0x60] sm:$0xff] }
 0x4c5   : > { %v4046_v7 = vpop.permute.xlu1 %4045  ;;  %v4043_v46 = vpop.permute.xlu0 %4042  ;;  %v3877_v3 = vsel %vm3857_vm7, %v8540_v10, %v8473_v39  ;;  %vm3977_vm0 = vcmp.eq.s32.totalorder %v8525_v54, 1  ;;  %vm3978_vm7 = vcmp.eq.s32.totalorder %v8531_v21, 1  ;;  %v255_v21 = vld [vmem:[#allocation2 + $0x68] sm:$0xff] }
 0x4c6   : > { %4136 = vst [vmem:[%s8572_s10 + $0x8] sm:$0xff] %v4120_v37  ;;  %4135 = vst [vmem:[%s8572_s10] sm:$0xff] %v4119_v17  ;;  %vm4086_vm12 = vcmp.eq.s32.totalorder %v4046_v7, 1  ;;  %vm4085_vm13 = vcmp.eq.s32.totalorder %v4043_v46, 1  ;;  %v3992_v37 = vsel %vm3972_vm5, %v8545_v30, %v3875_v63  ;;  %v3878_v17 = vsel %vm3858_vm6, %v8540_v10, %v8470_v1 }
 0x4c7   : > { %v4106_v20 = vsel %vm4086_vm12, %v8552_v47, %v3989_v53  ;;  %v4105_v34 = vsel %vm4085_vm13, %v8552_v47, %v3988_v28  ;;  %vm3860_vm12 = vcmp.eq.s32.totalorder %v8501_v14, 1  ;;  %vm3859_vm13 = vcmp.eq.s32.totalorder %v8503_v57, 1  ;;  %v252_v28 = vld [vmem:[#allocation2 + $0x50] sm:$0xff] }
 0x4c8   : > { %v4122_v22 = vadd.f32 %v4106_v20, %v245_v62  ;;  %v4121_v12 = vadd.f32 %v4105_v34, %v244_v15  ;;  %v3995_v7 = vsel %vm3975_vm10, %v8545_v30, %v3878_v17  ;;  %v3994_v15 = vsel %vm3974_vm11, %v8545_v30, %v3877_v3 }
 0x4c9   : > { %v4052_v38 = vpop.permute.xlu1 %4051  ;;  %v4049_v42 = vpop.permute.xlu0 %4048  ;;  %v3880_v46 = vsel %vm3860_vm12, %v8540_v10, %v8476_v23  ;;  %v3879_v54 = vsel %vm3859_vm13, %v8540_v10, %v8479_v9  ;;  %vm3979_vm6 = vcmp.eq.s32.totalorder %v8529_v16, 1  ;;  %vm3981_vm12 = vcmp.eq.s32.totalorder %v8533_v29, 1  ;;  %v257_v29 = vld [vmem:[#allocation2 + $0x78] sm:$0xff] }
 0x4ca   : > { %4138 = vst [vmem:[%s8572_s10 + $0x18] sm:$0xff] %v4122_v22  ;;  %4137 = vst [vmem:[%s8572_s10 + $0x10] sm:$0xff] %v4121_v12  ;;  %vm4088_vm2 = vcmp.eq.s32.totalorder %v4052_v38, 1  ;;  %vm4087_vm3 = vcmp.eq.s32.totalorder %v4049_v42, 1  ;;  %v3997_v34 = vsel %vm3977_vm0, %v8545_v30, %v3880_v46  ;;  %v3996_v22 = vsel %vm3976_vm1, %v8545_v30, %v3879_v54 }
 0x4cb   : > { %v4108_v44 = vsel %vm4088_vm2, %v8552_v47, %v3991_v13  ;;  %v4107_v50 = vsel %vm4087_vm3, %v8552_v47, %v3990_v61  ;;  %vm3862_vm2 = vcmp.eq.s32.totalorder %v8505_v56, 1  ;;  %vm3861_vm3 = vcmp.eq.s32.totalorder %v8507_v2, 1  ;;  %v256_v61 = vld [vmem:[#allocation2 + $0x70] sm:$0xff] }
 0x4cc   : > { %v4124_v11 = vadd.f32 %v4108_v44, %v247_v26  ;;  %v4123_v33 = vadd.f32 %v4107_v50, %v246_v31  ;;  %v3882_v12 = vsel %vm3862_vm2, %v8540_v10, %v8481_v59  ;;  %v3881_v16 = vsel %vm3861_vm3, %v8540_v10, %v8483_v48 }
 0x4cd   : > { %v4058_v36 = vpop.permute.xlu1 %4057  ;;  %v4055_v55 = vpop.permute.xlu0 %4054  ;;  %v3999_v38 = vsel %vm3979_vm6, %v8545_v30, %v3882_v12  ;;  %v3998_v31 = vsel %vm3978_vm7, %v8545_v30, %v3881_v16  ;;  %vm3980_vm13 = vcmp.eq.s32.totalorder %v8535_v58, 1 }
 0x4ce   : > { %4140 = vst [vmem:[%s8572_s10 + $0x28] sm:$0xff] %v4124_v11  ;;  %4139 = vst [vmem:[%s8572_s10 + $0x20] sm:$0xff] %v4123_v33  ;;  %vm4090_vm8 = vcmp.eq.s32.totalorder %v4058_v36, 1  ;;  %vm4089_vm9 = vcmp.eq.s32.totalorder %v4055_v55, 1 }
 0x4cf   : > { %v4110_v8 = vsel %vm4090_vm8, %v8552_v47, %v3993_v0  ;;  %v4109_v51 = vsel %vm4089_vm9, %v8552_v47, %v3992_v37  ;;  %vm3864_vm8 = vcmp.eq.s32.totalorder %v8509_v24, 1  ;;  %vm3863_vm9 = vcmp.eq.s32.totalorder %v8511_v35, 1 }
 0x4d0   : > { %v4126_v27 = vadd.f32 %v4110_v8, %v249_v40  ;;  %v4125_v25 = vadd.f32 %v4109_v51, %v248_v41  ;;  %v3884_v42 = vsel %vm3864_vm8, %v8540_v10, %v8485_v52  ;;  %v3883_v13 = vsel %vm3863_vm9, %v8540_v10, %v8487_v60 }
 0x4d1   : > { %v4064_v49 = vpop.permute.xlu1 %4063  ;;  %v4061_v62 = vpop.permute.xlu0 %4060  ;;  %v4001_v50 = vsel %vm3981_vm12, %v8545_v30, %v3884_v42  ;;  %v4000_v11 = vsel %vm3980_vm13, %v8545_v30, %v3883_v13 }
 0x4d2   : > { %4142 = vst [vmem:[%s8572_s10 + $0x38] sm:$0xff] %v4126_v27  ;;  %4141 = vst [vmem:[%s8572_s10 + $0x30] sm:$0xff] %v4125_v25  ;;  %vm4092_vm14 = vcmp.eq.s32.totalorder %v4064_v49, 1  ;;  %vm4091_vm15 = vcmp.eq.s32.totalorder %v4061_v62, 1 }
 0x4d3   : > { %v4112_v1 = vsel %vm4092_vm14, %v8552_v47, %v3995_v7  ;;  %v4111_v39 = vsel %vm4091_vm15, %v8552_v47, %v3994_v15 }
 0x4d4   : > { %v4128_v32 = vadd.f32 %v4112_v1, %v251_v5  ;;  %v4127_v43 = vadd.f32 %v4111_v39, %v250_v4 }
 0x4d5   : > { %v4070_v53 = vpop.permute.xlu1 %4069  ;;  %v4067_v20 = vpop.permute.xlu0 %4066 }
 0x4d6   : > { %4144 = vst [vmem:[%s8572_s10 + $0x48] sm:$0xff] %v4128_v32  ;;  %4143 = vst [vmem:[%s8572_s10 + $0x40] sm:$0xff] %v4127_v43  ;;  %vm4094_vm4 = vcmp.eq.s32.totalorder %v4070_v53, 1  ;;  %vm4093_vm5 = vcmp.eq.s32.totalorder %v4067_v20, 1 }
 0x4d7   : > { %v4114_v23 = vsel %vm4094_vm4, %v8552_v47, %v3997_v34  ;;  %v4113_v9 = vsel %vm4093_vm5, %v8552_v47, %v3996_v22 }
 0x4d8   : > { %v4130_v14 = vadd.f32 %v4114_v23, %v253_v6  ;;  %v4129_v57 = vadd.f32 %v4113_v9, %v252_v28 }
 0x4d9   : > { %v4076_v45 = vpop.permute.xlu1 %4075  ;;  %v4073_v26 = vpop.permute.xlu0 %4072 }
 0x4da   : > { %4146 = vst [vmem:[%s8572_s10 + $0x58] sm:$0xff] %v4130_v14  ;;  %4145 = vst [vmem:[%s8572_s10 + $0x50] sm:$0xff] %v4129_v57  ;;  %vm4096_vm10 = vcmp.eq.s32.totalorder %v4076_v45, 1  ;;  %vm4095_vm11 = vcmp.eq.s32.totalorder %v4073_v26, 1 }
 0x4db   : > { %v4116_v59 = vsel %vm4096_vm10, %v8552_v47, %v3999_v38  ;;  %v4115_v48 = vsel %vm4095_vm11, %v8552_v47, %v3998_v31 }
 0x4dc   : > { %v4132_v56 = vadd.f32 %v4116_v59, %v255_v21  ;;  %v4131_v2 = vadd.f32 %v4115_v48, %v254_v18  ;;  %4158 = sbr.rel (!%p9560_p8) target bundleno = 1276 (0x4fc), region = 40 }
 0x4dd   : > { %v4082_v58 = vpop.permute.xlu1 %4081  ;;  %v4079_v44 = vpop.permute.xlu0 %4078 }
 0x4de   : > { %4148 = vst [vmem:[%s8572_s10 + $0x68] sm:$0xff] %v4132_v56  ;;  %4147 = vst [vmem:[%s8572_s10 + $0x60] sm:$0xff] %v4131_v2  ;;  %vm4098_vm14 = vcmp.eq.s32.totalorder %v4082_v58, 1  ;;  %vm4097_vm15 = vcmp.eq.s32.totalorder %v4079_v44, 1 }
 0x4df   : > { %v4118_v52 = vsel %vm4098_vm14, %v8552_v47, %v4001_v50  ;;  %v4117_v24 = vsel %vm4097_vm15, %v8552_v47, %v4000_v11 }
 0x4e0   : > { %v4134_v35 = vadd.f32 %v4118_v52, %v257_v29  ;;  %v4133_v60 = vadd.f32 %v4117_v24, %v256_v61 }
 0x4e2   : > { %4150 = vst [vmem:[%s8572_s10 + $0x78] sm:$0xff] %v4134_v35  ;;  %4149 = vst [vmem:[%s8572_s10 + $0x70] sm:$0xff] %v4133_v60 }
 0x4e3   : > { %4164 = vsyncadd %s8688_s11, 1408  ;;  %s4312_s18 = smul.u32 640, %s4561_s15  ;;  %s4171_s19 = sshll.u32 %s8572_s10, 4  ;;  %s8695_s19 = int_to_ptr.vmem [resolvable:$true] %s4171_s19 }
 0x4e4   : > { %s4491_s23 = scalar_lea.vmem %s8695_s19, 640  ;;  %s4575_s26 = smov [#allocation5]  }
 0x4e5   : > { %s4169_s4 = scalar_lea.hbm %s8736_s3, %s4312_s18  ;;  %p4492_p10 = scmp.ne.s32.totalorder %s8695_s19, %s4491_s23 }
 0x4e6   : > { %s4493_s22 = sshll.u32 %s4575_s26, 4  ;;  %s4494_s22 = int_to_ptr.vmem [resolvable:$false] %s4493_s22 }
 0x4e7   : > { %s4495_s5 = scalar_lea.vmem %s4494_s22, 4096  ;;  %p4496_p11 = scmp.lt.s32.totalorder %s8695_s19, %s4494_s22 }
 0x4e8   : > { %p4497_p13 = scmp.lt.s32.totalorder %s4495_s5, %s4491_s23 }
 0x4ea   : > { %p4498_p1 = por %p4497_p13, %p4496_p11 }
 0x4ec   : > { %p4499_p6 = pnand %p4498_p1, %p4492_p10 }
 0x4ee   : > { %4502 = shalt.err (!%p4499_p6)
}
 0x4ef   : > { %s4503_s15 = scalar_lea.hbm %s4169_s4, 640  ;;  %s4505_s29 = scalar_lea.hbm %s8736_s3, 1280 }
 0x4f0   : > { %p4504_p7 = scmp.ne.s32.totalorder %s4169_s4, %s4503_s15  ;;  %p4506_p9 = scmp.lt.u32.totalorder %s4169_s4, %s8736_s3 }
 0x4f1   : > { %p4507_p12 = scmp.lt.u32.totalorder %s4505_s29, %s4503_s15  ;;  %p4509_p2 = scmp.lt.u32.totalorder %s4503_s15, %s4169_s4 }
 0x4f3   : > { %p4508_p0 = por %p4507_p12, %p4506_p9 }
 0x4f5   : > { %p4510_p3 = por %p4509_p2, %p4508_p0 }
 0x4f7   : > { %p4511_p5 = pnand %p4510_p3, %p4504_p7 }
 0x4f9   : > { %4514 = shalt.err (!%p4511_p5)
}
 0x4fa   : > { %s4576_s8 = smov 128   ;;  %s4577_s9 = smov 8  }
 0x4fb   : > { %4177 = dma.vmem_to_hbm [thread:$0]  %s8695_s19, 640, %s4169_s4, %s8688_s11, %s4576_s8, %s4576_s8, %s4577_s9  }
 0x4fc PF: > { %p4328_p4 = scmp.ge.s32.totalorder %s4569_s17, 2  ;;  %s4186_s10 = sand.u32 1, %s4549_s12  }
 0x4fd   : > { %p9561_p8 = scmp.ne.s32.totalorder %s8811_s24, 0  ;;  %s4187_s18 = scalar_lea.sflag [#allocation4], %s4186_s10 }
 0x4ff   : > { %p4323_p10 = pnand %p4328_p4, %p9561_p8 }
 0x501   : > { %4544 = dma.done.wait (!%p4323_p10), %s4187_s18, 2048  }
 0x502   : > { %4546 = vsyncadd (!%p4323_p10), %s4187_s18, 4294965248  ;;  %s17_s17 = sadd.s32 1, %s4569_s17   ;;  %s9562_s12 = smov %s4553_s13 }
 0x503   : > { %p14_p11 = scmp.ge.s32.totalorder %s17_s17, 4   ;;  %s9563_s13 = smov %s4557_s14 }
 0x504   : > { %s9564_s14 = smov %s4651_s25  ;;  %s9565_s15 = smov %s4565_s16 }
 0x505   : > { %s9566_s16 = smov %s9568_s20  ;;  %16 = sbr.rel (!%p14_p11) target bundleno = 5 (0x5), region = 73 }
 0x50c   :  { %4192 = vsyncpa [#allocation3], 1 }
 0x50d   :  { %4194 = vsyncpa [#allocation3 + $0x1], 1 }
 0x50e   :  { %4195 = vsyncpa [#allocation4], 1 }
 0x50f   :  { %4197 = vsyncpa [#allocation4 + $0x1], 1 }

</bundles_post_ra>
